<compile_context>
chip_gen: v7x
topology: tpu7x:2x2x1
jax: 0.10.0
libtpu: 0.0.40
codegen_flags: <defaults>
</compile_context>

<pallas_src>
import jax
import jax.numpy as jnp
from jax.experimental import pallas as pl
from jax.experimental.pallas import tpu as pltpu

EPS = 1e-5  # PyTorch BatchNorm2d default eps


def _silu(y):
    return y * jax.nn.sigmoid(y)


def _cparams():
    # Per-generation VMEM budget (~3/4 of physical, capped); safe fallback when
    # hardware info is unavailable (e.g. interpret mode on CPU).
    try:
        vmem_cap = pltpu.get_tpu_info().vmem_capacity_bytes
        vmem_limit = min((vmem_cap * 3) // 4, 100 * 1024 * 1024)
    except Exception:
        vmem_limit = 48 * 1024 * 1024
    return pltpu.CompilerParams(
        dimension_semantics=("parallel",),
        vmem_limit_bytes=int(vmem_limit),
    )


# ---------------- K2: BN1-apply + SiLU -> conv1 (3x3, one matmul) + time ----------------

def conv1_time_kernel(x_ref, sc_ref, sh_ref, w1_ref, temb_ref,
                      z_ref, zsum_ref, zsq_ref, a_scr, col_scr):
    _, H, W, Cin = x_ref.shape
    Cout = z_ref.shape[-1]
    Hp, Wp = H + 2, W + 2

    # Conv zero-padding lives in the scratch border.  Re-zero it every step
    # (4 tiny stores) so correctness does not depend on which core ran step 0.
    zrow = jnp.zeros((1, Wp, Cin), a_scr.dtype)
    zcol = jnp.zeros((Hp, 1, Cin), a_scr.dtype)
    a_scr[0:1, :, :] = zrow
    a_scr[H + 1:H + 2, :, :] = zrow
    a_scr[:, 0:1, :] = zcol
    a_scr[:, W + 1:W + 2, :] = zcol

    # BN1-apply + SiLU on the interior only (the pad frame stays exactly zero,
    # matching Conv2d's zero padding of the BN+SiLU output).
    a = _silu(x_ref[0].astype(jnp.float32) * sc_ref[...] + sh_ref[...])
    a_scr[1:H + 1, 1:W + 1, :] = a.astype(jnp.bfloat16)

    # im2col (H*W, 9*Cin): the whole 3x3 conv is ONE MXU matmul with K = 9*Cin.
    for t in range(9):
        dy, dx = t // 3, t % 3
        col_scr[:, t * Cin:(t + 1) * Cin] = (
            a_scr[dy:dy + H, dx:dx + W, :].reshape(H * W, Cin))

    z = jnp.dot(col_scr[...], w1_ref[...], preferred_element_type=jnp.float32)
    z = z + temb_ref[0]                      # SiLU(t)@We + be + b1 (precomputed)

    z_ref[0] = z.reshape(H, W, Cout).astype(z_ref.dtype)   # bf16 intermediate
    # Per-image partial sums (f32, pre-cast) for the BN2 batch statistics.
    zsum_ref[0] = jnp.sum(z, axis=0, keepdims=True)
    zsq_ref[0] = jnp.sum(z * z, axis=0, keepdims=True)


# ---- K3: BN2 + SiLU -> conv2 (3x3) + residual (1x1) in ONE matmul + fused pool ----

def conv2_res_pool_kernel(z_ref, x_ref, sc_ref, sh_ref, wcat_ref, bcr_ref,
                          wp_ref, bp_ref, x1_ref, pool_ref, a_scr, col_scr):
    _, H, W, Cout = z_ref.shape
    Cin = x_ref.shape[-1]
    Hp, Wp = H + 2, W + 2
    Hh, Wh = H // 2, W // 2
    K9 = 9 * Cout

    zrow = jnp.zeros((1, Wp, Cout), a_scr.dtype)
    zcol = jnp.zeros((Hp, 1, Cout), a_scr.dtype)
    a_scr[0:1, :, :] = zrow
    a_scr[H + 1:H + 2, :, :] = zrow
    a_scr[:, 0:1, :] = zcol
    a_scr[:, W + 1:W + 2, :] = zcol

    a = _silu(z_ref[0].astype(jnp.float32) * sc_ref[...] + sh_ref[...])
    a_scr[1:H + 1, 1:W + 1, :] = a.astype(jnp.bfloat16)

    # im2col for conv2 with the 1x1-residual input appended on the contraction
    # axis: conv2 + residual collapse into ONE matmul with K = 9*Cout + Cin.
    for t in range(9):
        dy, dx = t // 3, t % 3
        col_scr[:, t * Cout:(t + 1) * Cout] = (
            a_scr[dy:dy + H, dx:dx + W, :].reshape(H * W, Cout))
    col_scr[:, K9:K9 + Cin] = x_ref[0].reshape(H * W, Cin).astype(jnp.bfloat16)

    x1 = jnp.dot(col_scr[...], wcat_ref[...], preferred_element_type=jnp.float32)
    x1 = x1 + bcr_ref[...]                                  # b2 + br folded

    # Channel-major store: minor dim H*W is lane-dense and the wrapper gets NCHW
    # back with a free reshape (no output transpose pass).
    x1_ref[0] = x1.T

    # Fused pool = 1x1 conv, stride 2, on the in-register x1 value (no re-read
    # of the stored block, no strided ref indexing, no extra scratch).
    sub = x1.reshape(Hh, 2, W, Cout)[:, 0]                  # even rows (Hh, W, Cout)
    sub = sub.reshape(Hh, Wh, 2, Cout)[:, :, 0]             # even cols (Hh, Wh, Cout)
    p = jnp.dot(sub.reshape(Hh * Wh, Cout).astype(jnp.bfloat16), wp_ref[...],
                preferred_element_type=jnp.float32) + bp_ref[...]
    pool_ref[0] = p.T


# ----------------------------------- wrapper -----------------------------------

@jax.jit
def down_module_forward(x_nchw, time_vec, params):
    B, Cin, H, W = x_nchw.shape
    Cout = params["w1"].shape[-1]
    assert H % 2 == 0 and W % 2 == 0
    Hh, Wh = H // 2, W // 2
    Hp, Wp = H + 2, W + 2
    n_pix = B * H * W

    x = jnp.transpose(x_nchw, (0, 2, 3, 1)).astype(jnp.float32)          # NHWC

    # BN1 (training-mode) batch statistics in plain JAX: memory-bound, fuses
    # with the layout transpose; centered variance (no cancellation).
    mean1 = jnp.mean(x, axis=(0, 1, 2))
    var1 = jnp.var(x, axis=(0, 1, 2))
    scale1 = params["bn1_g"] * jax.lax.rsqrt(var1 + EPS)                 # (1, Cin)
    shift1 = params["bn1_b"] - mean1 * scale1

    # Time embedding Linear(SiLU(t)) for all images at once; fold be and the
    # conv1 bias so the kernel does a single broadcast add per image.
    temb = (_silu(time_vec.astype(jnp.float32)) @ params["we"]
            + params["be"] + params["b1"]).reshape(B, 1, Cout)

    # Flattened im2col weights, bf16 MXU operands.
    w1 = params["w1"].reshape(9 * Cin, Cout).astype(jnp.bfloat16)        # (9*Cin, Cout)
    wcat = jnp.concatenate(
        [params["w2"].reshape(9 * Cout, Cout), params["wr"]],
        axis=0).astype(jnp.bfloat16)                                     # (9*Cout+Cin, Cout)
    bcr = params["b2"] + params["br"]
    wp = params["wp"].astype(jnp.bfloat16)

    cparams = _cparams()

    # --- K2: BN1-apply + SiLU + conv1(3x3) + time embedding (+ BN2 partials) ---
    z, zsum, zsq = pl.pallas_call(
        conv1_time_kernel,
        out_shape=(jax.ShapeDtypeStruct((B, H, W, Cout), jnp.bfloat16),
                   jax.ShapeDtypeStruct((B, 1, Cout), jnp.float32),
                   jax.ShapeDtypeStruct((B, 1, Cout), jnp.float32)),
        grid=(B,),
        in_specs=[
            pl.BlockSpec((1, H, W, Cin), lambda b: (b, 0, 0, 0)),        # x
            pl.BlockSpec((1, Cin), lambda b: (0, 0)),                    # scale1
            pl.BlockSpec((1, Cin), lambda b: (0, 0)),                    # shift1
            pl.BlockSpec((9 * Cin, Cout), lambda b: (0, 0)),             # w1 (bf16)
            pl.BlockSpec((1, 1, Cout), lambda b: (b, 0, 0)),             # temb row b
        ],
        out_specs=(pl.BlockSpec((1, H, W, Cout), lambda b: (b, 0, 0, 0)),
                   pl.BlockSpec((1, 1, Cout), lambda b: (b, 0, 0)),
                   pl.BlockSpec((1, 1, Cout), lambda b: (b, 0, 0))),
        scratch_shapes=[pltpu.VMEM((Hp, Wp, Cin), jnp.bfloat16),         # padded act
                        pltpu.VMEM((H * W, 9 * Cin), jnp.bfloat16)],     # im2col
        compiler_params=cparams,
    )(x, scale1, shift1, w1, temb)

    # BN2 batch stats from per-image partial sums (f32, taken before the bf16 store).
    mean2 = jnp.sum(zsum, axis=0) / n_pix                                # (1, Cout)
    var2 = jnp.maximum(jnp.sum(zsq, axis=0) / n_pix - mean2 * mean2, 0.0)
    scale2 = params["bn2_g"] * jax.lax.rsqrt(var2 + EPS)
    shift2 = params["bn2_b"] - mean2 * scale2

    # --- K3: BN2-apply + SiLU + conv2(3x3) + residual(1x1) + fused stride-2 pool ---
    x1_cm, pool_cm = pl.pallas_call(
        conv2_res_pool_kernel,
        out_shape=(jax.ShapeDtypeStruct((B, Cout, H * W), jnp.float32),
                   jax.ShapeDtypeStruct((B, Cout, Hh * Wh), jnp.float32)),
        grid=(B,),
        in_specs=[
            pl.BlockSpec((1, H, W, Cout), lambda b: (b, 0, 0, 0)),       # z (bf16)
            pl.BlockSpec((1, H, W, Cin), lambda b: (b, 0, 0, 0)),        # x (residual)
            pl.BlockSpec((1, Cout), lambda b: (0, 0)),                   # scale2
            pl.BlockSpec((1, Cout), lambda b: (0, 0)),                   # shift2
            pl.BlockSpec((9 * Cout + Cin, Cout), lambda b: (0, 0)),      # w2|wr (bf16)
            pl.BlockSpec((1, Cout), lambda b: (0, 0)),                   # b2+br
            pl.BlockSpec((Cout, Cout), lambda b: (0, 0)),                # wp (bf16)
            pl.BlockSpec((1, Cout), lambda b: (0, 0)),                   # bp
        ],
        out_specs=(pl.BlockSpec((1, Cout, H * W), lambda b: (b, 0, 0)),
                   pl.BlockSpec((1, Cout, Hh * Wh), lambda b: (b, 0, 0))),
        scratch_shapes=[pltpu.VMEM((Hp, Wp, Cout), jnp.bfloat16),
                        pltpu.VMEM((H * W, 9 * Cout + Cin), jnp.bfloat16)],
        compiler_params=cparams,
    )(z, x, scale2, shift2, wcat, bcr, wp, params["bp"])

    # Channel-major blocks are already NCHW-ordered: only free reshapes remain.
    x1 = x1_cm.reshape(B, Cout, H, W)
    pooled = pool_cm.reshape(B, Cout, Hh, Wh)
    return pooled, x1                       # DownModule returns (pool(x1), x1)


# ------------------------------- params & reference -------------------------------

def init_params(key, cin, cout, emb):
    ks = jax.random.split(key, 10)
    std = 0.1
    p = {}
    p["bn1_g"] = jnp.ones((1, cin), jnp.float32)
    p["bn1_b"] = jnp.zeros((1, cin), jnp.float32)
    p["w1"] = jax.random.normal(ks[0], (3, 3, cin, cout), jnp.float32) * std  # (ky,kx,cin,cout)
    p["b1"] = jax.random.normal(ks[1], (1, cout), jnp.float32) * std
    p["we"] = jax.random.normal(ks[2], (emb, cout), jnp.float32) * std        # embed Linear
    p["be"] = jax.random.normal(ks[3], (1, cout), jnp.float32) * std
    p["bn2_g"] = jnp.ones((1, cout), jnp.float32)
    p["bn2_b"] = jnp.zeros((1, cout), jnp.float32)
    p["w2"] = jax.random.normal(ks[4], (3, 3, cout, cout), jnp.float32) * std
    p["b2"] = jax.random.normal(ks[5], (1, cout), jnp.float32) * std
    p["wr"] = jax.random.normal(ks[6], (cin, cout), jnp.float32) * std        # 1x1 residual conv
    p["br"] = jax.random.normal(ks[7], (1, cout), jnp.float32) * std
    p["wp"] = jax.random.normal(ks[8], (cout, cout), jnp.float32) * std       # 1x1 stride-2 pool conv
    p["bp"] = jax.random.normal(ks[9], (1, cout), jnp.float32) * std
    return p


def _ref_forward(x_nchw, time_vec, params):
    # Pure-JAX f32 reference of the PyTorch DownModule forward (training-mode BN).
    x = jnp.transpose(x_nchw, (0, 2, 3, 1)).astype(jnp.float32)
    m1 = jnp.mean(x, axis=(0, 1, 2)); v1 = jnp.var(x, axis=(0, 1, 2))
    a = (x - m1) * jax.lax.rsqrt(v1 + EPS) * params["bn1_g"][0] + params["bn1_b"][0]
    a = a * jax.nn.sigmoid(a)
    z = jax.lax.conv_general_dilated(
        a, params["w1"], (1, 1), "SAME",
        dimension_numbers=("NHWC", "HWIO", "NHWC")) + params["b1"][0]
    t = time_vec.astype(jnp.float32)
    t = t * jax.nn.sigmoid(t)
    t = t @ params["we"] + params["be"]
    z = z + t[:, None, None, :]
    m2 = jnp.mean(z, axis=(0, 1, 2)); v2 = jnp.var(z, axis=(0, 1, 2))
    a2 = (z - m2) * jax.lax.rsqrt(v2 + EPS) * params["bn2_g"][0] + params["bn2_b"][0]
    a2 = a2 * jax.nn.sigmoid(a2)
    x1 = jax.lax.conv_general_dilated(
        a2, params["w2"], (1, 1), "SAME",
        dimension_numbers=("NHWC", "HWIO", "NHWC")) + params["b2"][0]
    x1 = x1 + x @ params["wr"] + params["br"][0]
    pooled = x1[:, ::2, ::2, :] @ params["wp"] + params["bp"][0]
    return jnp.transpose(pooled, (0, 3, 1, 2)), jnp.transpose(x1, (0, 3, 1, 2))


if __name__ == "__main__":
    key = jax.random.PRNGKey(0)
    kx, kt, kp = jax.random.split(key, 3)
    B, Cin, Cout, H, W, EMB = 2, 4, 8, 16, 16, 32

    x = jax.random.normal(kx, (B, Cin, H, W), jnp.float32)
    time_vec = jax.random.normal(kt, (B, EMB), jnp.float32)
    params = init_params(kp, Cin, Cout, EMB)

    out, x1 = down_module_forward(x, time_vec, params)
    jax.block_until_ready((out, x1))

    assert out.shape == (B, Cout, H // 2, W // 2), out.shape
    assert x1.shape == (B, Cout, H, W), x1.shape

    # Loose-tolerance check vs the f32 reference (bf16 MXU operands + bf16 z
    # intermediate give ~1e-2-level deviations by design).
    ref_out, ref_x1 = _ref_forward(x, time_vec, params)
    assert float(jnp.max(jnp.abs(out - ref_out))) < 0.2
    assert float(jnp.max(jnp.abs(x1 - ref_x1))) < 0.2

    print("KERNEL_OK")
</pallas_src>

<mosaic_0001>
module attributes {stable_mosaic.version = 11 : i64} {
  func.func @conv1_time_kernel(%arg0: i32, %arg1: memref<1x16x16x4xf32, #tpu.memory_space<vmem>>, %arg2: memref<1x4xf32, #tpu.memory_space<vmem>>, %arg3: memref<1x4xf32, #tpu.memory_space<vmem>>, %arg4: memref<36x8xbf16, #tpu.memory_space<vmem>>, %arg5: memref<1x1x8xf32, #tpu.memory_space<vmem>>, %arg6: memref<1x16x16x8xbf16, #tpu.memory_space<vmem>>, %arg7: memref<1x1x8xf32, #tpu.memory_space<vmem>>, %arg8: memref<1x1x8xf32, #tpu.memory_space<vmem>>, %arg9: memref<18x18x4xbf16, #tpu.memory_space<vmem>>, %arg10: memref<256x36xbf16, #tpu.memory_space<vmem>>) attributes {dimension_semantics = [#tpu.dimension_semantics<parallel>], iteration_bounds = array<i64: 2>, scalar_prefetch = 0 : i64, scratch_operands = 2 : i64, tpu.core_type = #tpu.core_type<tc>, window_params = [{transform_indices = @transform_0, window_bounds = array<i64: 1, 16, 16, 4>}, {pipeline_mode = #tpu.pipeline_mode<synchronous>, transform_indices = @transform_1, window_bounds = array<i64: 1, 4>}, {pipeline_mode = #tpu.pipeline_mode<synchronous>, transform_indices = @transform_2, window_bounds = array<i64: 1, 4>}, {pipeline_mode = #tpu.pipeline_mode<synchronous>, transform_indices = @transform_3, window_bounds = array<i64: 36, 8>}, {transform_indices = @transform_4, window_bounds = array<i64: 1, 1, 8>}, {transform_indices = @transform_5, window_bounds = array<i64: 1, 16, 16, 8>}, {transform_indices = @transform_6, window_bounds = array<i64: 1, 1, 8>}, {transform_indices = @transform_7, window_bounds = array<i64: 1, 1, 8>}]} {
    %cst = arith.constant 0.000000e+00 : bf16
    %0 = vector.broadcast %cst : bf16 to vector<1x18x4xbf16>
    %cst_0 = arith.constant 0.000000e+00 : bf16
    %1 = vector.broadcast %cst_0 : bf16 to vector<18x1x4xbf16>
    %c0 = arith.constant 0 : index
    %c0_1 = arith.constant 0 : index
    %c0_2 = arith.constant 0 : index
    %2 = vector.load %arg9[%c0, %c0_1, %c0_2] : memref<18x18x4xbf16, #tpu.memory_space<vmem>>, vector<1x18x4xbf16>
    tpu.vector_store %arg9[%c0, %c0_1, %c0_2], %0 {strides = array<i32>} : memref<18x18x4xbf16, #tpu.memory_space<vmem>>, vector<1x18x4xbf16>,
    %c17 = arith.constant 17 : index
    %c0_3 = arith.constant 0 : index
    %c0_4 = arith.constant 0 : index
    %3 = vector.load %arg9[%c17, %c0_3, %c0_4] : memref<18x18x4xbf16, #tpu.memory_space<vmem>>, vector<1x18x4xbf16>
    tpu.vector_store %arg9[%c17, %c0_3, %c0_4], %0 {strides = array<i32>} : memref<18x18x4xbf16, #tpu.memory_space<vmem>>, vector<1x18x4xbf16>,
    %c0_5 = arith.constant 0 : index
    %c0_6 = arith.constant 0 : index
    %c0_7 = arith.constant 0 : index
    %4 = vector.load %arg9[%c0_5, %c0_6, %c0_7] : memref<18x18x4xbf16, #tpu.memory_space<vmem>>, vector<18x1x4xbf16>
    tpu.vector_store %arg9[%c0_5, %c0_6, %c0_7], %1 {strides = array<i32>} : memref<18x18x4xbf16, #tpu.memory_space<vmem>>, vector<18x1x4xbf16>,
    %c0_8 = arith.constant 0 : index
    %c17_9 = arith.constant 17 : index
    %c0_10 = arith.constant 0 : index
    %5 = vector.load %arg9[%c0_8, %c17_9, %c0_10] : memref<18x18x4xbf16, #tpu.memory_space<vmem>>, vector<18x1x4xbf16>
    tpu.vector_store %arg9[%c0_8, %c17_9, %c0_10], %1 {strides = array<i32>} : memref<18x18x4xbf16, #tpu.memory_space<vmem>>, vector<18x1x4xbf16>,
    %c0_11 = arith.constant 0 : index
    %c0_12 = arith.constant 0 : index
    %c0_13 = arith.constant 0 : index
    %c0_14 = arith.constant 0 : index
    %6 = vector.load %arg1[%c0_11, %c0_12, %c0_13, %c0_14] : memref<1x16x16x4xf32, #tpu.memory_space<vmem>>, vector<1x16x16x4xf32>
    %7 = vector.shape_cast %6 : vector<1x16x16x4xf32> to vector<16x16x4xf32>
    %c0_15 = arith.constant 0 : index
    %c0_16 = arith.constant 0 : index
    %8 = vector.load %arg2[%c0_15, %c0_16] : memref<1x4xf32, #tpu.memory_space<vmem>>, vector<1x4xf32>
    %9 = vector.shape_cast %8 : vector<1x4xf32> to vector<1x1x4xf32>
    %10 = vector.broadcast %9 : vector<1x1x4xf32> to vector<16x16x4xf32>
    %11 = arith.mulf %7, %10 : vector<16x16x4xf32>
    %c0_17 = arith.constant 0 : index
    %c0_18 = arith.constant 0 : index
    %12 = vector.load %arg3[%c0_17, %c0_18] : memref<1x4xf32, #tpu.memory_space<vmem>>, vector<1x4xf32>
    %13 = vector.shape_cast %12 : vector<1x4xf32> to vector<1x1x4xf32>
    %14 = vector.broadcast %13 : vector<1x1x4xf32> to vector<16x16x4xf32>
    %15 = arith.addf %11, %14 : vector<16x16x4xf32>
    %16 = arith.negf %15 : vector<16x16x4xf32>
    %17 = math.exp %16 : vector<16x16x4xf32>
    %cst_19 = arith.constant 1.000000e+00 : f32
    %18 = vector.broadcast %cst_19 : f32 to vector<16x16x4xf32>
    %19 = arith.addf %18, %17 : vector<16x16x4xf32>
    %20 = arith.divf %18, %19 : vector<16x16x4xf32>
    %21 = arith.mulf %15, %20 : vector<16x16x4xf32>
    %22 = arith.truncf %21 : vector<16x16x4xf32> to vector<16x16x4xbf16>
    %c1 = arith.constant 1 : index
    %c1_20 = arith.constant 1 : index
    %c0_21 = arith.constant 0 : index
    %23 = vector.load %arg9[%c1, %c1_20, %c0_21] : memref<18x18x4xbf16, #tpu.memory_space<vmem>>, vector<16x16x4xbf16>
    tpu.vector_store %arg9[%c1, %c1_20, %c0_21], %22 {strides = array<i32>} : memref<18x18x4xbf16, #tpu.memory_space<vmem>>, vector<16x16x4xbf16>,
    %c0_22 = arith.constant 0 : index
    %c0_23 = arith.constant 0 : index
    %c0_24 = arith.constant 0 : index
    %24 = vector.load %arg9[%c0_22, %c0_23, %c0_24] : memref<18x18x4xbf16, #tpu.memory_space<vmem>>, vector<16x16x4xbf16>
    %25 = vector.shape_cast %24 : vector<16x16x4xbf16> to vector<256x4xbf16>
    %c0_25 = arith.constant 0 : index
    %c0_26 = arith.constant 0 : index
    %26 = vector.load %arg10[%c0_25, %c0_26] : memref<256x36xbf16, #tpu.memory_space<vmem>>, vector<256x4xbf16>
    tpu.vector_store %arg10[%c0_25, %c0_26], %25 {strides = array<i32>} : memref<256x36xbf16, #tpu.memory_space<vmem>>, vector<256x4xbf16>,
    %c0_27 = arith.constant 0 : index
    %c1_28 = arith.constant 1 : index
    %c0_29 = arith.constant 0 : index
    %27 = vector.load %arg9[%c0_27, %c1_28, %c0_29] : memref<18x18x4xbf16, #tpu.memory_space<vmem>>, vector<16x16x4xbf16>
    %28 = vector.shape_cast %27 : vector<16x16x4xbf16> to vector<256x4xbf16>
    %c0_30 = arith.constant 0 : index
    %c4 = arith.constant 4 : index
    %29 = vector.load %arg10[%c0_30, %c4] : memref<256x36xbf16, #tpu.memory_space<vmem>>, vector<256x4xbf16>
    tpu.vector_store %arg10[%c0_30, %c4], %28 {strides = array<i32>} : memref<256x36xbf16, #tpu.memory_space<vmem>>, vector<256x4xbf16>,
    %c0_31 = arith.constant 0 : index
    %c2 = arith.constant 2 : index
    %c0_32 = arith.constant 0 : index
    %30 = vector.load %arg9[%c0_31, %c2, %c0_32] : memref<18x18x4xbf16, #tpu.memory_space<vmem>>, vector<16x16x4xbf16>
    %31 = vector.shape_cast %30 : vector<16x16x4xbf16> to vector<256x4xbf16>
    %c0_33 = arith.constant 0 : index
    %c8 = arith.constant 8 : index
    %32 = vector.load %arg10[%c0_33, %c8] : memref<256x36xbf16, #tpu.memory_space<vmem>>, vector<256x4xbf16>
    tpu.vector_store %arg10[%c0_33, %c8], %31 {strides = array<i32>} : memref<256x36xbf16, #tpu.memory_space<vmem>>, vector<256x4xbf16>,
    %c1_34 = arith.constant 1 : index
    %c0_35 = arith.constant 0 : index
    %c0_36 = arith.constant 0 : index
    %33 = vector.load %arg9[%c1_34, %c0_35, %c0_36] : memref<18x18x4xbf16, #tpu.memory_space<vmem>>, vector<16x16x4xbf16>
    %34 = vector.shape_cast %33 : vector<16x16x4xbf16> to vector<256x4xbf16>
    %c0_37 = arith.constant 0 : index
    %c12 = arith.constant 12 : index
    %35 = vector.load %arg10[%c0_37, %c12] : memref<256x36xbf16, #tpu.memory_space<vmem>>, vector<256x4xbf16>
    tpu.vector_store %arg10[%c0_37, %c12], %34 {strides = array<i32>} : memref<256x36xbf16, #tpu.memory_space<vmem>>, vector<256x4xbf16>,
    %c1_38 = arith.constant 1 : index
    %c1_39 = arith.constant 1 : index
    %c0_40 = arith.constant 0 : index
    %36 = vector.load %arg9[%c1_38, %c1_39, %c0_40] : memref<18x18x4xbf16, #tpu.memory_space<vmem>>, vector<16x16x4xbf16>
    %37 = vector.shape_cast %36 : vector<16x16x4xbf16> to vector<256x4xbf16>
    %c0_41 = arith.constant 0 : index
    %c16 = arith.constant 16 : index
    %38 = vector.load %arg10[%c0_41, %c16] : memref<256x36xbf16, #tpu.memory_space<vmem>>, vector<256x4xbf16>
    tpu.vector_store %arg10[%c0_41, %c16], %37 {strides = array<i32>} : memref<256x36xbf16, #tpu.memory_space<vmem>>, vector<256x4xbf16>,
    %c1_42 = arith.constant 1 : index
    %c2_43 = arith.constant 2 : index
    %c0_44 = arith.constant 0 : index
    %39 = vector.load %arg9[%c1_42, %c2_43, %c0_44] : memref<18x18x4xbf16, #tpu.memory_space<vmem>>, vector<16x16x4xbf16>
    %40 = vector.shape_cast %39 : vector<16x16x4xbf16> to vector<256x4xbf16>
    %c0_45 = arith.constant 0 : index
    %c20 = arith.constant 20 : index
    %41 = vector.load %arg10[%c0_45, %c20] : memref<256x36xbf16, #tpu.memory_space<vmem>>, vector<256x4xbf16>
    tpu.vector_store %arg10[%c0_45, %c20], %40 {strides = array<i32>} : memref<256x36xbf16, #tpu.memory_space<vmem>>, vector<256x4xbf16>,
    %c2_46 = arith.constant 2 : index
    %c0_47 = arith.constant 0 : index
    %c0_48 = arith.constant 0 : index
    %42 = vector.load %arg9[%c2_46, %c0_47, %c0_48] : memref<18x18x4xbf16, #tpu.memory_space<vmem>>, vector<16x16x4xbf16>
    %43 = vector.shape_cast %42 : vector<16x16x4xbf16> to vector<256x4xbf16>
    %c0_49 = arith.constant 0 : index
    %c24 = arith.constant 24 : index
    %44 = vector.load %arg10[%c0_49, %c24] : memref<256x36xbf16, #tpu.memory_space<vmem>>, vector<256x4xbf16>
    tpu.vector_store %arg10[%c0_49, %c24], %43 {strides = array<i32>} : memref<256x36xbf16, #tpu.memory_space<vmem>>, vector<256x4xbf16>,
    %c2_50 = arith.constant 2 : index
    %c1_51 = arith.constant 1 : index
    %c0_52 = arith.constant 0 : index
    %45 = vector.load %arg9[%c2_50, %c1_51, %c0_52] : memref<18x18x4xbf16, #tpu.memory_space<vmem>>, vector<16x16x4xbf16>
    %46 = vector.shape_cast %45 : vector<16x16x4xbf16> to vector<256x4xbf16>
    %c0_53 = arith.constant 0 : index
    %c28 = arith.constant 28 : index
    %47 = vector.load %arg10[%c0_53, %c28] : memref<256x36xbf16, #tpu.memory_space<vmem>>, vector<256x4xbf16>
    tpu.vector_store %arg10[%c0_53, %c28], %46 {strides = array<i32>} : memref<256x36xbf16, #tpu.memory_space<vmem>>, vector<256x4xbf16>,
    %c2_54 = arith.constant 2 : index
    %c2_55 = arith.constant 2 : index
    %c0_56 = arith.constant 0 : index
    %48 = vector.load %arg9[%c2_54, %c2_55, %c0_56] : memref<18x18x4xbf16, #tpu.memory_space<vmem>>, vector<16x16x4xbf16>
    %49 = vector.shape_cast %48 : vector<16x16x4xbf16> to vector<256x4xbf16>
    %c0_57 = arith.constant 0 : index
    %c32 = arith.constant 32 : index
    %50 = vector.load %arg10[%c0_57, %c32] : memref<256x36xbf16, #tpu.memory_space<vmem>>, vector<256x4xbf16>
    tpu.vector_store %arg10[%c0_57, %c32], %49 {strides = array<i32>} : memref<256x36xbf16, #tpu.memory_space<vmem>>, vector<256x4xbf16>,
    %c0_58 = arith.constant 0 : index
    %c0_59 = arith.constant 0 : index
    %51 = vector.load %arg10[%c0_58, %c0_59] : memref<256x36xbf16, #tpu.memory_space<vmem>>, vector<256x36xbf16>
    %c0_60 = arith.constant 0 : index
    %c0_61 = arith.constant 0 : index
    %52 = vector.load %arg4[%c0_60, %c0_61] : memref<36x8xbf16, #tpu.memory_space<vmem>>, vector<36x8xbf16>
    %cst_62 = arith.constant dense<0.000000e+00> : vector<256x8xf32>
    %53 = tpu.matmul %51, %52, %cst_62 {dimension_numbers = #tpu.dot_dimension_numbers<[1], [0], [0], [1], [0, 0, 1, 1], [], []>} : vector<256x36xbf16>, vector<36x8xbf16>, vector<256x8xf32> -> vector<256x8xf32>
    %c0_63 = arith.constant 0 : index
    %c0_64 = arith.constant 0 : index
    %c0_65 = arith.constant 0 : index
    %54 = vector.load %arg5[%c0_63, %c0_64, %c0_65] : memref<1x1x8xf32, #tpu.memory_space<vmem>>, vector<1x1x8xf32>
    %55 = vector.shape_cast %54 : vector<1x1x8xf32> to vector<1x8xf32>
    %56 = vector.broadcast %55 : vector<1x8xf32> to vector<256x8xf32>
    %57 = arith.addf %53, %56 : vector<256x8xf32>
    %58 = vector.shape_cast %57 : vector<256x8xf32> to vector<16x16x8xf32>
    %59 = arith.truncf %58 : vector<16x16x8xf32> to vector<16x16x8xbf16>
    %c0_66 = arith.constant 0 : index
    %c0_67 = arith.constant 0 : index
    %c0_68 = arith.constant 0 : index
    %c0_69 = arith.constant 0 : index
    %60 = vector.load %arg6[%c0_66, %c0_67, %c0_68, %c0_69] : memref<1x16x16x8xbf16, #tpu.memory_space<vmem>>, vector<1x16x16x8xbf16>
    %61 = vector.shape_cast %60 : vector<1x16x16x8xbf16> to vector<16x16x8xbf16>
    %62 = vector.shape_cast %59 : vector<16x16x8xbf16> to vector<1x16x16x8xbf16>
    tpu.vector_store %arg6[%c0_66, %c0_67, %c0_68, %c0_69], %62 {strides = array<i32>} : memref<1x16x16x8xbf16, #tpu.memory_space<vmem>>, vector<1x16x16x8xbf16>,
    %cst_70 = arith.constant dense<0.000000e+00> : vector<8xf32>
    %63 = vector.multi_reduction <add>, %57, %cst_70 [0] : vector<256x8xf32> to vector<8xf32>
    %64 = vector.shape_cast %63 : vector<8xf32> to vector<1x8xf32>
    %c0_71 = arith.constant 0 : index
    %c0_72 = arith.constant 0 : index
    %c0_73 = arith.constant 0 : index
    %65 = vector.load %arg7[%c0_71, %c0_72, %c0_73] : memref<1x1x8xf32, #tpu.memory_space<vmem>>, vector<1x1x8xf32>
    %66 = vector.shape_cast %65 : vector<1x1x8xf32> to vector<1x8xf32>
    %67 = vector.shape_cast %64 : vector<1x8xf32> to vector<1x1x8xf32>
    tpu.vector_store %arg7[%c0_71, %c0_72, %c0_73], %67 {strides = array<i32>} : memref<1x1x8xf32, #tpu.memory_space<vmem>>, vector<1x1x8xf32>,
    %68 = arith.mulf %57, %57 : vector<256x8xf32>
    %cst_74 = arith.constant dense<0.000000e+00> : vector<8xf32>
    %69 = vector.multi_reduction <add>, %68, %cst_74 [0] : vector<256x8xf32> to vector<8xf32>
    %70 = vector.shape_cast %69 : vector<8xf32> to vector<1x8xf32>
    %c0_75 = arith.constant 0 : index
    %c0_76 = arith.constant 0 : index
    %c0_77 = arith.constant 0 : index
    %71 = vector.load %arg8[%c0_75, %c0_76, %c0_77] : memref<1x1x8xf32, #tpu.memory_space<vmem>>, vector<1x1x8xf32>
    %72 = vector.shape_cast %71 : vector<1x1x8xf32> to vector<1x8xf32>
    %73 = vector.shape_cast %70 : vector<1x8xf32> to vector<1x1x8xf32>
    tpu.vector_store %arg8[%c0_75, %c0_76, %c0_77], %73 {strides = array<i32>} : memref<1x1x8xf32, #tpu.memory_space<vmem>>, vector<1x1x8xf32>,
    return
  }
  func.func @transform_0(%arg0: i32) -> (i32, i32, i32, i32) {
    %c0_i32 = arith.constant 0 : i32
    %c0_i32_0 = arith.constant 0 : i32
    %c0_i32_1 = arith.constant 0 : i32
    %c0_i32_2 = arith.constant 0 : i32
    return %arg0, %c0_i32, %c0_i32_0, %c0_i32_1 : i32, i32, i32, i32
  }
  func.func @transform_1(%arg0: i32) -> (i32, i32) {
    %c0_i32 = arith.constant 0 : i32
    %c0_i32_0 = arith.constant 0 : i32
    %c0_i32_1 = arith.constant 0 : i32
    return %c0_i32, %c0_i32_0 : i32, i32
  }
  func.func @transform_2(%arg0: i32) -> (i32, i32) {
    %c0_i32 = arith.constant 0 : i32
    %c0_i32_0 = arith.constant 0 : i32
    %c0_i32_1 = arith.constant 0 : i32
    return %c0_i32, %c0_i32_0 : i32, i32
  }
  func.func @transform_3(%arg0: i32) -> (i32, i32) {
    %c0_i32 = arith.constant 0 : i32
    %c0_i32_0 = arith.constant 0 : i32
    %c0_i32_1 = arith.constant 0 : i32
    return %c0_i32, %c0_i32_0 : i32, i32
  }
  func.func @transform_4(%arg0: i32) -> (i32, i32, i32) {
    %c0_i32 = arith.constant 0 : i32
    %c0_i32_0 = arith.constant 0 : i32
    %c0_i32_1 = arith.constant 0 : i32
    return %arg0, %c0_i32, %c0_i32_0 : i32, i32, i32
  }
  func.func @transform_5(%arg0: i32) -> (i32, i32, i32, i32) {
    %c0_i32 = arith.constant 0 : i32
    %c0_i32_0 = arith.constant 0 : i32
    %c0_i32_1 = arith.constant 0 : i32
    %c0_i32_2 = arith.constant 0 : i32
    return %arg0, %c0_i32, %c0_i32_0, %c0_i32_1 : i32, i32, i32, i32
  }
  func.func @transform_6(%arg0: i32) -> (i32, i32, i32) {
    %c0_i32 = arith.constant 0 : i32
    %c0_i32_0 = arith.constant 0 : i32
    %c0_i32_1 = arith.constant 0 : i32
    return %arg0, %c0_i32, %c0_i32_0 : i32, i32, i32
  }
  func.func @transform_7(%arg0: i32) -> (i32, i32, i32) {
    %c0_i32 = arith.constant 0 : i32
    %c0_i32_0 = arith.constant 0 : i32
    %c0_i32_1 = arith.constant 0 : i32
    return %arg0, %c0_i32, %c0_i32_0 : i32, i32, i32
  }
}

module attributes {stable_mosaic.version = 11 : i64} {
  func.func @conv2_res_pool_kernel(%arg0: i32, %arg1: memref<1x16x16x8xbf16, #tpu.memory_space<vmem>>, %arg2: memref<1x16x16x4xf32, #tpu.memory_space<vmem>>, %arg3: memref<1x8xf32, #tpu.memory_space<vmem>>, %arg4: memref<1x8xf32, #tpu.memory_space<vmem>>, %arg5: memref<76x8xbf16, #tpu.memory_space<vmem>>, %arg6: memref<1x8xf32, #tpu.memory_space<vmem>>, %arg7: memref<8x8xbf16, #tpu.memory_space<vmem>>, %arg8: memref<1x8xf32, #tpu.memory_space<vmem>>, %arg9: memref<1x8x256xf32, #tpu.memory_space<vmem>>, %arg10: memref<1x8x64xf32, #tpu.memory_space<vmem>>, %arg11: memref<18x18x8xbf16, #tpu.memory_space<vmem>>, %arg12: memref<256x76xbf16, #tpu.memory_space<vmem>>) attributes {dimension_semantics = [#tpu.dimension_semantics<parallel>], iteration_bounds = array<i64: 2>, scalar_prefetch = 0 : i64, scratch_operands = 2 : i64, tpu.core_type = #tpu.core_type<tc>, window_params = [{transform_indices = @transform_0, window_bounds = array<i64: 1, 16, 16, 8>}, {transform_indices = @transform_1, window_bounds = array<i64: 1, 16, 16, 4>}, {pipeline_mode = #tpu.pipeline_mode<synchronous>, transform_indices = @transform_2, window_bounds = array<i64: 1, 8>}, {pipeline_mode = #tpu.pipeline_mode<synchronous>, transform_indices = @transform_3, window_bounds = array<i64: 1, 8>}, {pipeline_mode = #tpu.pipeline_mode<synchronous>, transform_indices = @transform_4, window_bounds = array<i64: 76, 8>}, {pipeline_mode = #tpu.pipeline_mode<synchronous>, transform_indices = @transform_5, window_bounds = array<i64: 1, 8>}, {pipeline_mode = #tpu.pipeline_mode<synchronous>, transform_indices = @transform_6, window_bounds = array<i64: 8, 8>}, {pipeline_mode = #tpu.pipeline_mode<synchronous>, transform_indices = @transform_7, window_bounds = array<i64: 1, 8>}, {transform_indices = @transform_8, window_bounds = array<i64: 1, 8, 256>}, {transform_indices = @transform_9, window_bounds = array<i64: 1, 8, 64>}]} {
    %cst = arith.constant 0.000000e+00 : bf16
    %0 = vector.broadcast %cst : bf16 to vector<1x18x8xbf16>
    %cst_0 = arith.constant 0.000000e+00 : bf16
    %1 = vector.broadcast %cst_0 : bf16 to vector<18x1x8xbf16>
    %c0 = arith.constant 0 : index
    %c0_1 = arith.constant 0 : index
    %c0_2 = arith.constant 0 : index
    %2 = vector.load %arg11[%c0, %c0_1, %c0_2] : memref<18x18x8xbf16, #tpu.memory_space<vmem>>, vector<1x18x8xbf16>
    tpu.vector_store %arg11[%c0, %c0_1, %c0_2], %0 {strides = array<i32>} : memref<18x18x8xbf16, #tpu.memory_space<vmem>>, vector<1x18x8xbf16>,
    %c17 = arith.constant 17 : index
    %c0_3 = arith.constant 0 : index
    %c0_4 = arith.constant 0 : index
    %3 = vector.load %arg11[%c17, %c0_3, %c0_4] : memref<18x18x8xbf16, #tpu.memory_space<vmem>>, vector<1x18x8xbf16>
    tpu.vector_store %arg11[%c17, %c0_3, %c0_4], %0 {strides = array<i32>} : memref<18x18x8xbf16, #tpu.memory_space<vmem>>, vector<1x18x8xbf16>,
    %c0_5 = arith.constant 0 : index
    %c0_6 = arith.constant 0 : index
    %c0_7 = arith.constant 0 : index
    %4 = vector.load %arg11[%c0_5, %c0_6, %c0_7] : memref<18x18x8xbf16, #tpu.memory_space<vmem>>, vector<18x1x8xbf16>
    tpu.vector_store %arg11[%c0_5, %c0_6, %c0_7], %1 {strides = array<i32>} : memref<18x18x8xbf16, #tpu.memory_space<vmem>>, vector<18x1x8xbf16>,
    %c0_8 = arith.constant 0 : index
    %c17_9 = arith.constant 17 : index
    %c0_10 = arith.constant 0 : index
    %5 = vector.load %arg11[%c0_8, %c17_9, %c0_10] : memref<18x18x8xbf16, #tpu.memory_space<vmem>>, vector<18x1x8xbf16>
    tpu.vector_store %arg11[%c0_8, %c17_9, %c0_10], %1 {strides = array<i32>} : memref<18x18x8xbf16, #tpu.memory_space<vmem>>, vector<18x1x8xbf16>,
    %c0_11 = arith.constant 0 : index
    %c0_12 = arith.constant 0 : index
    %c0_13 = arith.constant 0 : index
    %c0_14 = arith.constant 0 : index
    %6 = vector.load %arg1[%c0_11, %c0_12, %c0_13, %c0_14] : memref<1x16x16x8xbf16, #tpu.memory_space<vmem>>, vector<1x16x16x8xbf16>
    %7 = vector.shape_cast %6 : vector<1x16x16x8xbf16> to vector<16x16x8xbf16>
    %8 = arith.extf %7 : vector<16x16x8xbf16> to vector<16x16x8xf32>
    %c0_15 = arith.constant 0 : index
    %c0_16 = arith.constant 0 : index
    %9 = vector.load %arg3[%c0_15, %c0_16] : memref<1x8xf32, #tpu.memory_space<vmem>>, vector<1x8xf32>
    %10 = vector.shape_cast %9 : vector<1x8xf32> to vector<1x1x8xf32>
    %11 = vector.broadcast %10 : vector<1x1x8xf32> to vector<16x16x8xf32>
    %12 = arith.mulf %8, %11 : vector<16x16x8xf32>
    %c0_17 = arith.constant 0 : index
    %c0_18 = arith.constant 0 : index
    %13 = vector.load %arg4[%c0_17, %c0_18] : memref<1x8xf32, #tpu.memory_space<vmem>>, vector<1x8xf32>
    %14 = vector.shape_cast %13 : vector<1x8xf32> to vector<1x1x8xf32>
    %15 = vector.broadcast %14 : vector<1x1x8xf32> to vector<16x16x8xf32>
    %16 = arith.addf %12, %15 : vector<16x16x8xf32>
    %17 = arith.negf %16 : vector<16x16x8xf32>
    %18 = math.exp %17 : vector<16x16x8xf32>
    %cst_19 = arith.constant 1.000000e+00 : f32
    %19 = vector.broadcast %cst_19 : f32 to vector<16x16x8xf32>
    %20 = arith.addf %19, %18 : vector<16x16x8xf32>
    %21 = arith.divf %19, %20 : vector<16x16x8xf32>
    %22 = arith.mulf %16, %21 : vector<16x16x8xf32>
    %23 = arith.truncf %22 : vector<16x16x8xf32> to vector<16x16x8xbf16>
    %c1 = arith.constant 1 : index
    %c1_20 = arith.constant 1 : index
    %c0_21 = arith.constant 0 : index
    %24 = vector.load %arg11[%c1, %c1_20, %c0_21] : memref<18x18x8xbf16, #tpu.memory_space<vmem>>, vector<16x16x8xbf16>
    tpu.vector_store %arg11[%c1, %c1_20, %c0_21], %23 {strides = array<i32>} : memref<18x18x8xbf16, #tpu.memory_space<vmem>>, vector<16x16x8xbf16>,
    %c0_22 = arith.constant 0 : index
    %c0_23 = arith.constant 0 : index
    %c0_24 = arith.constant 0 : index
    %25 = vector.load %arg11[%c0_22, %c0_23, %c0_24] : memref<18x18x8xbf16, #tpu.memory_space<vmem>>, vector<16x16x8xbf16>
    %26 = vector.shape_cast %25 : vector<16x16x8xbf16> to vector<256x8xbf16>
    %c0_25 = arith.constant 0 : index
    %c0_26 = arith.constant 0 : index
    %27 = vector.load %arg12[%c0_25, %c0_26] : memref<256x76xbf16, #tpu.memory_space<vmem>>, vector<256x8xbf16>
    tpu.vector_store %arg12[%c0_25, %c0_26], %26 {strides = array<i32>} : memref<256x76xbf16, #tpu.memory_space<vmem>>, vector<256x8xbf16>,
    %c0_27 = arith.constant 0 : index
    %c1_28 = arith.constant 1 : index
    %c0_29 = arith.constant 0 : index
    %28 = vector.load %arg11[%c0_27, %c1_28, %c0_29] : memref<18x18x8xbf16, #tpu.memory_space<vmem>>, vector<16x16x8xbf16>
    %29 = vector.shape_cast %28 : vector<16x16x8xbf16> to vector<256x8xbf16>
    %c0_30 = arith.constant 0 : index
    %c8 = arith.constant 8 : index
    %30 = vector.load %arg12[%c0_30, %c8] : memref<256x76xbf16, #tpu.memory_space<vmem>>, vector<256x8xbf16>
    tpu.vector_store %arg12[%c0_30, %c8], %29 {strides = array<i32>} : memref<256x76xbf16, #tpu.memory_space<vmem>>, vector<256x8xbf16>,
    %c0_31 = arith.constant 0 : index
    %c2 = arith.constant 2 : index
    %c0_32 = arith.constant 0 : index
    %31 = vector.load %arg11[%c0_31, %c2, %c0_32] : memref<18x18x8xbf16, #tpu.memory_space<vmem>>, vector<16x16x8xbf16>
    %32 = vector.shape_cast %31 : vector<16x16x8xbf16> to vector<256x8xbf16>
    %c0_33 = arith.constant 0 : index
    %c16 = arith.constant 16 : index
    %33 = vector.load %arg12[%c0_33, %c16] : memref<256x76xbf16, #tpu.memory_space<vmem>>, vector<256x8xbf16>
    tpu.vector_store %arg12[%c0_33, %c16], %32 {strides = array<i32>} : memref<256x76xbf16, #tpu.memory_space<vmem>>, vector<256x8xbf16>,
    %c1_34 = arith.constant 1 : index
    %c0_35 = arith.constant 0 : index
    %c0_36 = arith.constant 0 : index
    %34 = vector.load %arg11[%c1_34, %c0_35, %c0_36] : memref<18x18x8xbf16, #tpu.memory_space<vmem>>, vector<16x16x8xbf16>
    %35 = vector.shape_cast %34 : vector<16x16x8xbf16> to vector<256x8xbf16>
    %c0_37 = arith.constant 0 : index
    %c24 = arith.constant 24 : index
    %36 = vector.load %arg12[%c0_37, %c24] : memref<256x76xbf16, #tpu.memory_space<vmem>>, vector<256x8xbf16>
    tpu.vector_store %arg12[%c0_37, %c24], %35 {strides = array<i32>} : memref<256x76xbf16, #tpu.memory_space<vmem>>, vector<256x8xbf16>,
    %c1_38 = arith.constant 1 : index
    %c1_39 = arith.constant 1 : index
    %c0_40 = arith.constant 0 : index
    %37 = vector.load %arg11[%c1_38, %c1_39, %c0_40] : memref<18x18x8xbf16, #tpu.memory_space<vmem>>, vector<16x16x8xbf16>
    %38 = vector.shape_cast %37 : vector<16x16x8xbf16> to vector<256x8xbf16>
    %c0_41 = arith.constant 0 : index
    %c32 = arith.constant 32 : index
    %39 = vector.load %arg12[%c0_41, %c32] : memref<256x76xbf16, #tpu.memory_space<vmem>>, vector<256x8xbf16>
    tpu.vector_store %arg12[%c0_41, %c32], %38 {strides = array<i32>} : memref<256x76xbf16, #tpu.memory_space<vmem>>, vector<256x8xbf16>,
    %c1_42 = arith.constant 1 : index
    %c2_43 = arith.constant 2 : index
    %c0_44 = arith.constant 0 : index
    %40 = vector.load %arg11[%c1_42, %c2_43, %c0_44] : memref<18x18x8xbf16, #tpu.memory_space<vmem>>, vector<16x16x8xbf16>
    %41 = vector.shape_cast %40 : vector<16x16x8xbf16> to vector<256x8xbf16>
    %c0_45 = arith.constant 0 : index
    %c40 = arith.constant 40 : index
    %42 = vector.load %arg12[%c0_45, %c40] : memref<256x76xbf16, #tpu.memory_space<vmem>>, vector<256x8xbf16>
    tpu.vector_store %arg12[%c0_45, %c40], %41 {strides = array<i32>} : memref<256x76xbf16, #tpu.memory_space<vmem>>, vector<256x8xbf16>,
    %c2_46 = arith.constant 2 : index
    %c0_47 = arith.constant 0 : index
    %c0_48 = arith.constant 0 : index
    %43 = vector.load %arg11[%c2_46, %c0_47, %c0_48] : memref<18x18x8xbf16, #tpu.memory_space<vmem>>, vector<16x16x8xbf16>
    %44 = vector.shape_cast %43 : vector<16x16x8xbf16> to vector<256x8xbf16>
    %c0_49 = arith.constant 0 : index
    %c48 = arith.constant 48 : index
    %45 = vector.load %arg12[%c0_49, %c48] : memref<256x76xbf16, #tpu.memory_space<vmem>>, vector<256x8xbf16>
    tpu.vector_store %arg12[%c0_49, %c48], %44 {strides = array<i32>} : memref<256x76xbf16, #tpu.memory_space<vmem>>, vector<256x8xbf16>,
    %c2_50 = arith.constant 2 : index
    %c1_51 = arith.constant 1 : index
    %c0_52 = arith.constant 0 : index
    %46 = vector.load %arg11[%c2_50, %c1_51, %c0_52] : memref<18x18x8xbf16, #tpu.memory_space<vmem>>, vector<16x16x8xbf16>
    %47 = vector.shape_cast %46 : vector<16x16x8xbf16> to vector<256x8xbf16>
    %c0_53 = arith.constant 0 : index
    %c56 = arith.constant 56 : index
    %48 = vector.load %arg12[%c0_53, %c56] : memref<256x76xbf16, #tpu.memory_space<vmem>>, vector<256x8xbf16>
    tpu.vector_store %arg12[%c0_53, %c56], %47 {strides = array<i32>} : memref<256x76xbf16, #tpu.memory_space<vmem>>, vector<256x8xbf16>,
    %c2_54 = arith.constant 2 : index
    %c2_55 = arith.constant 2 : index
    %c0_56 = arith.constant 0 : index
    %49 = vector.load %arg11[%c2_54, %c2_55, %c0_56] : memref<18x18x8xbf16, #tpu.memory_space<vmem>>, vector<16x16x8xbf16>
    %50 = vector.shape_cast %49 : vector<16x16x8xbf16> to vector<256x8xbf16>
    %c0_57 = arith.constant 0 : index
    %c64 = arith.constant 64 : index
    %51 = vector.load %arg12[%c0_57, %c64] : memref<256x76xbf16, #tpu.memory_space<vmem>>, vector<256x8xbf16>
    tpu.vector_store %arg12[%c0_57, %c64], %50 {strides = array<i32>} : memref<256x76xbf16, #tpu.memory_space<vmem>>, vector<256x8xbf16>,
    %c0_58 = arith.constant 0 : index
    %c0_59 = arith.constant 0 : index
    %c0_60 = arith.constant 0 : index
    %c0_61 = arith.constant 0 : index
    %52 = vector.load %arg2[%c0_58, %c0_59, %c0_60, %c0_61] : memref<1x16x16x4xf32, #tpu.memory_space<vmem>>, vector<1x16x16x4xf32>
    %53 = vector.shape_cast %52 : vector<1x16x16x4xf32> to vector<16x16x4xf32>
    %54 = vector.shape_cast %53 : vector<16x16x4xf32> to vector<256x4xf32>
    %55 = arith.truncf %54 : vector<256x4xf32> to vector<256x4xbf16>
    %c0_62 = arith.constant 0 : index
    %c72 = arith.constant 72 : index
    %56 = vector.load %arg12[%c0_62, %c72] : memref<256x76xbf16, #tpu.memory_space<vmem>>, vector<256x4xbf16>
    tpu.vector_store %arg12[%c0_62, %c72], %55 {strides = array<i32>} : memref<256x76xbf16, #tpu.memory_space<vmem>>, vector<256x4xbf16>,
    %c0_63 = arith.constant 0 : index
    %c0_64 = arith.constant 0 : index
    %57 = vector.load %arg12[%c0_63, %c0_64] : memref<256x76xbf16, #tpu.memory_space<vmem>>, vector<256x76xbf16>
    %c0_65 = arith.constant 0 : index
    %c0_66 = arith.constant 0 : index
    %58 = vector.load %arg5[%c0_65, %c0_66] : memref<76x8xbf16, #tpu.memory_space<vmem>>, vector<76x8xbf16>
    %cst_67 = arith.constant dense<0.000000e+00> : vector<256x8xf32>
    %59 = tpu.matmul %57, %58, %cst_67 {dimension_numbers = #tpu.dot_dimension_numbers<[1], [0], [0], [1], [0, 0, 1, 1], [], []>} : vector<256x76xbf16>, vector<76x8xbf16>, vector<256x8xf32> -> vector<256x8xf32>
    %c0_68 = arith.constant 0 : index
    %c0_69 = arith.constant 0 : index
    %60 = vector.load %arg6[%c0_68, %c0_69] : memref<1x8xf32, #tpu.memory_space<vmem>>, vector<1x8xf32>
    %61 = vector.broadcast %60 : vector<1x8xf32> to vector<256x8xf32>
    %62 = arith.addf %59, %61 : vector<256x8xf32>
    %63 = tpu.transpose %62, [1, 0] : vector<256x8xf32> -> vector<8x256xf32>
    %c0_70 = arith.constant 0 : index
    %c0_71 = arith.constant 0 : index
    %c0_72 = arith.constant 0 : index
    %64 = vector.load %arg9[%c0_70, %c0_71, %c0_72] : memref<1x8x256xf32, #tpu.memory_space<vmem>>, vector<1x8x256xf32>
    %65 = vector.shape_cast %64 : vector<1x8x256xf32> to vector<8x256xf32>
    %66 = vector.shape_cast %63 : vector<8x256xf32> to vector<1x8x256xf32>
    tpu.vector_store %arg9[%c0_70, %c0_71, %c0_72], %66 {strides = array<i32>} : memref<1x8x256xf32, #tpu.memory_space<vmem>>, vector<1x8x256xf32>,
    %67 = vector.shape_cast %62 : vector<256x8xf32> to vector<8x2x16x8xf32>
    %68 = vector.extract_strided_slice %67 {offsets = [0, 0, 0, 0], sizes = [8, 1, 16, 8], strides = [1, 1, 1, 1]} : vector<8x2x16x8xf32> to vector<8x1x16x8xf32>
    %69 = vector.shape_cast %68 : vector<8x1x16x8xf32> to vector<8x16x8xf32>
    %70 = vector.shape_cast %69 : vector<8x16x8xf32> to vector<8x8x2x8xf32>
    %71 = vector.extract_strided_slice %70 {offsets = [0, 0, 0, 0], sizes = [8, 8, 1, 8], strides = [1, 1, 1, 1]} : vector<8x8x2x8xf32> to vector<8x8x1x8xf32>
    %72 = vector.shape_cast %71 : vector<8x8x1x8xf32> to vector<8x8x8xf32>
    %73 = vector.shape_cast %72 : vector<8x8x8xf32> to vector<64x8xf32>
    %74 = arith.truncf %73 : vector<64x8xf32> to vector<64x8xbf16>
    %c0_73 = arith.constant 0 : index
    %c0_74 = arith.constant 0 : index
    %75 = vector.load %arg7[%c0_73, %c0_74] : memref<8x8xbf16, #tpu.memory_space<vmem>>, vector<8x8xbf16>
    %cst_75 = arith.constant dense<0.000000e+00> : vector<64x8xf32>
    %76 = tpu.matmul %74, %75, %cst_75 {dimension_numbers = #tpu.dot_dimension_numbers<[1], [0], [0], [1], [0, 0, 1, 1], [], []>} : vector<64x8xbf16>, vector<8x8xbf16>, vector<64x8xf32> -> vector<64x8xf32>
    %c0_76 = arith.constant 0 : index
    %c0_77 = arith.constant 0 : index
    %77 = vector.load %arg8[%c0_76, %c0_77] : memref<1x8xf32, #tpu.memory_space<vmem>>, vector<1x8xf32>
    %78 = vector.broadcast %77 : vector<1x8xf32> to vector<64x8xf32>
    %79 = arith.addf %76, %78 : vector<64x8xf32>
    %80 = tpu.transpose %79, [1, 0] : vector<64x8xf32> -> vector<8x64xf32>
    %c0_78 = arith.constant 0 : index
    %c0_79 = arith.constant 0 : index
    %c0_80 = arith.constant 0 : index
    %81 = vector.load %arg10[%c0_78, %c0_79, %c0_80] : memref<1x8x64xf32, #tpu.memory_space<vmem>>, vector<1x8x64xf32>
    %82 = vector.shape_cast %81 : vector<1x8x64xf32> to vector<8x64xf32>
    %83 = vector.shape_cast %80 : vector<8x64xf32> to vector<1x8x64xf32>
    tpu.vector_store %arg10[%c0_78, %c0_79, %c0_80], %83 {strides = array<i32>} : memref<1x8x64xf32, #tpu.memory_space<vmem>>, vector<1x8x64xf32>,
    return
  }
  func.func @transform_0(%arg0: i32) -> (i32, i32, i32, i32) {
    %c0_i32 = arith.constant 0 : i32
    %c0_i32_0 = arith.constant 0 : i32
    %c0_i32_1 = arith.constant 0 : i32
    %c0_i32_2 = arith.constant 0 : i32
    return %arg0, %c0_i32, %c0_i32_0, %c0_i32_1 : i32, i32, i32, i32
  }
  func.func @transform_1(%arg0: i32) -> (i32, i32, i32, i32) {
    %c0_i32 = arith.constant 0 : i32
    %c0_i32_0 = arith.constant 0 : i32
    %c0_i32_1 = arith.constant 0 : i32
    %c0_i32_2 = arith.constant 0 : i32
    return %arg0, %c0_i32, %c0_i32_0, %c0_i32_1 : i32, i32, i32, i32
  }
  func.func @transform_2(%arg0: i32) -> (i32, i32) {
    %c0_i32 = arith.constant 0 : i32
    %c0_i32_0 = arith.constant 0 : i32
    %c0_i32_1 = arith.constant 0 : i32
    return %c0_i32, %c0_i32_0 : i32, i32
  }
  func.func @transform_3(%arg0: i32) -> (i32, i32) {
    %c0_i32 = arith.constant 0 : i32
    %c0_i32_0 = arith.constant 0 : i32
    %c0_i32_1 = arith.constant 0 : i32
    return %c0_i32, %c0_i32_0 : i32, i32
  }
  func.func @transform_4(%arg0: i32) -> (i32, i32) {
    %c0_i32 = arith.constant 0 : i32
    %c0_i32_0 = arith.constant 0 : i32
    %c0_i32_1 = arith.constant 0 : i32
    return %c0_i32, %c0_i32_0 : i32, i32
  }
  func.func @transform_5(%arg0: i32) -> (i32, i32) {
    %c0_i32 = arith.constant 0 : i32
    %c0_i32_0 = arith.constant 0 : i32
    %c0_i32_1 = arith.constant 0 : i32
    return %c0_i32, %c0_i32_0 : i32, i32
  }
  func.func @transform_6(%arg0: i32) -> (i32, i32) {
    %c0_i32 = arith.constant 0 : i32
    %c0_i32_0 = arith.constant 0 : i32
    %c0_i32_1 = arith.constant 0 : i32
    return %c0_i32, %c0_i32_0 : i32, i32
  }
  func.func @transform_7(%arg0: i32) -> (i32, i32) {
    %c0_i32 = arith.constant 0 : i32
    %c0_i32_0 = arith.constant 0 : i32
    %c0_i32_1 = arith.constant 0 : i32
    return %c0_i32, %c0_i32_0 : i32, i32
  }
  func.func @transform_8(%arg0: i32) -> (i32, i32, i32) {
    %c0_i32 = arith.constant 0 : i32
    %c0_i32_0 = arith.constant 0 : i32
    %c0_i32_1 = arith.constant 0 : i32
    return %arg0, %c0_i32, %c0_i32_0 : i32, i32, i32
  }
  func.func @transform_9(%arg0: i32) -> (i32, i32, i32) {
    %c0_i32 = arith.constant 0 : i32
    %c0_i32_0 = arith.constant 0 : i32
    %c0_i32_1 = arith.constant 0 : i32
    return %arg0, %c0_i32, %c0_i32_0 : i32, i32, i32
  }
}

</mosaic_0001>

<bundles_post_ra>
// kernel: down_module_forward.2
= control target key start
LH: loop header
LB: loop body
LE: loop exit
PB: predicated region body
PF: predicated region fallthrough
CT: control target
= control target key end

     0   :  { %s5821_s24 = smov 0   ;;  %s7621_s0 = inlined_call_operand.vmem [shape: f32[2,16,16,4], index: 0, kind: input, shape index: {}]   ;;  %s7622_s1 = inlined_call_operand.vmem [shape: f32[1,4], index: 1, kind: input, shape index: {}]   ;;  %s7623_s2 = inlined_call_operand.vmem [shape: f32[1,4], index: 2, kind: input, shape index: {}]   ;;  %s7624_s3 = inlined_call_operand.vmem [shape: bf16[36,8], index: 3, kind: input, shape index: {}]   ;;  %s7625_s4 = inlined_call_operand.vmem [shape: f32[2,1,8], index: 4, kind: input, shape index: {}]   ;;  %s7626_s5 = inlined_call_operand.vmem [shape: bf16[2,16,16,8], index: 5, kind: output, shape index: {0}]   ;;  %s7627_s6 = inlined_call_operand.vmem [shape: f32[2,1,8], index: 6, kind: output, shape index: {1}]   ;;  %s7628_s7 = inlined_call_operand.vmem [shape: f32[2,1,8], index: 7, kind: output, shape index: {2}]  }
   0x1 LB: > { %s5110_s25 = sadd.s32 4294967295, %s5770_s24   ;;  %p5114_p0 = scmp.ge.s32.totalorder %s5770_s24, 1  ;;  %s5770_s24 = sphi %s5821_s24, %s18_s24  }
   0x2   : > { %p250_p1 = scmp.lt.s32.totalorder %s5770_s24, 3 }
   0x4   : > { %p251_p2 = pnand %p5114_p0, %p250_p1 }
   0x6   : > { %254 = sbr.rel (%p251_p2) target bundleno = 840 (0x348), region = 40 }
   0xd   : > { %vm311_vm0 = vcmask 27648   ;;  %vm314_vm1 = vcmask 24576   ;;  %vm321_vm2 = vsmask.f32 256  ;;  %v5772_v0 = vmov 0   ;;  %p291_p3 = scmp.lt.s32.totalorder %s5110_s25, 1 }
   0xe   : > { %312 = vst.msk [vmem:[#allocation2] sm:$0xf] %vm311_vm0, %v5772_v0  ;;  %313 = vst.msk [vmem:[#allocation2 + $0x4] sm:$0xf] %vm311_vm0, %v5772_v0  ;;  %v329_v2 = vld [vmem:[#allocation2 + $0x18] sm:$0x1] }
   0xf   : > { %315 = vst.msk [vmem:[#allocation2 + $0x8] sm:$0x1] %vm314_vm1, %v5772_v0  ;;  %319 = vst.msk [vmem:[#allocation2 + $0xd4] sm:$0x1] %vm314_vm1, %v5772_v0  ;;  %vm377_vm4 = vsmask.f32 7938 }
  0x10   : > { %317 = vst.msk [vmem:[#allocation2 + $0xcc] sm:$0xf] %vm311_vm0, %v5772_v0  ;;  %318 = vst.msk [vmem:[#allocation2 + $0xd0] sm:$0xf] %vm311_vm0, %v5772_v0  ;;  %vm2089_vm5 = vcmask 1042432   ;;  %vm2090_vm6 = vcmask 1046532  }
  0x11   : > { %vm5837_vm3 = vmand %vm314_vm1, %vm321_vm2  ;;  %s7675_s25 = smov (!%p291_p3, %s5110_s25), 1  ;;  %v326_v4 = vld [vmem:[#allocation2 + $0xc] sm:$0x1]  ;;  %v5848_v5 = vld [vmem:[%s7622_s1] ss:$0 sm:$0xff]  ;;  %s5773_s11 = smov 8  }
  0x12   : > { %v330_v3 = vsel %vm5837_vm3, 0, %v329_v2  ;;  %v327_v6 = vsel %vm5837_vm3, 0, %v326_v4  ;;  %v332_v7 = vld [vmem:[#allocation2 + $0x24] sm:$0x1]  ;;  %v335_v8 = vld [vmem:[#allocation2 + $0x30] sm:$0x1]  ;;  %vm5854_vm7 = vmand %vm314_vm1, %vm377_vm4  ;;  %s306_s27 = scalar_lea.vmem %s7627_s6, %s7675_s25  ;;  %s309_s30 = scalar_lea.vmem %s7628_s7, %s7675_s25 }
  0x13   : > { %331 = vst [vmem:[#allocation2 + $0x18] sm:$0x1] %v330_v3  ;;  %s5431_s28 = sshll.u32 %s7675_s25, 8  ;;  %328 = vst [vmem:[#allocation2 + $0xc] sm:$0x1] %v327_v6  ;;  %v333_v10 = vsel %vm5837_vm3, 0, %v332_v7 }
  0x14   : > { %v336_v11 = vsel %vm5837_vm3, 0, %v335_v8  ;;  %v338_v12 = vld [vmem:[#allocation2 + $0x3c] sm:$0x1]  ;;  %vm5864_vm8 = vmor %vm2089_vm5, %vm2090_vm6  ;;  %s5871_s8 = scalar_lea.vmem %s7621_s0, %s5431_s28  ;;  %v5876_v14 = vld [vmem:[%s7623_s2] ss:$0 sm:$0xff]  ;;  %s5774_s12 = smov 4  }
  0x15   : > { %334 = vst [vmem:[#allocation2 + $0x24] sm:$0x1] %v333_v10  ;;  %337 = vst [vmem:[#allocation2 + $0x30] sm:$0x1] %v336_v11  ;;  %v339_v15 = vsel %vm5837_vm3, 0, %v338_v12  ;;  %v435_v24 = vld [vmem:[%s5871_s8 + $0x10] sm:$0xff] }
  0x16   : > { %v382_v16 = vld [vmem:[#allocation2 + $0x14] sm:$0x1]  ;;  %v379_v17 = vld [vmem:[#allocation2 + $0x8] sm:$0x1]  ;;  %v1993_v18 = vld [vmem:[#allocation2] sm:$0xe]  ;;  %v474_v28 = vmul.f32 %v5848_v5, %v435_v24 }
  0x17   : > { %v1994_v19 = vld [vmem:[#allocation2 + $0x4] sm:$0xf]  ;;  %vm1493_vm9 = vsmask.f32 3328  ;;  %vm1494_vm10 = vsmask.f32 7440  ;;  %vm6037_vm13 = vmand %vm311_vm0, %vm377_vm4 }
  0x18   : > { %340 = vst [vmem:[#allocation2 + $0x3c] sm:$0x1] %v339_v15  ;;  %v380_v20 = vsel %vm5854_vm7, 0, %v379_v17  ;;  %v5217_v21 = vrot.slane %v1993_v18, 9  ;;  %v2094_v22 = vrot.slane %v1994_v19, 5  ;;  %v436_v27 = vld [vmem:[%s5871_s8 + $0x18] sm:$0xff]  ;;  %v5897_v37 = vadd.f32 %v5876_v14, %v474_v28  ;;  %vm5941_vm11 = vmor %vm1493_vm9, %vm1494_vm10 }
  0x19   : > { %v323_v23 = vld [vmem:[#allocation2] sm:$0x1]  ;;  %381 = vst [vmem:[#allocation2 + $0x8] sm:$0x1] %v380_v20  ;;  %v1446_v26 = vld [vmem:[#allocation2 + $0x4] sm:$0xf]  ;;  %v475_v36 = vmul.f32 %v5848_v5, %v436_v27 }
  0x1a   : > { %v324_v25 = vsel %vm5837_vm3, 0, %v323_v23  ;;  %v433_v29 = vld [vmem:[%s5871_s8] sm:$0xff]  ;;  %v383_v30 = vsel %vm5854_vm7, 0, %v382_v16  ;;  %v5892_v31 = vsel %vm5864_vm8, %v5217_v21, %v2094_v22  ;;  %v2096_v32 = vrot.slane %v2094_v22, 4  ;;  %v434_v35 = vld [vmem:[%s5871_s8 + $0x8] sm:$0xff]  ;;  %v439_v42 = vld [vmem:[%s5871_s8 + $0x30] sm:$0xff] }
  0x1b   : > { %325 = vst [vmem:[#allocation2] sm:$0x1] %v324_v25  ;;  %v1506_v33 = vshll.u32 %v1446_v26, 16  ;;  %v1510_v34 = vshrl.u32 %v1446_v26, 16  ;;  %384 = vst [vmem:[#allocation2 + $0x14] sm:$0x1] %v383_v30  ;;  %v472_v38 = vmul.f32 %v5848_v5, %v433_v29  ;;  %v473_v39 = vmul.f32 %v5848_v5, %v434_v35 }
  0x1c   : > { %v437_v40 = vld [vmem:[%s5871_s8 + $0x20] sm:$0xff]  ;;  %v438_v41 = vld [vmem:[%s5871_s8 + $0x28] sm:$0xff]  ;;  %v5909_v47 = vadd.f32 %v5876_v14, %v475_v36  ;;  %v5123_v48 = vmul.f32 -1.442695, %v5897_v37  ;;  %v440_v51 = vld [vmem:[%s5871_s8 + $0x38] sm:$0xff]  ;;  %v478_v56 = vmul.f32 %v5848_v5, %v439_v42  ;;  %s5775_s13 = smov 12  }
  0x1d   : > { %v5904_v43 = vrot.slane %v1506_v33, 5  ;;  %v1512_v44 = vrot.slane %v1510_v34, 4  ;;  %v476_v45 = vmul.f32 %v5848_v5, %v437_v40  ;;  %v477_v46 = vmul.f32 %v5848_v5, %v438_v41  ;;  %v441_v52 = vld [vmem:[%s5871_s8 + $0x40] sm:$0xff]  ;;  %v442_v19 = vld [vmem:[%s5871_s8 + $0x48] sm:$0xff]  ;;  %v391_v21 = vld [vmem:[#allocation2 + $0x38] sm:$0x1] }
  0x1e   : > { %v5913_v49 = vadd.f32 %v5876_v14, %v472_v38  ;;  %v5916_v50 = vadd.f32 %v5876_v14, %v473_v39  ;;  %5630 = vpow2.f32 %v5123_v48  ;;  %v5124_v57 = vmul.f32 -1.442695, %v5909_v47  ;;  %v385_v15 = vld [vmem:[#allocation2 + $0x20] sm:$0x1]  ;;  %v388_v20 = vld [vmem:[#allocation2 + $0x2c] sm:$0x1] }
  0x1f   : > { %v1513_v53 = vor.u32 %v1512_v44, %v5904_v43  ;;  %v5922_v54 = vadd.f32 %v5876_v14, %v476_v45  ;;  %v5925_v55 = vadd.f32 %v5876_v14, %v477_v46  ;;  %v479_v63 = vmul.f32 %v5848_v5, %v440_v51  ;;  %v394_v25 = vld [vmem:[#allocation2 + $0x44] sm:$0x1]  ;;  %v341_v26 = vld [vmem:[#allocation2 + $0x48] sm:$0x1]  ;;  %v397_v30 = vld [vmem:[#allocation2 + $0x50] sm:$0x1] }
  0x20   : > { %v5121_v58 = vmul.f32 -1.442695, %v5913_v49  ;;  %v5122_v59 = vmul.f32 -1.442695, %v5916_v50  ;;  %v1995_v60 = vld [vmem:[#allocation2 + $0x8] sm:$0x1]  ;;  %v5935_v0 = vadd.f32 %v5876_v14, %v478_v56  ;;  %v480_v2 = vmul.f32 %v5848_v5, %v441_v52 }
  0x21   : > { %v1447_v61 = vld [vmem:[#allocation2 + $0x8] sm:$0x1]  ;;  %v5931_v62 = vrot.slane %v1513_v53, 4  ;;  %v2097_v3 = vrot.slane %v1995_v60, 5  ;;  %5632 = vpow2.f32 %v5124_v57  ;;  %v5125_v7 = vmul.f32 -1.442695, %v5922_v54 }
  0x22   : > { %v1445_v4 = vld [vmem:[#allocation2] sm:$0xf]  ;;  %v1516_v6 = vshll.u32 %v1447_v61, 16  ;;  %5634 = vpow2.f32 %v5121_v58  ;;  %v5126_v12 = vmul.f32 -1.442695, %v5925_v55  ;;  %v5949_v18 = vadd.f32 %v5876_v14, %v479_v63  ;;  %v443_v35 = vld [vmem:[%s5871_s8 + $0x50] sm:$0xff] }
  0x23   : > { %v1497_v10 = vshrl.u32 %v1445_v4, 16  ;;  %v1500_v11 = vshll.u32 %v1445_v4, 16  ;;  %v2098_v16 = vsel %vm5864_vm8, %v2096_v32, %v2097_v3  ;;  %5636 = vpow2.f32 %v5122_v59  ;;  %v444_v44 = vld [vmem:[%s5871_s8 + $0x58] sm:$0xff]  ;;  %v344_v57 = vld [vmem:[#allocation2 + $0x54] sm:$0x1]  ;;  %v445_v4 = vld [vmem:[%s5871_s8 + $0x60] sm:$0xff] }
  0x24   : > { %v1518_v17 = vrot.slane %v1516_v6, 5  ;;  %v5233_v22 = vcombine.low %v5892_v31, %v2098_v16  ;;  %5638 = vpow2.f32 %v5125_v7  ;;  %v5127_v28 = vmul.f32 -1.442695, %v5935_v0  ;;  %s5776_s14 = smov 24   ;;  %s5777_s15 = smov 20  }
  0x25   : > { %v1499_v23 = vrot.slane %v1497_v10, 4  ;;  %v1502_v24 = vrot.slane %v1500_v11, 5  ;;  %5640 = vpow2.f32 %v5126_v12  ;;  %v5128_v29 = vmul.f32 -1.442695, %v5949_v18  ;;  %v446_v12 = vld [vmem:[%s5871_s8 + $0x68] sm:$0xff]  ;;  %s5778_s16 = smov 32  }
  0x26   : > { %v1519_v27 = vsel %vm5941_vm11, %v5931_v62, %v1518_v17  ;;  %2252 = vrot.lane.b32.xlu1 %v5233_v22, %s5773_s11  ;;  %v481_v32 = vmul.f32 %v5848_v5, %v442_v19  ;;  %v5961_v33 = vadd.f32 %v5876_v14, %v480_v2  ;;  %v386_v34 = vsel %vm5854_vm7, 0, %v385_v15  ;;  %v447_v15 = vld [vmem:[%s5871_s8 + $0x70] sm:$0xff]  ;;  %v448_v22 = vld [vmem:[%s5871_s8 + $0x78] sm:$0xff]  ;;  %s5779_s17 = smov 16   ;;  %s5780_s18 = smov 28  }
  0x27   : > { %v1503_v31 = vor.u32 %v1502_v24, %v1499_v23  ;;  %5642 = vpow2.f32 %v5127_v28  ;;  %387 = vst [vmem:[#allocation2 + $0x20] sm:$0x1] %v386_v34  ;;  %v389_v36 = vsel %vm5854_vm7, 0, %v388_v20  ;;  %v392_v38 = vsel %vm5854_vm7, 0, %v391_v21 }
  0x28   : > { %v395_v39 = vsel %vm5854_vm7, 0, %v394_v25  ;;  %5644 = vpow2.f32 %v5128_v29  ;;  %v5973_v41 = vadd.f32 %v5876_v14, %v481_v32  ;;  %v5129_v42 = vmul.f32 -1.442695, %v5961_v33  ;;  %390 = vst [vmem:[#allocation2 + $0x2c] sm:$0x1] %v389_v36  ;;  %v5631_v45 = vpop.eup %5630 }
  0x29   : > { %v1504_v40 = vrot.slane %v1503_v31, 4  ;;  %393 = vst [vmem:[#allocation2 + $0x38] sm:$0x1] %v392_v38  ;;  %396 = vst [vmem:[#allocation2 + $0x44] sm:$0x1] %v395_v39  ;;  %v342_v46 = vsel %vm5837_vm3, 0, %v341_v26  ;;  %v482_v48 = vmul.f32 %v5848_v5, %v443_v35  ;;  %v483_v63 = vmul.f32 %v5848_v5, %v444_v44 }
  0x2a   : > { %v398_v51 = vsel %vm5854_vm7, 0, %v397_v30  ;;  %v641_v53 = vadd.f32 1.0, %v5631_v45  ;;  %5646 = vpow2.f32 %v5129_v42  ;;  %v5130_v56 = vmul.f32 -1.442695, %v5973_v41  ;;  %343 = vst [vmem:[#allocation2 + $0x48] sm:$0x1] %v342_v46 }
  0x2b   : > { %v1509_v52 = vsel %vm5941_vm11, %v1504_v40, %v5904_v43  ;;  %399 = vst [vmem:[#allocation2 + $0x50] sm:$0x1] %v398_v51  ;;  %v5633_v58 = vpop.eup %5632  ;;  %v345_v60 = vsel %vm5837_vm3, 0, %v344_v57  ;;  %v5991_v3 = vadd.f32 %v5876_v14, %v482_v48  ;;  %v5997_v17 = vadd.f32 %v5876_v14, %v483_v63  ;;  %v400_v36 = vld [vmem:[#allocation2 + $0x5c] sm:$0x1] }
  0x2c   : > { %v5201_v59 = vcombine.low %v1509_v52, %v1519_v27  ;;  %v5635_v61 = vpop.eup %5634  ;;  %v642_v62 = vadd.f32 1.0, %v5633_v58  ;;  %5648 = vrcp.f32 %v641_v53  ;;  %346 = vst [vmem:[#allocation2 + $0x54] sm:$0x1] %v345_v60  ;;  %v484_v19 = vmul.f32 %v5848_v5, %v445_v4 }
  0x2d   : > { %v5637_v43 = vpop.eup %5636  ;;  %v639_v2 = vadd.f32 1.0, %v5635_v61  ;;  %5650 = vpow2.f32 %v5130_v56  ;;  %v5131_v21 = vmul.f32 -1.442695, %v5991_v3  ;;  %v485_v25 = vmul.f32 %v5848_v5, %v446_v12 }
  0x2e   : > { %1928 = vrot.lane.b32.xlu0 %v5201_v59, %s5774_s12  ;;  %v5639_v6 = vpop.eup %5638  ;;  %5652 = vrcp.f32 %v642_v62  ;;  %v640_v7 = vadd.f32 1.0, %v5637_v43  ;;  %v486_v26 = vmul.f32 %v5848_v5, %v447_v15  ;;  %v5132_v29 = vmul.f32 -1.442695, %v5997_v17 }
  0x2f   : > { %v5641_v10 = vpop.eup %5640  ;;  %5654 = vrcp.f32 %v639_v2  ;;  %v643_v11 = vadd.f32 1.0, %v5639_v6  ;;  %v6006_v30 = vadd.f32 %v5876_v14, %v484_v19  ;;  %v487_v31 = vmul.f32 %v5848_v5, %v448_v22 }
  0x30   : > { %5656 = vrcp.f32 %v640_v7  ;;  %v644_v16 = vadd.f32 1.0, %v5641_v10  ;;  %v6010_v35 = vadd.f32 %v5876_v14, %v485_v25  ;;  %v6013_v38 = vadd.f32 %v5876_v14, %v486_v26  ;;  %v1195_v10 = vld [vmem:[#allocation2 + $0x18] sm:$0xf] }
  0x31   : > { %v5643_v20 = vpop.eup %5642  ;;  %5658 = vrcp.f32 %v643_v11  ;;  %v401_v42 = vsel %vm5854_vm7, 0, %v400_v36  ;;  %v5133_v45 = vmul.f32 -1.442695, %v6006_v30  ;;  %v6020_v46 = vadd.f32 %v5876_v14, %v487_v31 }
  0x32   : > { %v5645_v23 = vpop.eup %5644  ;;  %5660 = vrcp.f32 %v644_v16  ;;  %v645_v24 = vadd.f32 1.0, %v5643_v20  ;;  %402 = vst [vmem:[#allocation2 + $0x5c] sm:$0x1] %v401_v42  ;;  %vm863_vm12 = vsmask.f32 4368  ;;  %vm7631_vm15 = vcmask 31744  }
  0x33   : > { %v646_v27 = vadd.f32 1.0, %v5645_v23  ;;  %5662 = vpow2.f32 %v5131_v21  ;;  %v6025_v56 = vmul.f32 -1.442695, %v6010_v35  ;;  %v6028_v57 = vmul.f32 -1.442695, %v6013_v38  ;;  %vm6044_vm14 = vmor %vm321_vm2, %vm863_vm12 }
  0x34   : > { %v5647_v28 = vpop.eup %5646  ;;  %5664 = vrcp.f32 %v645_v24  ;;  %vm1976_vm1 = vcmask 64544   ;;  %vm7632_vm2 = vcmask 97344   ;;  %vm7630_vm4 = vcmask 130144  }
  0x35   : > { %v647_v32 = vadd.f32 1.0, %v5647_v28  ;;  %5666 = vrcp.f32 %v646_v27  ;;  %vm3022_vm5 = vcmask 162944   ;;  %vm3343_vm6 = vcmask 195744  }
  0x36   : > { %v5649_v34 = vpop.eup %5648  ;;  %5668 = vpow2.f32 %v5132_v29  ;;  %vm3521_vm9 = vcmask 228544   ;;  %vm4066_vm10 = vcmask 261344   ;;  %vm4387_vm12 = vcmask 294144  }
  0x37   : > { %v5651_v39 = vpop.eup %5650  ;;  %v737_v40 = vmul.f32 %v5649_v34, %v5897_v37  ;;  %5670 = vrcp.f32 %v647_v32  ;;  %v1188_v34 = vld [vmem:[#allocation2 + $0xc] sm:$0xf] }
  0x38   : > { %v5653_v44 = vpop.eup %5652  ;;  %v648_v5 = vadd.f32 1.0, %v5651_v39 }
  0x39   : > { %v5655_v48 = vpop.eup %5654  ;;  %v738_v51 = vmul.f32 %v5653_v44, %v5909_v47  ;;  %v5435_v52 = vpack.c.bf16 %v737_v40, %v737_v40 }
  0x3a   : > { %v5657_v37 = vpop.eup %5656  ;;  %v735_v53 = vmul.f32 %v5655_v48, %v5913_v49  ;;  %5672 = vrcp.f32 %v648_v5  ;;  %v6033_v49 = vmul.f32 -1.442695, %v6020_v46 }
  0x3b   : > { %v5659_v58 = vpop.eup %5658  ;;  %v5436_v59 = vpack.c.bf16 %v738_v51, %v738_v51  ;;  %v883_v14 = vshrl.u32 %v5435_v52, 16  ;;  %v886_v60 = vshll.u32 %v5435_v52, 16  ;;  %v736_v61 = vmul.f32 %v5657_v37, %v5916_v50  ;;  %v1202_v37 = vld [vmem:[#allocation2 + $0x24] sm:$0xf] }
  0x3c   : > { %v5661_v47 = vpop.eup %5660  ;;  %v5433_v62 = vpack.c.bf16 %v735_v53, %v735_v53  ;;  %v739_v63 = vmul.f32 %v5659_v58, %v5922_v54  ;;  %5674 = vpow2.f32 %v5133_v45  ;;  %v1192_v53 = vld [vmem:[#allocation2 + $0x14] sm:$0x1] }
  0x3d   : > { %v885_v43 = vrot.slane %v883_v14, 7  ;;  %v891_v2 = vshrl.u32 %v5436_v59, 16  ;;  %v894_v4 = vshll.u32 %v5436_v59, 16  ;;  %v5434_v6 = vpack.c.bf16 %v736_v61, %v736_v61  ;;  %v5663_v15 = vpop.eup %5662 }
  0x3e   : > { %v866_v50 = vshrl.u32 %v5433_v62, 16  ;;  %v869_v11 = vshll.u32 %v5433_v62, 16  ;;  %v740_v12 = vmul.f32 %v5661_v47, %v5925_v55  ;;  %v5437_v54 = vpack.c.bf16 %v739_v63, %v739_v63  ;;  %v5665_v22 = vpop.eup %5664 }
  0x3f   : > { %v888_v16 = vor.u32 %v886_v60, %v885_v43  ;;  %v889_v19 = vrot.slane %v885_v43, 4  ;;  %v893_v20 = vrot.slane %v891_v2, 7  ;;  %v874_v21 = vshrl.u32 %v5434_v6, 16  ;;  %v5667_v28 = vpop.eup %5666  ;;  %v1199_v2 = vld [vmem:[#allocation2 + $0x20] sm:$0x1] }
  0x40   : > { %v868_v24 = vrot.slane %v866_v50, 7  ;;  %v877_v25 = vshll.u32 %v5434_v6, 16  ;;  %v5438_v26 = vpack.c.bf16 %v740_v12, %v740_v12  ;;  %v900_v27 = vshrl.u32 %v5437_v54, 16  ;;  %v6050_v36 = vpop.eup %5668  ;;  %v1206_v12 = vld [vmem:[#allocation2 + $0x2c] sm:$0x1] }
  0x41   : > { %v896_v29 = vor.u32 %v894_v4, %v893_v20  ;;  %v898_v55 = vrot.slane %v893_v20, 4  ;;  %v1196_v31 = vsel %vm6037_vm13, %v888_v16, %v1195_v10  ;;  %v876_v32 = vrot.slane %v874_v21, 7  ;;  %v5671_v5 = vpop.eup %5670 }
  0x42   : > { %1197 = vst [vmem:[#allocation2 + $0x18] sm:$0xf] %v1196_v31  ;;  %v871_v39 = vor.u32 %v869_v11, %v868_v24  ;;  %v872_v40 = vrot.slane %v868_v24, 4  ;;  %v902_v42 = vrot.slane %v900_v27, 7  ;;  %v903_v44 = vshll.u32 %v5437_v54, 16 }
  0x43   : > { %v897_v45 = vsel %vm6044_vm14, %v889_v19, %v896_v29  ;;  %v879_v48 = vor.u32 %v877_v25, %v876_v32  ;;  %v881_v51 = vrot.slane %v876_v32, 4  ;;  %v908_v52 = vshrl.u32 %v5438_v26, 16 }
  0x44   : > { %v5673_v58 = vpop.eup %5672  ;;  %1198 = vst.msk [vmem:[#allocation2 + $0x1c] sm:$0xf] %vm311_vm0, %v897_v45  ;;  %v1189_v59 = vsel %vm6037_vm13, %v871_v39, %v1188_v34  ;;  %v905_v14 = vor.u32 %v903_v44, %v902_v42  ;;  %v906_v60 = vrot.slane %v902_v42, 4  ;;  %v911_v61 = vshll.u32 %v5438_v26, 16  ;;  %v1216_v34 = vld [vmem:[#allocation2 + $0x3c] sm:$0xf] }
  0x45   : > { %v880_v47 = vsel %vm6044_vm14, %v872_v40, %v879_v48  ;;  %1190 = vst [vmem:[#allocation2 + $0xc] sm:$0xf] %v1189_v59  ;;  %v910_v62 = vrot.slane %v908_v52, 7  ;;  %v741_v63 = vmul.f32 %v5665_v22, %v5935_v0  ;;  %v742_v43 = vmul.f32 %v5667_v28, %v5949_v18  ;;  %v1209_v28 = vld [vmem:[#allocation2 + $0x30] sm:$0xf] }
  0x46   : > { %v6061_v4 = vpop.eup %5674  ;;  %1191 = vst.msk [vmem:[#allocation2 + $0x10] sm:$0xf] %vm311_vm0, %v880_v47  ;;  %v1203_v6 = vsel %vm6037_vm13, %v905_v14, %v1202_v37  ;;  %v743_v10 = vmul.f32 %v5671_v5, %v5961_v33  ;;  %v744_v50 = vmul.f32 %v5673_v58, %v5973_v41  ;;  %v1193_v11 = vsel %vm5837_vm3, %v881_v51, %v1192_v53  ;;  %v1213_v44 = vld [vmem:[#allocation2 + $0x38] sm:$0x1] }
  0x47   : > { %v913_v54 = vor.u32 %v911_v61, %v910_v62  ;;  %v915_v0 = vrot.slane %v910_v62, 4  ;;  %1204 = vst [vmem:[#allocation2 + $0x24] sm:$0xf] %v1203_v6  ;;  %v5439_v18 = vpack.c.bf16 %v741_v63, %v741_v63  ;;  %v5440_v16 = vpack.c.bf16 %v742_v43, %v742_v43  ;;  %1194 = vst [vmem:[#allocation2 + $0x14] sm:$0x1] %v1193_v11 }
  0x48   : > { %v5441_v19 = vpack.c.bf16 %v743_v10, %v743_v10  ;;  %v5442_v20 = vpack.c.bf16 %v744_v50, %v744_v50  ;;  %v1200_v21 = vsel %vm5837_vm3, %v898_v55, %v1199_v2  ;;  %v649_v22 = vadd.f32 1.0, %v5663_v15 }
  0x49   : > { %v914_v33 = vsel %vm6044_vm14, %v906_v60, %v913_v54  ;;  %v917_v41 = vshrl.u32 %v5439_v18, 16  ;;  %v920_v24 = vshll.u32 %v5439_v18, 16  ;;  %1201 = vst [vmem:[#allocation2 + $0x20] sm:$0x1] %v1200_v21  ;;  %v1207_v25 = vsel %vm5837_vm3, %v915_v0, %v1206_v12  ;;  %v6077_v32 = vld [vmem:[#allocation2 + $0x18] sm:$0xe] }
  0x4a   : > { %1205 = vst.msk [vmem:[#allocation2 + $0x28] sm:$0xf] %vm311_vm0, %v914_v33  ;;  %v925_v26 = vshrl.u32 %v5440_v16, 16  ;;  %v928_v27 = vshll.u32 %v5440_v16, 16  ;;  %v934_v29 = vshrl.u32 %v5441_v19, 16  ;;  %v937_v31 = vshll.u32 %v5441_v19, 16 }
  0x4b   : > { %1208 = vst [vmem:[#allocation2 + $0x2c] sm:$0x1] %v1207_v25  ;;  %v5579_v15 = vld [vmem:[#allocation2 + $0x18] sm:$0xff]   ;;  %v919_v55 = vrot.slane %v917_v41, 7  ;;  %5676 = vrcp.f32 %v649_v22  ;;  %v942_v42 = vshrl.u32 %v5442_v20, 16  ;;  %v945_v52 = vshll.u32 %v5442_v20, 16 }
  0x4c   : > { %v927_v39 = vrot.slane %v925_v26, 7  ;;  %v936_v40 = vrot.slane %v934_v29, 7  ;;  %5678 = vpow2.f32 %v6025_v56  ;;  %2431 = vrot.lane.b32.xlu1 %v5579_v15, %s5775_s13  ;;  %v5582_v45 = vld [vmem:[#allocation2 + $0x18] sm:$0xff]   ;;  %v5345_v37 = vrot.slane %v6077_v32, 9  ;;  %v1220_v60 = vld [vmem:[#allocation2 + $0x44] sm:$0x1] }
  0x4d   : > { %v5580_v5 = vld [vmem:[#allocation2 + $0xc] sm:$0xff]   ;;  %v922_v48 = vor.u32 %v920_v24, %v919_v55  ;;  %v923_v51 = vrot.slane %v919_v55, 4  ;;  %v944_v61 = vrot.slane %v942_v42, 7  ;;  %v650_v63 = vadd.f32 1.0, %v6050_v36  ;;  %v4084_v24 = vld [vmem:[#allocation2 + $0x1c] sm:$0xf] }
  0x4e   : > { %v930_v53 = vor.u32 %v928_v27, %v927_v39  ;;  %v932_v58 = vrot.slane %v927_v39, 4  ;;  %v939_v59 = vor.u32 %v937_v31, %v936_v40  ;;  %v940_v14 = vrot.slane %v936_v40, 4  ;;  %2429 = vrot.lane.b32.xlu0 %v5580_v5, %s5775_s13  ;;  %v3039_v47 = vld [vmem:[#allocation2 + $0xc] sm:$0xe]  ;;  %v3040_v62 = vld [vmem:[#allocation2 + $0x10] sm:$0xf] }
  0x4f   : > { %v1210_v56 = vsel %vm6037_vm13, %v922_v48, %v1209_v28  ;;  %v3041_v6 = vld [vmem:[#allocation2 + $0x14] sm:$0x1]  ;;  %v5281_v10 = vrot.slane %v3039_v47, 9  ;;  %v3137_v50 = vrot.slane %v3040_v62, 5  ;;  %v1996_v11 = vld [vmem:[#allocation2 + $0xc] sm:$0xe]  ;;  %v947_v54 = vor.u32 %v945_v52, %v944_v61 }
  0x50   : > { %v931_v43 = vsel %vm6044_vm14, %v923_v51, %v930_v53  ;;  %1211 = vst [vmem:[#allocation2 + $0x30] sm:$0xf] %v1210_v56  ;;  %v1217_v2 = vsel %vm6037_vm13, %v939_v59, %v1216_v34  ;;  %v949_v0 = vrot.slane %v944_v61, 4  ;;  %v1214_v36 = vsel %vm5837_vm3, %v932_v58, %v1213_v44  ;;  %v1997_v20 = vld [vmem:[#allocation2 + $0x10] sm:$0xf] }
  0x51   : > { %v5581_v12 = vld [vmem:[#allocation2 + $0x24] sm:$0xff]   ;;  %1212 = vst.msk [vmem:[#allocation2 + $0x34] sm:$0xf] %vm311_vm0, %v931_v43  ;;  %1218 = vst [vmem:[#allocation2 + $0x3c] sm:$0xf] %v1217_v2  ;;  %5680 = vrcp.f32 %v650_v63  ;;  %v3139_v16 = vrot.slane %v3137_v50, 4  ;;  %v948_v22 = vsel %vm6044_vm14, %v940_v14, %v947_v54  ;;  %v6103_v55 = vsel %vm5864_vm8, %v5281_v10, %v3137_v50 }
  0x52   : > { %v5584_v18 = vld [vmem:[#allocation2 + $0x24] sm:$0xff]   ;;  %v3140_v19 = vrot.slane %v3041_v6, 5  ;;  %v5218_v21 = vrot.slane %v1996_v11, 9  ;;  %1215 = vst [vmem:[#allocation2 + $0x38] sm:$0x1] %v1214_v36  ;;  %3475 = vrot.lane.b32.xlu1 %v5581_v12, %s5776_s14  ;;  %3473 = vrot.lane.b32.xlu0 %v5582_v45, %s5776_s14  ;;  %v2101_v41 = vrot.slane %v1997_v20, 5  ;;  %v1221_v25 = vsel %vm5837_vm3, %v949_v0, %v1220_v60 }
  0x53   : > { %v1998_v33 = vld [vmem:[#allocation2 + $0x14] sm:$0x1]  ;;  %v651_v26 = vadd.f32 1.0, %v6061_v4  ;;  %1219 = vst.msk [vmem:[#allocation2 + $0x40] sm:$0xf] %vm311_vm0, %v948_v22  ;;  %v4181_v29 = vrot.slane %v4084_v24, 5  ;;  %5682 = vpow2.f32 %v6028_v57 }
  0x54   : > { %v2104_v27 = vrot.slane %v1998_v33, 5  ;;  %v4085_v28 = vld [vmem:[#allocation2 + $0x20] sm:$0x1]  ;;  %v3042_v31 = vld [vmem:[#allocation2 + $0x18] sm:$0xe]  ;;  %v2103_v34 = vrot.slane %v2101_v41, 4  ;;  %v3141_v5 = vsel %vm5864_vm8, %v3139_v16, %v3140_v19  ;;  %v6111_v53 = vsel %vm5864_vm8, %v5218_v21, %v2101_v41 }
  0x55   : > { %1222 = vst [vmem:[#allocation2 + $0x44] sm:$0x1] %v1221_v25  ;;  %v5677_v15 = vpop.eup %5676  ;;  %v4184_v39 = vrot.slane %v4085_v28, 5  ;;  %v3043_v40 = vld [vmem:[#allocation2 + $0x1c] sm:$0xf]  ;;  %v4183_v45 = vrot.slane %v4181_v29, 4  ;;  %v6122_v56 = vsel %vm5864_vm8, %v5345_v37, %v4181_v29  ;;  %v5297_v63 = vcombine.low %v6103_v55, %v3141_v5 }
  0x56   : > { %v3044_v42 = vld [vmem:[#allocation2 + $0x20] sm:$0x1]  ;;  %v5679_v4 = vpop.eup %5678  ;;  %v5282_v48 = vrot.slane %v3042_v31, 9  ;;  %v3144_v51 = vrot.slane %v3043_v40, 5  ;;  %v4086_v52 = vld [vmem:[#allocation2 + $0x24] sm:$0xe]  ;;  %2433 = vrot.lane.b32.xlu0 %v5584_v18, %s5775_s13  ;;  %v745_v14 = vmul.f32 %v5677_v15, %v5991_v3  ;;  %v6116_v57 = vsel %vm5864_vm8, %v2103_v34, %v2104_v27 }
  0x57   : > { %v347_v44 = vld [vmem:[#allocation2 + $0x60] sm:$0x1]  ;;  %v3147_v58 = vrot.slane %v3044_v42, 5  ;;  %v5346_v59 = vrot.slane %v4086_v52, 9  ;;  %v6126_v61 = vsel %vm5864_vm8, %v4183_v45, %v4184_v39  ;;  %v4087_v3 = vld [vmem:[#allocation2 + $0x28] sm:$0xf]  ;;  %5684 = vpow2.f32 %v6033_v49 }
  0x58   : > { %v5583_v60 = vld [vmem:[#allocation2 + $0x30] sm:$0xff]   ;;  %v3146_v47 = vrot.slane %v3144_v51, 4  ;;  %v6129_v43 = vpack.c.bf16 %v745_v14, %v745_v14  ;;  %v652_v2 = vadd.f32 1.0, %v5679_v4  ;;  %v6135_v32 = vsel %vm5864_vm8, %v5282_v48, %v3144_v51  ;;  %v4088_v6 = vld [vmem:[#allocation2 + $0x2c] sm:$0x1] }
  0x59   : > { %v5586_v62 = vld [vmem:[#allocation2 + $0x30] sm:$0xff]   ;;  %2435 = vrot.lane.b32.xlu1 %v5583_v60, %s5775_s13  ;;  %v4188_v10 = vrot.slane %v4087_v3, 5  ;;  %v2002_v50 = vld [vmem:[#allocation2 + $0x24] sm:$0xe]  ;;  %v348_v11 = vsel %vm5837_vm3, 0, %v347_v44  ;;  %v5234_v49 = vcombine.low %v6111_v53, %v6116_v57  ;;  %v5361_v0 = vcombine.low %v6122_v56, %v6126_v61 }
  0x5a   : > { %v6139_v37 = vsel %vm5864_vm8, %v3146_v47, %v3147_v58  ;;  %v5585_v54 = vld [vmem:[#allocation2 + $0x3c] sm:$0xff]   ;;  %3477 = vrot.lane.b32.xlu0 %v5586_v62, %s5776_s14  ;;  %v4191_v36 = vrot.slane %v4088_v6, 5  ;;  %v2003_v18 = vld [vmem:[#allocation2 + $0x28] sm:$0xf]  ;;  %5686 = vrcp.f32 %v651_v26  ;;  %349 = vst [vmem:[#allocation2 + $0x60] sm:$0x1] %v348_v11 }
  0x5b   : > { %v5681_v12 = vpop.eup %5680  ;;  %v6150_v16 = vsel %vm5864_vm8, %v5346_v59, %v4188_v10  ;;  %v4190_v19 = vrot.slane %v4188_v10, 4  ;;  %v2004_v20 = vld [vmem:[#allocation2 + $0x2c] sm:$0x1]  ;;  %v5220_v21 = vrot.slane %v2002_v50, 9  ;;  %v2115_v22 = vrot.slane %v2003_v18, 5 }
  0x5c   : > { %v5298_v33 = vcombine.low %v6135_v32, %v6139_v37  ;;  %v2118_v41 = vrot.slane %v2004_v20, 5  ;;  %v1999_v24 = vld [vmem:[#allocation2 + $0x18] sm:$0xe]  ;;  %v2000_v25 = vld [vmem:[#allocation2 + $0x1c] sm:$0xf]  ;;  %v746_v27 = vmul.f32 %v5681_v12, %v5997_v17  ;;  %v951_v28 = vshrl.u32 %v6129_v43, 16 }
  0x5d   : > { %3479 = vrot.lane.b32.xlu1 %v5585_v54, %s5776_s14  ;;  %v4192_v26 = vsel %vm5864_vm8, %v4190_v19, %v4191_v36  ;;  %v2117_v29 = vrot.slane %v2115_v22, 4  ;;  %v2001_v31 = vld [vmem:[#allocation2 + $0x20] sm:$0x1]  ;;  %v5219_v15 = vrot.slane %v1999_v24, 9  ;;  %v3048_v55 = vld [vmem:[#allocation2 + $0x30] sm:$0xe]  ;;  %5688 = vrcp.f32 %v652_v2  ;;  %v6159_v34 = vpop.eup %5682 }
  0x5e   : > { %3295 = vrot.lane.b32.xlu0 %v5297_v63, %s5777_s15  ;;  %v5362_v39 = vcombine.low %v6150_v16, %v4192_v26  ;;  %v6165_v17 = vsel %vm5864_vm8, %v5220_v21, %v2115_v22  ;;  %v2108_v40 = vrot.slane %v2000_v25, 5  ;;  %v2111_v42 = vrot.slane %v2001_v31, 5  ;;  %v3049_v44 = vld [vmem:[#allocation2 + $0x34] sm:$0xf]  ;;  %v3050_v4 = vld [vmem:[#allocation2 + $0x38] sm:$0x1] }
  0x5f   : > { %v2119_v5 = vsel %vm5864_vm8, %v2117_v29, %v2118_v41  ;;  %v5284_v45 = vrot.slane %v3048_v55, 9  ;;  %v3158_v48 = vrot.slane %v3049_v44, 5  ;;  %v3161_v51 = vrot.slane %v3050_v4, 5  ;;  %v3045_v52 = vld [vmem:[#allocation2 + $0x24] sm:$0xe] }
  0x60   : > { %v2109_v53 = vsel %vm5864_vm8, %v5219_v15, %v2108_v40  ;;  %v2110_v58 = vrot.slane %v2108_v40, 4  ;;  %v3046_v59 = vld [vmem:[#allocation2 + $0x28] sm:$0xf]  ;;  %v3047_v14 = vld [vmem:[#allocation2 + $0x2c] sm:$0x1]  ;;  %v5283_v60 = vrot.slane %v3045_v52, 9  ;;  %v6171_v57 = vpack.c.bf16 %v746_v27, %v746_v27 }
  0x61   : > { %2254 = vrot.lane.b32.xlu1 %v5234_v49, %s5773_s11  ;;  %v6176_v56 = vsel %vm5864_vm8, %v5284_v45, %v3158_v48  ;;  %v3160_v61 = vrot.slane %v3158_v48, 4  ;;  %v3151_v47 = vrot.slane %v3046_v59, 5  ;;  %v3154_v62 = vrot.slane %v3047_v14, 5  ;;  %v2497_v63 = vld [vmem:[#allocation2 + $0x18] sm:$0xf]  ;;  %v6178_v3 = vpop.eup %5684 }
  0x62   : > { %4339 = vrot.lane.b32.xlu0 %v5361_v0, %s5778_s16  ;;  %v5236_v2 = vcombine.low %v6165_v17, %v2119_v5  ;;  %v2112_v32 = vsel %vm5864_vm8, %v2110_v58, %v2111_v42  ;;  %v2498_v37 = vld [vmem:[#allocation2 + $0x1c] sm:$0xf]  ;;  %v2499_v6 = vld [vmem:[#allocation2 + $0x20] sm:$0x1]  ;;  %v2567_v10 = vshrl.u32 %v2497_v63, 16  ;;  %v2570_v50 = vshll.u32 %v2497_v63, 16 }
  0x63   : > { %v5235_v11 = vcombine.low %v2109_v53, %v2112_v32  ;;  %v3162_v12 = vsel %vm5864_vm8, %v3160_v61, %v3161_v51  ;;  %v3152_v54 = vsel %vm5864_vm8, %v5283_v60, %v3151_v47  ;;  %v3153_v49 = vrot.slane %v3151_v47, 4  ;;  %v4089_v36 = vld [vmem:[#allocation2 + $0x30] sm:$0xe]  ;;  %v4090_v18 = vld [vmem:[#allocation2 + $0x34] sm:$0xf] }
  0x64   : > { %v6188_v0 = vpop.eup %5686  ;;  %v5300_v16 = vcombine.low %v6176_v56, %v3162_v12  ;;  %v2569_v19 = vrot.slane %v2567_v10, 4  ;;  %v2572_v20 = vrot.slane %v2570_v50, 5  ;;  %v2576_v21 = vshll.u32 %v2498_v37, 16  ;;  %v4091_v22 = vld [vmem:[#allocation2 + $0x38] sm:$0x1] }
  0x65   : > { %3297 = vrot.lane.b32.xlu1 %v5298_v33, %s5777_s15  ;;  %v3155_v41 = vsel %vm5864_vm8, %v3153_v49, %v3154_v62  ;;  %v2580_v24 = vshrl.u32 %v2498_v37, 16  ;;  %v2586_v25 = vshll.u32 %v2499_v6, 16  ;;  %v5347_v27 = vrot.slane %v4089_v36, 9  ;;  %v3541_v26 = vld [vmem:[#allocation2 + $0x24] sm:$0xf] }
  0x66   : > { %4341 = vrot.lane.b32.xlu0 %v5362_v39, %s5778_s16  ;;  %v5299_v29 = vcombine.low %v3152_v54, %v3155_v41  ;;  %v2573_v31 = vor.u32 %v2572_v20, %v2569_v19  ;;  %v2578_v15 = vrot.slane %v2576_v21, 5  ;;  %v4195_v55 = vrot.slane %v4090_v18, 5  ;;  %v3542_v17 = vld [vmem:[#allocation2 + $0x28] sm:$0xf]  ;;  %v3543_v33 = vld [vmem:[#allocation2 + $0x2c] sm:$0x1] }
  0x67   : > { %v6195_v40 = vpop.eup %5688  ;;  %v2582_v42 = vrot.slane %v2580_v24, 4  ;;  %v2588_v44 = vrot.slane %v2586_v25, 5  ;;  %v4198_v4 = vrot.slane %v4091_v22, 5  ;;  %v3611_v5 = vshrl.u32 %v3541_v26, 16  ;;  %v4092_v53 = vld [vmem:[#allocation2 + $0x3c] sm:$0xe] }
  0x68   : > { %v2574_v45 = vrot.slane %v2573_v31, 4  ;;  %v4196_v48 = vsel %vm5864_vm8, %v5347_v27, %v4195_v55  ;;  %v4197_v51 = vrot.slane %v4195_v55, 4  ;;  %v3614_v52 = vshll.u32 %v3541_v26, 16  ;;  %v4093_v60 = vld [vmem:[#allocation2 + $0x40] sm:$0xf] }
  0x69   : > { %2258 = vrot.lane.b32.xlu1 %v5236_v2, %s5773_s11  ;;  %v2583_v39 = vor.u32 %v2582_v42, %v2578_v15  ;;  %v3613_v58 = vrot.slane %v3611_v5, 4  ;;  %v3620_v59 = vshll.u32 %v3542_v17, 16  ;;  %v3624_v14 = vshrl.u32 %v3542_v17, 16  ;;  %v4094_v63 = vld [vmem:[#allocation2 + $0x44] sm:$0x1] }
  0x6a   : > { %2256 = vrot.lane.b32.xlu0 %v5235_v11, %s5773_s11  ;;  %v2579_v56 = vsel %vm5941_vm11, %v2574_v45, %v2578_v15  ;;  %v4199_v61 = vsel %vm5864_vm8, %v4197_v51, %v4198_v4  ;;  %v3616_v47 = vrot.slane %v3614_v52, 5  ;;  %v3630_v62 = vshll.u32 %v3543_v33, 16  ;;  %v1451_v32 = vld [vmem:[#allocation2 + $0x18] sm:$0xf]  ;;  %v1452_v36 = vld [vmem:[#allocation2 + $0x1c] sm:$0xf] }
  0x6b   : > { %v2584_v37 = vrot.slane %v2583_v39, 4  ;;  %v5363_v6 = vcombine.low %v4196_v48, %v4199_v61  ;;  %v3622_v2 = vrot.slane %v3620_v59, 5  ;;  %v3626_v10 = vrot.slane %v3624_v14, 4  ;;  %v1453_v20 = vld [vmem:[#allocation2 + $0x20] sm:$0x1] }
  0x6c   : > { %v3617_v50 = vor.u32 %v3616_v47, %v3613_v58  ;;  %v3632_v12 = vrot.slane %v3630_v62, 5  ;;  %v5348_v54 = vrot.slane %v4092_v53, 9  ;;  %v4202_v49 = vrot.slane %v4093_v60, 5  ;;  %v1456_v48 = vld [vmem:[#allocation2 + $0x2c] sm:$0x1] }
  0x6d   : > { %3301 = vrot.lane.b32.xlu1 %v5300_v16, %s5777_s15  ;;  %v2589_v11 = vsel %vm5941_vm11, %v2584_v37, %v2588_v44  ;;  %v3627_v18 = vor.u32 %v3626_v10, %v3622_v2  ;;  %v4205_v19 = vrot.slane %v4094_v63, 5  ;;  %v1545_v21 = vshrl.u32 %v1451_v32, 16  ;;  %v1454_v16 = vld [vmem:[#allocation2 + $0x24] sm:$0xf]  ;;  %v1448_v51 = vld [vmem:[#allocation2 + $0xc] sm:$0xf] }
  0x6e   : > { %3299 = vrot.lane.b32.xlu0 %v5299_v29, %s5777_s15  ;;  %v5266_v22 = vcombine.low %v2579_v56, %v2589_v11  ;;  %v3618_v41 = vrot.slane %v3617_v50, 4  ;;  %v4203_v24 = vsel %vm5864_vm8, %v5348_v54, %v4202_v49  ;;  %v4204_v25 = vrot.slane %v4202_v49, 4  ;;  %v1455_v29 = vld [vmem:[#allocation2 + $0x28] sm:$0xf]  ;;  %v1449_v63 = vld [vmem:[#allocation2 + $0x10] sm:$0xf] }
  0x6f   : > { %v3628_v27 = vrot.slane %v3627_v18, 4  ;;  %v1547_v26 = vrot.slane %v1545_v21, 4  ;;  %v1548_v31 = vshll.u32 %v1451_v32, 16  ;;  %v1554_v15 = vshll.u32 %v1452_v36, 16  ;;  %v1450_v50 = vld [vmem:[#allocation2 + $0x14] sm:$0x1] }
  0x70   : > { %v3623_v55 = vsel %vm5941_vm11, %v3618_v41, %v3622_v2  ;;  %v4206_v17 = vsel %vm5864_vm8, %v4204_v25, %v4205_v19  ;;  %v1558_v42 = vshrl.u32 %v1452_v36, 16  ;;  %v1564_v44 = vshll.u32 %v1453_v20, 16  ;;  %v2503_v21 = vld [vmem:[#allocation2 + $0x30] sm:$0xf] }
  0x71   : > { %2976 = vrot.lane.b32.xlu1 %v5266_v22, %s5779_s17  ;;  %v3633_v4 = vsel %vm5941_vm11, %v3628_v27, %v3632_v12  ;;  %v5364_v33 = vcombine.low %v4203_v24, %v4206_v17  ;;  %v1550_v5 = vrot.slane %v1548_v31, 5  ;;  %v1556_v45 = vrot.slane %v1554_v15, 5  ;;  %v2504_v27 = vld [vmem:[#allocation2 + $0x34] sm:$0xf] }
  0x72   : > { %4343 = vrot.lane.b32.xlu0 %v5363_v6, %s5778_s16  ;;  %v5330_v52 = vcombine.low %v3623_v55, %v3633_v4  ;;  %v1560_v53 = vrot.slane %v1558_v42, 4  ;;  %v1566_v39 = vrot.slane %v1564_v44, 5  ;;  %v1569_v58 = vshrl.u32 %v1454_v16, 16  ;;  %v2505_v44 = vld [vmem:[#allocation2 + $0x38] sm:$0x1] }
  0x73   : > { %v1551_v59 = vor.u32 %v1550_v5, %v1547_v26  ;;  %v1572_v14 = vshll.u32 %v1454_v16, 16  ;;  %v1578_v60 = vshll.u32 %v1455_v29, 16  ;;  %v1582_v56 = vshrl.u32 %v1455_v29, 16 }
  0x74   : > { %v1561_v61 = vor.u32 %v1560_v53, %v1556_v45  ;;  %v1571_v47 = vrot.slane %v1569_v58, 4  ;;  %v1588_v62 = vshll.u32 %v1456_v48, 16  ;;  %v1521_v32 = vshrl.u32 %v1448_v51, 16  ;;  %v2494_v48 = vld [vmem:[#allocation2 + $0xc] sm:$0xf] }
  0x75   : > { %4020 = vrot.lane.b32.xlu1 %v5330_v52, %s5780_s18  ;;  %v1552_v37 = vrot.slane %v1551_v59, 4  ;;  %v1574_v2 = vrot.slane %v1572_v14, 5  ;;  %v1580_v10 = vrot.slane %v1578_v60, 5  ;;  %v1584_v6 = vrot.slane %v1582_v56, 4  ;;  %v2495_v58 = vld [vmem:[#allocation2 + $0x10] sm:$0xf] }
  0x76   : > { %4345 = vrot.lane.b32.xlu0 %v5364_v33, %s5778_s16  ;;  %v1562_v12 = vrot.slane %v1561_v61, 4  ;;  %v1590_v54 = vrot.slane %v1588_v62, 5  ;;  %v1523_v49 = vrot.slane %v1521_v32, 4  ;;  %v1524_v36 = vshll.u32 %v1448_v51, 16  ;;  %v2496_v62 = vld [vmem:[#allocation2 + $0x14] sm:$0x1] }
  0x77   : > { %v1557_v11 = vsel %vm5941_vm11, %v1552_v37, %v1556_v45  ;;  %v1575_v18 = vor.u32 %v1574_v2, %v1571_v47  ;;  %v1585_v19 = vor.u32 %v1584_v6, %v1580_v10  ;;  %v1530_v20 = vshll.u32 %v1449_v63, 16 }
  0x78   : > { %v1567_v22 = vsel %vm5941_vm11, %v1562_v12, %v1566_v39  ;;  %v1526_v41 = vrot.slane %v1524_v36, 5  ;;  %v1534_v24 = vshrl.u32 %v1449_v63, 16  ;;  %v1540_v25 = vshll.u32 %v1450_v50, 16  ;;  %v3547_v50 = vld [vmem:[#allocation2 + $0x3c] sm:$0xf] }
  0x79   : > { %v5203_v26 = vcombine.low %v1557_v11, %v1567_v22  ;;  %v1576_v31 = vrot.slane %v1575_v18, 4  ;;  %v1586_v15 = vrot.slane %v1585_v19, 4  ;;  %v1532_v16 = vrot.slane %v1530_v20, 5  ;;  %v3548_v11 = vld [vmem:[#allocation2 + $0x40] sm:$0xf] }
  0x7a   : > { %v1527_v55 = vor.u32 %v1526_v41, %v1523_v49  ;;  %v1536_v17 = vrot.slane %v1534_v24, 4  ;;  %v1542_v42 = vrot.slane %v1540_v25, 5  ;;  %v2615_v29 = vshrl.u32 %v2503_v21, 16 }
  0x7b   : > { %1932 = vrot.lane.b32.xlu1 %v5203_v26, %s5774_s12  ;;  %v1581_v4 = vsel %vm5941_vm11, %v1576_v31, %v1580_v10  ;;  %v1591_v33 = vsel %vm5941_vm11, %v1586_v15, %v1590_v54  ;;  %v2618_v5 = vshll.u32 %v2503_v21, 16  ;;  %v2624_v45 = vshll.u32 %v2504_v27, 16  ;;  %v3549_v31 = vld [vmem:[#allocation2 + $0x44] sm:$0x1] }
  0x7c   : > { %v5204_v51 = vcombine.low %v1581_v4, %v1591_v33  ;;  %v1528_v52 = vrot.slane %v1527_v55, 4  ;;  %v1537_v53 = vor.u32 %v1536_v17, %v1532_v16  ;;  %v2617_v39 = vrot.slane %v2615_v29, 4  ;;  %v3538_v29 = vld [vmem:[#allocation2 + $0x18] sm:$0xf] }
  0x7d   : > { %v2620_v59 = vrot.slane %v2618_v5, 5  ;;  %v2626_v14 = vrot.slane %v2624_v45, 5  ;;  %v2628_v60 = vshrl.u32 %v2504_v27, 16  ;;  %v2634_v56 = vshll.u32 %v2505_v44, 16 }
  0x7e   : > { %v1533_v61 = vsel %vm5941_vm11, %v1528_v52, %v1532_v16  ;;  %v1538_v47 = vrot.slane %v1537_v53, 4  ;;  %v2543_v63 = vshrl.u32 %v2494_v48, 16  ;;  %v2546_v32 = vshll.u32 %v2494_v48, 16  ;;  %v3539_v48 = vld [vmem:[#allocation2 + $0x1c] sm:$0xf] }
  0x7f   : > { %1934 = vrot.lane.b32.xlu1 %v5204_v51, %s5774_s12  ;;  %v2621_v37 = vor.u32 %v2620_v59, %v2617_v39  ;;  %v2630_v2 = vrot.slane %v2628_v60, 4  ;;  %v2636_v10 = vrot.slane %v2634_v56, 5  ;;  %v2552_v6 = vshll.u32 %v2495_v58, 16  ;;  %v2500_v59 = vld [vmem:[#allocation2 + $0x24] sm:$0xf] }
  0x80   : > { %v1543_v12 = vsel %vm5941_vm11, %v1538_v47, %v1542_v42  ;;  %v2545_v54 = vrot.slane %v2543_v63, 4  ;;  %v2548_v49 = vrot.slane %v2546_v32, 5  ;;  %v2556_v36 = vshrl.u32 %v2495_v58, 16  ;;  %v3540_v58 = vld [vmem:[#allocation2 + $0x20] sm:$0x1] }
  0x81   : > { %v5202_v18 = vcombine.low %v1533_v61, %v1543_v12  ;;  %v2622_v19 = vrot.slane %v2621_v37, 4  ;;  %v2631_v20 = vor.u32 %v2630_v2, %v2626_v14  ;;  %v2554_v21 = vrot.slane %v2552_v6, 5 }
  0x82   : > { %v2549_v22 = vor.u32 %v2548_v49, %v2545_v54  ;;  %v2558_v41 = vrot.slane %v2556_v36, 4  ;;  %v2562_v24 = vshll.u32 %v2496_v62, 16  ;;  %v3659_v25 = vshrl.u32 %v3547_v50, 16 }
  0x83   : > { %1930 = vrot.lane.b32.xlu0 %v5202_v18, %s5774_s12  ;;  %v2627_v27 = vsel %vm5941_vm11, %v2622_v19, %v2626_v14  ;;  %v2632_v26 = vrot.slane %v2631_v20, 4  ;;  %v3662_v15 = vshll.u32 %v3547_v50, 16  ;;  %v3668_v16 = vshll.u32 %v3548_v11, 16  ;;  %v2501_v50 = vld [vmem:[#allocation2 + $0x28] sm:$0xf] }
  0x84   : > { %v2550_v55 = vrot.slane %v2549_v22, 4  ;;  %v2559_v17 = vor.u32 %v2558_v41, %v2554_v21  ;;  %v2564_v42 = vrot.slane %v2562_v24, 5  ;;  %v3661_v44 = vrot.slane %v3659_v25, 4  ;;  %v2502_v24 = vld [vmem:[#allocation2 + $0x2c] sm:$0x1] }
  0x85   : > { %v2637_v4 = vsel %vm5941_vm11, %v2632_v26, %v2636_v10  ;;  %v3664_v33 = vrot.slane %v3662_v15, 5  ;;  %v3670_v5 = vrot.slane %v3668_v16, 5  ;;  %v3672_v45 = vshrl.u32 %v3548_v11, 16 }
  0x86   : > { %v5268_v51 = vcombine.low %v2627_v27, %v2637_v4  ;;  %v2555_v52 = vsel %vm5941_vm11, %v2550_v55, %v2554_v21  ;;  %v2560_v53 = vrot.slane %v2559_v17, 4  ;;  %v3678_v39 = vshll.u32 %v3549_v31, 16  ;;  %v1457_v27 = vld [vmem:[#allocation2 + $0x30] sm:$0xf]  ;;  %v1458_v55 = vld [vmem:[#allocation2 + $0x34] sm:$0xf] }
  0x87   : > { %v3665_v14 = vor.u32 %v3664_v33, %v3661_v44  ;;  %v3674_v60 = vrot.slane %v3672_v45, 4  ;;  %v3587_v56 = vshrl.u32 %v3538_v29, 16  ;;  %v3590_v61 = vshll.u32 %v3538_v29, 16  ;;  %v1459_v45 = vld [vmem:[#allocation2 + $0x38] sm:$0x1] }
  0x88   : > { %2980 = vrot.lane.b32.xlu1 %v5268_v51, %s5779_s17  ;;  %v2565_v47 = vsel %vm5941_vm11, %v2560_v53, %v2564_v42  ;;  %v3680_v62 = vrot.slane %v3678_v39, 5  ;;  %v3596_v63 = vshll.u32 %v3539_v48, 16  ;;  %v3600_v32 = vshrl.u32 %v3539_v48, 16 }
  0x89   : > { %v5265_v37 = vcombine.low %v2555_v52, %v2565_v47  ;;  %v3666_v2 = vrot.slane %v3665_v14, 4  ;;  %v3675_v10 = vor.u32 %v3674_v60, %v3670_v5  ;;  %v3589_v6 = vrot.slane %v3587_v56, 4 }
  0x8a   : > { %v3592_v12 = vrot.slane %v3590_v61, 5  ;;  %v3598_v54 = vrot.slane %v3596_v63, 5  ;;  %v3602_v49 = vrot.slane %v3600_v32, 4  ;;  %v3606_v36 = vshll.u32 %v3540_v58, 16  ;;  %v3544_v58 = vld [vmem:[#allocation2 + $0x30] sm:$0xf] }
  0x8b   : > { %2974 = vrot.lane.b32.xlu0 %v5265_v37, %s5779_s17  ;;  %v3671_v11 = vsel %vm5941_vm11, %v3666_v2, %v3670_v5  ;;  %v3676_v18 = vrot.slane %v3675_v10, 4  ;;  %v2591_v19 = vshrl.u32 %v2500_v59, 16  ;;  %v2594_v20 = vshll.u32 %v2500_v59, 16  ;;  %v3545_v59 = vld [vmem:[#allocation2 + $0x34] sm:$0xf] }
  0x8c   : > { %v3593_v21 = vor.u32 %v3592_v12, %v3589_v6  ;;  %v3603_v22 = vor.u32 %v3602_v49, %v3598_v54  ;;  %v3608_v41 = vrot.slane %v3606_v36, 5  ;;  %v2600_v25 = vshll.u32 %v2501_v50, 16  ;;  %v3546_v37 = vld [vmem:[#allocation2 + $0x38] sm:$0x1]  ;;  %v1460_v2 = vld [vmem:[#allocation2 + $0x3c] sm:$0xf] }
  0x8d   : > { %v3681_v26 = vsel %vm5941_vm11, %v3676_v18, %v3680_v62  ;;  %v2593_v31 = vrot.slane %v2591_v19, 4  ;;  %v2596_v15 = vrot.slane %v2594_v20, 5  ;;  %v2604_v16 = vshrl.u32 %v2501_v50, 16  ;;  %v1461_v18 = vld [vmem:[#allocation2 + $0x40] sm:$0xf] }
  0x8e   : > { %v5332_v17 = vcombine.low %v3671_v11, %v3681_v26  ;;  %v3594_v42 = vrot.slane %v3593_v21, 4  ;;  %v3604_v44 = vrot.slane %v3603_v22, 4  ;;  %v2602_v29 = vrot.slane %v2600_v25, 5  ;;  %v1462_v26 = vld [vmem:[#allocation2 + $0x44] sm:$0x1] }
  0x8f   : > { %v2597_v4 = vor.u32 %v2596_v15, %v2593_v31  ;;  %v2606_v33 = vrot.slane %v2604_v16, 4  ;;  %v2610_v5 = vshll.u32 %v2502_v24, 16  ;;  %v1593_v48 = vshrl.u32 %v1457_v27, 16 }
  0x90   : > { %4024 = vrot.lane.b32.xlu1 %v5332_v17, %s5780_s18  ;;  %v3599_v51 = vsel %vm5941_vm11, %v3594_v42, %v3598_v54  ;;  %v3609_v52 = vsel %vm5941_vm11, %v3604_v44, %v3608_v41  ;;  %v1596_v53 = vshll.u32 %v1457_v27, 16  ;;  %v1602_v39 = vshll.u32 %v1458_v55, 16  ;;  %v2005_v17 = vld [vmem:[#allocation2 + $0x30] sm:$0xe] }
  0x91   : > { %v5329_v14 = vcombine.low %v3599_v51, %v3609_v52  ;;  %v2598_v60 = vrot.slane %v2597_v4, 4  ;;  %v2607_v56 = vor.u32 %v2606_v33, %v2602_v29  ;;  %v2612_v61 = vrot.slane %v2610_v5, 5  ;;  %v2006_v33 = vld [vmem:[#allocation2 + $0x34] sm:$0xf] }
  0x92   : > { %v1595_v47 = vrot.slane %v1593_v48, 4  ;;  %v1598_v62 = vrot.slane %v1596_v53, 5  ;;  %v1604_v63 = vrot.slane %v1602_v39, 5  ;;  %v1606_v32 = vshrl.u32 %v1458_v55, 16 }
  0x93   : > { %4018 = vrot.lane.b32.xlu0 %v5329_v14, %s5780_s18  ;;  %v2603_v10 = vsel %vm5941_vm11, %v2598_v60, %v2602_v29  ;;  %v2608_v6 = vrot.slane %v2607_v56, 4  ;;  %v1612_v50 = vshll.u32 %v1459_v45, 16  ;;  %v3635_v12 = vshrl.u32 %v3544_v58, 16 }
  0x94   : > { %v1599_v54 = vor.u32 %v1598_v62, %v1595_v47  ;;  %v1608_v49 = vrot.slane %v1606_v32, 4  ;;  %v3638_v36 = vshll.u32 %v3544_v58, 16  ;;  %v3644_v11 = vshll.u32 %v3545_v59, 16  ;;  %v2008_v47 = vld [vmem:[#allocation2 + $0x3c] sm:$0xe] }
  0x95   : > { %v2613_v19 = vsel %vm5941_vm11, %v2608_v6, %v2612_v61  ;;  %v1614_v20 = vrot.slane %v1612_v50, 5  ;;  %v3637_v21 = vrot.slane %v3635_v12, 4  ;;  %v3648_v22 = vshrl.u32 %v3545_v59, 16  ;;  %v2007_v59 = vld [vmem:[#allocation2 + $0x38] sm:$0x1] }
  0x96   : > { %v5267_v41 = vcombine.low %v2603_v10, %v2613_v19  ;;  %v1600_v24 = vrot.slane %v1599_v54, 4  ;;  %v1609_v25 = vor.u32 %v1608_v49, %v1604_v63  ;;  %v3640_v27 = vrot.slane %v3638_v36, 5  ;;  %v2010_v10 = vld [vmem:[#allocation2 + $0x44] sm:$0x1] }
  0x97   : > { %v3646_v31 = vrot.slane %v3644_v11, 5  ;;  %v3650_v15 = vrot.slane %v3648_v22, 4  ;;  %v3654_v16 = vshll.u32 %v3546_v37, 16  ;;  %v1617_v55 = vshrl.u32 %v1460_v2, 16 }
  0x98   : > { %2978 = vrot.lane.b32.xlu0 %v5267_v41, %s5779_s17  ;;  %v1605_v42 = vsel %vm5941_vm11, %v1600_v24, %v1604_v63  ;;  %v1610_v44 = vrot.slane %v1609_v25, 4  ;;  %v3641_v29 = vor.u32 %v3640_v27, %v3637_v21  ;;  %v1620_v4 = vshll.u32 %v1460_v2, 16  ;;  %v2009_v2 = vld [vmem:[#allocation2 + $0x40] sm:$0xf] }
  0x99   : > { %v3651_v5 = vor.u32 %v3650_v15, %v3646_v31  ;;  %v3656_v45 = vrot.slane %v3654_v16, 5  ;;  %v1619_v48 = vrot.slane %v1617_v55, 4  ;;  %v1626_v51 = vshll.u32 %v1461_v18, 16  ;;  %v1223_v55 = vld [vmem:[#allocation2 + $0x48] sm:$0xf] }
  0x9a   : > { %v1615_v52 = vsel %vm5941_vm11, %v1610_v44, %v1614_v20  ;;  %v3642_v53 = vrot.slane %v3641_v29, 4  ;;  %v1622_v39 = vrot.slane %v1620_v4, 5  ;;  %v1630_v58 = vshrl.u32 %v1461_v18, 16 }
  0x9b   : > { %v5205_v14 = vcombine.low %v1605_v42, %v1615_v52  ;;  %v3652_v60 = vrot.slane %v3651_v5, 4  ;;  %v1628_v56 = vrot.slane %v1626_v51, 5  ;;  %v1636_v61 = vshll.u32 %v1462_v26, 16  ;;  %v2508_v52 = vld [vmem:[#allocation2 + $0x44] sm:$0x1] }
  0x9c   : > { %v3647_v62 = vsel %vm5941_vm11, %v3642_v53, %v3646_v31  ;;  %v1623_v63 = vor.u32 %v1622_v39, %v1619_v48  ;;  %v1632_v32 = vrot.slane %v1630_v58, 4  ;;  %v5221_v37 = vrot.slane %v2005_v17, 9  ;;  %v2506_v17 = vld [vmem:[#allocation2 + $0x3c] sm:$0xf] }
  0x9d   : > { %1936 = vrot.lane.b32.xlu1 %v5205_v14, %s5774_s12  ;;  %v3657_v6 = vsel %vm5941_vm11, %v3652_v60, %v3656_v45  ;;  %v1638_v50 = vrot.slane %v1636_v61, 5  ;;  %v2122_v12 = vrot.slane %v2006_v33, 5  ;;  %v2125_v54 = vrot.slane %v2007_v59, 5  ;;  %v1227_v33 = vld [vmem:[#allocation2 + $0x50] sm:$0x1]  ;;  %v5587_v45 = vld [vmem:[#allocation2 + $0x3c] sm:$0xff]  }
  0x9e   : > { %v5331_v49 = vcombine.low %v3647_v62, %v3657_v6  ;;  %v1624_v36 = vrot.slane %v1623_v63, 4  ;;  %v1633_v11 = vor.u32 %v1632_v32, %v1628_v56  ;;  %v5222_v18 = vrot.slane %v2008_v47, 9  ;;  %v3051_v14 = vld [vmem:[#allocation2 + $0x3c] sm:$0xe]  ;;  %v3052_v60 = vld [vmem:[#allocation2 + $0x40] sm:$0xf] }
  0x9f   : > { %v2123_v19 = vsel %vm5864_vm8, %v5221_v37, %v2122_v12  ;;  %v2124_v20 = vrot.slane %v2122_v12, 4  ;;  %v2129_v21 = vrot.slane %v2009_v2, 5  ;;  %v2132_v22 = vrot.slane %v2010_v10, 5  ;;  %v3053_v63 = vld [vmem:[#allocation2 + $0x44] sm:$0x1] }
  0xa0   : > { %4022 = vrot.lane.b32.xlu0 %v5331_v49, %s5780_s18  ;;  %v1629_v41 = vsel %vm5941_vm11, %v1624_v36, %v1628_v56  ;;  %v1634_v24 = vrot.slane %v1633_v11, 4  ;;  %v953_v25 = vrot.slane %v951_v28, 7  ;;  %v954_v27 = vshll.u32 %v6129_v43, 16  ;;  %v2507_v28 = vld [vmem:[#allocation2 + $0x40] sm:$0xf] }
  0xa1   : > { %v2126_v26 = vsel %vm5864_vm8, %v2124_v20, %v2125_v54  ;;  %v2130_v31 = vsel %vm5864_vm8, %v5222_v18, %v2129_v21  ;;  %v2131_v15 = vrot.slane %v2129_v21, 4  ;;  %v959_v16 = vshrl.u32 %v6171_v57, 16 }
  0xa2   : > { %v1639_v42 = vsel %vm5941_vm11, %v1634_v24, %v1638_v50  ;;  %v5237_v44 = vcombine.low %v2123_v19, %v2126_v26  ;;  %v956_v29 = vor.u32 %v954_v27, %v953_v25  ;;  %v957_v4 = vrot.slane %v953_v25, 4 }
  0xa3   : > { %v5206_v43 = vcombine.low %v1629_v41, %v1639_v42  ;;  %v2133_v5 = vsel %vm5864_vm8, %v2131_v15, %v2132_v22  ;;  %v961_v48 = vrot.slane %v959_v16, 7  ;;  %v962_v51 = vshll.u32 %v6171_v57, 16  ;;  %v449_v16 = vld [vmem:[%s5871_s8 + $0x80] sm:$0xff] }
  0xa4   : > { %2260 = vrot.lane.b32.xlu0 %v5237_v44, %s5773_s11  ;;  %v5238_v53 = vcombine.low %v2130_v31, %v2133_v5  ;;  %v1224_v39 = vsel %vm6037_vm13, %v956_v29, %v1223_v55  ;;  %v2639_v58 = vshrl.u32 %v2506_v17, 16  ;;  %v2642_v59 = vshll.u32 %v2506_v17, 16 }
  0xa5   : > { %1938 = vrot.lane.b32.xlu1 %v5206_v43, %s5774_s12  ;;  %v964_v56 = vor.u32 %v962_v51, %v961_v48  ;;  %v966_v61 = vrot.slane %v961_v48, 4  ;;  %1225 = vst [vmem:[#allocation2 + $0x48] sm:$0xf] %v1224_v39  ;;  %v2648_v47 = vshll.u32 %v2507_v28, 16  ;;  %v2652_v62 = vshrl.u32 %v2507_v28, 16 }
  0xa6   : > { %v2641_v57 = vrot.slane %v2639_v58, 4  ;;  %v2644_v32 = vrot.slane %v2642_v59, 5  ;;  %v2658_v37 = vshll.u32 %v2508_v52, 16  ;;  %v5285_v54 = vrot.slane %v3051_v14, 9  ;;  %v1230_v52 = vld [vmem:[#allocation2 + $0x54] sm:$0xf] }
  0xa7   : > { %v965_v2 = vsel %vm6044_vm14, %v957_v4, %v964_v56  ;;  %v2650_v10 = vrot.slane %v2648_v47, 5  ;;  %v2654_v6 = vrot.slane %v2652_v62, 4  ;;  %v1228_v50 = vsel %vm5837_vm3, %v966_v61, %v1227_v33 }
  0xa8   : > { %2437 = vrot.lane.b32.xlu0 %v5587_v45, %s5775_s13  ;;  %1226 = vst.msk [vmem:[#allocation2 + $0x4c] sm:$0xf] %vm311_vm0, %v965_v2  ;;  %v2645_v12 = vor.u32 %v2644_v32, %v2641_v57  ;;  %1229 = vst [vmem:[#allocation2 + $0x50] sm:$0x1] %v1228_v50  ;;  %v3165_v49 = vrot.slane %v3052_v60, 5  ;;  %v3168_v36 = vrot.slane %v3053_v63, 5  ;;  %v747_v19 = vmul.f32 %v6188_v0, %v6006_v30 }
  0xa9   : > { %2262 = vrot.lane.b32.xlu1 %v5238_v53, %s5773_s11  ;;  %v2655_v11 = vor.u32 %v2654_v6, %v2650_v10  ;;  %v2660_v18 = vrot.slane %v2658_v37, 5  ;;  %v653_v24 = vadd.f32 1.0, %v6159_v34  ;;  %v654_v15 = vadd.f32 1.0, %v6178_v3  ;;  %v6317_v3 = vld [vmem:[%s7622_s1] ss:$0 sm:$0xff] }
  0xaa   : > { %v2646_v20 = vrot.slane %v2645_v12, 4  ;;  %v3167_v21 = vrot.slane %v3165_v49, 4  ;;  %v5445_v41 = vpack.c.bf16 %v747_v19, %v747_v19  ;;  %v3166_v26 = vsel %vm5864_vm8, %v5285_v54, %v3165_v49 }
  0xab   : > { %v2656_v22 = vrot.slane %v2655_v11, 4  ;;  %v748_v34 = vmul.f32 %v6195_v40, %v6010_v35  ;;  %5690 = vrcp.f32 %v653_v24  ;;  %v6320_v5 = vmul.f32 %v6317_v3, %v449_v16  ;;  %v1234_v24 = vld [vmem:[#allocation2 + $0x5c] sm:$0x1] }
  0xac   : > { %v2651_v25 = vsel %vm5941_vm11, %v2646_v20, %v2650_v10  ;;  %v2509_v27 = vld [vmem:[#allocation2 + $0x48] sm:$0xf]  ;;  %v3169_v31 = vsel %vm5864_vm8, %v3167_v21, %v3168_v36  ;;  %v968_v44 = vshrl.u32 %v5445_v41, 16  ;;  %v971_v29 = vshll.u32 %v5445_v41, 16 }
  0xad   : > { %v2661_v30 = vsel %vm5941_vm11, %v2656_v22, %v2660_v18  ;;  %v2663_v0 = vshrl.u32 %v2509_v27, 16  ;;  %v2666_v55 = vshll.u32 %v2509_v27, 16  ;;  %v3054_v17 = vld [vmem:[#allocation2 + $0x48] sm:$0xe]  ;;  %v5301_v43 = vcombine.low %v3166_v26, %v3169_v31 }
  0xae   : > { %v5269_v42 = vcombine.low %v2651_v25, %v2661_v30  ;;  %v5286_v51 = vrot.slane %v3054_v17, 9  ;;  %v3550_v53 = vld [vmem:[#allocation2 + $0x48] sm:$0xf]  ;;  %v5446_v14 = vpack.c.bf16 %v748_v34, %v748_v34  ;;  %v970_v60 = vrot.slane %v968_v44, 7 }
  0xaf   : > { %v5588_v4 = vld [vmem:[#allocation2 + $0x48] sm:$0xff]   ;;  %v2665_v33 = vrot.slane %v2663_v0, 4  ;;  %v2511_v45 = vld [vmem:[#allocation2 + $0x50] sm:$0x1]  ;;  %v2668_v35 = vrot.slane %v2666_v55, 5  ;;  %5692 = vrcp.f32 %v654_v15  ;;  %v3683_v19 = vshrl.u32 %v3550_v53, 16 }
  0xb0   : > { %v2510_v28 = vld [vmem:[#allocation2 + $0x4c] sm:$0xf]  ;;  %2982 = vrot.lane.b32.xlu0 %v5269_v42, %s5779_s17  ;;  %2439 = vrot.lane.b32.xlu1 %v5588_v4, %s5775_s13  ;;  %v2682_v39 = vshll.u32 %v2511_v45, 16  ;;  %v3056_v59 = vld [vmem:[#allocation2 + $0x50] sm:$0x1]  ;;  %v973_v32 = vor.u32 %v971_v29, %v970_v60  ;;  %v974_v37 = vrot.slane %v970_v60, 4 }
  0xb1   : > { %v2672_v40 = vshll.u32 %v2510_v28, 16  ;;  %v2676_v48 = vshrl.u32 %v2510_v28, 16  ;;  %v3055_v58 = vld [vmem:[#allocation2 + $0x4c] sm:$0xf]  ;;  %v2669_v56 = vor.u32 %v2668_v35, %v2665_v33  ;;  %v3175_v57 = vrot.slane %v3056_v59, 5 }
  0xb2   : > { %v3172_v62 = vrot.slane %v3055_v58, 5  ;;  %v2684_v63 = vrot.slane %v2682_v39, 5  ;;  %v5589_v12 = vld [vmem:[#allocation2 + $0x48] sm:$0xff]   ;;  %v976_v49 = vshrl.u32 %v5446_v14, 16  ;;  %v979_v36 = vshll.u32 %v5446_v14, 16 }
  0xb3   : > { %v2674_v61 = vrot.slane %v2672_v40, 5  ;;  %v2678_v47 = vrot.slane %v2676_v48, 4  ;;  %v2670_v2 = vrot.slane %v2669_v56, 4  ;;  %v3551_v54 = vld [vmem:[#allocation2 + $0x4c] sm:$0xf]  ;;  %v1231_v11 = vsel %vm6037_vm13, %v973_v32, %v1230_v52  ;;  %v6341_v52 = vpop.permute.xlu0 %1928 }
  0xb4   : > { %3303 = vrot.lane.b32.xlu0 %v5301_v43, %s5777_s15  ;;  %v6327_v6 = vsel %vm5864_vm8, %v5286_v51, %v3172_v62  ;;  %v3174_v50 = vrot.slane %v3172_v62, 4  ;;  %v3552_v18 = vld [vmem:[#allocation2 + $0x50] sm:$0x1]  ;;  %1232 = vst [vmem:[#allocation2 + $0x54] sm:$0xf] %v1231_v11  ;;  %v3686_v41 = vshll.u32 %v3550_v53, 16  ;;  %v6339_v43 = vpop.permute.xlu1 %2252 }
  0xb5   : > { %v2679_v10 = vor.u32 %v2678_v47, %v2674_v61  ;;  %v2675_v20 = vsel %vm5941_vm11, %v2670_v2, %v2674_v61  ;;  %v4095_v25 = vld [vmem:[#allocation2 + $0x48] sm:$0xe]  ;;  %v978_v26 = vrot.slane %v976_v49, 7  ;;  %v3685_v31 = vrot.slane %v3683_v19, 4  ;;  %v4096_v16 = vld [vmem:[#allocation2 + $0x4c] sm:$0xf]  ;;  %v5691_v42 = vpop.eup %5690 }
  0xb6   : > { %v3176_v22 = vsel %vm5864_vm8, %v3174_v50, %v3175_v57  ;;  %v3692_v15 = vshll.u32 %v3551_v54, 16  ;;  %v3688_v0 = vrot.slane %v3686_v41, 5  ;;  %v3696_v55 = vshrl.u32 %v3551_v54, 16  ;;  %v4097_v34 = vld [vmem:[#allocation2 + $0x50] sm:$0x1]  ;;  %v450_v53 = vld [vmem:[%s5871_s8 + $0x88] sm:$0xff] }
  0xb7   : > { %v2680_v21 = vrot.slane %v2679_v10, 4  ;;  %v5302_v27 = vcombine.low %v6327_v6, %v3176_v22  ;;  %v3702_v17 = vshll.u32 %v3552_v18, 16  ;;  %v981_v29 = vor.u32 %v979_v36, %v978_v26  ;;  %v1463_v33 = vld [vmem:[#allocation2 + $0x48] sm:$0xf]  ;;  %v1464_v51 = vld [vmem:[#allocation2 + $0x4c] sm:$0xf] }
  0xb8   : > { %3481 = vrot.lane.b32.xlu0 %v5589_v12, %s5776_s14  ;;  %v983_v4 = vrot.slane %v978_v26, 4  ;;  %v3694_v28 = vrot.slane %v3692_v15, 5  ;;  %v3689_v45 = vor.u32 %v3688_v0, %v3685_v31  ;;  %v3698_v35 = vrot.slane %v3696_v55, 4  ;;  %v1465_v54 = vld [vmem:[#allocation2 + $0x50] sm:$0x1] }
  0xb9   : > { %v2685_v30 = vsel %vm5941_vm11, %v2680_v21, %v2684_v63  ;;  %v3704_v40 = vrot.slane %v3702_v17, 5  ;;  %v5349_v48 = vrot.slane %v4095_v25, 9  ;;  %v5693_v39 = vpop.eup %5692  ;;  %v982_v58 = vsel %vm6044_vm14, %v974_v37, %v981_v29 }
  0xba   : > { %v5270_v44 = vcombine.low %v2675_v20, %v2685_v30  ;;  %v1235_v59 = vsel %vm5837_vm3, %v983_v4, %v1234_v24  ;;  %v4209_v14 = vrot.slane %v4096_v16, 5  ;;  %v4212_v60 = vrot.slane %v4097_v34, 5  ;;  %1233 = vst.msk [vmem:[#allocation2 + $0x58] sm:$0xf] %vm311_vm0, %v982_v58  ;;  %v6372_v4 = vld [vmem:[%s7623_s2] ss:$0 sm:$0xff] }
  0xbb   : > { %v3690_v56 = vrot.slane %v3689_v45, 4  ;;  %v3699_v61 = vor.u32 %v3698_v35, %v3694_v28  ;;  %1236 = vst [vmem:[#allocation2 + $0x5c] sm:$0x1] %v1235_v59  ;;  %v1641_v47 = vshrl.u32 %v1463_v33, 16  ;;  %v1644_v62 = vshll.u32 %v1463_v33, 16 }
  0xbc   : > { %2984 = vrot.lane.b32.xlu1 %v5270_v44, %s5779_s17  ;;  %v3553_v63 = vld [vmem:[#allocation2 + $0x54] sm:$0xf]  ;;  %v4210_v57 = vsel %vm5864_vm8, %v5349_v48, %v4209_v14  ;;  %v4211_v32 = vrot.slane %v4209_v14, 4  ;;  %v1650_v2 = vshll.u32 %v1464_v51, 16  ;;  %v6353_v37 = vmul.f32 %v6317_v3, %v450_v53 }
  0xbd   : > { %v3695_v10 = vsel %vm5941_vm11, %v3690_v56, %v3694_v28  ;;  %v3700_v6 = vrot.slane %v3699_v61, 4  ;;  %v3707_v50 = vshrl.u32 %v3553_v63, 16  ;;  %v3710_v12 = vshll.u32 %v3553_v63, 16  ;;  %v4098_v18 = vld [vmem:[#allocation2 + $0x54] sm:$0xe] }
  0xbe   : > { %v4213_v49 = vsel %vm5864_vm8, %v4211_v32, %v4212_v60  ;;  %v1643_v36 = vrot.slane %v1641_v47, 4  ;;  %v1646_v11 = vrot.slane %v1644_v62, 5  ;;  %v1466_v19 = vld [vmem:[#allocation2 + $0x54] sm:$0xf]  ;;  %v749_v20 = vmul.f32 %v5691_v42, %v6013_v38  ;;  %v6361_v21 = vpop.permute.xlu1 %2431 }
  0xbf   : > { %v3705_v22 = vsel %vm5941_vm11, %v3700_v6, %v3704_v40  ;;  %v3709_v41 = vrot.slane %v3707_v50, 4  ;;  %v3712_v24 = vrot.slane %v3710_v12, 5  ;;  %v1652_v25 = vrot.slane %v1650_v2, 5 }
  0xc0   : > { %3305 = vrot.lane.b32.xlu1 %v5302_v27, %s5777_s15  ;;  %v6365_v26 = vpop.permute.xlu0 %2429  ;;  %v5333_v27 = vcombine.low %v3695_v10, %v3705_v22  ;;  %v1647_v31 = vor.u32 %v1646_v11, %v1643_v36  ;;  %v1654_v15 = vshrl.u32 %v1464_v51, 16  ;;  %v1660_v16 = vshll.u32 %v1465_v54, 16  ;;  %v2012_v36 = vld [vmem:[#allocation2 + $0x4c] sm:$0xf] }
  0xc1   : > { %v3713_v30 = vor.u32 %v3712_v24, %v3709_v41  ;;  %v5350_v0 = vrot.slane %v4098_v18, 9  ;;  %v1665_v55 = vshrl.u32 %v1466_v19, 16  ;;  %v1668_v17 = vshll.u32 %v1466_v19, 16  ;;  %v5590_v34 = vld [vmem:[#allocation2 + $0x54] sm:$0xff]  }
  0xc2   : > { %4026 = vrot.lane.b32.xlu0 %v5333_v27, %s5780_s18  ;;  %v3554_v38 = vld [vmem:[#allocation2 + $0x58] sm:$0xf]  ;;  %v5365_v42 = vcombine.low %v4210_v57, %v4213_v49  ;;  %v1648_v44 = vrot.slane %v1647_v31, 4  ;;  %v750_v29 = vmul.f32 %v5693_v39, %v6020_v46  ;;  %v6376_v28 = vadd.f32 %v6372_v4, %v6320_v5  ;;  %v3555_v33 = vld [vmem:[#allocation2 + $0x5c] sm:$0x1] }
  0xc3   : > { %v3714_v45 = vrot.slane %v3713_v30, 4  ;;  %v3716_v35 = vshll.u32 %v3554_v38, 16  ;;  %v3720_v40 = vshrl.u32 %v3554_v38, 16  ;;  %v1656_v48 = vrot.slane %v1654_v15, 4  ;;  %v4099_v58 = vld [vmem:[#allocation2 + $0x58] sm:$0xf] }
  0xc4   : > { %v6378_v51 = vpop.permute.xlu0 %3473  ;;  %3483 = vrot.lane.b32.xlu1 %v5590_v34, %s5776_s14  ;;  %v3726_v53 = vshll.u32 %v3555_v33, 16  ;;  %v1653_v46 = vsel %vm5941_vm11, %v1648_v44, %v1652_v25  ;;  %v1662_v39 = vrot.slane %v1660_v16, 5  ;;  %v4100_v59 = vld [vmem:[#allocation2 + $0x5c] sm:$0x1]  ;;  %v6383_v14 = vpack.c.bf16 %v749_v20, %v749_v20  ;;  %v6385_v5 = vpop.permute.xlu1 %3475  ;;  %v1467_v62 = vld [vmem:[#allocation2 + $0x58] sm:$0xf] }
  0xc5   : > { %v3718_v60 = vrot.slane %v3716_v35, 5  ;;  %v3722_v56 = vrot.slane %v3720_v40, 4  ;;  %v1657_v61 = vor.u32 %v1656_v48, %v1652_v25  ;;  %v4216_v47 = vrot.slane %v4099_v58, 5  ;;  %v1468_v57 = vld [vmem:[#allocation2 + $0x5c] sm:$0x1]  ;;  %v5604_v35 = vld [vmem:[%s7624_s3] sm:$0xff]  }
  0xc6   : > { %4347 = vrot.lane.b32.xlu0 %v5365_v42, %s5778_s16  ;;  %v4219_v63 = vrot.slane %v4100_v59, 5  ;;  %v1667_v32 = vrot.slane %v1665_v55, 4  ;;  %v1670_v2 = vrot.slane %v1668_v17, 5  ;;  %v6388_v10 = vpack.c.bf16 %v750_v29, %v750_v29  ;;  %v2011_v49 = vld [vmem:[#allocation2 + $0x48] sm:$0xe]  ;;  %5516 = vmatprep.subr.bf16.mxu0 %v5604_v35 }
  0xc7   : > { %v3723_v6 = vor.u32 %v3722_v56, %v3718_v60  ;;  %v3728_v50 = vrot.slane %v3726_v53, 5  ;;  %v1658_v12 = vrot.slane %v1657_v61, 4  ;;  %v4217_v54 = vsel %vm5864_vm8, %v5350_v0, %v4216_v47  ;;  %v2013_v31 = vld [vmem:[#allocation2 + $0x50] sm:$0x1]  ;;  %v2014_v15 = vld [vmem:[#allocation2 + $0x54] sm:$0xe]  ;;  %5517 = vmatpush3.bf16.msra.mxu0 %v5604_v35  ;;  %5554 = vmatprep.subr.bf16.mxu1 %v5604_v35 }
  0xc8   : > { %v6392_v11 = vpop.permute.xlu0 %2433  ;;  %v4218_v18 = vrot.slane %v4216_v47, 4  ;;  %v1671_v19 = vor.u32 %v1670_v2, %v1667_v32  ;;  %v1674_v20 = vshll.u32 %v1467_v62, 16  ;;  %v1678_v22 = vshrl.u32 %v1467_v62, 16  ;;  %v2015_v17 = vld [vmem:[#allocation2 + $0x58] sm:$0xf]  ;;  %5557 = vmatpush3.bf16.msra.mxu1 %v5604_v35 }
  0xc9   : > { %v3719_v41 = vsel %vm5941_vm11, %v3714_v45, %v3718_v60  ;;  %v3724_v24 = vrot.slane %v3723_v6, 4  ;;  %v1663_v25 = vsel %vm5941_vm11, %v1658_v12, %v1662_v39  ;;  %v1684_v27 = vshll.u32 %v1468_v57, 16  ;;  %v2016_v34 = vld [vmem:[#allocation2 + $0x5c] sm:$0x1]  ;;  %v2512_v56 = vld [vmem:[#allocation2 + $0x54] sm:$0xf] }
  0xca   : > { %v5207_v16 = vcombine.low %v1653_v46, %v1663_v25  ;;  %v4220_v30 = vsel %vm5864_vm8, %v4218_v18, %v4219_v63  ;;  %v1676_v0 = vrot.slane %v1674_v20, 5  ;;  %v5223_v55 = vrot.slane %v2011_v49, 9  ;;  %v2514_v25 = vld [vmem:[#allocation2 + $0x5c] sm:$0x1] }
  0xcb   : > { %v6400_v38 = vpop.permute.xlu1 %2435  ;;  %v3729_v42 = vsel %vm5941_vm11, %v3724_v24, %v3728_v50  ;;  %v5366_v44 = vcombine.low %v4217_v54, %v4220_v30  ;;  %v1672_v29 = vrot.slane %v1671_v19, 4  ;;  %v1680_v33 = vrot.slane %v1678_v22, 4  ;;  %v2513_v24 = vld [vmem:[#allocation2 + $0x58] sm:$0xf]  ;;  %v403_v30 = vld [vmem:[#allocation2 + $0x68] sm:$0x1] }
  0xcc   : > { %v6404_v45 = vpop.permute.xlu0 %3477  ;;  %v5334_v40 = vcombine.low %v3719_v41, %v3729_v42  ;;  %v1686_v48 = vrot.slane %v1684_v27, 5  ;;  %v2136_v53 = vrot.slane %v2012_v36, 5  ;;  %v2139_v46 = vrot.slane %v2013_v31, 5 }
  0xcd   : > { %7645 = vst [vmem:[#allocation4_spill] sm:$0xff] %v6404_v45  ;;  %4349 = vrot.lane.b32.xlu0 %v5366_v44, %s5778_s16  ;;  %v1681_v39 = vor.u32 %v1680_v33, %v1676_v0  ;;  %v5224_v58 = vrot.slane %v2014_v15, 9  ;;  %v2143_v59 = vrot.slane %v2015_v17, 5  ;;  %v2146_v60 = vrot.slane %v2016_v34, 5  ;;  %v5591_v17 = vld [vmem:[#allocation2 + $0x54] sm:$0xff]  }
  0xce   : > { %4028 = vrot.lane.b32.xlu1 %v5334_v40, %s5780_s18  ;;  %v2137_v61 = vsel %vm5864_vm8, %v5223_v55, %v2136_v53  ;;  %v2138_v47 = vrot.slane %v2136_v53, 4  ;;  %v985_v62 = vshrl.u32 %v6383_v14, 16  ;;  %v988_v63 = vshll.u32 %v6383_v14, 16  ;;  %v1237_v14 = vld [vmem:[#allocation2 + $0x60] sm:$0xf] }
  0xcf   : > { %v6415_v57 = vpop.permute.xlu1 %3479  ;;  %v1677_v32 = vsel %vm5941_vm11, %v1672_v29, %v1676_v0  ;;  %v1682_v2 = vrot.slane %v1681_v39, 4  ;;  %v2145_v6 = vrot.slane %v2143_v59, 4  ;;  %v993_v50 = vshrl.u32 %v6388_v10, 16  ;;  %v6438_v0 = vld [vmem:[#allocation2 + $0x54] sm:$0xe]  ;;  %v5593_v29 = vld [vmem:[#allocation2] sm:$0xff]  }
  0xd0   : > { %v6420_v12 = vpop.permute.xlu0 %3295  ;;  %v2140_v54 = vsel %vm5864_vm8, %v2138_v47, %v2139_v46  ;;  %v987_v49 = vrot.slane %v985_v62, 7  ;;  %v996_v36 = vshll.u32 %v6388_v10, 16  ;;  %v2687_v18 = vshrl.u32 %v2512_v56, 16  ;;  %v350_v33 = vld [vmem:[#allocation2 + $0x6c] sm:$0x1]  ;;  %1429 = vst.msk [vmem:[#allocation3] sm:$0xff] %vm7631_vm15, %v5593_v29 }
  0xd1   : > { %v1687_v19 = vsel %vm5941_vm11, %v1682_v2, %v1686_v48  ;;  %v5239_v20 = vcombine.low %v2137_v61, %v2140_v54  ;;  %v6429_v22 = vsel %vm5864_vm8, %v5224_v58, %v2143_v59  ;;  %v6431_v41 = vrot.slane %v993_v50, 7  ;;  %v5600_v58 = vld [vmem:[#allocation2 + $0x18] sm:$0xff]   ;;  %v5601_v59 = vld [vmem:[#allocation2 + $0x24] sm:$0xff]   ;;  %1977 = vst.msk [vmem:[#allocation3] sm:$0xff] %vm1976_vm1, %v6341_v52 }
  0xd2   : > { %1940 = vrot.lane.b32.xlu1 %v5207_v16, %s5774_s12  ;;  %v5208_v27 = vcombine.low %v1677_v32, %v1687_v19  ;;  %v6436_v10 = vsel %vm5864_vm8, %v2145_v6, %v2146_v60  ;;  %v990_v31 = vor.u32 %v988_v63, %v987_v49  ;;  %v991_v15 = vrot.slane %v987_v49, 4  ;;  %v6444_v16 = vld [vmem:[#allocation2 + $0x58] sm:$0xf]  ;;  %v5602_v60 = vld [vmem:[#allocation2 + $0xc] sm:$0xff]   ;;  %v3059_v62 = vld [vmem:[#allocation2 + $0x5c] sm:$0x1] }
  0xd3   : > { %v6440_v55 = vpop.permute.xlu1 %2254  ;;  %2264 = vrot.lane.b32.xlu0 %v5239_v20, %s5773_s11  ;;  %v998_v34 = vor.u32 %v996_v36, %v6431_v41  ;;  %v2689_v42 = vrot.slane %v2687_v18, 4  ;;  %v2690_v44 = vshll.u32 %v2512_v56, 16  ;;  %v6448_v35 = vadd.f32 %v6372_v4, %v6353_v37  ;;  %v5606_v63 = vld [vmem:[%s7624_s3 + $0x8] sm:$0xff]   ;;  %1431 = vst.msk [vmem:[#allocation3 + $0x10] sm:$0xff] %vm7631_vm15, %v5600_v58  ;;  %1432 = vst.msk [vmem:[#allocation3 + $0x18] sm:$0xff] %vm7631_vm15, %v5601_v59 }
  0xd4   : > { %v6450_v40 = vpop.permute.xlu0 %4339  ;;  %v1238_v48 = vsel %vm6037_vm13, %v990_v31, %v1237_v14  ;;  %v2696_v53 = vshll.u32 %v2513_v24, 16  ;;  %v2700_v46 = vshrl.u32 %v2513_v24, 16  ;;  %v2706_v39 = vshll.u32 %v2514_v25, 16  ;;  %v406_v14 = vld [vmem:[#allocation2 + $0x74] sm:$0x1]  ;;  %5518 = vmatprep.subr.bf16.mxu0 %v5606_v63  ;;  %1430 = vst.msk [vmem:[#allocation3 + $0x8] sm:$0xff] %vm7631_vm15, %v5602_v60  ;;  %5555 = vmatprep.subr.bf16.mxu1 %v5606_v63 }
  0xd5   : > { %7646 = vst [vmem:[#allocation5_spill] sm:$0xff] %v6450_v40  ;;  %v5240_v56 = vcombine.low %v6429_v22, %v6436_v10  ;;  %v999_v61 = vsel %vm6044_vm14, %v991_v15, %v998_v34  ;;  %1239 = vst [vmem:[#allocation2 + $0x60] sm:$0xf] %v1238_v48  ;;  %v2692_v37 = vrot.slane %v2690_v44, 5  ;;  %v404_v47 = vsel %vm5854_vm7, 0, %v403_v30  ;;  %5519 = vmatpush3.bf16.msra.mxu0 %v5606_v63  ;;  %v453_v44 = vld [vmem:[%s5871_s8 + $0xa0] sm:$0xff] }
  0xd6   : > { %1942 = vrot.lane.b32.xlu1 %v5208_v27, %s5774_s12  ;;  %1240 = vst.msk [vmem:[#allocation2 + $0x64] sm:$0xf] %vm311_vm0, %v999_v61  ;;  %v2698_v32 = vrot.slane %v2696_v53, 5  ;;  %v2702_v2 = vrot.slane %v2700_v46, 4  ;;  %405 = vst [vmem:[#allocation2 + $0x68] sm:$0x1] %v404_v47  ;;  %5558 = vmatpush3.bf16.msra.mxu1 %v5606_v63 }
  0xd7   : > { %v5287_v6 = vrot.slane %v6438_v0, 9  ;;  %v3179_v50 = vrot.slane %v6444_v16, 5  ;;  %v6467_v54 = vpop.permute.xlu1 %3297  ;;  %2441 = vrot.lane.b32.xlu0 %v5591_v17, %s5775_s13  ;;  %v2693_v49 = vor.u32 %v2692_v37, %v2689_v42  ;;  %v2708_v36 = vrot.slane %v2706_v39, 5  ;;  %v353_v25 = vld [vmem:[#allocation2 + $0x78] sm:$0x1]  ;;  %v451_v27 = vld [vmem:[%s5871_s8 + $0x90] sm:$0xff] }
  0xd8   : > { %v6470_v18 = vpop.permute.xlu0 %4341  ;;  %v2703_v19 = vor.u32 %v2702_v2, %v2698_v32  ;;  %v3182_v22 = vrot.slane %v3059_v62, 5  ;;  %v351_v24 = vsel %vm5837_vm3, 0, %v350_v33  ;;  %v5137_v31 = vmul.f32 -1.442695, %v6376_v28  ;;  %2301 = vst.msk [vmem:[#allocation3] sm:$0xff] %vm7632_vm2, %v6339_v43  ;;  %v452_v17 = vld [vmem:[%s5871_s8 + $0x98] sm:$0xff] }
  0xd9   : > { %v3181_v20 = vrot.slane %v3179_v50, 4  ;;  %v2694_v10 = vrot.slane %v2693_v49, 4  ;;  %352 = vst [vmem:[#allocation2 + $0x6c] sm:$0x1] %v351_v24  ;;  %v5138_v15 = vmul.f32 -1.442695, %v6448_v35  ;;  %v490_v43 = vmul.f32 %v6317_v3, %v451_v27 }
  0xda   : > { %2266 = vrot.lane.b32.xlu1 %v5240_v56, %s5773_s11  ;;  %v1000_v30 = vrot.slane %v6431_v41, 4  ;;  %v2704_v0 = vrot.slane %v2703_v19, 4  ;;  %v407_v52 = vsel %vm5854_vm7, 0, %v406_v14  ;;  %5694 = vpow2.f32 %v5137_v31  ;;  %2478 = vst.msk [vmem:[#allocation3] sm:$0xff] %vm7630_vm4, %v6365_v26  ;;  %v454_v53 = vld [vmem:[%s5871_s8 + $0xa8] sm:$0xff]  ;;  %v455_v63 = vld [vmem:[%s5871_s8 + $0xb0] sm:$0xff] }
  0xdb   : > { %v6490_v34 = vpop.permute.xlu1 %2258  ;;  %v2699_v42 = vsel %vm5941_vm11, %v2694_v10, %v2698_v32  ;;  %408 = vst [vmem:[#allocation2 + $0x74] sm:$0x1] %v407_v52  ;;  %v354_v41 = vsel %vm5837_vm3, 0, %v353_v25  ;;  %v3180_v33 = vsel %vm5864_vm8, %v5287_v6, %v3179_v50  ;;  %v3183_v48 = vsel %vm5864_vm8, %v3181_v20, %v3182_v22  ;;  %v456_v49 = vld [vmem:[%s5871_s8 + $0xb8] sm:$0xff] }
  0xdc   : > { %v2709_v16 = vsel %vm5941_vm11, %v2704_v0, %v2708_v36  ;;  %v2515_v29 = vld [vmem:[#allocation2 + $0x60] sm:$0xf]  ;;  %5696 = vpow2.f32 %v5138_v15  ;;  %355 = vst [vmem:[#allocation2 + $0x78] sm:$0x1] %v354_v41  ;;  %v6506_v26 = vpop.permute.xlu0 %2256  ;;  %v491_v60 = vmul.f32 %v6317_v3, %v452_v17  ;;  %v5303_v50 = vcombine.low %v3180_v33, %v3183_v48  ;;  %v5607_v15 = vld [vmem:[#allocation2 + $0x30] sm:$0xff]  }
  0xdd   : > { %v5592_v46 = vld [vmem:[#allocation2 + $0x60] sm:$0xff]   ;;  %v5271_v39 = vcombine.low %v2699_v42, %v2709_v16  ;;  %v1241_v58 = vld [vmem:[#allocation2 + $0x68] sm:$0x1]  ;;  %v2711_v59 = vshrl.u32 %v2515_v29, 16  ;;  %v2714_v37 = vshll.u32 %v2515_v29, 16  ;;  %v6524_v20 = vadd.f32 %v6372_v4, %v490_v43  ;;  %1433 = vst.msk [vmem:[#allocation3 + $0x20] sm:$0xff] %vm7631_vm15, %v5607_v15 }
  0xde   : > { %v1242_v56 = vsel %vm5837_vm3, %v1000_v30, %v1241_v58  ;;  %v2516_v61 = vld [vmem:[#allocation2 + $0x64] sm:$0xf]  ;;  %2443 = vrot.lane.b32.xlu1 %v5592_v46, %s5775_s13  ;;  %v6520_v14 = vld [vmem:[#allocation2 + $0x60] sm:$0xe]  ;;  %v6527_v22 = vmul.f32 %v6317_v3, %v453_v44  ;;  %v6532_v10 = vadd.f32 %v6372_v4, %v491_v60  ;;  %v6535_v31 = vmul.f32 %v6317_v3, %v454_v53 }
  0xdf   : > { %v6512_v47 = vld [vmem:[#allocation2 + $0x64] sm:$0xf]  ;;  %v6514_v62 = vpop.permute.xlu1 %3301  ;;  %2986 = vrot.lane.b32.xlu0 %v5271_v39, %s5779_s17  ;;  %1243 = vst [vmem:[#allocation2 + $0x68] sm:$0x1] %v1242_v56  ;;  %v2713_v32 = vrot.slane %v2711_v59, 4  ;;  %v2720_v2 = vshll.u32 %v2516_v61, 16  ;;  %v6542_v43 = vmul.f32 %v6317_v3, %v455_v63  ;;  %v6547_v53 = vmul.f32 %v6317_v3, %v456_v49 }
  0xe0   : > { %v2724_v6 = vshrl.u32 %v2516_v61, 16  ;;  %v2716_v36 = vrot.slane %v2714_v37, 5  ;;  %v7629_v19 = vrot.slane %v6512_v47, 5  ;;  %v3556_v27 = vld [vmem:[#allocation2 + $0x60] sm:$0xf]  ;;  %v6537_v42 = vpop.permute.xlu0 %3299  ;;  %v5288_v39 = vrot.slane %v6520_v14, 9 }
  0xe1   : > { %v6529_v24 = vrot.slane %v2720_v2, 5  ;;  %v3557_v0 = vld [vmem:[#allocation2 + $0x64] sm:$0xf]  ;;  %v3731_v52 = vshrl.u32 %v3556_v27, 16  ;;  %v3734_v17 = vshll.u32 %v3556_v27, 16  ;;  %7647 = vst [vmem:[#allocation6_spill] sm:$0xff] %v6537_v42 }
  0xe2   : > { %v2726_v25 = vrot.slane %v2724_v6, 4  ;;  %v2717_v30 = vor.u32 %v2716_v36, %v2713_v32  ;;  %v5594_v16 = vld [vmem:[#allocation2 + $0x60] sm:$0xff]   ;;  %v3740_v29 = vshll.u32 %v3557_v0, 16  ;;  %v3744_v33 = vshrl.u32 %v3557_v0, 16  ;;  %v458_v6 = vld [vmem:[%s5871_s8 + $0xc8] sm:$0xff] }
  0xe3   : > { %v6539_v41 = vpop.permute.xlu1 %2976  ;;  %3307 = vrot.lane.b32.xlu0 %v5303_v50, %s5777_s15  ;;  %v4102_v48 = vld [vmem:[#allocation2 + $0x64] sm:$0xf]  ;;  %v3188_v58 = vrot.slane %v7629_v19, 4  ;;  %v3733_v59 = vrot.slane %v3731_v52, 4  ;;  %v3736_v60 = vrot.slane %v3734_v17, 5 }
  0xe4   : > { %v2727_v44 = vor.u32 %v2726_v25, %v6529_v24  ;;  %v457_v46 = vld [vmem:[%s5871_s8 + $0xc0] sm:$0xff]  ;;  %v5695_v56 = vpop.eup %5694  ;;  %v2718_v61 = vrot.slane %v2717_v30, 4  ;;  %v3742_v63 = vrot.slane %v3740_v29, 5  ;;  %v3746_v32 = vrot.slane %v3744_v33, 4 }
  0xe5   : > { %v4101_v2 = vld [vmem:[#allocation2 + $0x60] sm:$0xe]  ;;  %v655_v25 = vadd.f32 1.0, %v5695_v56  ;;  %v3737_v27 = vor.u32 %v3736_v60, %v3733_v59  ;;  %v4223_v15 = vrot.slane %v4102_v48, 5  ;;  %v496_v14 = vmul.f32 %v6317_v3, %v457_v46  ;;  %v6559_v56 = vpop.permute.xlu0 %4343 }
  0xe6   : > { %v2728_v37 = vrot.slane %v2727_v44, 4  ;;  %v5697_v50 = vpop.eup %5696  ;;  %v2517_v49 = vld [vmem:[#allocation2 + $0x68] sm:$0x1]  ;;  %v3747_v44 = vor.u32 %v3746_v32, %v3742_v63  ;;  %v5609_v29 = vld [vmem:[#allocation2 + $0x3c] sm:$0xff]   ;;  %v5351_v40 = vrot.slane %v4101_v2, 9  ;;  %v2723_v48 = vsel %vm5941_vm11, %v2718_v61, %v6529_v24 }
  0xe7   : > { %v3062_v36 = vld [vmem:[#allocation2 + $0x68] sm:$0x1]  ;;  %v6555_v0 = vpop.permute.xlu1 %4020  ;;  %v2730_v19 = vshll.u32 %v2517_v49, 16  ;;  %3485 = vrot.lane.b32.xlu0 %v5594_v16, %s5776_s14  ;;  %v656_v30 = vadd.f32 1.0, %v5697_v50  ;;  %5698 = vrcp.f32 %v655_v25  ;;  %v3738_v33 = vrot.slane %v3737_v27, 4  ;;  %1434 = vst.msk [vmem:[#allocation3 + $0x28] sm:$0xff] %vm7631_vm15, %v5609_v29 }
  0xe8   : > { %v3189_v52 = vrot.slane %v3062_v36, 5  ;;  %v3558_v17 = vld [vmem:[#allocation2 + $0x68] sm:$0x1]  ;;  %v3748_v59 = vrot.slane %v3747_v44, 4  ;;  %v4225_v32 = vrot.slane %v4223_v15, 4  ;;  %v497_v49 = vmul.f32 %v6317_v3, %v458_v6  ;;  %v459_v29 = vld [vmem:[%s5871_s8 + $0xd0] sm:$0xff] }
  0xe9   : > { %v3750_v45 = vshll.u32 %v3558_v17, 16  ;;  %v4103_v42 = vld [vmem:[#allocation2 + $0x68] sm:$0x1]  ;;  %v2732_v46 = vrot.slane %v2730_v19, 5  ;;  %5700 = vrcp.f32 %v656_v30  ;;  %v3743_v16 = vsel %vm5941_vm11, %v3738_v33, %v3742_v63  ;;  %v1469_v50 = vld [vmem:[#allocation2 + $0x60] sm:$0xf] }
  0xea   : > { %v7648_v36 = vrot.slane %v6512_v47, 5  ;;  %v3190_v24 = vsel %vm5864_vm8, %v3188_v58, %v3189_v52  ;;  %v4226_v61 = vrot.slane %v4103_v42, 5  ;;  %v4224_v63 = vsel %vm5864_vm8, %v5351_v40, %v4223_v15  ;;  %v1470_v6 = vld [vmem:[#allocation2 + $0x64] sm:$0xf]  ;;  %v409_v27 = vld [vmem:[#allocation2 + $0x80] sm:$0x1] }
  0xeb   : > { %v3752_v60 = vrot.slane %v3750_v45, 5  ;;  %v2733_v2 = vsel %vm5941_vm11, %v2728_v37, %v2732_v46  ;;  %v6582_v47 = vadd.f32 %v6372_v4, %v6527_v22  ;;  %v1689_v42 = vshrl.u32 %v1469_v50, 16  ;;  %v356_v15 = vld [vmem:[#allocation2 + $0x84] sm:$0x1]  ;;  %v6592_v22 = vpop.permute.xlu0 %4345  ;;  %v460_v46 = vld [vmem:[%s5871_s8 + $0xd8] sm:$0xff] }
  0xec   : > { %v3187_v19 = vsel %vm5864_vm8, %v5288_v39, %v7648_v36  ;;  %v5272_v25 = vcombine.low %v2723_v48, %v2733_v2  ;;  %v4227_v58 = vsel %vm5864_vm8, %v4225_v32, %v4226_v61  ;;  %v1692_v52 = vshll.u32 %v1469_v50, 16  ;;  %v6606_v48 = vld [vmem:[#allocation2 + $0x68] sm:$0x1]  ;;  %v412_v61 = vld [vmem:[#allocation2 + $0x8c] sm:$0x1] }
  0xed   : > { %v3753_v45 = vsel %vm5941_vm11, %v3748_v59, %v3752_v60  ;;  %v1933_v37 = vpop.permute.xlu1 %1932  ;;  %v5304_v40 = vcombine.low %v3187_v19, %v3190_v24  ;;  %v6590_v30 = vadd.f32 %v6372_v4, %v6535_v31  ;;  %v6598_v17 = vadd.f32 %v6372_v4, %v6542_v43 }
  0xee   : > { %v5335_v39 = vcombine.low %v3743_v16, %v3753_v45  ;;  %1979 = vst.msk [vmem:[#allocation3 + $0x10] sm:$0xff] %vm1976_vm1, %v1933_v37  ;;  %2988 = vrot.lane.b32.xlu1 %v5272_v25, %s5779_s17  ;;  %v6602_v44 = vadd.f32 %v6372_v4, %v6547_v53  ;;  %v5367_v33 = vcombine.low %v4224_v63, %v4227_v58  ;;  %v1698_v31 = vshll.u32 %v1470_v6, 16  ;;  %v6646_v37 = vld [vmem:[#allocation2 + $0x64] sm:$0xf] }
  0xef   : > { %2303 = vst.msk [vmem:[#allocation3 + $0x10] sm:$0xff] %vm7632_vm2, %v6506_v26  ;;  %v6611_v26 = vadd.f32 %v6372_v4, %v496_v14  ;;  %v6614_v43 = vadd.f32 %v6372_v4, %v497_v49  ;;  %v1702_v59 = vshrl.u32 %v1470_v6, 16  ;;  %v5139_v53 = vmul.f32 -1.442695, %v6524_v20 }
  0xf0   : > { %4030 = vrot.lane.b32.xlu0 %v5335_v39, %s5780_s18  ;;  %2480 = vst.msk [vmem:[#allocation3 + $0x10] sm:$0xff] %vm7630_vm4, %v6392_v11  ;;  %v5140_v16 = vmul.f32 -1.442695, %v6532_v10  ;;  %v410_v60 = vsel %vm5854_vm7, 0, %v409_v27  ;;  %v6621_v50 = vrot.slane %v1689_v42, 4  ;;  %v6623_v2 = vrot.slane %v1692_v52, 5 }
  0xf1   : > { %v1935_v32 = vpop.permute.xlu1 %1934  ;;  %v6625_v11 = vld [vmem:[#allocation2 + $0x60] sm:$0xe]  ;;  %411 = vst [vmem:[#allocation2 + $0x80] sm:$0x1] %v410_v60  ;;  %v357_v14 = vsel %vm5837_vm3, 0, %v356_v15  ;;  %v6631_v49 = vmul.f32 %v6317_v3, %v459_v29  ;;  %v5699_v36 = vpop.eup %5698  ;;  %5702 = vpow2.f32 %v5139_v53  ;;  %v6639_v25 = vmul.f32 %v6317_v3, %v460_v46 }
  0xf2   : > { %1980 = vst.msk [vmem:[#allocation3 + $0x18] sm:$0xff] %vm1976_vm1, %v1935_v32  ;;  %3309 = vrot.lane.b32.xlu1 %v5304_v40, %s5777_s15  ;;  %358 = vst [vmem:[#allocation2 + $0x84] sm:$0x1] %v357_v14  ;;  %v5141_v19 = vmul.f32 -1.442695, %v6582_v47  ;;  %v751_v63 = vmul.f32 %v5699_v36, %v6376_v28  ;;  %v6643_v6 = vrot.slane %v1698_v31, 5  ;;  %5704 = vpow2.f32 %v5140_v16 }
  0xf3   : > { %v5142_v24 = vmul.f32 -1.442695, %v6590_v30  ;;  %2304 = vst.msk [vmem:[#allocation3 + $0x18] sm:$0xff] %vm7632_vm2, %v6490_v34  ;;  %v5701_v45 = vpop.eup %5700  ;;  %v1708_v27 = vshll.u32 %v6606_v48, 16  ;;  %v6651_v39 = vrot.slane %v1702_v59, 4  ;;  %v5225_v3 = vrot.slane %v6625_v11, 9 }
  0xf4   : > { %4351 = vrot.lane.b32.xlu0 %v5367_v33, %s5778_s16  ;;  %2481 = vst.msk [vmem:[#allocation3 + $0x18] sm:$0xff] %vm7630_vm4, %v6400_v38  ;;  %v752_v34 = vmul.f32 %v5701_v45, %v6448_v35  ;;  %5706 = vpow2.f32 %v5141_v19  ;;  %v5449_v58 = vpack.c.bf16 %v751_v63, %v751_v63  ;;  %v1695_v42 = vor.u32 %v6623_v2, %v6621_v50  ;;  %v359_v40 = vld [vmem:[#allocation2 + $0x90] sm:$0x1]  ;;  %v415_v38 = vld [vmem:[#allocation2 + $0x98] sm:$0x1] }
  0xf5   : > { %v1931_v28 = vpop.permute.xlu0 %1930  ;;  %5708 = vpow2.f32 %v5142_v24  ;;  %v413_v52 = vsel %vm5854_vm7, 0, %v412_v61  ;;  %v2150_v35 = vrot.slane %v6646_v37, 5  ;;  %v5608_v29 = vld [vmem:[%s7624_s3 + $0x10] ss:$0 sps:$4 sm:$0x33]   ;;  %v416_v16 = vsel %vm5854_vm7, 0, %v415_v38 }
  0xf6   : > { %1978 = vst.msk [vmem:[#allocation3 + $0x8] sm:$0xff] %vm1976_vm1, %v1931_v28  ;;  %v5450_v15 = vpack.c.bf16 %v752_v34, %v752_v34  ;;  %414 = vst [vmem:[#allocation2 + $0x8c] sm:$0x1] %v413_v52  ;;  %v362_v33 = vld [vmem:[#allocation2 + $0x9c] sm:$0x1]  ;;  %v1002_v48 = vshrl.u32 %v5449_v58, 16  ;;  %v1705_v45 = vor.u32 %v6651_v39, %v6643_v6 }
  0xf7   : > { %2302 = vst.msk [vmem:[#allocation3 + $0x8] sm:$0xff] %vm7632_vm2, %v6440_v55  ;;  %v1005_v31 = vshll.u32 %v5449_v58, 16  ;;  %v6665_v46 = vld [vmem:[#allocation2 + $0x68] sm:$0x1]  ;;  %v360_v55 = vsel %vm5837_vm3, 0, %v359_v40  ;;  %v6675_v2 = vrot.slane %v1708_v27, 5 }
  0xf8   : > { %2479 = vst.msk [vmem:[#allocation3 + $0x8] sm:$0xff] %vm7630_vm4, %v6361_v21  ;;  %v1010_v59 = vshrl.u32 %v5450_v15, 16  ;;  %v1013_v53 = vshll.u32 %v5450_v15, 16  ;;  %v418_v60 = vld [vmem:[#allocation2 + $0xa4] sm:$0x1]  ;;  %v1004_v32 = vrot.slane %v1002_v48, 7 }
  0xf9   : > { %3024 = vst.msk [vmem:[#allocation3 + $0x8] sm:$0xff] %vm3022_vm5, %v6539_v41  ;;  %v1244_v50 = vld [vmem:[#allocation2 + $0x6c] sm:$0xf]  ;;  %361 = vst [vmem:[#allocation2 + $0x90] sm:$0x1] %v360_v55  ;;  %vm4496_vm4 = vcmask 1041408  }
  0xfa   : > { %3345 = vst.msk [vmem:[#allocation3 + $0x8] sm:$0xff] %vm3343_vm6, %v6467_v54  ;;  %v2981_v21 = vpop.permute.xlu1 %2980  ;;  %417 = vst [vmem:[#allocation2 + $0x98] sm:$0x1] %v416_v16  ;;  %v1012_v41 = vrot.slane %v1010_v59, 7  ;;  %v2153_v14 = vrot.slane %v6665_v46, 5  ;;  %5560 = vmatprep.subr.msk.bf16.mxu0 %vm4496_vm4, %v5608_v29  ;;  %v4498_v19 = vsel %vm4496_vm4, %v5608_v29, 0  ;;  %5561 = vmatprep.subr.msk.bf16.mxu1 %vm4496_vm4, %v5608_v29  ;;  %v1007_v24 = vor.u32 %v1005_v31, %v1004_v32 }
  0xfb   : > { %3523 = vst.msk [vmem:[#allocation3 + $0x8] sm:$0xff] %vm3521_vm9, %v6385_v5  ;;  %v5143_v36 = vmul.f32 -1.442695, %v6598_v17  ;;  %v1008_v61 = vrot.slane %v1004_v32, 4  ;;  %v1248_v54 = vld [vmem:[#allocation2 + $0x74] sm:$0x1]  ;;  %5521 = vmatpush3.bf16.msra.mxu0 %v4498_v19  ;;  %5559 = vmatpush3.bf16.msra.mxu1 %v4498_v19  ;;  %v5703_v63 = vpop.eup %5702 }
  0xfc   : > { %3026 = vst.msk [vmem:[#allocation3 + $0x18] sm:$0xff] %vm3022_vm5, %v2981_v21  ;;  %v363_v5 = vsel %vm5837_vm3, 0, %v362_v33  ;;  %v1015_v27 = vor.u32 %v1013_v53, %v1012_v41  ;;  %v1017_v34 = vrot.slane %v1012_v41, 4  ;;  %v6692_v28 = vrot.slane %v1695_v42, 4  ;;  %v461_v58 = vld [vmem:[%s5871_s8 + $0xe0] sm:$0xff]  ;;  %v5705_v52 = vpop.eup %5704 }
  0xfd   : > { %4068 = vst.msk [vmem:[#allocation3 + $0x8] sm:$0xff] %vm4066_vm10, %v6555_v0  ;;  %v2152_v39 = vrot.slane %v2150_v35, 4  ;;  %364 = vst [vmem:[#allocation2 + $0x9c] sm:$0x1] %v363_v5  ;;  %v365_v0 = vld [vmem:[#allocation2 + $0xa8] sm:$0x1]  ;;  %v1245_v40 = vsel %vm6037_vm13, %v1007_v24, %v1244_v50  ;;  %5710 = vpow2.f32 %v5143_v36  ;;  %v6748_v24 = vsel %vm5864_vm8, %v5225_v3, %v2150_v35 }
  0xfe   : > { %3347 = vst.msk [vmem:[#allocation3 + $0x18] sm:$0xff] %vm3343_vm6, %v6514_v62  ;;  %v2975_v62 = vpop.permute.xlu0 %2974  ;;  %v657_v38 = vadd.f32 1.0, %v5703_v63  ;;  %v5144_v42 = vmul.f32 -1.442695, %v6602_v44  ;;  %v419_v15 = vsel %vm5854_vm7, 0, %v418_v60  ;;  %v5707_v29 = vpop.eup %5706  ;;  %v1249_v33 = vsel %vm5837_vm3, %v1017_v34, %v1248_v54 }
  0xff   : > { %4389 = vst.msk [vmem:[#allocation3 + $0x8] sm:$0xff] %vm4387_vm12, %v6470_v18  ;;  %v421_v18 = vld [vmem:[#allocation2 + $0xb0] sm:$0x1]  ;;  %1246 = vst [vmem:[#allocation2 + $0x6c] sm:$0xf] %v1245_v40  ;;  %v5709_v59 = vpop.eup %5708  ;;  %v658_v53 = vadd.f32 1.0, %v5705_v52  ;;  %v6725_v60 = vadd.f32 %v6372_v4, %v6639_v25  ;;  %v1701_v46 = vsel %vm5941_vm11, %v6692_v28, %v6643_v6 }
 0x100   : > { %3525 = vst.msk [vmem:[#allocation3 + $0x18] sm:$0xff] %vm3521_vm9, %v6415_v57  ;;  %v1016_v57 = vsel %vm6044_vm14, %v1008_v61, %v1015_v27  ;;  %v5145_v48 = vmul.f32 -1.442695, %v6611_v26  ;;  %420 = vst [vmem:[#allocation2 + $0xa4] sm:$0x1] %v419_v15  ;;  %5712 = vrcp.f32 %v657_v38  ;;  %v366_v55 = vsel %vm5837_vm3, 0, %v365_v0 }
 0x101   : > { %3023 = vst.msk [vmem:[#allocation3] sm:$0xff] %vm3022_vm5, %v2975_v62  ;;  %v368_v31 = vld [vmem:[#allocation2 + $0xb4] sm:$0x1]  ;;  %1250 = vst [vmem:[#allocation2 + $0x74] sm:$0x1] %v1249_v33  ;;  %v659_v16 = vadd.f32 1.0, %v5707_v29  ;;  %5714 = vpow2.f32 %v5144_v42  ;;  %v6754_v61 = vsel %vm5864_vm8, %v2152_v39, %v2153_v14 }
 0x102   : > { %3344 = vst.msk [vmem:[#allocation3] sm:$0xff] %vm3343_vm6, %v6420_v12  ;;  %v6721_v12 = vadd.f32 %v6372_v4, %v6631_v49  ;;  %367 = vst [vmem:[#allocation2 + $0xa8] sm:$0x1] %v366_v55  ;;  %v422_v32 = vsel %vm5854_vm7, 0, %v421_v18  ;;  %v1706_v21 = vrot.slane %v1705_v45, 4  ;;  %v660_v41 = vadd.f32 1.0, %v5709_v59  ;;  %v4025_v49 = vpop.permute.xlu1 %4024 }
 0x103   : > { %1247 = vst.msk [vmem:[#allocation2 + $0x70] sm:$0xf] %vm311_vm0, %v1016_v57  ;;  %423 = vst [vmem:[#allocation2 + $0xb0] sm:$0x1] %v422_v32  ;;  %v369_v36 = vsel %vm5837_vm3, 0, %v368_v31  ;;  %5716 = vpow2.f32 %v5145_v48  ;;  %vm4447_vm4 = vcmask 293888   ;;  %v5241_v63 = vcombine.low %v6748_v24, %v6754_v61 }
 0x104   : > { %3522 = vst.msk [vmem:[#allocation3] sm:$0xff] %vm3521_vm9, %v6378_v51  ;;  %v6732_v51 = vld [vmem:[%s7622_s1] ss:$0 sm:$0xff]  ;;  %v5146_v25 = vmul.f32 -1.442695, %v6614_v43  ;;  %5718 = vrcp.f32 %v658_v53 }
 0x105   : > { %v500_v50 = vmul.f32 %v6732_v51, %v461_v58  ;;  %4070 = vst.msk [vmem:[#allocation3 + $0x18] sm:$0xff] %vm4066_vm10, %v4025_v49  ;;  %370 = vst [vmem:[#allocation2 + $0xb4] sm:$0x1] %v369_v36  ;;  %5720 = vrcp.f32 %v659_v16  ;;  %v5147_v37 = vmul.f32 -1.442695, %v6721_v12  ;;  %v7649_v27 = vld [vmem:[#allocation5_spill] sm:$0xff] }
 0x106   : > { %4391 = vst.msk [vmem:[#allocation3 + $0x18] sm:$0xff] %vm4387_vm12, %v6592_v22  ;;  %v5148_v11 = vmul.f32 -1.442695, %v6725_v60  ;;  %v3559_v35 = vld [vmem:[#allocation2 + $0x6c] sm:$0xf]  ;;  %v1711_v22 = vsel %vm5941_vm11, %v1706_v21, %v6675_v2  ;;  %5722 = vrcp.f32 %v660_v41 }
 0x107   : > { %v6740_v19 = vadd.f32 %v6372_v4, %v500_v50  ;;  %v4019_v4 = vpop.permute.xlu0 %4018  ;;  %v4104_v14 = vld [vmem:[#allocation2 + $0x6c] sm:$0xe]  ;;  %v3755_v5 = vshrl.u32 %v3559_v35, 16  ;;  %5724 = vpow2.f32 %v5146_v25  ;;  %v3758_v6 = vshll.u32 %v3559_v35, 16  ;;  %v6775_v2 = vpop.eup %5710 }
 0x108   : > { %4067 = vst.msk [vmem:[#allocation3] sm:$0xff] %vm4066_vm10, %v4019_v4  ;;  %v3561_v34 = vld [vmem:[#allocation2 + $0x74] sm:$0x1]  ;;  %v5352_v62 = vrot.slane %v4104_v14, 9  ;;  %v6778_v52 = vcombine.low %v1701_v46, %v1711_v22  ;;  %5726 = vpow2.f32 %v5147_v37  ;;  %v1472_v33 = vld [vmem:[#allocation2 + $0x6c] sm:$0xf] }
 0x109   : > { %v6761_v3 = vmul.f32 -1.442695, %v6740_v19  ;;  %4388 = vst.msk [vmem:[#allocation3] sm:$0xff] %vm4387_vm12, %v7649_v27  ;;  %v3757_v0 = vrot.slane %v3755_v5, 4  ;;  %v3774_v58 = vshll.u32 %v3561_v34, 16  ;;  %v3760_v15 = vrot.slane %v3758_v6, 5 }
 0x10a   : > { %v5595_v54 = vld [vmem:[#allocation2 + $0x6c] sm:$0xff]   ;;  %v4106_v38 = vld [vmem:[#allocation2 + $0x74] sm:$0x1]  ;;  %v5713_v42 = vpop.eup %5712  ;;  %5728 = vpow2.f32 %v5148_v11  ;;  %v1713_v35 = vshrl.u32 %v1472_v33, 16  ;;  %v7651_v14 = vld [vmem:[#allocation4_spill] sm:$0xff] }
 0x10b   : > { %v3560_v45 = vld [vmem:[#allocation2 + $0x70] sm:$0xf]  ;;  %3487 = vrot.lane.b32.xlu1 %v5595_v54, %s5776_s14  ;;  %v2979_v48 = vpop.permute.xlu0 %2978  ;;  %v3776_v31 = vrot.slane %v3774_v58, 5  ;;  %v4233_v59 = vrot.slane %v4106_v38, 5  ;;  %v1474_v55 = vld [vmem:[#allocation2 + $0x74] sm:$0x1]  ;;  %v753_v16 = vmul.f32 %v5713_v42, %v6524_v20  ;;  %v6782_v32 = vpop.eup %5714  ;;  %v3761_v50 = vor.u32 %v3760_v15, %v3757_v0 }
 0x10c   : > { %v3764_v28 = vshll.u32 %v3560_v45, 16  ;;  %v3768_v39 = vshrl.u32 %v3560_v45, 16  ;;  %v4105_v40 = vld [vmem:[#allocation2 + $0x70] sm:$0xf]  ;;  %3025 = vst.msk [vmem:[#allocation3 + $0x10] sm:$0xff] %vm3022_vm5, %v2979_v48  ;;  %v7650_v4 = vld [vmem:[#allocation6_spill] sm:$0xff]  ;;  %5730 = vpow2.f32 %v6761_v3 }
 0x10d   : > { %v4230_v57 = vrot.slane %v4105_v40, 5  ;;  %v1473_v53 = vld [vmem:[#allocation2 + $0x70] sm:$0xf]  ;;  %v2020_v36 = vld [vmem:[#allocation2 + $0x6c] sm:$0xe]  ;;  %3346 = vst.msk [vmem:[#allocation3 + $0x10] sm:$0xff] %vm3343_vm6, %v7650_v4  ;;  %v6788_v37 = vpop.eup %5716 }
 0x10e   : > { %v3766_v18 = vrot.slane %v3764_v28, 5  ;;  %v3770_v29 = vrot.slane %v3768_v39, 4  ;;  %v2021_v25 = vld [vmem:[#allocation2 + $0x70] sm:$0xf]  ;;  %v1716_v20 = vshll.u32 %v1472_v33, 16  ;;  %v1722_v46 = vshll.u32 %v1473_v53, 16  ;;  %v5719_v54 = vpop.eup %5718 }
 0x10f   : > { %v4231_v41 = vsel %vm5864_vm8, %v5352_v62, %v4230_v57  ;;  %v4232_v49 = vrot.slane %v4230_v57, 4  ;;  %v1726_v22 = vshrl.u32 %v1473_v53, 16  ;;  %v2022_v11 = vld [vmem:[#allocation2 + $0x74] sm:$0x1]  ;;  %3524 = vst.msk [vmem:[#allocation3 + $0x10] sm:$0xff] %vm3521_vm9, %v7651_v14  ;;  %v3762_v45 = vrot.slane %v3761_v50, 4  ;;  %v6794_v28 = vpop.eup %5720  ;;  %v1937_v40 = vpop.permute.xlu1 %1936 }
 0x110   : > { %v3771_v21 = vor.u32 %v3770_v29, %v3766_v18  ;;  %v1732_v34 = vshll.u32 %v1474_v55, 16  ;;  %v4404_v6 = vld [vmem:[#allocation3] sm:$0xff]  ;;  %v1715_v62 = vrot.slane %v1713_v35, 4  ;;  %v1718_v0 = vrot.slane %v1716_v20, 5  ;;  %v4405_v38 = vld [vmem:[#allocation3 + $0x8] sm:$0xff]  ;;  %v6797_v42 = vpop.eup %5722  ;;  %1981 = vst.msk [vmem:[#allocation3 + $0x20] sm:$0xff] %vm1976_vm1, %v1937_v40 }
 0x111   : > { %v4234_v27 = vsel %vm5864_vm8, %v4232_v49, %v4233_v59  ;;  %v1724_v58 = vrot.slane %v1722_v46, 5  ;;  %5522 = vmatprep.mubr.msk.bf16.mxu0 %vm4447_vm4, %v4404_v6  ;;  %v3767_v15 = vsel %vm5941_vm11, %v3762_v45, %v3766_v18  ;;  %v1728_v57 = vrot.slane %v1726_v22, 4  ;;  %v2518_v48 = vld [vmem:[#allocation2 + $0x6c] sm:$0xf]  ;;  %v6805_v59 = vpop.eup %5724  ;;  %v3064_v24 = vld [vmem:[#allocation2 + $0x70] sm:$0xf] }
 0x112   : > { %v3772_v5 = vrot.slane %v3771_v21, 4  ;;  %v5368_v39 = vcombine.low %v4231_v41, %v4234_v27  ;;  %v1734_v33 = vrot.slane %v1732_v34, 5  ;;  %5523 = vmatmul.mubr.msk.bf16.vlgmr.msra.gmra.mrb[0].mxu0 %vm4447_vm4, %v4405_v38  ;;  %v1719_v55 = vor.u32 %v1718_v0, %v1715_v62  ;;  %v4023_v4 = vpop.permute.xlu0 %4022  ;;  %v5614_v35 = vld [vmem:[#allocation2 + $0x48] sm:$0xff]   ;;  %v6809_v20 = vpop.eup %5726  ;;  %v2520_v62 = vld [vmem:[#allocation2 + $0x74] sm:$0x1] }
 0x113   : > { %v5226_v50 = vrot.slane %v2020_v36, 9  ;;  %v2157_v21 = vrot.slane %v2021_v25, 5  ;;  %v1729_v41 = vor.u32 %v1728_v57, %v1724_v58  ;;  %v2160_v18 = vrot.slane %v2022_v11, 5  ;;  %v5596_v45 = vld [vmem:[#allocation2 + $0x6c] sm:$0xff]   ;;  %4069 = vst.msk [vmem:[#allocation3 + $0x10] sm:$0xff] %vm4066_vm10, %v4023_v4 }
 0x114   : > { %v3777_v29 = vsel %vm5941_vm11, %v3772_v5, %v3776_v31  ;;  %4353 = vrot.lane.b32.xlu0 %v5368_v39, %s5778_s16  ;;  %v754_v49 = vmul.f32 %v5719_v54, %v6532_v10  ;;  %v5451_v31 = vpack.c.bf16 %v753_v16, %v753_v16  ;;  %v1720_v46 = vrot.slane %v1719_v55, 4  ;;  %v2519_v54 = vld [vmem:[#allocation2 + $0x70] sm:$0xf]  ;;  %4390 = vst.msk [vmem:[#allocation3 + $0x10] sm:$0xff] %vm4387_vm12, %v6559_v56  ;;  %v5615_v5 = vld [vmem:[#allocation2 + $0x54] sm:$0xff]   ;;  %v6820_v27 = vpop.eup %5728 }
 0x115   : > { %v5336_v53 = vcombine.low %v3767_v15, %v3777_v29  ;;  %v6814_v22 = vsel %vm5864_vm8, %v5226_v50, %v2157_v21  ;;  %v2159_v14 = vrot.slane %v2157_v21, 4  ;;  %v2735_v36 = vshrl.u32 %v2518_v48, 16  ;;  %1435 = vst.msk [vmem:[#allocation3 + $0x30] sm:$0xff] %vm7631_vm15, %v5614_v35  ;;  %v1251_v39 = vld [vmem:[#allocation2 + $0x78] sm:$0xf]  ;;  %1436 = vst.msk [vmem:[#allocation3 + $0x38] sm:$0xff] %vm7631_vm15, %v5615_v5 }
 0x116   : > { %v1730_v25 = vrot.slane %v1729_v41, 4  ;;  %v5452_v11 = vpack.c.bf16 %v754_v49, %v754_v49  ;;  %v1019_v10 = vshrl.u32 %v5451_v31, 16  ;;  %v1022_v16 = vshll.u32 %v5451_v31, 16  ;;  %v6832_v40 = vld [vmem:[#allocation2 + $0x6c] sm:$0xe]  ;;  %v2261_v61 = vpop.permute.xlu0 %2260 }
 0x117   : > { %4032 = vrot.lane.b32.xlu1 %v5336_v53, %s5780_s18  ;;  %v1725_v34 = vsel %vm5941_vm11, %v1720_v46, %v1724_v58  ;;  %v6830_v6 = vsel %vm5864_vm8, %v2159_v14, %v2160_v18  ;;  %v2737_v56 = vrot.slane %v2735_v36, 4  ;;  %v2738_v0 = vshll.u32 %v2518_v48, 16  ;;  %v1939_v55 = vpop.permute.xlu1 %1938  ;;  %2305 = vst.msk [vmem:[#allocation3 + $0x20] sm:$0xff] %vm7632_vm2, %v2261_v61  ;;  %v3065_v18 = vld [vmem:[#allocation2 + $0x74] sm:$0x1] }
 0x118   : > { %2268 = vrot.lane.b32.xlu0 %v5241_v63, %s5773_s11  ;;  %v1735_v38 = vsel %vm5941_vm11, %v1730_v25, %v1734_v33  ;;  %v5242_v58 = vcombine.low %v6814_v22, %v6830_v6  ;;  %v1021_v15 = vrot.slane %v1019_v10, 7  ;;  %v1027_v29 = vshrl.u32 %v5452_v11, 16  ;;  %1982 = vst.msk [vmem:[#allocation3 + $0x28] sm:$0xff] %vm1976_vm1, %v1939_v55  ;;  %v1255_v4 = vld [vmem:[#allocation2 + $0x80] sm:$0x1] }
 0x119   : > { %v5210_v63 = vcombine.low %v1725_v34, %v1735_v38  ;;  %v1030_v57 = vshll.u32 %v5452_v11, 16  ;;  %v2740_v48 = vrot.slane %v2738_v0, 5  ;;  %v2744_v53 = vshll.u32 %v2519_v54, 16  ;;  %v462_v11 = vld [vmem:[%s5871_s8 + $0xe8] sm:$0xff]  ;;  %v4407_v0 = vld [vmem:[#allocation3 + $0x18] sm:$0xff] }
 0x11a   : > { %v1024_v33 = vor.u32 %v1022_v16, %v1021_v15  ;;  %v1025_v50 = vrot.slane %v1021_v15, 4  ;;  %v1029_v21 = vrot.slane %v1027_v29, 7  ;;  %v2748_v41 = vshrl.u32 %v2519_v54, 16  ;;  %v2438_v25 = vpop.permute.xlu0 %2437 }
 0x11b   : > { %1944 = vrot.lane.b32.xlu1 %v6778_v52, %s5774_s12  ;;  %v2741_v49 = vor.u32 %v2740_v48, %v2737_v56  ;;  %v2746_v31 = vrot.slane %v2744_v53, 5  ;;  %v2754_v52 = vshll.u32 %v2520_v62, 16  ;;  %v5289_v35 = vrot.slane %v6832_v40, 9  ;;  %v2263_v5 = vpop.permute.xlu1 %2262  ;;  %v4406_v34 = vld [vmem:[#allocation3 + $0x10] sm:$0xff] }
 0x11c   : > { %2445 = vrot.lane.b32.xlu0 %v5596_v45, %s5775_s13  ;;  %v1032_v46 = vor.u32 %v1030_v57, %v1029_v21  ;;  %v1034_v22 = vrot.slane %v1029_v21, 4  ;;  %v1252_v14 = vsel %vm6037_vm13, %v1024_v33, %v1251_v39  ;;  %v2750_v36 = vrot.slane %v2748_v41, 4  ;;  %2306 = vst.msk [vmem:[#allocation3 + $0x28] sm:$0xff] %vm7632_vm2, %v2263_v5  ;;  %5526 = vmatprep.mubr.msk.bf16.mxu0 %vm4447_vm4, %v4406_v34 }
 0x11d   : > { %1253 = vst [vmem:[#allocation2 + $0x78] sm:$0xf] %v1252_v14  ;;  %v2742_v10 = vrot.slane %v2741_v49, 4  ;;  %v2756_v16 = vrot.slane %v2754_v52, 5  ;;  %v3193_v45 = vrot.slane %v3064_v24, 5  ;;  %v3196_v54 = vrot.slane %v3065_v18, 5  ;;  %5527 = vmatmul.mubr.msk.bf16.gmra.mrb[4].mxu0 %vm4447_vm4, %v4407_v0  ;;  %v6898_v0 = vpop.eup %5730 }
 0x11e   : > { %vm7652_vm15 = vcmask 130144   ;;  %v1033_v6 = vsel %vm6044_vm14, %v1025_v50, %v1032_v46  ;;  %v2751_v62 = vor.u32 %v2750_v36, %v2746_v31  ;;  %v1256_v39 = vsel %vm5837_vm3, %v1034_v22, %v1255_v4  ;;  %v463_v50 = vld [vmem:[%s5871_s8 + $0xf0] sm:$0xff]  ;;  %v6888_v22 = vld [vmem:[%s7623_s2] ss:$0 sm:$0xff] }
 0x11f   : > { %1946 = vrot.lane.b32.xlu1 %v5210_v63, %s5774_s12  ;;  %2482 = vst.msk [vmem:[#allocation3 + $0x20] sm:$0xff] %vm7652_vm15, %v2438_v25  ;;  %v755_v56 = vmul.f32 %v6794_v28, %v6582_v47  ;;  %1257 = vst [vmem:[#allocation2 + $0x80] sm:$0x1] %v1256_v39  ;;  %v3195_v40 = vrot.slane %v3193_v45, 4  ;;  %v756_v38 = vmul.f32 %v6797_v42, %v6590_v30  ;;  %v661_v24 = vadd.f32 1.0, %v6775_v2 }
 0x120   : > { %1254 = vst.msk [vmem:[#allocation2 + $0x7c] sm:$0xf] %vm311_vm0, %v1033_v6  ;;  %v501_v15 = vmul.f32 %v6732_v51, %v462_v11  ;;  %v2747_v47 = vsel %vm5941_vm11, %v2742_v10, %v2746_v31  ;;  %v2752_v28 = vrot.slane %v2751_v62, 4  ;;  %v3194_v61 = vsel %vm5864_vm8, %v5289_v35, %v3193_v45 }
 0x121   : > { %v5453_v29 = vpack.c.bf16 %v755_v56, %v755_v56  ;;  %v3197_v30 = vsel %vm5864_vm8, %v3195_v40, %v3196_v54  ;;  %v5454_v42 = vpack.c.bf16 %v756_v38, %v756_v38  ;;  %v662_v63 = vadd.f32 1.0, %v6782_v32  ;;  %v1258_v54 = vld [vmem:[#allocation2 + $0x84] sm:$0xf] }
 0x122   : > { %v2757_v3 = vsel %vm5941_vm11, %v2752_v28, %v2756_v16  ;;  %v663_v48 = vadd.f32 1.0, %v6788_v37  ;;  %v6877_v53 = vadd.f32 1.0, %v6805_v59  ;;  %v5305_v41 = vcombine.low %v3194_v61, %v3197_v30  ;;  %v2983_v49 = vpop.permute.xlu0 %2982  ;;  %v2440_v37 = vpop.permute.xlu1 %2439 }
 0x123   : > { %2270 = vrot.lane.b32.xlu1 %v5242_v58, %s5773_s11  ;;  %v1036_v57 = vshrl.u32 %v5453_v29, 16  ;;  %v5273_v2 = vcombine.low %v2747_v47, %v2757_v3  ;;  %v1039_v58 = vshll.u32 %v5453_v29, 16  ;;  %v1044_v55 = vshrl.u32 %v5454_v42, 16  ;;  %3027 = vst.msk [vmem:[#allocation3 + $0x20] sm:$0xff] %vm3022_vm5, %v2983_v49 }
 0x124   : > { %v1047_v33 = vshll.u32 %v5454_v42, 16  ;;  %v2521_v21 = vld [vmem:[#allocation2 + $0x78] sm:$0xf]  ;;  %5732 = vrcp.f32 %v661_v24  ;;  %2483 = vst.msk [vmem:[#allocation3 + $0x28] sm:$0xff] %vm7652_vm15, %v2440_v37  ;;  %v6891_v14 = vadd.f32 %v6888_v22, %v501_v15  ;;  %v6894_v36 = vmul.f32 %v6732_v51, %v463_v50 }
 0x125   : > { %v3066_v18 = vld [vmem:[#allocation2 + $0x78] sm:$0xe]  ;;  %2990 = vrot.lane.b32.xlu0 %v5273_v2, %s5779_s17  ;;  %v2759_v32 = vshrl.u32 %v2521_v21, 16  ;;  %v2762_v31 = vshll.u32 %v2521_v21, 16  ;;  %v1038_v4 = vrot.slane %v1036_v57, 7  ;;  %v6882_v46 = vrot.slane %v1044_v55, 7 }
 0x126   : > { %v5290_v52 = vrot.slane %v3066_v18, 9  ;;  %5734 = vrcp.f32 %v662_v63  ;;  %v2523_v25 = vld [vmem:[#allocation2 + $0x80] sm:$0x1]  ;;  %v3304_v56 = vpop.permute.xlu0 %3303  ;;  %v3562_v30 = vld [vmem:[#allocation2 + $0x78] sm:$0xf] }
 0x127   : > { %v5597_v59 = vld [vmem:[#allocation2 + $0x78] sm:$0xff]   ;;  %v2761_v11 = vrot.slane %v2759_v32, 4  ;;  %v2764_v10 = vrot.slane %v2762_v31, 5  ;;  %v2778_v5 = vshll.u32 %v2523_v25, 16  ;;  %v3068_v6 = vld [vmem:[#allocation2 + $0x80] sm:$0x1]  ;;  %v1041_v62 = vor.u32 %v1039_v58, %v1038_v4 }
 0x128   : > { %v2522_v35 = vld [vmem:[#allocation2 + $0x7c] sm:$0xf]  ;;  %2447 = vrot.lane.b32.xlu1 %v5597_v59, %s5775_s13  ;;  %v1049_v39 = vor.u32 %v1047_v33, %v6882_v46  ;;  %5736 = vrcp.f32 %v663_v48  ;;  %3348 = vst.msk [vmem:[#allocation3 + $0x20] sm:$0xff] %vm3343_vm6, %v3304_v56  ;;  %v3203_v29 = vrot.slane %v3068_v6, 5  ;;  %v1042_v24 = vrot.slane %v1038_v4, 4 }
 0x129   : > { %v2768_v16 = vshll.u32 %v2522_v35, 16  ;;  %v2772_v45 = vshrl.u32 %v2522_v35, 16  ;;  %v3067_v34 = vld [vmem:[#allocation2 + $0x7c] sm:$0xf]  ;;  %v2765_v51 = vor.u32 %v2764_v10, %v2761_v11  ;;  %3311 = vrot.lane.b32.xlu0 %v5305_v41, %s5777_s15  ;;  %v2780_v28 = vrot.slane %v2778_v5, 5 }
 0x12a   : > { %v3200_v15 = vrot.slane %v3067_v34, 5  ;;  %v5598_v47 = vld [vmem:[#allocation2 + $0x78] sm:$0xff]   ;;  %v1051_v61 = vrot.slane %v6882_v46, 4  ;;  %v1262_v2 = vld [vmem:[#allocation2 + $0x8c] sm:$0x1]  ;;  %v1050_v58 = vsel %vm6044_vm14, %v1042_v24, %v1049_v39  ;;  %v1259_v55 = vsel %vm6037_vm13, %v1041_v62, %v1258_v54  ;;  %v3482_v18 = vpop.permute.xlu0 %3481 }
 0x12b   : > { %v2770_v40 = vrot.slane %v2768_v16, 5  ;;  %v2774_v38 = vrot.slane %v2772_v45, 4  ;;  %v2766_v42 = vrot.slane %v2765_v51, 4  ;;  %v3563_v48 = vld [vmem:[#allocation2 + $0x7c] sm:$0xf]  ;;  %v3779_v50 = vshrl.u32 %v3562_v30, 16 }
 0x12c   : > { %v6905_v3 = vsel %vm5864_vm8, %v5290_v52, %v3200_v15  ;;  %v3202_v57 = vrot.slane %v3200_v15, 4  ;;  %v3564_v33 = vld [vmem:[#allocation2 + $0x80] sm:$0x1]  ;;  %v3782_v21 = vshll.u32 %v3562_v30, 16  ;;  %v4107_v41 = vld [vmem:[#allocation2 + $0x78] sm:$0xe]  ;;  %v1263_v5 = vsel %vm5837_vm3, %v1051_v61, %v1262_v2 }
 0x12d   : > { %v2775_v63 = vor.u32 %v2774_v38, %v2770_v40  ;;  %v2771_v49 = vsel %vm5941_vm11, %v2766_v42, %v2770_v40  ;;  %3489 = vrot.lane.b32.xlu0 %v5598_v47, %s5776_s14  ;;  %1260 = vst [vmem:[#allocation2 + $0x84] sm:$0xf] %v1259_v55  ;;  %1261 = vst.msk [vmem:[#allocation2 + $0x88] sm:$0xf] %vm311_vm0, %v1050_v58  ;;  %v3788_v52 = vshll.u32 %v3563_v48, 16  ;;  %v3781_v46 = vrot.slane %v3779_v50, 4 }
 0x12e   : > { %v3204_v31 = vsel %vm5864_vm8, %v3202_v57, %v3203_v29  ;;  %v4108_v4 = vld [vmem:[#allocation2 + $0x7c] sm:$0xf]  ;;  %v4109_v37 = vld [vmem:[#allocation2 + $0x80] sm:$0x1]  ;;  %3526 = vst.msk [vmem:[#allocation3 + $0x20] sm:$0xff] %vm3521_vm9, %v3482_v18  ;;  %v5733_v59 = vpop.eup %5732  ;;  %v3784_v25 = vrot.slane %v3782_v21, 5  ;;  %v2985_v6 = vpop.permute.xlu1 %2984  ;;  %5738 = vrcp.f32 %v6877_v53 }
 0x12f   : > { %v2776_v32 = vrot.slane %v2775_v63, 4  ;;  %v5306_v35 = vcombine.low %v6905_v3, %v3204_v31  ;;  %v3792_v11 = vshrl.u32 %v3563_v48, 16  ;;  %v1475_v10 = vld [vmem:[#allocation2 + $0x78] sm:$0xf]  ;;  %v3790_v45 = vrot.slane %v3788_v52, 5  ;;  %3028 = vst.msk [vmem:[#allocation3 + $0x28] sm:$0xff] %vm3022_vm5, %v2985_v6 }
 0x130   : > { %v3798_v54 = vshll.u32 %v3564_v33, 16  ;;  %v1476_v34 = vld [vmem:[#allocation2 + $0x7c] sm:$0xf]  ;;  %v5735_v62 = vpop.eup %5734  ;;  %v3785_v56 = vor.u32 %v3784_v25, %v3781_v46  ;;  %1264 = vst [vmem:[#allocation2 + $0x8c] sm:$0x1] %v1263_v5  ;;  %v5353_v40 = vrot.slane %v4107_v41, 9  ;;  %v6935_v50 = vmul.f32 %v5733_v59, %v6598_v17 }
 0x131   : > { %v2781_v16 = vsel %vm5941_vm11, %v2776_v32, %v2780_v28  ;;  %v3794_v51 = vrot.slane %v3792_v11, 4  ;;  %v4237_v15 = vrot.slane %v4108_v4, 5  ;;  %v4240_v47 = vrot.slane %v4109_v37, 5  ;;  %v1477_v55 = vld [vmem:[#allocation2 + $0x80] sm:$0x1] }
 0x132   : > { %v5274_v39 = vcombine.low %v2771_v49, %v2781_v16  ;;  %v3800_v38 = vrot.slane %v3798_v54, 5  ;;  %v1737_v29 = vshrl.u32 %v1475_v10, 16  ;;  %v6924_v28 = vpop.eup %5736  ;;  %v3786_v24 = vrot.slane %v3785_v56, 4  ;;  %v3306_v48 = vpop.permute.xlu1 %3305 }
 0x133   : > { %v3795_v61 = vor.u32 %v3794_v51, %v3790_v45  ;;  %v1740_v30 = vshll.u32 %v1475_v10, 16  ;;  %v1746_v42 = vshll.u32 %v1476_v34, 16  ;;  %v6929_v63 = vsel %vm5864_vm8, %v5353_v40, %v4237_v15  ;;  %3349 = vst.msk [vmem:[#allocation3 + $0x28] sm:$0xff] %vm3343_vm6, %v3306_v48 }
 0x134   : > { %2992 = vrot.lane.b32.xlu1 %v5274_v39, %s5779_s17  ;;  %v4239_v3 = vrot.slane %v4237_v15, 4  ;;  %v1739_v57 = vrot.slane %v1737_v29, 4  ;;  %v3791_v2 = vsel %vm5941_vm11, %v3786_v24, %v3790_v45  ;;  %v1750_v33 = vshrl.u32 %v1476_v34, 16  ;;  %v3565_v21 = vld [vmem:[#allocation2 + $0x84] sm:$0xf]  ;;  %v4027_v54 = vpop.permute.xlu0 %4026 }
 0x135   : > { %v3796_v58 = vrot.slane %v3795_v61, 4  ;;  %v3566_v41 = vld [vmem:[#allocation2 + $0x88] sm:$0xf]  ;;  %v1742_v49 = vrot.slane %v1740_v30, 5  ;;  %v6940_v32 = vrot.slane %v1746_v42, 5  ;;  %v6943_v53 = vmul.f32 %v5735_v62, %v6602_v44  ;;  %4071 = vst.msk [vmem:[#allocation3 + $0x20] sm:$0xff] %vm4066_vm10, %v4027_v54 }
 0x136   : > { %v4241_v18 = vsel %vm5864_vm8, %v4239_v3, %v4240_v47  ;;  %v5599_v31 = vld [vmem:[#allocation2 + $0x84] sm:$0xff]   ;;  %v3803_v52 = vshrl.u32 %v3565_v21, 16  ;;  %v3806_v4 = vshll.u32 %v3565_v21, 16  ;;  %v3812_v37 = vshll.u32 %v3566_v41, 16  ;;  %v3484_v40 = vpop.permute.xlu1 %3483  ;;  %v2024_v21 = vld [vmem:[#allocation2 + $0x7c] sm:$0xf] }
 0x137   : > { %v3801_v17 = vsel %vm5941_vm11, %v3796_v58, %v3800_v38  ;;  %v4110_v59 = vld [vmem:[#allocation2 + $0x84] sm:$0xe]  ;;  %v3567_v25 = vld [vmem:[#allocation2 + $0x8c] sm:$0x1]  ;;  %v3816_v11 = vshrl.u32 %v3566_v41, 16  ;;  %v5369_v10 = vcombine.low %v6929_v63, %v4241_v18  ;;  %v1743_v16 = vor.u32 %v1742_v49, %v1739_v57  ;;  %3527 = vst.msk [vmem:[#allocation3 + $0x28] sm:$0xff] %vm3521_vm9, %v3484_v40 }
 0x138   : > { %3313 = vrot.lane.b32.xlu1 %v5306_v35, %s5777_s15  ;;  %v5337_v46 = vcombine.low %v3791_v2, %v3801_v17  ;;  %v4111_v45 = vld [vmem:[#allocation2 + $0x88] sm:$0xf]  ;;  %v3805_v44 = vrot.slane %v3803_v52, 4  ;;  %v3808_v5 = vrot.slane %v3806_v4, 5  ;;  %v3814_v34 = vrot.slane %v3812_v37, 5  ;;  %v4348_v57 = vpop.permute.xlu0 %4347  ;;  %v6960_v41 = vpop.eup %5738 }
 0x139   : > { %v3822_v35 = vshll.u32 %v3567_v25, 16  ;;  %v3818_v6 = vrot.slane %v3816_v11, 4  ;;  %v1744_v62 = vrot.slane %v1743_v16, 4  ;;  %v1752_v39 = vrot.slane %v1750_v33, 4  ;;  %v4112_v51 = vld [vmem:[#allocation2 + $0x8c] sm:$0x1] }
 0x13a   : > { %4034 = vrot.lane.b32.xlu0 %v5337_v46, %s5780_s18  ;;  %v1756_v56 = vshll.u32 %v1477_v55, 16  ;;  %v3809_v38 = vor.u32 %v3808_v5, %v3805_v44  ;;  %v5354_v47 = vrot.slane %v4110_v59, 9  ;;  %v4244_v29 = vrot.slane %v4111_v45, 5  ;;  %v1478_v24 = vld [vmem:[#allocation2 + $0x84] sm:$0xf]  ;;  %4392 = vst.msk [vmem:[#allocation3 + $0x20] sm:$0xff] %vm4387_vm12, %v4348_v57 }
 0x13b   : > { %v3824_v15 = vrot.slane %v3822_v35, 5  ;;  %v3819_v61 = vor.u32 %v3818_v6, %v3814_v34  ;;  %v1749_v30 = vsel %vm5941_vm11, %v1744_v62, %v6940_v32  ;;  %v1753_v42 = vor.u32 %v1752_v39, %v6940_v32  ;;  %v1479_v3 = vld [vmem:[#allocation2 + $0x88] sm:$0xf]  ;;  %v2023_v33 = vld [vmem:[#allocation2 + $0x78] sm:$0xe] }
 0x13c   : > { %3491 = vrot.lane.b32.xlu1 %v5599_v31, %s5776_s14  ;;  %v1758_v63 = vrot.slane %v1756_v56, 5  ;;  %v3810_v48 = vrot.slane %v3809_v38, 4  ;;  %v4245_v2 = vsel %vm5864_vm8, %v5354_v47, %v4244_v29  ;;  %v4246_v58 = vrot.slane %v4244_v29, 4  ;;  %v1480_v32 = vld [vmem:[#allocation2 + $0x8c] sm:$0x1] }
 0x13d   : > { %v4247_v55 = vrot.slane %v4112_v51, 5  ;;  %v3820_v18 = vrot.slane %v3819_v61, 4  ;;  %v1754_v49 = vrot.slane %v1753_v42, 4  ;;  %v1761_v31 = vshrl.u32 %v1478_v24, 16  ;;  %v2025_v52 = vld [vmem:[#allocation2 + $0x80] sm:$0x1] }
 0x13e   : > { %4355 = vrot.lane.b32.xlu0 %v5369_v10, %s5778_s16  ;;  %v1764_v17 = vshll.u32 %v1478_v24, 16  ;;  %v3815_v4 = vsel %vm5941_vm11, %v3810_v48, %v3814_v34  ;;  %v1770_v59 = vshll.u32 %v1479_v3, 16  ;;  %v1774_v46 = vshrl.u32 %v1479_v3, 16  ;;  %v2026_v45 = vld [vmem:[#allocation2 + $0x84] sm:$0xe] }
 0x13f   : > { %v4248_v37 = vsel %vm5864_vm8, %v4246_v58, %v4247_v55  ;;  %v3825_v25 = vsel %vm5941_vm11, %v3820_v18, %v3824_v15  ;;  %v1759_v11 = vsel %vm5941_vm11, %v1754_v49, %v1758_v63  ;;  %v1763_v16 = vrot.slane %v1761_v31, 4  ;;  %v2027_v54 = vld [vmem:[#allocation2 + $0x88] sm:$0xf]  ;;  %v2028_v51 = vld [vmem:[#allocation2 + $0x8c] sm:$0x1]  ;;  %v4350_v29 = vpop.permute.xlu0 %4349 }
 0x140   : > { %v5370_v10 = vcombine.low %v4245_v2, %v4248_v37  ;;  %v5338_v44 = vcombine.low %v3815_v4, %v3825_v25  ;;  %v5211_v5 = vcombine.low %v1749_v30, %v1759_v11  ;;  %v1766_v35 = vrot.slane %v1764_v17, 5  ;;  %v2524_v63 = vld [vmem:[#allocation2 + $0x84] sm:$0xf]  ;;  %v4029_v3 = vpop.permute.xlu1 %4028  ;;  %v2525_v31 = vld [vmem:[#allocation2 + $0x88] sm:$0xf] }
 0x141   : > { %v1772_v6 = vrot.slane %v1770_v59, 5  ;;  %v1776_v34 = vrot.slane %v1774_v46, 4  ;;  %v1780_v62 = vshll.u32 %v1480_v32, 16  ;;  %v5227_v39 = vrot.slane %v2023_v33, 9  ;;  %v4408_v57 = vld [vmem:[#allocation3 + $0x20] sm:$0xff]  ;;  %4072 = vst.msk [vmem:[#allocation3 + $0x28] sm:$0xff] %vm4066_vm10, %v4029_v3 }
 0x142   : > { %4357 = vrot.lane.b32.xlu0 %v5370_v10, %s5778_s16  ;;  %v2164_v56 = vrot.slane %v2024_v21, 5  ;;  %4036 = vrot.lane.b32.xlu1 %v5338_v44, %s5780_s18  ;;  %v1767_v40 = vor.u32 %v1766_v35, %v1763_v16  ;;  %v2167_v38 = vrot.slane %v2025_v52, 5  ;;  %v5228_v15 = vrot.slane %v2026_v45, 9  ;;  %4393 = vst.msk [vmem:[#allocation3 + $0x28] sm:$0xff] %vm4387_vm12, %v4350_v29  ;;  %v2526_v37 = vld [vmem:[#allocation2 + $0x8c] sm:$0x1] }
 0x143   : > { %v2171_v47 = vrot.slane %v2027_v54, 5  ;;  %v1777_v24 = vor.u32 %v1776_v34, %v1772_v6  ;;  %v1782_v61 = vrot.slane %v1780_v62, 5  ;;  %v2174_v58 = vrot.slane %v2028_v51, 5  ;;  %5530 = vmatprep.mubr.msk.bf16.mxu0 %vm4447_vm4, %v4408_v57  ;;  %v3070_v59 = vld [vmem:[#allocation2 + $0x88] sm:$0xf] }
 0x144   : > { %v2165_v30 = vsel %vm5864_vm8, %v5227_v39, %v2164_v56  ;;  %v2166_v42 = vrot.slane %v2164_v56, 4  ;;  %v1768_v48 = vrot.slane %v1767_v40, 4  ;;  %v6977_v55 = vmul.f32 %v6924_v28, %v6611_v26  ;;  %v1941_v46 = vpop.permute.xlu1 %1940  ;;  %v5603_v11 = vld [vmem:[#allocation2 + $0x84] sm:$0xff]   ;;  %v1265_v45 = vld [vmem:[#allocation2 + $0x90] sm:$0xf] }
 0x145   : > { %v2173_v2 = vrot.slane %v2171_v47, 4  ;;  %v1778_v33 = vrot.slane %v1777_v24, 4  ;;  %v5455_v18 = vpack.c.bf16 %v6935_v50, %v6935_v50  ;;  %v5456_v49 = vpack.c.bf16 %v6943_v53, %v6943_v53  ;;  %1983 = vst.msk [vmem:[#allocation3 + $0x30] sm:$0xff] %vm1976_vm1, %v1941_v46  ;;  %v2265_v44 = vpop.permute.xlu0 %2264  ;;  %v3069_v62 = vld [vmem:[#allocation2 + $0x84] sm:$0xe] }
 0x146   : > { %v2168_v21 = vsel %vm5864_vm8, %v2166_v42, %v2167_v38  ;;  %1948 = vrot.lane.b32.xlu1 %v5211_v5, %s5774_s12  ;;  %v1773_v26 = vsel %vm5941_vm11, %v1768_v48, %v1772_v6  ;;  %v2172_v32 = vsel %vm5864_vm8, %v5228_v15, %v2171_v47  ;;  %v2783_v17 = vshrl.u32 %v2524_v63, 16  ;;  %2307 = vst.msk [vmem:[#allocation3 + $0x30] sm:$0xff] %vm7632_vm2, %v2265_v44  ;;  %v1269_v40 = vld [vmem:[#allocation2 + $0x98] sm:$0x1] }
 0x147   : > { %v5243_v28 = vcombine.low %v2165_v30, %v2168_v21  ;;  %v1783_v52 = vsel %vm5941_vm11, %v1778_v33, %v1782_v61  ;;  %v2175_v50 = vsel %vm5864_vm8, %v2173_v2, %v2174_v58  ;;  %v1053_v53 = vshrl.u32 %v5455_v18, 16  ;;  %v3071_v61 = vld [vmem:[#allocation2 + $0x8c] sm:$0x1] }
 0x148   : > { %v1056_v4 = vshll.u32 %v5455_v18, 16  ;;  %v5212_v25 = vcombine.low %v1773_v26, %v1783_v52  ;;  %v1061_v10 = vshrl.u32 %v5456_v49, 16  ;;  %v1064_v16 = vshll.u32 %v5456_v49, 16  ;;  %v1943_v30 = vpop.permute.xlu1 %1942 }
 0x149   : > { %2272 = vrot.lane.b32.xlu0 %v5243_v28, %s5773_s11  ;;  %v2785_v54 = vrot.slane %v2783_v17, 4  ;;  %v1055_v5 = vrot.slane %v1053_v53, 7  ;;  %v2786_v35 = vshll.u32 %v2524_v63, 16  ;;  %v2792_v6 = vshll.u32 %v2525_v31, 16  ;;  %1984 = vst.msk [vmem:[#allocation3 + $0x38] sm:$0xff] %vm1976_vm1, %v1943_v30  ;;  %v2442_v48 = vpop.permute.xlu0 %2441  ;;  %v4409_v2 = vld [vmem:[#allocation3 + $0x28] sm:$0xff] }
 0x14a   : > { %v2796_v34 = vshrl.u32 %v2525_v31, 16  ;;  %1950 = vrot.lane.b32.xlu1 %v5212_v25, %s5774_s12  ;;  %v5244_v39 = vcombine.low %v2172_v32, %v2175_v50  ;;  %v1063_v56 = vrot.slane %v1061_v10, 7  ;;  %v2802_v51 = vshll.u32 %v2526_v37, 16  ;;  %2484 = vst.msk [vmem:[#allocation3 + $0x30] sm:$0xff] %vm7652_vm15, %v2442_v48  ;;  %5531 = vmatmul.mubr.msk.bf16.gmra.mrb[8].mxu0 %vm4447_vm4, %v4409_v2  ;;  %v5620_v53 = vld [vmem:[#allocation2 + $0x60] sm:$0xff]  }
 0x14b   : > { %v3207_v38 = vrot.slane %v3070_v59, 5  ;;  %v1058_v15 = vor.u32 %v1056_v4, %v1055_v5  ;;  %v1059_v47 = vrot.slane %v1055_v5, 4  ;;  %v2788_v29 = vrot.slane %v2786_v35, 5  ;;  %v371_v10 = vld [vmem:[#allocation2 + $0xc0] sm:$0x1] }
 0x14c   : > { %v2794_v24 = vrot.slane %v2792_v6, 5  ;;  %v1066_v42 = vor.u32 %v1064_v16, %v1063_v56  ;;  %v1068_v63 = vrot.slane %v1063_v56, 4  ;;  %v2798_v3 = vrot.slane %v2796_v34, 4  ;;  %v2267_v50 = vpop.permute.xlu1 %2266  ;;  %v1272_v35 = vld [vmem:[#allocation2 + $0x9c] sm:$0xf]  ;;  %v5621_v34 = vld [vmem:[#allocation2 + $0x6c] sm:$0xff]  }
 0x14d   : > { %2449 = vrot.lane.b32.xlu0 %v5603_v11, %s5775_s13  ;;  %v5291_v57 = vrot.slane %v3069_v62, 9  ;;  %v1266_v58 = vsel %vm6037_vm13, %v1058_v15, %v1265_v45  ;;  %v2789_v33 = vor.u32 %v2788_v29, %v2785_v54  ;;  %v2804_v21 = vrot.slane %v2802_v51, 5  ;;  %2308 = vst.msk [vmem:[#allocation3 + $0x38] sm:$0xff] %vm7632_vm2, %v2267_v50  ;;  %v424_v11 = vld [vmem:[#allocation2 + $0xbc] sm:$0x1] }
 0x14e   : > { %v3209_v18 = vrot.slane %v3207_v38, 4  ;;  %2274 = vrot.lane.b32.xlu1 %v5244_v39, %s5773_s11  ;;  %v1067_v49 = vsel %vm6044_vm14, %v1059_v47, %v1066_v42  ;;  %1267 = vst [vmem:[#allocation2 + $0x90] sm:$0xf] %v1266_v58  ;;  %v2799_v26 = vor.u32 %v2798_v3, %v2794_v24  ;;  %v1270_v28 = vsel %vm5837_vm3, %v1068_v63, %v1269_v40  ;;  %v464_v45 = vld [vmem:[%s5871_s8 + $0xf8] sm:$0xff]  ;;  %v5762_v30 = vld [vmem:[%s7622_s1] ss:$0 sm:$0xff] }
 0x14f   : > { %v3210_v32 = vrot.slane %v3071_v61, 5  ;;  %1268 = vst.msk [vmem:[#allocation2 + $0x94] sm:$0xf] %vm311_vm0, %v1067_v49  ;;  %v2790_v31 = vrot.slane %v2789_v33, 4  ;;  %1271 = vst [vmem:[#allocation2 + $0x98] sm:$0x1] %v1270_v28  ;;  %v760_v17 = vmul.f32 %v6960_v41, %v6614_v43  ;;  %v5457_v52 = vpack.c.bf16 %v6977_v55, %v6977_v55 }
 0x150   : > { %v2800_v4 = vrot.slane %v2799_v26, 4  ;;  %v3208_v37 = vsel %vm5864_vm8, %v5291_v57, %v3207_v38  ;;  %v665_v59 = vadd.f32 1.0, %v6809_v20  ;;  %v7023_v46 = vadd.f32 %v6888_v22, %v6894_v36  ;;  %v2444_v56 = vpop.permute.xlu1 %2443 }
 0x151   : > { %v2795_v43 = vsel %vm5941_vm11, %v2790_v31, %v2794_v24  ;;  %v3211_v41 = vsel %vm5864_vm8, %v3209_v18, %v3210_v32  ;;  %v7029_v55 = vpack.c.bf16 %v760_v17, %v760_v17  ;;  %v1070_v25 = vshrl.u32 %v5457_v52, 16  ;;  %v2987_v51 = vpop.permute.xlu0 %2986 }
 0x152   : > { %vm7653_vm15 = vcmask 31744   ;;  %v2805_v20 = vsel %vm5941_vm11, %v2800_v4, %v2804_v21  ;;  %v1073_v16 = vshll.u32 %v5457_v52, 16  ;;  %v666_v22 = vadd.f32 1.0, %v6820_v27  ;;  %3029 = vst.msk [vmem:[#allocation3 + $0x30] sm:$0xff] %vm3022_vm5, %v2987_v51  ;;  %v1276_v51 = vld [vmem:[#allocation2 + $0xa4] sm:$0x1] }
 0x153   : > { %1437 = vst.msk [vmem:[#allocation3 + $0x40] sm:$0xff] %vm7653_vm15, %v5620_v53  ;;  %v5150_v36 = vmul.f32 -1.442695, %v6891_v14  ;;  %v5275_v54 = vcombine.low %v2795_v43, %v2805_v20  ;;  %v7037_v44 = vrot.slane %v1070_v25, 7  ;;  %v1078_v5 = vshrl.u32 %v7029_v55, 16 }
 0x154   : > { %v667_v6 = vadd.f32 1.0, %v6898_v0  ;;  %v1081_v62 = vshll.u32 %v7029_v55, 16  ;;  %v425_v39 = vsel %vm5854_vm7, 0, %v424_v11  ;;  %v372_v27 = vsel %vm5837_vm3, 0, %v371_v10 }
 0x155   : > { %v7047_v40 = vmul.f32 -1.442695, %v7023_v46  ;;  %2994 = vrot.lane.b32.xlu0 %v5275_v54, %s5779_s17  ;;  %v2527_v38 = vld [vmem:[#allocation2 + $0x90] sm:$0xf]  ;;  %v5307_v15 = vcombine.low %v3208_v37, %v3211_v41  ;;  %v1075_v0 = vor.u32 %v1073_v16, %v7037_v44  ;;  %5740 = vrcp.f32 %v665_v59  ;;  %426 = vst [vmem:[#allocation2 + $0xbc] sm:$0x1] %v425_v39  ;;  %v3308_v26 = vpop.permute.xlu0 %3307 }
 0x156   : > { %v3072_v47 = vld [vmem:[#allocation2 + $0x90] sm:$0xe]  ;;  %vm7654_vm15 = vcmask 130144   ;;  %373 = vst [vmem:[#allocation2 + $0xc0] sm:$0x1] %v372_v27  ;;  %vm7655_vm2 = vcmask 31744   ;;  %5742 = vrcp.f32 %v666_v22  ;;  %v7057_v42 = vmul.f32 %v5762_v30, %v464_v45 }
 0x157   : > { %2485 = vst.msk [vmem:[#allocation3 + $0x38] sm:$0xff] %vm7654_vm15, %v2444_v56  ;;  %v5605_v29 = vld [vmem:[#allocation2 + $0x90] sm:$0xff]   ;;  %v2807_v61 = vshrl.u32 %v2527_v38, 16  ;;  %v2529_v63 = vld [vmem:[#allocation2 + $0x98] sm:$0x1]  ;;  %v2810_v3 = vshll.u32 %v2527_v38, 16  ;;  %v1273_v49 = vsel %vm6037_vm13, %v1075_v0, %v1272_v35  ;;  %5744 = vpow2.f32 %v5150_v36  ;;  %vm7656_vm15 = vmmov %vm7655_vm2 }
 0x158   : > { %1438 = vst.msk [vmem:[#allocation3 + $0x48] sm:$0xff] %vm7655_vm2, %v5621_v34  ;;  %v2528_v24 = vld [vmem:[#allocation2 + $0x94] sm:$0xf]  ;;  %v5292_v2 = vrot.slane %v3072_v47, 9  ;;  %2451 = vrot.lane.b32.xlu1 %v5605_v29, %s5775_s13  ;;  %v2826_v33 = vshll.u32 %v2529_v63, 16  ;;  %v1076_v4 = vrot.slane %v7037_v44, 4  ;;  %5746 = vrcp.f32 %v667_v6 }
 0x159   : > { %v2816_v57 = vshll.u32 %v2528_v24, 16  ;;  %v2820_v48 = vshrl.u32 %v2528_v24, 16  ;;  %v2809_v58 = vrot.slane %v2807_v61, 4  ;;  %v3073_v21 = vld [vmem:[#allocation2 + $0x94] sm:$0xf]  ;;  %v2812_v28 = vrot.slane %v2810_v3, 5  ;;  %3315 = vrot.lane.b32.xlu0 %v5307_v15, %s5777_s15  ;;  %v3486_v36 = vpop.permute.xlu0 %3485 }
 0x15a   : > { %v3074_v18 = vld [vmem:[#allocation2 + $0x98] sm:$0x1]  ;;  %v3214_v17 = vrot.slane %v3073_v21, 5  ;;  %1274 = vst [vmem:[#allocation2 + $0x9c] sm:$0xf] %v1273_v49  ;;  %3350 = vst.msk [vmem:[#allocation3 + $0x30] sm:$0xff] %vm3343_vm6, %v3308_v26  ;;  %5748 = vpow2.f32 %v7047_v40 }
 0x15b   : > { %v2818_v32 = vrot.slane %v2816_v57, 5  ;;  %v2822_v31 = vrot.slane %v2820_v48, 4  ;;  %v2828_v52 = vrot.slane %v2826_v33, 5  ;;  %v3217_v50 = vrot.slane %v3074_v18, 5  ;;  %v5610_v53 = vld [vmem:[#allocation2 + $0x90] sm:$0xff]   ;;  %3528 = vst.msk [vmem:[#allocation3 + $0x30] sm:$0xff] %vm3521_vm9, %v3486_v36 }
 0x15c   : > { %v2813_v37 = vor.u32 %v2812_v28, %v2809_v58  ;;  %v7067_v43 = vsel %vm5864_vm8, %v5292_v2, %v3214_v17  ;;  %v3216_v41 = vrot.slane %v3214_v17, 4  ;;  %v3568_v25 = vld [vmem:[#allocation2 + $0x90] sm:$0xf]  ;;  %v3569_v11 = vld [vmem:[#allocation2 + $0x94] sm:$0xf]  ;;  %v1080_v10 = vrot.slane %v1078_v5, 7 }
 0x15d   : > { %v2823_v59 = vor.u32 %v2822_v31, %v2818_v32  ;;  %v3827_v20 = vshrl.u32 %v3568_v25, 16  ;;  %v3830_v16 = vshll.u32 %v3568_v25, 16  ;;  %v3836_v22 = vshll.u32 %v3569_v11, 16  ;;  %3493 = vrot.lane.b32.xlu0 %v5610_v53, %s5776_s14  ;;  %v3570_v35 = vld [vmem:[#allocation2 + $0x98] sm:$0x1] }
 0x15e   : > { %v2814_v45 = vrot.slane %v2813_v37, 4  ;;  %v3218_v44 = vsel %vm5864_vm8, %v3216_v41, %v3217_v50  ;;  %v3840_v6 = vshrl.u32 %v3569_v11, 16  ;;  %v1083_v5 = vor.u32 %v1081_v62, %v1080_v10  ;;  %v4113_v27 = vld [vmem:[#allocation2 + $0x90] sm:$0xe]  ;;  %v4114_v24 = vld [vmem:[#allocation2 + $0x94] sm:$0xf] }
 0x15f   : > { %v2824_v54 = vrot.slane %v2823_v59, 4  ;;  %v5308_v34 = vcombine.low %v7067_v43, %v3218_v44  ;;  %v1085_v39 = vrot.slane %v1080_v10, 4  ;;  %v3829_v56 = vrot.slane %v3827_v20, 4  ;;  %v7076_v38 = vpop.eup %5740  ;;  %v4115_v61 = vld [vmem:[#allocation2 + $0x98] sm:$0x1]  ;;  %v5625_v20 = vld [vmem:[#allocation2 + $0x84] sm:$0xff]  }
 0x160   : > { %v2819_v15 = vsel %vm5941_vm11, %v2814_v45, %v2818_v32  ;;  %v3832_v0 = vrot.slane %v3830_v16, 5  ;;  %v3838_v29 = vrot.slane %v3836_v22, 5  ;;  %v5743_v30 = vpop.eup %5742  ;;  %v1084_v55 = vsel %vm6044_vm14, %v1076_v4, %v1083_v5  ;;  %v1481_v21 = vld [vmem:[#allocation2 + $0x90] sm:$0xf]  ;;  %v1482_v31 = vld [vmem:[#allocation2 + $0x94] sm:$0xf]  ;;  %v2989_v37 = vpop.permute.xlu1 %2988 }
 0x161   : > { %v2829_v47 = vsel %vm5941_vm11, %v2824_v54, %v2828_v52  ;;  %v3842_v62 = vrot.slane %v3840_v6, 4  ;;  %v3846_v3 = vshll.u32 %v3570_v35, 16  ;;  %v3571_v57 = vld [vmem:[#allocation2 + $0x9c] sm:$0xf]  ;;  %1275 = vst.msk [vmem:[#allocation2 + $0xa0] sm:$0xf] %vm311_vm0, %v1084_v55  ;;  %v1277_v2 = vsel %vm5837_vm3, %v1085_v39, %v1276_v51  ;;  %v7087_v18 = vpop.eup %5744 }
 0x162   : > { %v5276_v63 = vcombine.low %v2819_v15, %v2829_v47  ;;  %v3833_v48 = vor.u32 %v3832_v0, %v3829_v56  ;;  %v3851_v58 = vshrl.u32 %v3571_v57, 16  ;;  %v3854_v33 = vshll.u32 %v3571_v57, 16  ;;  %1278 = vst [vmem:[#allocation2 + $0xa4] sm:$0x1] %v1277_v2  ;;  %v5624_v17 = vld [vmem:[#allocation2 + $0x78] sm:$0xff]   ;;  %v7090_v59 = vpop.eup %5746  ;;  %3030 = vst.msk [vmem:[#allocation3 + $0x38] sm:$0xff] %vm3022_vm5, %v2989_v37  ;;  %v4031_v10 = vpop.permute.xlu0 %4030 }
 0x163   : > { %v3843_v49 = vor.u32 %v3842_v62, %v3838_v29  ;;  %v3848_v26 = vrot.slane %v3846_v3, 5  ;;  %v5355_v28 = vrot.slane %v4113_v27, 9  ;;  %v4251_v32 = vrot.slane %v4114_v24, 5  ;;  %1439 = vst.msk [vmem:[#allocation3 + $0x50] sm:$0xff] %vm7655_vm2, %v5624_v17  ;;  %v1483_v56 = vld [vmem:[#allocation2 + $0x98] sm:$0x1] }
 0x164   : > { %2996 = vrot.lane.b32.xlu1 %v5276_v63, %s5779_s17  ;;  %v3834_v52 = vrot.slane %v3833_v48, 4  ;;  %v3853_v50 = vrot.slane %v3851_v58, 4  ;;  %v3856_v53 = vrot.slane %v3854_v33, 5  ;;  %v4254_v4 = vrot.slane %v4115_v61, 5  ;;  %4073 = vst.msk [vmem:[#allocation3 + $0x30] sm:$0xff] %vm4066_vm10, %v4031_v10  ;;  %v3310_v15 = vpop.permute.xlu1 %3309 }
 0x165   : > { %v3844_v43 = vrot.slane %v3843_v49, 4  ;;  %v4252_v41 = vsel %vm5864_vm8, %v5355_v28, %v4251_v32  ;;  %v4253_v25 = vrot.slane %v4251_v32, 4  ;;  %v1785_v11 = vshrl.u32 %v1481_v21, 16  ;;  %1440 = vst.msk [vmem:[#allocation3 + $0x58] sm:$0xff] %vm7656_vm15, %v5625_v20  ;;  %v4116_v27 = vld [vmem:[#allocation2 + $0x9c] sm:$0xe]  ;;  %vm7657_vm15 = vmmov %vm7655_vm2 }
 0x166   : > { %v3839_v16 = vsel %vm5941_vm11, %v3834_v52, %v3838_v29  ;;  %v3857_v22 = vor.u32 %v3856_v53, %v3853_v50  ;;  %v1788_v36 = vshll.u32 %v1481_v21, 16  ;;  %v1794_v45 = vshll.u32 %v1482_v31, 16  ;;  %3351 = vst.msk [vmem:[#allocation3 + $0x38] sm:$0xff] %vm3343_vm6, %v3310_v15  ;;  %v4352_v63 = vpop.permute.xlu0 %4351  ;;  %v5626_v28 = vld [vmem:[#allocation2 + $0x90] sm:$0xff]   ;;  %v7133_v15 = vpop.eup %5748 }
 0x167   : > { %v3849_v54 = vsel %vm5941_vm11, %v3844_v43, %v3848_v26  ;;  %v4255_v44 = vsel %vm5864_vm8, %v4253_v25, %v4254_v4  ;;  %v1787_v35 = vrot.slane %v1785_v11, 4  ;;  %v1798_v6 = vshrl.u32 %v1482_v31, 16  ;;  %4394 = vst.msk [vmem:[#allocation3 + $0x30] sm:$0xff] %vm4387_vm12, %v4352_v63 }
 0x168   : > { %3317 = vrot.lane.b32.xlu1 %v5308_v34, %s5777_s15  ;;  %v5339_v5 = vcombine.low %v3839_v16, %v3849_v54  ;;  %v7105_v39 = vrot.slane %v3857_v22, 4  ;;  %v1790_v51 = vrot.slane %v1788_v36, 5  ;;  %v5611_v34 = vld [vmem:[#allocation2 + $0x9c] sm:$0xff]   ;;  %v5371_v0 = vcombine.low %v4252_v41, %v4255_v44  ;;  %v2029_v41 = vld [vmem:[#allocation2 + $0x90] sm:$0xe]  ;;  %1441 = vst.msk [vmem:[#allocation3 + $0x60] sm:$0xff] %vm7655_vm2, %v5626_v28 }
 0x169   : > { %v3572_v47 = vld [vmem:[#allocation2 + $0xa0] sm:$0xf]  ;;  %v1796_v29 = vrot.slane %v1794_v45, 5  ;;  %v761_v24 = vmul.f32 %v7076_v38, %v6721_v12  ;;  %v762_v61 = vmul.f32 %v5743_v30, %v6725_v60  ;;  %v3573_v55 = vld [vmem:[#allocation2 + $0xa4] sm:$0x1]  ;;  %v1800_v48 = vrot.slane %v1798_v6, 4 }
 0x16a   : > { %4038 = vrot.lane.b32.xlu0 %v5339_v5, %s5780_s18  ;;  %v3860_v62 = vshll.u32 %v3572_v47, 16  ;;  %v3864_v3 = vshrl.u32 %v3572_v47, 16  ;;  %v1791_v57 = vor.u32 %v1790_v51, %v1787_v35  ;;  %v3870_v40 = vshll.u32 %v3573_v55, 16  ;;  %v4117_v58 = vld [vmem:[#allocation2 + $0xa0] sm:$0xf] }
 0x16b   : > { %v1804_v2 = vshll.u32 %v1483_v56, 16  ;;  %v1484_v12 = vld [vmem:[#allocation2 + $0x9c] sm:$0xf]  ;;  %v7115_v38 = vpack.c.bf16 %v761_v24, %v761_v24  ;;  %v7117_v60 = vpack.c.bf16 %v762_v61, %v762_v61  ;;  %v1801_v49 = vor.u32 %v1800_v48, %v1796_v29  ;;  %v4118_v26 = vld [vmem:[#allocation2 + $0xa4] sm:$0x1] }
 0x16c   : > { %3495 = vrot.lane.b32.xlu1 %v5611_v34, %s5776_s14  ;;  %v3862_v30 = vrot.slane %v3860_v62, 5  ;;  %v3866_v33 = vrot.slane %v3864_v3, 4  ;;  %v1792_v21 = vrot.slane %v1791_v57, 4  ;;  %v3872_v32 = vrot.slane %v3870_v40, 5  ;;  %v1485_v50 = vld [vmem:[#allocation2 + $0xa0] sm:$0xf] }
 0x16d   : > { %v1806_v31 = vrot.slane %v1804_v2, 5  ;;  %v5356_v17 = vrot.slane %v4116_v27, 9  ;;  %v4258_v52 = vrot.slane %v4117_v58, 5  ;;  %v1802_v43 = vrot.slane %v1801_v49, 4  ;;  %v5627_v25 = vld [vmem:[#allocation2 + $0x9c] sm:$0xff]  }
 0x16e   : > { %v3863_v53 = vsel %vm5941_vm11, %v7105_v39, %v3862_v30  ;;  %v3867_v4 = vor.u32 %v3866_v33, %v3862_v30  ;;  %4359 = vrot.lane.b32.xlu0 %v5371_v0, %s5778_s16  ;;  %v1797_v37 = vsel %vm5941_vm11, %v1792_v21, %v1796_v29  ;;  %v4261_v20 = vrot.slane %v4118_v26, 5  ;;  %v2030_v22 = vld [vmem:[#allocation2 + $0x94] sm:$0xf]  ;;  %v1486_v54 = vld [vmem:[#allocation2 + $0xa4] sm:$0x1]  ;;  %1442 = vst.msk [vmem:[#allocation3 + $0x68] sm:$0xff] %vm7657_vm15, %v5627_v25 }
 0x16f   : > { %v4259_v11 = vsel %vm5864_vm8, %v5356_v17, %v4258_v52  ;;  %v4260_v10 = vrot.slane %v4258_v52, 4  ;;  %v1809_v16 = vshrl.u32 %v1484_v12, 16  ;;  %v1807_v45 = vsel %vm5941_vm11, %v1802_v43, %v1806_v31  ;;  %v2031_v51 = vld [vmem:[#allocation2 + $0x98] sm:$0x1]  ;;  %v2032_v27 = vld [vmem:[#allocation2 + $0x9c] sm:$0xe] }
 0x170   : > { %v3868_v36 = vrot.slane %v3867_v4, 4  ;;  %v1812_v44 = vshll.u32 %v1484_v12, 16  ;;  %v1818_v35 = vshll.u32 %v1485_v50, 16  ;;  %v5213_v6 = vcombine.low %v1797_v37, %v1807_v45  ;;  %v2033_v24 = vld [vmem:[#allocation2 + $0xa0] sm:$0xf]  ;;  %v4410_v57 = vld [vmem:[#allocation3 + $0x30] sm:$0xff] }
 0x171   : > { %v4262_v5 = vsel %vm5864_vm8, %v4260_v10, %v4261_v20  ;;  %v1811_v39 = vrot.slane %v1809_v16, 4  ;;  %v1822_v56 = vshrl.u32 %v1485_v50, 16  ;;  %v2034_v61 = vld [vmem:[#allocation2 + $0xa4] sm:$0x1]  ;;  %v1828_v62 = vshll.u32 %v1486_v54, 16  ;;  %5534 = vmatprep.mubr.msk.bf16.mxu0 %vm4447_vm4, %v4410_v57  ;;  %v5612_v45 = vld [vmem:[#allocation2 + $0x9c] sm:$0xff]  }
 0x172   : > { %v3873_v34 = vsel %vm5941_vm11, %v3868_v36, %v3872_v32  ;;  %v5372_v47 = vcombine.low %v4259_v11, %v4262_v5  ;;  %v1814_v0 = vrot.slane %v1812_v44, 5  ;;  %v1820_v29 = vrot.slane %v1818_v35, 5  ;;  %v2530_v31 = vld [vmem:[#allocation2 + $0x9c] sm:$0xf]  ;;  %v2531_v25 = vld [vmem:[#allocation2 + $0xa0] sm:$0xf] }
 0x173   : > { %v5340_v63 = vcombine.low %v3863_v53, %v3873_v34  ;;  %v1824_v55 = vrot.slane %v1822_v56, 4  ;;  %v5229_v3 = vrot.slane %v2029_v41, 9  ;;  %v2178_v40 = vrot.slane %v2030_v22, 5  ;;  %v1279_v16 = vld [vmem:[#allocation2 + $0xa8] sm:$0xf] }
 0x174   : > { %4361 = vrot.lane.b32.xlu0 %v5372_v47, %s5778_s16  ;;  %v1815_v48 = vor.u32 %v1814_v0, %v1811_v39  ;;  %v2181_v2 = vrot.slane %v2031_v51, 5  ;;  %v5230_v58 = vrot.slane %v2032_v27, 9  ;;  %v1830_v30 = vrot.slane %v1828_v62, 5  ;;  %v2532_v22 = vld [vmem:[#allocation2 + $0xa4] sm:$0x1] }
 0x175   : > { %4040 = vrot.lane.b32.xlu1 %v5340_v63, %s5780_s18  ;;  %v1825_v12 = vor.u32 %v1824_v55, %v1820_v29  ;;  %v2185_v33 = vrot.slane %v2033_v24, 5  ;;  %v2188_v21 = vrot.slane %v2034_v61, 5  ;;  %v2179_v26 = vsel %vm5864_vm8, %v5229_v3, %v2178_v40  ;;  %v3075_v35 = vld [vmem:[#allocation2 + $0x9c] sm:$0xe]  ;;  %v3076_v27 = vld [vmem:[#allocation2 + $0xa0] sm:$0xf] }
 0x176   : > { %v1816_v49 = vrot.slane %v1815_v48, 4  ;;  %v2180_v28 = vrot.slane %v2178_v40, 4  ;;  %v1087_v32 = vshrl.u32 %v7115_v38, 16  ;;  %v1090_v53 = vshll.u32 %v7115_v38, 16  ;;  %v3077_v63 = vld [vmem:[#allocation2 + $0xa4] sm:$0x1] }
 0x177   : > { %v1826_v17 = vrot.slane %v1825_v12, 4  ;;  %v2186_v52 = vsel %vm5864_vm8, %v5230_v58, %v2185_v33  ;;  %v2187_v50 = vrot.slane %v2185_v33, 4  ;;  %v1095_v41 = vshrl.u32 %v7117_v60, 16 }
 0x178   : > { %v1821_v4 = vsel %vm5941_vm11, %v1816_v49, %v1820_v29  ;;  %v2182_v37 = vsel %vm5864_vm8, %v2180_v28, %v2181_v2  ;;  %v1089_v43 = vrot.slane %v1087_v32, 7  ;;  %v1098_v38 = vshll.u32 %v7117_v60, 16  ;;  %v1283_v29 = vld [vmem:[#allocation2 + $0xb0] sm:$0x1] }
 0x179   : > { %1952 = vrot.lane.b32.xlu1 %v5213_v6, %s5774_s12  ;;  %v1831_v11 = vsel %vm5941_vm11, %v1826_v17, %v1830_v30  ;;  %v5245_v10 = vcombine.low %v2179_v26, %v2182_v37  ;;  %v2189_v20 = vsel %vm5864_vm8, %v2187_v50, %v2188_v21  ;;  %v763_v5 = vmul.f32 %v7090_v59, %v6740_v19  ;;  %v427_v30 = vld [vmem:[#allocation2 + $0xc8] sm:$0x1] }
 0x17a   : > { %v5214_v36 = vcombine.low %v1821_v4, %v1831_v11  ;;  %v1092_v54 = vor.u32 %v1090_v53, %v1089_v43  ;;  %v1093_v44 = vrot.slane %v1089_v43, 4  ;;  %v1097_v6 = vrot.slane %v1095_v41, 7  ;;  %v374_v4 = vld [vmem:[#allocation2 + $0xcc] sm:$0x1] }
 0x17b   : > { %2276 = vrot.lane.b32.xlu0 %v5245_v10, %s5773_s11  ;;  %v2831_v39 = vshrl.u32 %v2530_v31, 16  ;;  %v2834_v56 = vshll.u32 %v2530_v31, 16  ;;  %v2840_v51 = vshll.u32 %v2531_v25, 16  ;;  %v5246_v34 = vcombine.low %v2186_v52, %v2189_v20  ;;  %v5763_v31 = vld [vmem:[%s7623_s2] ss:$0 sm:$0xff] }
 0x17c   : > { %v1280_v60 = vsel %vm6037_vm13, %v1092_v54, %v1279_v16  ;;  %v2844_v47 = vshrl.u32 %v2531_v25, 16  ;;  %v2850_v0 = vshll.u32 %v2532_v22, 16  ;;  %v1100_v24 = vor.u32 %v1098_v38, %v1097_v6 }
 0x17d   : > { %1954 = vrot.lane.b32.xlu1 %v5214_v36, %s5774_s12  ;;  %v1102_v61 = vrot.slane %v1097_v6, 4  ;;  %1281 = vst [vmem:[#allocation2 + $0xa8] sm:$0xf] %v1280_v60  ;;  %v2833_v19 = vrot.slane %v2831_v39, 4  ;;  %v2836_v59 = vrot.slane %v2834_v56, 5  ;;  %v2842_v55 = vrot.slane %v2840_v51, 5  ;;  %v3488_v48 = vpop.permute.xlu1 %3487 }
 0x17e   : > { %v2846_v62 = vrot.slane %v2844_v47, 4  ;;  %v5293_v3 = vrot.slane %v3075_v35, 9  ;;  %v3221_v57 = vrot.slane %v3076_v27, 5  ;;  %v1101_v40 = vsel %vm6044_vm14, %v1093_v44, %v1100_v24  ;;  %3529 = vst.msk [vmem:[#allocation3 + $0x38] sm:$0xff] %vm3521_vm9, %v3488_v48  ;;  %v1286_v36 = vld [vmem:[#allocation2 + $0xb4] sm:$0xf] }
 0x17f   : > { %2453 = vrot.lane.b32.xlu0 %v5612_v45, %s5775_s13  ;;  %v2837_v2 = vor.u32 %v2836_v59, %v2833_v19  ;;  %v2852_v58 = vrot.slane %v2850_v0, 5  ;;  %v1284_v12 = vsel %vm5837_vm3, %v1102_v61, %v1283_v29  ;;  %1282 = vst.msk [vmem:[#allocation2 + $0xac] sm:$0xf] %vm311_vm0, %v1101_v40  ;;  %v3224_v49 = vrot.slane %v3077_v63, 5 }
 0x180   : > { %v2847_v33 = vor.u32 %v2846_v62, %v2842_v55  ;;  %1285 = vst [vmem:[#allocation2 + $0xb0] sm:$0x1] %v1284_v12  ;;  %v3223_v21 = vrot.slane %v3221_v57, 4  ;;  %v668_v26 = vadd.f32 1.0, %v7087_v18  ;;  %v5461_v32 = vpack.c.bf16 %v763_v5, %v763_v5 }
 0x181   : > { %2278 = vrot.lane.b32.xlu1 %v5246_v34, %s5773_s11  ;;  %v2838_v28 = vrot.slane %v2837_v2, 4  ;;  %v7176_v17 = vadd.f32 %v5763_v31, %v7057_v42  ;;  %v428_v50 = vsel %vm5854_vm7, 0, %v427_v30  ;;  %v3222_v41 = vsel %vm5864_vm8, %v5293_v3, %v3221_v57 }
 0x182   : > { %v2848_v52 = vrot.slane %v2847_v33, 4  ;;  %5750 = vrcp.f32 %v668_v26  ;;  %v1104_v18 = vshrl.u32 %v5461_v32, 16  ;;  %429 = vst [vmem:[#allocation2 + $0xc8] sm:$0x1] %v428_v50  ;;  %v3225_v42 = vsel %vm5864_vm8, %v3223_v21, %v3224_v49 }
 0x183   : > { %v2843_v53 = vsel %vm5941_vm11, %v2838_v28, %v2842_v55  ;;  %v1107_v25 = vshll.u32 %v5461_v32, 16  ;;  %v5152_v38 = vmul.f32 -1.442695, %v7176_v17  ;;  %v669_v45 = vadd.f32 1.0, %v7133_v15 }
 0x184   : > { %v2853_v37 = vsel %vm5941_vm11, %v2848_v52, %v2852_v58  ;;  %v2533_v43 = vld [vmem:[#allocation2 + $0xa8] sm:$0xf]  ;;  %v7189_v22 = vrot.slane %v1104_v18, 7  ;;  %v375_v44 = vsel %vm5837_vm3, 0, %v374_v4  ;;  %v5309_v39 = vcombine.low %v3222_v41, %v3225_v42 }
 0x185   : > { %v5277_v11 = vcombine.low %v2843_v53, %v2853_v37  ;;  %v2855_v10 = vshrl.u32 %v2533_v43, 16  ;;  %v2858_v20 = vshll.u32 %v2533_v43, 16  ;;  %v3078_v16 = vld [vmem:[#allocation2 + $0xa8] sm:$0xe]  ;;  %376 = vst [vmem:[#allocation2 + $0xcc] sm:$0x1] %v375_v44  ;;  %5752 = vpow2.f32 %v5152_v38 }
 0x186   : > { %v4354_v54 = vpop.permute.xlu0 %4353  ;;  %v5613_v35 = vld [vmem:[#allocation2 + $0xa8] sm:$0xff]   ;;  %v1109_v60 = vor.u32 %v1107_v25, %v7189_v22  ;;  %v5294_v61 = vrot.slane %v3078_v16, 9  ;;  %v1110_v48 = vrot.slane %v7189_v22, 4  ;;  %5754 = vrcp.f32 %v669_v45 }
 0x187   : > { %2998 = vrot.lane.b32.xlu0 %v5277_v11, %s5779_s17  ;;  %v2534_v5 = vld [vmem:[#allocation2 + $0xac] sm:$0xf]  ;;  %v2857_v6 = vrot.slane %v2855_v10, 4  ;;  %v2535_v56 = vld [vmem:[#allocation2 + $0xb0] sm:$0x1]  ;;  %v2860_v51 = vrot.slane %v2858_v20, 5  ;;  %2455 = vrot.lane.b32.xlu1 %v5613_v35, %s5775_s13 }
 0x188   : > { %v2864_v27 = vshll.u32 %v2534_v5, 16  ;;  %v2868_v34 = vshrl.u32 %v2534_v5, 16  ;;  %v3574_v47 = vld [vmem:[#allocation2 + $0xa8] sm:$0xf]  ;;  %v2874_v15 = vshll.u32 %v2535_v56, 16  ;;  %v1287_v40 = vsel %vm6037_vm13, %v1109_v60, %v1286_v36 }
 0x189   : > { %v4033_v0 = vpop.permute.xlu1 %4032  ;;  %v3079_v29 = vld [vmem:[#allocation2 + $0xac] sm:$0xf]  ;;  %v3080_v24 = vld [vmem:[#allocation2 + $0xb0] sm:$0x1]  ;;  %v2861_v19 = vor.u32 %v2860_v51, %v2857_v6  ;;  %1288 = vst [vmem:[#allocation2 + $0xb4] sm:$0xf] %v1287_v40 }
 0x18a   : > { %4074 = vst.msk [vmem:[#allocation3 + $0x38] sm:$0xff] %vm4066_vm10, %v4033_v0  ;;  %v2866_v59 = vrot.slane %v2864_v27, 5  ;;  %v2870_v63 = vrot.slane %v2868_v34, 4  ;;  %v3228_v55 = vrot.slane %v3079_v29, 5  ;;  %v2269_v62 = vpop.permute.xlu0 %2268  ;;  %v3231_v3 = vrot.slane %v3080_v24, 5  ;;  %v5616_v57 = vld [vmem:[#allocation2 + $0xa8] sm:$0xff]  }
 0x18b   : > { %4395 = vst.msk [vmem:[#allocation3 + $0x38] sm:$0xff] %vm4387_vm12, %v4354_v54  ;;  %3319 = vrot.lane.b32.xlu0 %v5309_v39, %s5777_s15  ;;  %v3575_v2 = vld [vmem:[#allocation2 + $0xac] sm:$0xf]  ;;  %v2862_v12 = vrot.slane %v2861_v19, 4  ;;  %v2876_v33 = vrot.slane %v2874_v15, 5  ;;  %v3875_v32 = vshrl.u32 %v3574_v47, 16 }
 0x18c   : > { %v5751_v58 = vpop.eup %5750  ;;  %v2871_v30 = vor.u32 %v2870_v63, %v2866_v59  ;;  %v3230_v21 = vrot.slane %v3228_v55, 4  ;;  %v3576_v28 = vld [vmem:[#allocation2 + $0xb0] sm:$0x1]  ;;  %v3878_v31 = vshll.u32 %v3574_v47, 16  ;;  %v3884_v52 = vshll.u32 %v3575_v2, 16 }
 0x18d   : > { %v1945_v49 = vpop.permute.xlu1 %1944  ;;  %v764_v26 = vmul.f32 %v5751_v58, %v6891_v14  ;;  %v2867_v50 = vsel %vm5941_vm11, %v2862_v12, %v2866_v59  ;;  %v3229_v18 = vsel %vm5864_vm8, %v5294_v61, %v3228_v55  ;;  %v3888_v4 = vshrl.u32 %v3575_v2, 16  ;;  %v4119_v25 = vld [vmem:[#allocation2 + $0xa8] sm:$0xe]  ;;  %v4120_v11 = vld [vmem:[#allocation2 + $0xac] sm:$0xf] }
 0x18e   : > { %1985 = vst.msk [vmem:[#allocation3 + $0x40] sm:$0xff] %vm1976_vm1, %v1945_v49  ;;  %v2872_v53 = vrot.slane %v2871_v30, 4  ;;  %vm7658_vm2 = vcmask 97344   ;;  %v2446_v37 = vpop.permute.xlu0 %2445  ;;  %v3232_v14 = vsel %vm5864_vm8, %v3230_v21, %v3231_v3  ;;  %v3877_v41 = vrot.slane %v3875_v32, 4  ;;  %v1290_v39 = vld [vmem:[#allocation2 + $0xbc] sm:$0x1] }
 0x18f   : > { %2309 = vst.msk [vmem:[#allocation3 + $0x40] sm:$0xff] %vm7658_vm2, %v2269_v62  ;;  %3497 = vrot.lane.b32.xlu0 %v5616_v57, %s5776_s14  ;;  %v5462_v43 = vpack.c.bf16 %v764_v26, %v764_v26  ;;  %v3880_v42 = vrot.slane %v3878_v31, 5  ;;  %vm7659_vm15 = vcmask 130144   ;;  %v3886_v20 = vrot.slane %v3884_v52, 5  ;;  %v4121_v56 = vld [vmem:[#allocation2 + $0xb0] sm:$0x1]  ;;  %v7217_v60 = vpop.eup %5752 }
 0x190   : > { %2486 = vst.msk [vmem:[#allocation3 + $0x40] sm:$0xff] %vm7659_vm15, %v2446_v37  ;;  %v2877_v10 = vsel %vm5941_vm11, %v2872_v53, %v2876_v33  ;;  %v3890_v38 = vrot.slane %v3888_v4, 4  ;;  %v3894_v16 = vshll.u32 %v3576_v28, 16  ;;  %v5357_v51 = vrot.slane %v4119_v25, 9  ;;  %v3577_v29 = vld [vmem:[#allocation2 + $0xb4] sm:$0xf]  ;;  %v5755_v62 = vpop.eup %5754 }
 0x191   : > { %v1947_v36 = vpop.permute.xlu1 %1946  ;;  %v5278_v45 = vcombine.low %v2867_v50, %v2877_v10  ;;  %v1112_v54 = vshrl.u32 %v5462_v43, 16  ;;  %v1115_v44 = vshll.u32 %v5462_v43, 16  ;;  %v3881_v35 = vor.u32 %v3880_v42, %v3877_v41  ;;  %v1487_v63 = vld [vmem:[#allocation2 + $0xa8] sm:$0xf]  ;;  %v1488_v58 = vld [vmem:[#allocation2 + $0xac] sm:$0xf] }
 0x192   : > { %1986 = vst.msk [vmem:[#allocation3 + $0x48] sm:$0xff] %vm1976_vm1, %v1947_v36  ;;  %v3891_v5 = vor.u32 %v3890_v38, %v3886_v20  ;;  %v3896_v6 = vrot.slane %v3894_v16, 5  ;;  %v4265_v27 = vrot.slane %v4120_v11, 5  ;;  %v4411_v34 = vld [vmem:[#allocation3 + $0x38] sm:$0xff]  ;;  %v5310_v47 = vcombine.low %v3229_v18, %v3232_v14  ;;  %v2035_v53 = vld [vmem:[#allocation2 + $0xa8] sm:$0xe] }
 0x193   : > { %3000 = vrot.lane.b32.xlu1 %v5278_v45, %s5779_s17  ;;  %v1114_v0 = vrot.slane %v1112_v54, 7  ;;  %v3882_v15 = vrot.slane %v3881_v35, 4  ;;  %5535 = vmatmul.mubr.msk.bf16.gmra.mrb[12].mxu0 %vm4447_vm4, %v4411_v34  ;;  %v3899_v61 = vshrl.u32 %v3577_v29, 16  ;;  %v3902_v19 = vshll.u32 %v3577_v29, 16  ;;  %v1489_v12 = vld [vmem:[#allocation2 + $0xb0] sm:$0x1] }
 0x194   : > { %v3892_v24 = vrot.slane %v3891_v5, 4  ;;  %v4266_v59 = vsel %vm5864_vm8, %v5357_v51, %v4265_v27  ;;  %v4267_v2 = vrot.slane %v4265_v27, 4  ;;  %v4268_v49 = vrot.slane %v4121_v56, 5  ;;  %v7235_v52 = vld [vmem:[#allocation2 + $0xb4] sm:$0xe] }
 0x195   : > { %v2271_v55 = vpop.permute.xlu1 %2270  ;;  %v1117_v3 = vor.u32 %v1115_v44, %v1114_v0  ;;  %v1119_v57 = vrot.slane %v1114_v0, 4  ;;  %v3887_v40 = vsel %vm5941_vm11, %v3882_v15, %v3886_v20  ;;  %v3901_v33 = vrot.slane %v3899_v61, 4  ;;  %v1490_v50 = vld [vmem:[#allocation2 + $0xb4] sm:$0xf]  ;;  %v2036_v18 = vld [vmem:[#allocation2 + $0xac] sm:$0xf] }
 0x196   : > { %2310 = vst.msk [vmem:[#allocation3 + $0x48] sm:$0xff] %vm7658_vm2, %v2271_v55  ;;  %v3897_v30 = vsel %vm5941_vm11, %v3892_v24, %v3896_v6  ;;  %v3904_v21 = vrot.slane %v3902_v19, 5  ;;  %v1833_v31 = vshrl.u32 %v1487_v63, 16  ;;  %v4269_v22 = vsel %vm5864_vm8, %v4267_v2, %v4268_v49  ;;  %v2037_v38 = vld [vmem:[#allocation2 + $0xb0] sm:$0x1]  ;;  %v5628_v19 = vld [vmem:[#allocation2 + $0xa8] sm:$0xff]  }
 0x197   : > { %3321 = vrot.lane.b32.xlu1 %v5310_v47, %s5777_s15  ;;  %v1118_v26 = vsel %vm6044_vm14, %v1110_v48, %v1117_v3  ;;  %v5341_v28 = vcombine.low %v3887_v40, %v3897_v30  ;;  %v1291_v32 = vsel %vm5837_vm3, %v1119_v57, %v1290_v39  ;;  %v1836_v37 = vshll.u32 %v1487_v63, 16  ;;  %v2991_v48 = vpop.permute.xlu0 %2990  ;;  %v7248_v35 = vld [vmem:[#allocation2 + $0xb4] sm:$0xe] }
 0x198   : > { %1289 = vst.msk [vmem:[#allocation2 + $0xb8] sm:$0xf] %vm311_vm0, %v1118_v26  ;;  %1292 = vst [vmem:[#allocation2 + $0xbc] sm:$0x1] %v1291_v32  ;;  %v3905_v4 = vor.u32 %v3904_v21, %v3901_v33  ;;  %v1842_v14 = vshll.u32 %v1488_v58, 16  ;;  %v5373_v43 = vcombine.low %v4266_v59, %v4269_v22  ;;  %v1835_v41 = vrot.slane %v1833_v31, 4 }
 0x199   : > { %4042 = vrot.lane.b32.xlu0 %v5341_v28, %s5780_s18  ;;  %v1846_v42 = vshrl.u32 %v1488_v58, 16  ;;  %v1852_v25 = vshll.u32 %v1489_v12, 16  ;;  %3031 = vst.msk [vmem:[#allocation3 + $0x40] sm:$0xff] %vm3022_vm5, %v2991_v48  ;;  %v1838_v10 = vrot.slane %v1836_v37, 5  ;;  %v765_v16 = vmul.f32 %v5755_v62, %v7023_v46 }
 0x19a   : > { %v7242_v11 = vrot.slane %v3905_v4, 4  ;;  %v7244_v20 = vrot.slane %v1842_v14, 5  ;;  %v5358_v45 = vrot.slane %v7235_v52, 9  ;;  %v1857_v54 = vshrl.u32 %v1490_v50, 16  ;;  %v2448_v5 = vpop.permute.xlu1 %2447 }
 0x19b   : > { %v1848_v36 = vrot.slane %v1846_v42, 4  ;;  %v1860_v44 = vshll.u32 %v1490_v50, 16  ;;  %v1839_v6 = vor.u32 %v1838_v10, %v1835_v41  ;;  %v7250_v39 = vrot.slane %v1852_v25, 5  ;;  %2487 = vst.msk [vmem:[#allocation3 + $0x48] sm:$0xff] %vm7659_vm15, %v2448_v5  ;;  %v3312_v27 = vpop.permute.xlu0 %3311 }
 0x19c   : > { %v5231_v56 = vrot.slane %v2035_v53, 9  ;;  %v2192_v51 = vrot.slane %v2036_v18, 5  ;;  %v1859_v34 = vrot.slane %v1857_v54, 4  ;;  %v2195_v0 = vrot.slane %v2037_v38, 5  ;;  %3352 = vst.msk [vmem:[#allocation3 + $0x40] sm:$0xff] %vm3343_vm6, %v3312_v27 }
 0x19d   : > { %4363 = vrot.lane.b32.xlu0 %v5373_v43, %s5778_s16  ;;  %v1849_v46 = vor.u32 %v1848_v36, %v7244_v20  ;;  %v1862_v47 = vrot.slane %v1860_v44, 5  ;;  %v1840_v15 = vrot.slane %v1839_v6, 4  ;;  %v5232_v24 = vrot.slane %v7248_v35, 9  ;;  %v2536_v38 = vld [vmem:[#allocation2 + $0xb4] sm:$0xf] }
 0x19e   : > { %v2194_v29 = vrot.slane %v2192_v51, 4  ;;  %v670_v61 = vadd.f32 1.0, %v7217_v60  ;;  %v7260_v2 = vsel %vm5864_vm8, %v5231_v56, %v2192_v51  ;;  %vm7660_vm2 = vcmask 31744  }
 0x19f   : > { %v5617_v59 = vld [vmem:[#allocation2 + $0xb4] sm:$0xff]   ;;  %v1850_v55 = vrot.slane %v1849_v46, 4  ;;  %v3579_v62 = vld [vmem:[#allocation2 + $0xbc] sm:$0x1]  ;;  %v3490_v58 = vpop.permute.xlu0 %3489  ;;  %1443 = vst.msk [vmem:[#allocation3 + $0x70] sm:$0xff] %vm7660_vm2, %v5628_v19  ;;  %v1863_v21 = vor.u32 %v1862_v47, %v1859_v34  ;;  %v7264_v49 = vpack.c.bf16 %v765_v16, %v765_v16  ;;  %v1845_v32 = vsel %vm5941_vm11, %v1840_v15, %v7244_v20  ;;  %vm7661_vm15 = vmmov %vm7660_vm2 }
 0x1a0   : > { %v3578_v63 = vld [vmem:[#allocation2 + $0xb8] sm:$0xf]  ;;  %3499 = vrot.lane.b32.xlu1 %v5617_v59, %s5776_s14  ;;  %v3918_v12 = vshll.u32 %v3579_v62, 16  ;;  %v4124_v30 = vld [vmem:[#allocation2 + $0xbc] sm:$0x1]  ;;  %3530 = vst.msk [vmem:[#allocation3 + $0x40] sm:$0xff] %vm3521_vm9, %v3490_v58  ;;  %v2196_v4 = vsel %vm5864_vm8, %v2194_v29, %v2195_v0  ;;  %5756 = vrcp.f32 %v670_v61 }
 0x1a1   : > { %v3908_v3 = vshll.u32 %v3578_v63, 16  ;;  %v3912_v57 = vshrl.u32 %v3578_v63, 16  ;;  %v4123_v40 = vld [vmem:[#allocation2 + $0xb8] sm:$0xf]  ;;  %v4275_v31 = vrot.slane %v4124_v30, 5  ;;  %v1855_v14 = vsel %vm5941_vm11, %v1850_v55, %v7250_v39 }
 0x1a2   : > { %v4272_v60 = vrot.slane %v4123_v40, 5  ;;  %v1491_v33 = vld [vmem:[#allocation2 + $0xb8] sm:$0xf]  ;;  %v1492_v52 = vld [vmem:[#allocation2 + $0xbc] sm:$0x1]  ;;  %v3920_v50 = vrot.slane %v3918_v12, 5  ;;  %v5215_v6 = vcombine.low %v1845_v32, %v1855_v14  ;;  %v5247_v39 = vcombine.low %v7260_v2, %v2196_v4 }
 0x1a3   : > { %v3910_v26 = vrot.slane %v3908_v3, 5  ;;  %v3914_v28 = vrot.slane %v3912_v57, 4  ;;  %v5629_v22 = vld [vmem:[#allocation2 + $0xb4] sm:$0xff]   ;;  %v1866_v48 = vshll.u32 %v1491_v33, 16  ;;  %v1870_v43 = vshrl.u32 %v1491_v33, 16 }
 0x1a4   : > { %v4273_v53 = vsel %vm5864_vm8, %v5358_v45, %v4272_v60  ;;  %v4274_v18 = vrot.slane %v4272_v60, 4  ;;  %v7277_v41 = vld [vmem:[#allocation2 + $0xb8] sm:$0xf]  ;;  %v1864_v10 = vrot.slane %v1863_v21, 4  ;;  %v1876_v20 = vshll.u32 %v1492_v52, 16  ;;  %1444 = vst.msk [vmem:[#allocation3 + $0x78] sm:$0xff] %vm7661_vm15, %v5629_v22 }
 0x1a5   : > { %v3915_v37 = vor.u32 %v3914_v28, %v3910_v26  ;;  %v3911_v42 = vsel %vm5941_vm11, %v7242_v11, %v3910_v26  ;;  %v1868_v54 = vrot.slane %v1866_v48, 5  ;;  %v1872_v44 = vrot.slane %v1870_v43, 4  ;;  %v2040_v5 = vld [vmem:[#allocation2 + $0xbc] sm:$0x1]  ;;  %v2537_v56 = vld [vmem:[#allocation2 + $0xb8] sm:$0xf] }
 0x1a6   : > { %v4276_v25 = vsel %vm5864_vm8, %v4274_v18, %v4275_v31  ;;  %v2993_v16 = vpop.permute.xlu1 %2992  ;;  %v2199_v11 = vrot.slane %v7277_v41, 5  ;;  %v1878_v46 = vrot.slane %v1876_v20, 5  ;;  %v1121_v34 = vshrl.u32 %v7264_v49, 16  ;;  %v2538_v47 = vld [vmem:[#allocation2 + $0xbc] sm:$0x1] }
 0x1a7   : > { %v3916_v36 = vrot.slane %v3915_v37, 4  ;;  %v5374_v45 = vcombine.low %v4273_v53, %v4276_v25  ;;  %3032 = vst.msk [vmem:[#allocation3 + $0x48] sm:$0xff] %vm3022_vm5, %v2993_v16  ;;  %v1873_v27 = vor.u32 %v1872_v44, %v1868_v54  ;;  %v2202_v15 = vrot.slane %v2040_v5, 5  ;;  %v1293_v19 = vld [vmem:[#allocation2 + $0xc0] sm:$0xf] }
 0x1a8   : > { %v1124_v29 = vshll.u32 %v7264_v49, 16  ;;  %v2879_v59 = vshrl.u32 %v2536_v38, 16  ;;  %v1869_v61 = vsel %vm5941_vm11, %v1864_v10, %v1868_v54  ;;  %v7295_v62 = vrot.slane %v1121_v34, 7  ;;  %v3081_v57 = vld [vmem:[#allocation2 + $0xb4] sm:$0xe] }
 0x1a9   : > { %v3921_v51 = vsel %vm5941_vm11, %v3916_v36, %v3920_v50  ;;  %4365 = vrot.lane.b32.xlu0 %v5374_v45, %s5778_s16  ;;  %v1874_v55 = vrot.slane %v1873_v27, 4  ;;  %v2882_v3 = vshll.u32 %v2536_v38, 16  ;;  %v430_v40 = vld [vmem:[#allocation2 + $0xd4] sm:$0x1]  ;;  %v2888_v58 = vshll.u32 %v2537_v56, 16 }
 0x1aa   : > { %v5342_v0 = vcombine.low %v3911_v42, %v3921_v51  ;;  %v3314_v63 = vpop.permute.xlu1 %3313  ;;  %v2881_v2 = vrot.slane %v2879_v59, 4  ;;  %v2892_v12 = vshrl.u32 %v2537_v56, 16  ;;  %v2898_v30 = vshll.u32 %v2538_v47, 16  ;;  %v3082_v60 = vld [vmem:[#allocation2 + $0xb8] sm:$0xf]  ;;  %v5757_v16 = vpop.eup %5756 }
 0x1ab   : > { %3353 = vst.msk [vmem:[#allocation3 + $0x48] sm:$0xff] %vm3343_vm6, %v3314_v63  ;;  %v1879_v33 = vsel %vm5941_vm11, %v1874_v55, %v1878_v46  ;;  %v2201_v21 = vrot.slane %v2199_v11, 4  ;;  %v5618_v49 = vld [vmem:[#allocation2 + $0xb4] sm:$0xff]   ;;  %v1126_v26 = vor.u32 %v1124_v29, %v7295_v62  ;;  %v2884_v28 = vrot.slane %v2882_v3, 5  ;;  %v3083_v32 = vld [vmem:[#allocation2 + $0xbc] sm:$0x1] }
 0x1ac   : > { %4044 = vrot.lane.b32.xlu1 %v5342_v0, %s5780_s18  ;;  %v4035_v31 = vpop.permute.xlu0 %4034  ;;  %v5216_v52 = vcombine.low %v1869_v61, %v1879_v33  ;;  %v2890_v50 = vrot.slane %v2888_v58, 5  ;;  %v2894_v53 = vrot.slane %v2892_v12, 4  ;;  %v2900_v37 = vrot.slane %v2898_v30, 5  ;;  %v1297_v47 = vld [vmem:[#allocation2 + $0xc8] sm:$0x1] }
 0x1ad   : > { %2280 = vrot.lane.b32.xlu0 %v5247_v39, %s5773_s11  ;;  %4075 = vst.msk [vmem:[#allocation3 + $0x40] sm:$0xff] %vm4066_vm10, %v4035_v31  ;;  %v1294_v4 = vsel %vm6037_vm13, %v1126_v26, %v1293_v19  ;;  %v2885_v22 = vor.u32 %v2884_v28, %v2881_v2  ;;  %v3235_v14 = vrot.slane %v3082_v60, 5  ;;  %v5295_v43 = vrot.slane %v3081_v57, 9  ;;  %v3583_v61 = vld [vmem:[#allocation2 + $0xcc] sm:$0xf] }
 0x1ae   : > { %v3492_v18 = vpop.permute.xlu1 %3491  ;;  %1295 = vst [vmem:[#allocation2 + $0xc0] sm:$0xf] %v1294_v4  ;;  %v2895_v48 = vor.u32 %v2894_v53, %v2890_v50  ;;  %v3238_v41 = vrot.slane %v3083_v32, 5  ;;  %v431_v42 = vsel %vm5854_vm7, 0, %v430_v40  ;;  %v2200_v7 = vsel %vm5864_vm8, %v5232_v24, %v2199_v11  ;;  %v3584_v55 = vld [vmem:[#allocation2 + $0xd0] sm:$0xf] }
 0x1af   : > { %3531 = vst.msk [vmem:[#allocation3 + $0x48] sm:$0xff] %vm3521_vm9, %v3492_v18  ;;  %v2203_v25 = vsel %vm5864_vm8, %v2201_v21, %v2202_v15  ;;  %v2886_v10 = vrot.slane %v2885_v22, 4  ;;  %v3237_v20 = vrot.slane %v3235_v14, 4  ;;  %432 = vst [vmem:[#allocation2 + $0xd4] sm:$0x1] %v431_v42  ;;  %v766_v9 = vmul.f32 %v5757_v16, %v7176_v17 }
 0x1b0   : > { %1956 = vrot.lane.b32.xlu1 %v5215_v6, %s5774_s12  ;;  %v4356_v38 = vpop.permute.xlu0 %4355  ;;  %v2896_v36 = vrot.slane %v2895_v48, 4  ;;  %v5248_v24 = vcombine.low %v2200_v7, %v2203_v25  ;;  %v3236_v54 = vsel %vm5864_vm8, %v5295_v43, %v3235_v14  ;;  %v1127_v27 = vrot.slane %v7295_v62, 4 }
 0x1b1   : > { %2457 = vrot.lane.b32.xlu0 %v5618_v49, %s5775_s13  ;;  %4396 = vst.msk [vmem:[#allocation3 + $0x40] sm:$0xff] %vm4387_vm12, %v4356_v38  ;;  %v2891_v35 = vsel %vm5941_vm11, %v2886_v10, %v2890_v50  ;;  %v3239_v44 = vsel %vm5864_vm8, %v3237_v20, %v3238_v41  ;;  %v5464_v5 = vpack.c.bf16 %v766_v9, %v766_v9  ;;  %vm7662_vm7 = vcmask 97344  }
 0x1b2   : > { %v2901_v45 = vsel %vm5941_vm11, %v2896_v36, %v2900_v37  ;;  %v5311_v51 = vcombine.low %v3236_v54, %v3239_v44  ;;  %v3947_v58 = vshrl.u32 %v3583_v61, 16  ;;  %v3950_v12 = vshll.u32 %v3583_v61, 16 }
 0x1b3   : > { %v5279_v6 = vcombine.low %v2891_v35, %v2901_v45  ;;  %v1129_v17 = vshrl.u32 %v5464_v5, 16  ;;  %v1132_v56 = vshll.u32 %v5464_v5, 16  ;;  %v3956_v30 = vshll.u32 %v3584_v55, 16 }
 0x1b4   : > { %1958 = vrot.lane.b32.xlu1 %v5216_v52, %s5774_s12  ;;  %v4358_v39 = vpop.permute.xlu0 %4357  ;;  %v4037_v11 = vpop.permute.xlu1 %4036  ;;  %v3960_v60 = vshrl.u32 %v3584_v55, 16  ;;  %v7345_v31 = vrot.slane %v3947_v58, 4  ;;  %v7347_v52 = vrot.slane %v3950_v12, 5 }
 0x1b5   : > { %3002 = vrot.lane.b32.xlu0 %v5279_v6, %s5779_s17  ;;  %4076 = vst.msk [vmem:[#allocation3 + $0x48] sm:$0xff] %vm4066_vm10, %v4037_v11  ;;  %v1131_v46 = vrot.slane %v1129_v17, 7  ;;  %v2539_v34 = vld [vmem:[#allocation2 + $0xc0] sm:$0xf]  ;;  %v7349_v50 = vrot.slane %v3956_v30, 5 }
 0x1b6   : > { %4397 = vst.msk [vmem:[#allocation3 + $0x48] sm:$0xff] %vm4387_vm12, %v4358_v39  ;;  %v2903_v59 = vshrl.u32 %v2539_v34, 16  ;;  %v2906_v63 = vshll.u32 %v2539_v34, 16  ;;  %v3580_v40 = vld [vmem:[#allocation2 + $0xc0] sm:$0xf]  ;;  %v3962_v22 = vrot.slane %v3960_v60, 4 }
 0x1b7   : > { %v1134_v15 = vor.u32 %v1132_v56, %v1131_v46  ;;  %v1136_v29 = vrot.slane %v1131_v46, 4  ;;  %v3923_v49 = vshrl.u32 %v3580_v40, 16  ;;  %v3926_v26 = vshll.u32 %v3580_v40, 16  ;;  %v3084_v28 = vld [vmem:[#allocation2 + $0xc0] sm:$0xe] }
 0x1b8   : > { %2282 = vrot.lane.b32.xlu1 %v5248_v24, %s5773_s11  ;;  %v1949_v0 = vpop.permute.xlu1 %1948  ;;  %v4412_v19 = vld [vmem:[#allocation3 + $0x40] sm:$0xff]  ;;  %v2905_v21 = vrot.slane %v2903_v59, 4  ;;  %v2908_v23 = vrot.slane %v2906_v63, 5  ;;  %v5296_v48 = vrot.slane %v3084_v28, 9  ;;  %v3585_v25 = vld [vmem:[#allocation2 + $0xd4] sm:$0x1]  ;;  %v3953_v46 = vor.u32 %v7347_v52, %v7345_v31 }
 0x1b9   : > { %3323 = vrot.lane.b32.xlu0 %v5311_v51, %s5777_s15  ;;  %1987 = vst.msk [vmem:[#allocation3 + $0x50] sm:$0xff] %vm1976_vm1, %v1949_v0  ;;  %5538 = vmatprep.mubr.msk.bf16.mxu1 %vm4447_vm4, %v4412_v19  ;;  %v1135_v62 = vsel %vm6044_vm14, %v1127_v27, %v1134_v15  ;;  %v1298_v57 = vsel %vm5837_vm3, %v1136_v29, %v1297_v47  ;;  %vm7663_vm3 = vcmask 130144   ;;  %v3925_v18 = vrot.slane %v3923_v49, 4  ;;  %v4125_v54 = vld [vmem:[#allocation2 + $0xc0] sm:$0xe] }
 0x1ba   : > { %1296 = vst.msk [vmem:[#allocation2 + $0xc4] sm:$0xf] %vm311_vm0, %v1135_v62  ;;  %1299 = vst [vmem:[#allocation2 + $0xc8] sm:$0x1] %v1298_v57  ;;  %v2909_v53 = vor.u32 %v2908_v23, %v2905_v21  ;;  %v3928_v4 = vrot.slane %v3926_v26, 5  ;;  %v3963_v15 = vor.u32 %v3962_v22, %v7349_v50  ;;  %v3966_v29 = vshll.u32 %v3585_v25, 16 }
 0x1bb   : > { %v2273_v3 = vpop.permute.xlu0 %2272  ;;  %vm7664_vm0 = vmmov %vm7662_vm7  ;;  %v5359_v40 = vrot.slane %v4125_v54, 9  ;;  %v4129_v21 = vld [vmem:[#allocation2 + $0xd0] sm:$0xf]  ;;  %v3954_v28 = vrot.slane %v3953_v46, 4 }
 0x1bc   : > { %2311 = vst.msk [vmem:[#allocation3 + $0x50] sm:$0xff] %vm7662_vm7, %v2273_v3  ;;  %v1951_v2 = vpop.permute.xlu1 %1950  ;;  %v2910_v16 = vrot.slane %v2909_v53, 4  ;;  %v3929_v45 = vor.u32 %v3928_v4, %v3925_v18  ;;  %vm7665_vm13 = vmmov %vm7663_vm3  ;;  %v4286_v31 = vrot.slane %v4129_v21, 5  ;;  %v3968_v18 = vrot.slane %v3966_v29, 5 }
 0x1bd   : > { %1988 = vst.msk [vmem:[#allocation3 + $0x58] sm:$0xff] %vm1976_vm1, %v1951_v2  ;;  %v4413_v33 = vld [vmem:[#allocation3 + $0x48] sm:$0xff]  ;;  %vm7666_vm14 = vmmov %vm7664_vm0 }
 0x1be   : > { %5539 = vmatmul.mubr.msk.bf16.vlgmr.msra.gmra.mrb[0].mxu1 %vm4447_vm4, %v4413_v33  ;;  %v3930_v61 = vrot.slane %v3929_v45, 4  ;;  %vm7667_vm2 = vmmov %vm7663_vm3 }
 0x1bf   : > { %v2450_v1 = vpop.permute.xlu0 %2449  ;;  %vm7668_vm15 = vmmov %vm7664_vm0 }
 0x1c0   : > { %2488 = vst.msk [vmem:[#allocation3 + $0x50] sm:$0xff] %vm7663_vm3, %v2450_v1  ;;  %v2275_v32 = vpop.permute.xlu1 %2274  ;;  %vm7669_vm7 = vmmov %vm7667_vm2 }
 0x1c1   : > { %2312 = vst.msk [vmem:[#allocation3 + $0x58] sm:$0xff] %vm7664_vm0, %v2275_v32  ;;  %v5619_v37 = vld [vmem:[#allocation2 + $0xc0] sm:$0xff]   ;;  %v2541_v43 = vld [vmem:[#allocation2 + $0xc8] sm:$0x1]  ;;  %v3964_v32 = vrot.slane %v3963_v15, 4  ;;  %vm7670_vm3 = vmmov %vm7664_vm0 }
 0x1c2   : > { %v2540_v14 = vld [vmem:[#allocation2 + $0xc4] sm:$0xf]  ;;  %2459 = vrot.lane.b32.xlu1 %v5619_v37, %s5775_s13  ;;  %v2922_v10 = vshll.u32 %v2541_v43, 16  ;;  %v3086_v20 = vld [vmem:[#allocation2 + $0xc8] sm:$0x1]  ;;  %v5623_v43 = vld [vmem:[#allocation2 + $0xcc] sm:$0xff]   ;;  %s298_s13 = scalar_lea.vmem %s7625_s4, %s7675_s25 }
 0x1c3   : > { %v2912_v41 = vshll.u32 %v2540_v14, 16  ;;  %v2916_v42 = vshrl.u32 %v2540_v14, 16  ;;  %v3085_v7 = vld [vmem:[#allocation2 + $0xc4] sm:$0xf]  ;;  %v3245_v6 = vrot.slane %v3086_v20, 5  ;;  %v3969_v25 = vsel %vm5941_vm11, %v3964_v32, %v3968_v18  ;;  %vm7671_vm0 = vmmov %vm7667_vm2 }
 0x1c4   : > { %v3242_v38 = vrot.slane %v3085_v7, 5  ;;  %v5622_v35 = vld [vmem:[#allocation2 + $0xc0] sm:$0xff]   ;;  %v2924_v44 = vrot.slane %v2922_v10, 5  ;;  %v3582_v39 = vld [vmem:[#allocation2 + $0xc8] sm:$0x1]  ;;  %v3959_v7 = vsel %vm5941_vm11, %v3954_v28, %v7349_v50  ;;  %v4288_v10 = vrot.slane %v4286_v31, 4 }
 0x1c5   : > { %v2914_v36 = vrot.slane %v2912_v41, 5  ;;  %v2918_v9 = vrot.slane %v2916_v42, 4  ;;  %v3581_v24 = vld [vmem:[#allocation2 + $0xc4] sm:$0xf]  ;;  %3501 = vrot.lane.b32.xlu0 %v5622_v35, %s5776_s14  ;;  %v3942_v27 = vshll.u32 %v3582_v39, 16 }
 0x1c6   : > { %v3244_v5 = vrot.slane %v3242_v38, 4  ;;  %v3932_v11 = vshll.u32 %v3581_v24, 16  ;;  %v3936_v51 = vshrl.u32 %v3581_v24, 16  ;;  %v4126_v34 = vld [vmem:[#allocation2 + $0xc4] sm:$0xf]  ;;  %v3243_v62 = vsel %vm5864_vm8, %v5296_v48, %v3242_v38 }
 0x1c7   : > { %v2995_v17 = vpop.permute.xlu0 %2994  ;;  %v2919_v56 = vor.u32 %v2918_v9, %v2914_v36  ;;  %v4127_v47 = vld [vmem:[#allocation2 + $0xc8] sm:$0x1]  ;;  %v4279_v19 = vrot.slane %v4126_v34, 5  ;;  %v2915_v59 = vsel %vm5941_vm11, %v2910_v16, %v2914_v36  ;;  %v3944_v60 = vrot.slane %v3942_v27, 5  ;;  %v4128_v37 = vld [vmem:[#allocation2 + $0xcc] sm:$0xe] }
 0x1c8   : > { %3033 = vst.msk [vmem:[#allocation3 + $0x50] sm:$0xff] %vm3022_vm5, %v2995_v17  ;;  %v3934_v0 = vrot.slane %v3932_v11, 5  ;;  %v3938_v55 = vrot.slane %v3936_v51, 4  ;;  %v3246_v57 = vsel %vm5864_vm8, %v3244_v5, %v3245_v6  ;;  %v4282_v2 = vrot.slane %v4127_v47, 5  ;;  %v4130_v48 = vld [vmem:[#allocation2 + $0xd4] sm:$0x1] }
 0x1c9   : > { %v2920_v63 = vrot.slane %v2919_v56, 4  ;;  %v4281_v33 = vrot.slane %v4279_v19, 4  ;;  %v5312_v1 = vcombine.low %v3243_v62, %v3246_v57  ;;  %v4280_v4 = vsel %vm5864_vm8, %v5359_v40, %v4279_v19  ;;  %v7402_v13 = vld [vmem:[%s298_s13] ss:$0 sm:$0xff] }
 0x1ca   : > { %v2452_v3 = vpop.permute.xlu1 %2451  ;;  %v3939_v30 = vor.u32 %v3938_v55, %v3934_v0  ;;  %v3935_v49 = vsel %vm5941_vm11, %v3930_v61, %v3934_v0  ;;  %v5360_v42 = vrot.slane %v4128_v37, 9  ;;  %v4289_v20 = vrot.slane %v4130_v48, 5 }
 0x1cb   : > { %2489 = vst.msk [vmem:[#allocation3 + $0x58] sm:$0xff] %vm7665_vm13, %v2452_v3  ;;  %v3316_v58 = vpop.permute.xlu0 %3315  ;;  %v2925_v12 = vsel %vm5941_vm11, %v2920_v63, %v2924_v44  ;;  %v4283_v22 = vsel %vm5864_vm8, %v4281_v33, %v4282_v2  ;;  %v5344_v16 = vcombine.low %v3959_v7, %v3969_v25  ;;  %vm7673_vm13 = vmmov %vm7671_vm0 }
 0x1cc   : > { %3354 = vst.msk [vmem:[#allocation3 + $0x50] sm:$0xff] %vm3343_vm6, %v3316_v58  ;;  %v5280_v23 = vcombine.low %v2915_v59, %v2925_v12  ;;  %v3940_v26 = vrot.slane %v3939_v30, 4  ;;  %v5375_v41 = vcombine.low %v4280_v4, %v4283_v22  ;;  %v4287_v36 = vsel %vm5864_vm8, %v5360_v42, %v4286_v31 }
 0x1cd   : > { %v4290_v50 = vsel %vm5864_vm8, %v4288_v10, %v4289_v20  ;;  %vm4789_vm8 = vcmask 60416  }
 0x1ce   : > { %3004 = vrot.lane.b32.xlu1 %v5280_v23, %s5779_s17  ;;  %v3945_v53 = vsel %vm5941_vm11, %v3940_v26, %v3944_v60  ;;  %v5376_v9 = vcombine.low %v4287_v36, %v4290_v50  ;;  %vm4822_vm11 = vcmask 64512  }
 0x1cf   : > { %v3494_v52 = vpop.permute.xlu0 %3493  ;;  %v5343_v14 = vcombine.low %v3935_v49, %v3945_v53 }
 0x1d0   : > { %3532 = vst.msk [vmem:[#allocation3 + $0x50] sm:$0xff] %vm3521_vm9, %v3494_v52 }
 0x1d1   : > { %4046 = vrot.lane.b32.xlu0 %v5343_v14, %s5780_s18 }
 0x1d2   : > { %3325 = vrot.lane.b32.xlu1 %v5312_v1, %s5777_s15 }
 0x1d5   : > { %4367 = vrot.lane.b32.xlu0 %v5375_v41, %s5778_s16 }
 0x1d6   : > { %v2997_v38 = vpop.permute.xlu1 %2996  ;;  %3503 = vrot.lane.b32.xlu1 %v5623_v43, %s5776_s14  ;;  %s5432_s14 = sshll.u32 %s7675_s25, 7 }
 0x1d7   : > { %3034 = vst.msk [vmem:[#allocation3 + $0x58] sm:$0xff] %vm3022_vm5, %v2997_v38  ;;  %s7410_s17 = scalar_lea.vmem %s7626_s5, %s5432_s14 }
 0x1da   : > { %v3318_v8 = vpop.permute.xlu1 %3317  ;;  %4048 = vrot.lane.b32.xlu1 %v5344_v16, %s5780_s18 }
 0x1db   : > { %3355 = vst.msk [vmem:[#allocation3 + $0x58] sm:$0xff] %vm3343_vm6, %v3318_v8 }
 0x1dc   : > { %v4039_v35 = vpop.permute.xlu0 %4038 }
 0x1dd   : > { %4077 = vst.msk [vmem:[#allocation3 + $0x50] sm:$0xff] %vm4066_vm10, %v4039_v35 }
 0x1de   : > { %v3496_v24 = vpop.permute.xlu1 %3495  ;;  %4369 = vrot.lane.b32.xlu1 %v5376_v9, %s5778_s16 }
 0x1df   : > { %3533 = vst.msk [vmem:[#allocation3 + $0x58] sm:$0xff] %vm3521_vm9, %v3496_v24 }
 0x1e0   : > { %v4360_v45 = vpop.permute.xlu0 %4359 }
 0x1e1   : > { %4398 = vst.msk [vmem:[#allocation3 + $0x50] sm:$0xff] %vm4387_vm12, %v4360_v45 }
 0x1e5   : > { %v5524_v44 = vpop.f32.mrb[0].mxu0 }
 0x1e6   : > { %v4362_v54 = vpop.permute.xlu0 %4361  ;;  %v4543_v6 = vadd.f32 %v5524_v44, %v7402_v13  ;;  %v4534_v39 = vpop.f32.mrb[1].mxu0 }
 0x1e7   : > { %v4041_v5 = vpop.permute.xlu1 %4040  ;;  %v4535_v17 = vadd.f32 %v7402_v13, %v4534_v39  ;;  %v5525_v56 = vpop.f32.mrb[2].mxu0 }
 0x1e8   : > { %4078 = vst.msk [vmem:[#allocation3 + $0x58] sm:$0xff] %vm4066_vm10, %v4041_v5  ;;  %v4414_v11 = vld [vmem:[#allocation3 + $0x50] sm:$0xff]  ;;  %v5467_v51 = vpack.c.bf16 %v4543_v6, %v4543_v6  ;;  %v4546_v27 = vadd.f32 %v5525_v56, %v7402_v13  ;;  %v4537_v46 = vpop.f32.mrb[3].mxu0  ;;  %v4896_v29 = vmul.f32 %v4543_v6, %v4543_v6  ;;  %v4826_v57 = vsel %vm4822_vm11, %v4543_v6, 0.0 }
 0x1e9   : > { %4399 = vst.msk [vmem:[#allocation3 + $0x58] sm:$0xff] %vm4387_vm12, %v4362_v54  ;;  %5542 = vmatprep.mubr.msk.bf16.mxu1 %vm4447_vm4, %v4414_v11  ;;  %v5465_v34 = vpack.c.bf16 %v4535_v17, %v4535_v17  ;;  %v4894_v47 = vmul.f32 %v4535_v17, %v4535_v17  ;;  %v4538_v0 = vadd.f32 %v7402_v13, %v4537_v46  ;;  %v4823_v59 = vsel %vm4822_vm11, %v4535_v17, 0.0 }
 0x1ea   : > { %4792 = vst.msk [vmem:[%s7410_s17 + $0x8] sm:$0xf] %vm4789_vm8, %v5467_v51  ;;  %v5468_v19 = vpack.c.bf16 %v4546_v27, %v4546_v27  ;;  %v4897_v2 = vmul.f32 %v4546_v27, %v4546_v27  ;;  %v4929_v21 = vsel %vm4822_vm11, %v4896_v29, 0.0  ;;  %v4828_v23 = vsel %vm4822_vm11, %v4546_v27, 0.0 }
 0x1eb   : > { %v1953_v15 = vpop.permute.xlu1 %1952  ;;  %4790 = vst.msk [vmem:[%s7410_s17] sm:$0xf] %vm4789_vm8, %v5465_v34  ;;  %v5466_v63 = vpack.c.bf16 %v4538_v0, %v4538_v0  ;;  %v4824_v61 = vsel %vm4822_vm11, %v4538_v0, 0.0  ;;  %v4895_v55 = vmul.f32 %v4538_v0, %v4538_v0  ;;  %v4926_v40 = vsel %vm4822_vm11, %v4894_v47, 0.0 }
 0x1ec   : > { %1989 = vst.msk [vmem:[#allocation3 + $0x60] sm:$0xff] %vm1976_vm1, %v1953_v15  ;;  %v4825_v62 = vadd.f32 %v4824_v61, %v4823_v59  ;;  %v4931_v28 = vsel %vm4822_vm11, %v4897_v2, 0.0 }
 0x1ed   : > { %v2277_v3 = vpop.permute.xlu0 %2276  ;;  %4793 = vst.msk [vmem:[%s7410_s17 + $0xc] sm:$0xf] %vm4789_vm8, %v5468_v19  ;;  %4791 = vst.msk [vmem:[%s7410_s17 + $0x4] sm:$0xf] %vm4789_vm8, %v5466_v63  ;;  %v4927_v58 = vsel %vm4822_vm11, %v4895_v55, 0.0 }
 0x1ee   : > { %2313 = vst.msk [vmem:[#allocation3 + $0x60] sm:$0xff] %vm7666_vm14, %v2277_v3  ;;  %v4827_v30 = vadd.f32 %v4826_v57, %v4825_v62  ;;  %v4928_v60 = vadd.f32 %v4927_v58, %v4926_v40 }
 0x1ef   : > { %v1955_v12 = vpop.permute.xlu1 %1954 }
 0x1f0   : > { %1990 = vst.msk [vmem:[#allocation3 + $0x68] sm:$0xff] %vm1976_vm1, %v1955_v12  ;;  %v4415_v33 = vld [vmem:[#allocation3 + $0x58] sm:$0xff]  ;;  %v4930_v26 = vadd.f32 %v4929_v21, %v4928_v60  ;;  %v4829_v1 = vadd.f32 %v4828_v23, %v4827_v30  ;;  %v5528_v31 = vpop.f32.mrb[4].mxu0 }
 0x1f1   : > { %v2454_v49 = vpop.permute.xlu0 %2453  ;;  %5543 = vmatmul.mubr.msk.bf16.gmra.mrb[4].mxu1 %vm4447_vm4, %v4415_v33  ;;  %v4559_v53 = vadd.f32 %v5528_v31, %v7402_v13  ;;  %v4550_v18 = vpop.f32.mrb[5].mxu0 }
 0x1f2   : > { %2490 = vst.msk [vmem:[#allocation3 + $0x60] sm:$0xff] %vm7667_vm2, %v2454_v49  ;;  %v4932_v52 = vadd.f32 %v4931_v28, %v4930_v26  ;;  %v4551_v4 = vadd.f32 %v7402_v13, %v4550_v18  ;;  %v5529_v22 = vpop.f32.mrb[6].mxu0 }
 0x1f3   : > { %v2279_v32 = vpop.permute.xlu1 %2278  ;;  %v5471_v37 = vpack.c.bf16 %v4559_v53, %v4559_v53  ;;  %v4562_v14 = vadd.f32 %v5529_v22, %v7402_v13  ;;  %v4553_v48 = vpop.f32.mrb[7].mxu0  ;;  %v4900_v50 = vmul.f32 %v4559_v53, %v4559_v53  ;;  %v4834_v45 = vsel %vm4822_vm11, %v4559_v53, 0.0 }
 0x1f4   : > { %2314 = vst.msk [vmem:[#allocation3 + $0x68] sm:$0xff] %vm7668_vm15, %v2279_v32  ;;  %v5469_v43 = vpack.c.bf16 %v4551_v4, %v4551_v4  ;;  %v4830_v41 = vsel %vm4822_vm11, %v4551_v4, 0.0  ;;  %v4898_v42 = vmul.f32 %v4551_v4, %v4551_v4  ;;  %v4554_v7 = vadd.f32 %v7402_v13, %v4553_v48 }
 0x1f5   : > { %4796 = vst.msk [vmem:[%s7410_s17 + $0x18] sm:$0xf] %vm4789_vm8, %v5471_v37  ;;  %v4831_v25 = vadd.f32 %v4830_v41, %v4829_v1  ;;  %v5472_v10 = vpack.c.bf16 %v4562_v14, %v4562_v14  ;;  %v4901_v54 = vmul.f32 %v4562_v14, %v4562_v14  ;;  %v4836_v39 = vsel %vm4822_vm11, %v4562_v14, 0.0 }
 0x1f6   : > { %4794 = vst.msk [vmem:[%s7410_s17 + $0x10] sm:$0xf] %vm4789_vm8, %v5469_v43  ;;  %v4933_v38 = vsel %vm4822_vm11, %v4898_v42, 0.0  ;;  %v5470_v16 = vpack.c.bf16 %v4554_v7, %v4554_v7  ;;  %v4832_v36 = vsel %vm4822_vm11, %v4554_v7, 0.0  ;;  %v4899_v35 = vmul.f32 %v4554_v7, %v4554_v7 }
 0x1f7   : > { %v4934_v8 = vadd.f32 %v4933_v38, %v4932_v52  ;;  %4797 = vst.msk [vmem:[%s7410_s17 + $0x1c] sm:$0xf] %vm4789_vm8, %v5472_v10  ;;  %v4833_v9 = vadd.f32 %v4832_v36, %v4831_v25  ;;  %v4937_v17 = vsel %vm4822_vm11, %v4900_v50, 0.0  ;;  %v4939_v27 = vsel %vm4822_vm11, %v4901_v54, 0.0 }
 0x1f8   : > { %4795 = vst.msk [vmem:[%s7410_s17 + $0x14] sm:$0xf] %vm4789_vm8, %v5470_v16  ;;  %v4935_v5 = vsel %vm4822_vm11, %v4899_v35, 0.0 }
 0x1f9   : > { %v2999_v20 = vpop.permute.xlu0 %2998  ;;  %v2456_v24 = vpop.permute.xlu1 %2455  ;;  %v4835_v44 = vadd.f32 %v4834_v45, %v4833_v9  ;;  %v4936_v11 = vadd.f32 %v4935_v5, %v4934_v8 }
 0x1fa   : > { %3035 = vst.msk [vmem:[#allocation3 + $0x60] sm:$0xff] %vm3022_vm5, %v2999_v20 }
 0x1fb   : > { %2491 = vst.msk [vmem:[#allocation3 + $0x68] sm:$0xff] %vm7669_vm7, %v2456_v24  ;;  %v4837_v56 = vadd.f32 %v4836_v39, %v4835_v44  ;;  %v4938_v51 = vadd.f32 %v4937_v17, %v4936_v11 }
 0x1fd   : > { %v3320_v6 = vpop.permute.xlu0 %3319  ;;  %v4940_v34 = vadd.f32 %v4939_v27, %v4938_v51 }
 0x1fe   : > { %3356 = vst.msk [vmem:[#allocation3 + $0x60] sm:$0xff] %vm3343_vm6, %v3320_v6 }
 0x201   : > { %v3498_v46 = vpop.permute.xlu0 %3497 }
 0x202   : > { %3534 = vst.msk [vmem:[#allocation3 + $0x60] sm:$0xff] %vm3521_vm9, %v3498_v46 }
 0x205   : > { %v3001_v47 = vpop.permute.xlu1 %3000 }
 0x206   : > { %3036 = vst.msk [vmem:[#allocation3 + $0x68] sm:$0xff] %vm3022_vm5, %v3001_v47 }
 0x209   : > { %v3322_v0 = vpop.permute.xlu1 %3321 }
 0x20a   : > { %3357 = vst.msk [vmem:[#allocation3 + $0x68] sm:$0xff] %vm3343_vm6, %v3322_v0 }
 0x20b   : > { %v4043_v15 = vpop.permute.xlu0 %4042 }
 0x20c   : > { %4079 = vst.msk [vmem:[#allocation3 + $0x60] sm:$0xff] %vm4066_vm10, %v4043_v15 }
 0x20f   : > { %v4364_v29 = vpop.permute.xlu0 %4363 }
 0x210   : > { %4400 = vst.msk [vmem:[#allocation3 + $0x60] sm:$0xff] %vm4387_vm12, %v4364_v29 }
 0x212   : > { %v3500_v19 = vpop.permute.xlu1 %3499 }
 0x213   : > { %3535 = vst.msk [vmem:[#allocation3 + $0x68] sm:$0xff] %vm3521_vm9, %v3500_v19 }
 0x217   : > { %v4416_v59 = vld [vmem:[#allocation3 + $0x60] sm:$0xff] }
 0x218   : > { %5546 = vmatprep.mubr.msk.bf16.mxu1 %vm4447_vm4, %v4416_v59 }
 0x21b   : > { %v4366_v63 = vpop.permute.xlu0 %4365 }
 0x21d   : > { %v5532_v62 = vpop.f32.mrb[8].mxu0 }
 0x21e   : > { %v4045_v61 = vpop.permute.xlu1 %4044  ;;  %v4575_v40 = vadd.f32 %v5532_v62, %v7402_v13  ;;  %v4566_v2 = vpop.f32.mrb[9].mxu0 }
 0x21f   : > { %4080 = vst.msk [vmem:[#allocation3 + $0x68] sm:$0xff] %vm4066_vm10, %v4045_v61  ;;  %v2281_v55 = vpop.permute.xlu0 %2280  ;;  %v4567_v58 = vadd.f32 %v7402_v13, %v4566_v2  ;;  %v5533_v12 = vpop.f32.mrb[10].mxu0 }
 0x220   : > { %4401 = vst.msk [vmem:[#allocation3 + $0x68] sm:$0xff] %vm4387_vm12, %v4366_v63  ;;  %v5475_v30 = vpack.c.bf16 %v4575_v40, %v4575_v40  ;;  %v4578_v60 = vadd.f32 %v5533_v12, %v7402_v13  ;;  %v4569_v33 = vpop.f32.mrb[11].mxu0  ;;  %v4904_v22 = vmul.f32 %v4575_v40, %v4575_v40  ;;  %v4842_v41 = vsel %vm4822_vm11, %v4575_v40, 0.0 }
 0x221   : > { %v5473_v23 = vpack.c.bf16 %v4567_v58, %v4567_v58  ;;  %v4838_v49 = vsel %vm4822_vm11, %v4567_v58, 0.0  ;;  %v4902_v26 = vmul.f32 %v4567_v58, %v4567_v58  ;;  %v4570_v1 = vadd.f32 %v7402_v13, %v4569_v33 }
 0x222   : > { %v1957_v3 = vpop.permute.xlu1 %1956  ;;  %4800 = vst.msk [vmem:[%s7410_s17 + $0x28] sm:$0xf] %vm4789_vm8, %v5475_v30  ;;  %v4839_v32 = vadd.f32 %v4838_v49, %v4837_v56  ;;  %v5476_v31 = vpack.c.bf16 %v4578_v60, %v4578_v60  ;;  %v4905_v42 = vmul.f32 %v4578_v60, %v4578_v60  ;;  %v4844_v10 = vsel %vm4822_vm11, %v4578_v60, 0.0 }
 0x223   : > { %1991 = vst.msk [vmem:[#allocation3 + $0x70] sm:$0xff] %vm1976_vm1, %v1957_v3  ;;  %v2458_v57 = vpop.permute.xlu0 %2457  ;;  %v4941_v52 = vsel %vm4822_vm11, %v4902_v26, 0.0  ;;  %v5474_v53 = vpack.c.bf16 %v4570_v1, %v4570_v1  ;;  %v4840_v18 = vsel %vm4822_vm11, %v4570_v1, 0.0  ;;  %v4903_v48 = vmul.f32 %v4570_v1, %v4570_v1 }
 0x224   : > { %2315 = vst.msk [vmem:[#allocation3 + $0x70] sm:$0xff] %vm7670_vm3, %v2281_v55  ;;  %v4942_v37 = vadd.f32 %v4941_v52, %v4940_v34  ;;  %v4841_v14 = vadd.f32 %v4840_v18, %v4839_v32  ;;  %v4945_v16 = vsel %vm4822_vm11, %v4904_v22, 0.0  ;;  %v4947_v8 = vsel %vm4822_vm11, %v4905_v42, 0.0 }
 0x225   : > { %2492 = vst.msk [vmem:[#allocation3 + $0x70] sm:$0xff] %vm7671_vm0, %v2458_v57  ;;  %v4943_v25 = vsel %vm4822_vm11, %v4903_v48, 0.0 }
 0x226   : > { %v1959_v21 = vpop.permute.xlu1 %1958  ;;  %4798 = vst.msk [vmem:[%s7410_s17 + $0x20] sm:$0xf] %vm4789_vm8, %v5473_v23  ;;  %4801 = vst.msk [vmem:[%s7410_s17 + $0x2c] sm:$0xf] %vm4789_vm8, %v5476_v31  ;;  %v4843_v7 = vadd.f32 %v4842_v41, %v4841_v14  ;;  %v4944_v20 = vadd.f32 %v4943_v25, %v4942_v37 }
 0x227   : > { %1992 = vst.msk [vmem:[#allocation3 + $0x78] sm:$0xff] %vm1976_vm1, %v1959_v21  ;;  %v4417_v28 = vld [vmem:[#allocation3 + $0x68] sm:$0xff]  ;;  %v3003_v4 = vpop.permute.xlu0 %3002  ;;  %vm7672_vm1 = vmmov %vm7670_vm3 }
 0x228   : > { %5547 = vmatmul.mubr.msk.bf16.gmra.mrb[8].mxu1 %vm4447_vm4, %v4417_v28  ;;  %3037 = vst.msk [vmem:[#allocation3 + $0x70] sm:$0xff] %vm3022_vm5, %v3003_v4  ;;  %v4845_v36 = vadd.f32 %v4844_v10, %v4843_v7  ;;  %v4946_v50 = vadd.f32 %v4945_v16, %v4944_v20 }
 0x229   : > { %4799 = vst.msk [vmem:[%s7410_s17 + $0x24] sm:$0xf] %vm4789_vm8, %v5474_v53 }
 0x22a   : > { %v2283_v43 = vpop.permute.xlu1 %2282  ;;  %v4948_v9 = vadd.f32 %v4947_v8, %v4946_v50 }
 0x22b   : > { %2316 = vst.msk [vmem:[#allocation3 + $0x78] sm:$0xff] %vm7672_vm1, %v2283_v43  ;;  %v3324_v38 = vpop.permute.xlu0 %3323 }
 0x22c   : > { %3358 = vst.msk [vmem:[#allocation3 + $0x70] sm:$0xff] %vm3343_vm6, %v3324_v38 }
 0x234   : > { %v2460_v35 = vpop.permute.xlu1 %2459 }
 0x235   : > { %2493 = vst.msk [vmem:[#allocation3 + $0x78] sm:$0xff] %vm7673_vm13, %v2460_v35 }
 0x237   : > { %v3502_v24 = vpop.permute.xlu0 %3501 }
 0x238   : > { %3536 = vst.msk [vmem:[#allocation3 + $0x70] sm:$0xff] %vm3521_vm9, %v3502_v24 }
 0x240   : > { %v3005_v45 = vpop.permute.xlu1 %3004 }
 0x241   : > { %3038 = vst.msk [vmem:[#allocation3 + $0x78] sm:$0xff] %vm3022_vm5, %v3005_v45  ;;  %vm4892_vm5 = vcmask 57344  }
 0x243   : > { %v4047_v44 = vpop.permute.xlu0 %4046 }
 0x244   : > { %v3326_v54 = vpop.permute.xlu1 %3325  ;;  %4081 = vst.msk [vmem:[#allocation3 + $0x70] sm:$0xff] %vm4066_vm10, %v4047_v44 }
 0x245   : > { %3359 = vst.msk [vmem:[#allocation3 + $0x78] sm:$0xff] %vm3343_vm6, %v3326_v54 }
 0x247   : > { %v4368_v6 = vpop.permute.xlu0 %4367 }
 0x248   : > { %v3504_v5 = vpop.permute.xlu1 %3503  ;;  %4402 = vst.msk [vmem:[#allocation3 + $0x70] sm:$0xff] %vm4387_vm12, %v4368_v6 }
 0x249   : > { %3537 = vst.msk [vmem:[#allocation3 + $0x78] sm:$0xff] %vm3521_vm9, %v3504_v5 }
 0x24c   : > { %v4049_v39 = vpop.permute.xlu1 %4048 }
 0x24d   : > { %4082 = vst.msk [vmem:[#allocation3 + $0x78] sm:$0xff] %vm4066_vm10, %v4049_v39 }
 0x24f   : > { %v4418_v17 = vld [vmem:[#allocation3 + $0x70] sm:$0xff] }
 0x250   : > { %v4370_v11 = vpop.permute.xlu1 %4369  ;;  %5550 = vmatprep.mubr.msk.bf16.mxu1 %vm4447_vm4, %v4418_v17 }
 0x251   : > { %4403 = vst.msk [vmem:[#allocation3 + $0x78] sm:$0xff] %vm4387_vm12, %v4370_v11 }
 0x258   : > { %v4419_v56 = vld [vmem:[#allocation3 + $0x78] sm:$0xff] }
 0x259   : > { %5551 = vmatmul.mubr.msk.bf16.gmra.mrb[12].mxu1 %vm4447_vm4, %v4419_v56 }
 0x266   : > { %v5536_v51 = vpop.f32.mrb[12].mxu0 }
 0x267   : > { %v4591_v27 = vadd.f32 %v5536_v51, %v7402_v13  ;;  %v4582_v46 = vpop.f32.mrb[13].mxu0 }
 0x268   : > { %v4583_v34 = vadd.f32 %v7402_v13, %v4582_v46  ;;  %v5537_v47 = vpop.f32.mrb[14].mxu0 }
 0x269   : > { %v5479_v0 = vpack.c.bf16 %v4591_v27, %v4591_v27  ;;  %v4594_v15 = vadd.f32 %v5537_v47, %v7402_v13  ;;  %v4585_v29 = vpop.f32.mrb[15].mxu0  ;;  %v4908_v2 = vmul.f32 %v4591_v27, %v4591_v27  ;;  %v4850_v60 = vsel %vm4822_vm11, %v4591_v27, 0.0 }
 0x26a   : > { %v5477_v19 = vpack.c.bf16 %v4583_v34, %v4583_v34  ;;  %v4846_v59 = vsel %vm4822_vm11, %v4583_v34, 0.0  ;;  %v4906_v63 = vmul.f32 %v4583_v34, %v4583_v34  ;;  %v4586_v61 = vadd.f32 %v7402_v13, %v4585_v29 }
 0x26b   : > { %4804 = vst.msk [vmem:[%s7410_s17 + $0x38] sm:$0xf] %vm4789_vm8, %v5479_v0  ;;  %v4847_v55 = vadd.f32 %v4846_v59, %v4845_v36  ;;  %v5480_v3 = vpack.c.bf16 %v4594_v15, %v4594_v15  ;;  %v4909_v33 = vmul.f32 %v4594_v15, %v4594_v15  ;;  %v4852_v49 = vsel %vm4822_vm11, %v4594_v15, 0.0 }
 0x26c   : > { %4802 = vst.msk [vmem:[%s7410_s17 + $0x30] sm:$0xf] %vm4789_vm8, %v5477_v19  ;;  %v4949_v62 = vsel %vm4822_vm11, %v4906_v63, 0.0  ;;  %v5478_v57 = vpack.c.bf16 %v4586_v61, %v4586_v61  ;;  %v4848_v40 = vsel %vm4822_vm11, %v4586_v61, 0.0  ;;  %v4907_v30 = vmul.f32 %v4586_v61, %v4586_v61 }
 0x26d   : > { %v4950_v58 = vadd.f32 %v4949_v62, %v4948_v9  ;;  %4805 = vst.msk [vmem:[%s7410_s17 + $0x3c] sm:$0xf] %vm4789_vm8, %v5480_v3  ;;  %v4849_v12 = vadd.f32 %v4848_v40, %v4847_v55  ;;  %v4953_v1 = vsel %vm4822_vm11, %v4908_v2, 0.0  ;;  %v4955_v31 = vsel %vm4822_vm11, %v4909_v33, 0.0 }
 0x26e   : > { %4803 = vst.msk [vmem:[%s7410_s17 + $0x34] sm:$0xf] %vm4789_vm8, %v5478_v57  ;;  %v4951_v23 = vsel %vm4822_vm11, %v4907_v30, 0.0 }
 0x26f   : > { %v4851_v21 = vadd.f32 %v4850_v60, %v4849_v12  ;;  %v4952_v26 = vadd.f32 %v4951_v23, %v4950_v58 }
 0x271   : > { %v4853_v28 = vadd.f32 %v4852_v49, %v4851_v21  ;;  %v4954_v32 = vadd.f32 %v4953_v1, %v4952_v26 }
 0x273   : > { %v4956_v52 = vadd.f32 %v4955_v31, %v4954_v32 }
 0x291   : > { %v5540_v53 = vpop.f32.mrb[0].mxu1 }
 0x292   : > { %v4607_v18 = vadd.f32 %v5540_v53, %v7402_v13  ;;  %v4598_v4 = vpop.f32.mrb[1].mxu1 }
 0x293   : > { %v4599_v22 = vadd.f32 %v7402_v13, %v4598_v4  ;;  %v5541_v37 = vpop.f32.mrb[2].mxu1 }
 0x294   : > { %v5483_v14 = vpack.c.bf16 %v4607_v18, %v4607_v18  ;;  %v4610_v48 = vadd.f32 %v5541_v37, %v7402_v13  ;;  %v4601_v43 = vpop.f32.mrb[3].mxu1  ;;  %v4912_v50 = vmul.f32 %v4607_v18, %v4607_v18  ;;  %v4858_v24 = vsel %vm4822_vm11, %v4607_v18, 0.0 }
 0x295   : > { %v5481_v41 = vpack.c.bf16 %v4599_v22, %v4599_v22  ;;  %v4854_v42 = vsel %vm4822_vm11, %v4599_v22, 0.0  ;;  %v4910_v7 = vmul.f32 %v4599_v22, %v4599_v22  ;;  %v4602_v25 = vadd.f32 %v7402_v13, %v4601_v43 }
 0x296   : > { %4808 = vst.msk [vmem:[%s7410_s17 + $0x48] sm:$0xf] %vm4789_vm8, %v5483_v14  ;;  %v4855_v10 = vadd.f32 %v4854_v42, %v4853_v28  ;;  %v5484_v20 = vpack.c.bf16 %v4610_v48, %v4610_v48  ;;  %v4913_v45 = vmul.f32 %v4610_v48, %v4610_v48  ;;  %v4860_v5 = vsel %vm4822_vm11, %v4610_v48, 0.0 }
 0x297   : > { %4806 = vst.msk [vmem:[%s7410_s17 + $0x40] sm:$0xf] %vm4789_vm8, %v5481_v41  ;;  %v4957_v38 = vsel %vm4822_vm11, %v4910_v7, 0.0  ;;  %v5482_v16 = vpack.c.bf16 %v4602_v25, %v4602_v25  ;;  %v4856_v36 = vsel %vm4822_vm11, %v4602_v25, 0.0  ;;  %v4911_v35 = vmul.f32 %v4602_v25, %v4602_v25 }
 0x298   : > { %v4958_v8 = vadd.f32 %v4957_v38, %v4956_v52  ;;  %4809 = vst.msk [vmem:[%s7410_s17 + $0x4c] sm:$0xf] %vm4789_vm8, %v5484_v20  ;;  %v4857_v9 = vadd.f32 %v4856_v36, %v4855_v10  ;;  %v4961_v39 = vsel %vm4822_vm11, %v4912_v50, 0.0  ;;  %v4963_v56 = vsel %vm4822_vm11, %v4913_v45, 0.0 }
 0x299   : > { %4807 = vst.msk [vmem:[%s7410_s17 + $0x44] sm:$0xf] %vm4789_vm8, %v5482_v16  ;;  %v4959_v44 = vsel %vm4822_vm11, %v4911_v35, 0.0 }
 0x29a   : > { %v4859_v54 = vadd.f32 %v4858_v24, %v4857_v9  ;;  %v4960_v6 = vadd.f32 %v4959_v44, %v4958_v8 }
 0x29c   : > { %v4861_v11 = vadd.f32 %v4860_v5, %v4859_v54  ;;  %v4962_v17 = vadd.f32 %v4961_v39, %v4960_v6 }
 0x29e   : > { %v4964_v51 = vadd.f32 %v4963_v56, %v4962_v17 }
 0x2c4   : > { %v5544_v27 = vpop.f32.mrb[4].mxu1 }
 0x2c5   : > { %v4623_v46 = vadd.f32 %v5544_v27, %v7402_v13  ;;  %v4614_v34 = vpop.f32.mrb[5].mxu1 }
 0x2c6   : > { %v4615_v47 = vadd.f32 %v7402_v13, %v4614_v34  ;;  %v5545_v0 = vpop.f32.mrb[6].mxu1 }
 0x2c7   : > { %v5487_v15 = vpack.c.bf16 %v4623_v46, %v4623_v46  ;;  %v4626_v29 = vadd.f32 %v5545_v0, %v7402_v13  ;;  %v4617_v19 = vpop.f32.mrb[7].mxu1  ;;  %v4916_v58 = vmul.f32 %v4623_v46, %v4623_v46  ;;  %v4866_v33 = vsel %vm4822_vm11, %v4623_v46, 0.0 }
 0x2c8   : > { %v5485_v59 = vpack.c.bf16 %v4615_v47, %v4615_v47  ;;  %v4862_v63 = vsel %vm4822_vm11, %v4615_v47, 0.0  ;;  %v4914_v61 = vmul.f32 %v4615_v47, %v4615_v47  ;;  %v4618_v55 = vadd.f32 %v7402_v13, %v4617_v19 }
 0x2c9   : > { %4812 = vst.msk [vmem:[%s7410_s17 + $0x58] sm:$0xf] %vm4789_vm8, %v5487_v15  ;;  %v4863_v3 = vadd.f32 %v4862_v63, %v4861_v11  ;;  %v5488_v62 = vpack.c.bf16 %v4626_v29, %v4626_v29  ;;  %v4917_v21 = vmul.f32 %v4626_v29, %v4626_v29  ;;  %v4868_v26 = vsel %vm4822_vm11, %v4626_v29, 0.0 }
 0x2ca   : > { %4810 = vst.msk [vmem:[%s7410_s17 + $0x50] sm:$0xf] %vm4789_vm8, %v5485_v59  ;;  %v4965_v57 = vsel %vm4822_vm11, %v4914_v61, 0.0  ;;  %v5486_v40 = vpack.c.bf16 %v4618_v55, %v4618_v55  ;;  %v4864_v2 = vsel %vm4822_vm11, %v4618_v55, 0.0  ;;  %v4915_v60 = vmul.f32 %v4618_v55, %v4618_v55 }
 0x2cb   : > { %v4966_v12 = vadd.f32 %v4965_v57, %v4964_v51  ;;  %4813 = vst.msk [vmem:[%s7410_s17 + $0x5c] sm:$0xf] %vm4789_vm8, %v5488_v62  ;;  %v4865_v30 = vadd.f32 %v4864_v2, %v4863_v3  ;;  %v4969_v28 = vsel %vm4822_vm11, %v4916_v58, 0.0  ;;  %v4971_v52 = vsel %vm4822_vm11, %v4917_v21, 0.0 }
 0x2cc   : > { %4811 = vst.msk [vmem:[%s7410_s17 + $0x54] sm:$0xf] %vm4789_vm8, %v5486_v40  ;;  %v4967_v49 = vsel %vm4822_vm11, %v4915_v60, 0.0 }
 0x2cd   : > { %v4867_v23 = vadd.f32 %v4866_v33, %v4865_v30  ;;  %v4968_v1 = vadd.f32 %v4967_v49, %v4966_v12 }
 0x2cf   : > { %v4869_v32 = vadd.f32 %v4868_v26, %v4867_v23  ;;  %v4970_v31 = vadd.f32 %v4969_v28, %v4968_v1 }
 0x2d1   : > { %v4972_v53 = vadd.f32 %v4971_v52, %v4970_v31 }
 0x2fb   : > { %v5548_v18 = vpop.f32.mrb[8].mxu1 }
 0x2fc   : > { %v4639_v4 = vadd.f32 %v5548_v18, %v7402_v13  ;;  %v4630_v22 = vpop.f32.mrb[9].mxu1 }
 0x2fd   : > { %v4631_v37 = vadd.f32 %v7402_v13, %v4630_v22  ;;  %v5549_v14 = vpop.f32.mrb[10].mxu1 }
 0x2fe   : > { %v5491_v48 = vpack.c.bf16 %v4639_v4, %v4639_v4  ;;  %v4642_v43 = vadd.f32 %v5549_v14, %v7402_v13  ;;  %v4633_v41 = vpop.f32.mrb[11].mxu1  ;;  %v4920_v8 = vmul.f32 %v4639_v4, %v4639_v4  ;;  %v4874_v45 = vsel %vm4822_vm11, %v4639_v4, 0.0 }
 0x2ff   : > { %v5489_v42 = vpack.c.bf16 %v4631_v37, %v4631_v37  ;;  %v4870_v7 = vsel %vm4822_vm11, %v4631_v37, 0.0  ;;  %v4918_v25 = vmul.f32 %v4631_v37, %v4631_v37  ;;  %v4634_v10 = vadd.f32 %v7402_v13, %v4633_v41 }
 0x300   : > { %4816 = vst.msk [vmem:[%s7410_s17 + $0x68] sm:$0xf] %vm4789_vm8, %v5491_v48  ;;  %v4871_v20 = vadd.f32 %v4870_v7, %v4869_v32  ;;  %v5492_v38 = vpack.c.bf16 %v4642_v43, %v4642_v43  ;;  %v4921_v54 = vmul.f32 %v4642_v43, %v4642_v43  ;;  %v4876_v6 = vsel %vm4822_vm11, %v4642_v43, 0.0 }
 0x301   : > { %4814 = vst.msk [vmem:[%s7410_s17 + $0x60] sm:$0xf] %vm4789_vm8, %v5489_v42  ;;  %v4973_v16 = vsel %vm4822_vm11, %v4918_v25, 0.0  ;;  %v5490_v36 = vpack.c.bf16 %v4634_v10, %v4634_v10  ;;  %v4872_v50 = vsel %vm4822_vm11, %v4634_v10, 0.0  ;;  %v4919_v24 = vmul.f32 %v4634_v10, %v4634_v10 }
 0x302   : > { %v4974_v9 = vadd.f32 %v4973_v16, %v4972_v53  ;;  %4817 = vst.msk [vmem:[%s7410_s17 + $0x6c] sm:$0xf] %vm4789_vm8, %v5492_v38  ;;  %v4873_v35 = vadd.f32 %v4872_v50, %v4871_v20  ;;  %v4977_v11 = vsel %vm4822_vm11, %v4920_v8, 0.0  ;;  %v4979_v51 = vsel %vm4822_vm11, %v4921_v54, 0.0 }
 0x303   : > { %4815 = vst.msk [vmem:[%s7410_s17 + $0x64] sm:$0xf] %vm4789_vm8, %v5490_v36  ;;  %v4975_v5 = vsel %vm4822_vm11, %v4919_v24, 0.0 }
 0x304   : > { %v4875_v44 = vadd.f32 %v4874_v45, %v4873_v35  ;;  %v4976_v39 = vadd.f32 %v4975_v5, %v4974_v9 }
 0x306   : > { %v4877_v17 = vadd.f32 %v4876_v6, %v4875_v44  ;;  %v4978_v56 = vadd.f32 %v4977_v11, %v4976_v39 }
 0x308   : > { %v4980_v27 = vadd.f32 %v4979_v51, %v4978_v56 }
 0x32c   : > { %v5552_v46 = vpop.f32.mrb[12].mxu1 }
 0x32d   : > { %v4655_v34 = vadd.f32 %v5552_v46, %v7402_v13  ;;  %v4646_v47 = vpop.f32.mrb[13].mxu1 }
 0x32e   : > { %v4647_v0 = vadd.f32 %v7402_v13, %v4646_v47  ;;  %v5553_v15 = vpop.f32.mrb[14].mxu1 }
 0x32f   : > { %v5495_v29 = vpack.c.bf16 %v4655_v34, %v4655_v34  ;;  %v4658_v19 = vadd.f32 %v5553_v15, %v7402_v13  ;;  %v4649_v59 = vpop.f32.mrb[15].mxu1  ;;  %v4924_v12 = vmul.f32 %v4655_v34, %v4655_v34  ;;  %v4882_v21 = vsel %vm4822_vm11, %v4655_v34, 0.0 }
 0x330   : > { %v5493_v63 = vpack.c.bf16 %v4647_v0, %v4647_v0  ;;  %v4878_v61 = vsel %vm4822_vm11, %v4647_v0, 0.0  ;;  %v4922_v55 = vmul.f32 %v4647_v0, %v4647_v0  ;;  %v4650_v3 = vadd.f32 %v7402_v13, %v4649_v59 }
 0x331   : > { %4820 = vst.msk [vmem:[%s7410_s17 + $0x78] sm:$0xf] %vm4789_vm8, %v5495_v29  ;;  %v4879_v62 = vadd.f32 %v4878_v61, %v4877_v17  ;;  %v5496_v57 = vpack.c.bf16 %v4658_v19, %v4658_v19  ;;  %v4925_v13 = vmul.f32 %v4658_v19, %v4658_v19  ;;  %v4884_v26 = vsel %vm4822_vm11, %v4658_v19, 0.0 }
 0x332   : > { %4818 = vst.msk [vmem:[%s7410_s17 + $0x70] sm:$0xf] %vm4789_vm8, %v5493_v63  ;;  %v4981_v40 = vsel %vm4822_vm11, %v4922_v55, 0.0  ;;  %v5494_v2 = vpack.c.bf16 %v4650_v3, %v4650_v3  ;;  %v4880_v58 = vsel %vm4822_vm11, %v4650_v3, 0.0  ;;  %v4923_v33 = vmul.f32 %v4650_v3, %v4650_v3 }
 0x333   : > { %v4982_v30 = vadd.f32 %v4981_v40, %v4980_v27  ;;  %4821 = vst.msk [vmem:[%s7410_s17 + $0x7c] sm:$0xf] %vm4789_vm8, %v5496_v57  ;;  %v4881_v60 = vadd.f32 %v4880_v58, %v4879_v62  ;;  %v4985_v28 = vsel %vm4822_vm11, %v4924_v12, 0.0  ;;  %v4987_v52 = vsel %vm4822_vm11, %v4925_v13, 0.0 }
 0x334   : > { %4819 = vst.msk [vmem:[%s7410_s17 + $0x74] sm:$0xf] %vm4789_vm8, %v5494_v2  ;;  %v4983_v49 = vsel %vm4822_vm11, %v4923_v33, 0.0 }
 0x335   : > { %v4883_v23 = vadd.f32 %v4882_v21, %v4881_v60  ;;  %v4984_v1 = vadd.f32 %v4983_v49, %v4982_v30 }
 0x337   : > { %v4885_v32 = vadd.f32 %v4884_v26, %v4883_v23  ;;  %v4986_v31 = vadd.f32 %v4985_v28, %v4984_v1 }
 0x339   : > { %v4886_v53 = vrot.slane %v4885_v32, 4  ;;  %v4988_v18 = vadd.f32 %v4987_v52, %v4986_v31 }
 0x33b   : > { %v4887_v4 = vadd.f32 %v4886_v53, %v4885_v32  ;;  %v4989_v22 = vrot.slane %v4988_v18, 4 }
 0x33d   : > { %v4888_v37 = vrot.slane %v4887_v4, 2  ;;  %v4990_v14 = vadd.f32 %v4989_v22, %v4988_v18 }
 0x33f   : > { %v4889_v48 = vadd.f32 %v4888_v37, %v4887_v4  ;;  %v4991_v43 = vrot.slane %v4990_v14, 2 }
 0x341   : > { %v4890_v41 = vrot.slane %v4889_v48, 1  ;;  %v4992_v42 = vadd.f32 %v4991_v43, %v4990_v14 }
 0x343   : > { %v4891_v7 = vadd.f32 %v4890_v41, %v4889_v48  ;;  %v4993_v25 = vrot.slane %v4992_v42, 1 }
 0x345   : > { %4893 = vst.msk [vmem:[%s306_s27] sm:$0x1] %vm4892_vm5, %v4891_v7  ;;  %v4994_v10 = vadd.f32 %v4993_v25, %v4992_v42 }
 0x347   : > { %4995 = vst.msk [vmem:[%s309_s30] sm:$0x1] %vm4892_vm5, %v4994_v10 }
 0x348 PF: > { %s18_s24 = sadd.s32 1, %s5770_s24  }
 0x349   : > { %p15_p4 = scmp.ge.s32.totalorder %s18_s24, 4  }
 0x34b   :  { %17 = sbr.rel (!%p15_p4) target bundleno = 1 (0x1), region = 100 }

// kernel: down_module_forward.3
= control target key start
LH: loop header
LB: loop body
LE: loop exit
PB: predicated region body
PF: predicated region fallthrough
CT: control target
= control target key end

     0   :  { %s6628_s30 = smov 0   ;;  %s8908_s0 = inlined_call_operand.vmem [shape: bf16[2,16,16,8], index: 0, kind: input, shape index: {}]   ;;  %s8909_s1 = inlined_call_operand.vmem [shape: f32[2,16,16,4], index: 1, kind: input, shape index: {}]   ;;  %s8910_s2 = inlined_call_operand.vmem [shape: f32[1,8], index: 2, kind: input, shape index: {}]   ;;  %s8911_s3 = inlined_call_operand.vmem [shape: f32[1,8], index: 3, kind: input, shape index: {}]   ;;  %s8912_s4 = inlined_call_operand.vmem [shape: bf16[76,8], index: 4, kind: input, shape index: {}]   ;;  %s8913_s5 = inlined_call_operand.vmem [shape: f32[1,8], index: 5, kind: input, shape index: {}]   ;;  %s8914_s6 = inlined_call_operand.vmem [shape: bf16[8,8], index: 6, kind: input, shape index: {}]   ;;  %s8915_s7 = inlined_call_operand.vmem [shape: f32[1,8], index: 7, kind: input, shape index: {}]   ;;  %s8916_s8 = inlined_call_operand.vmem [shape: f32[2,8,256], index: 8, kind: output, shape index: {0}]   ;;  %s8917_s9 = inlined_call_operand.vmem [shape: f32[2,8,64], index: 9, kind: output, shape index: {1}]  }
   0x1 LB: > { %s5849_s10 = sadd.s32 4294967295, %s6565_s30   ;;  %p5853_p0 = scmp.ge.s32.totalorder %s6565_s30, 1  ;;  %s6565_s30 = sphi %s6628_s30, %s20_s30  }
   0x2   : > { %p300_p1 = scmp.lt.s32.totalorder %s6565_s30, 3 }
   0x4   : > { %p301_p2 = pnand %p5853_p0, %p300_p1 }
   0x6   : > { %304 = sbr.rel (%p301_p2) target bundleno = 1176 (0x498), region = 52 }
   0xd   : > { %p345_p3 = scmp.lt.s32.totalorder %s5849_s10, 1  ;;  %vm365_vm0 = vcmask 60416   ;;  %vm368_vm1 = vcmask 57344   ;;  %v6567_v0 = vmov 0   ;;  %vm375_vm2 = vsmask.f32 256 }
   0xe   : > { %366 = vst.msk [vmem:[#allocation2] sm:$0xf] %vm365_vm0, %v6567_v0  ;;  %367 = vst.msk [vmem:[#allocation2 + $0x4] sm:$0xf] %vm365_vm0, %v6567_v0  ;;  %vm431_vm4 = vsmask.f32 7938 }
   0xf   : > { %369 = vst.msk [vmem:[#allocation2 + $0x8] sm:$0x1] %vm368_vm1, %v6567_v0  ;;  %373 = vst.msk [vmem:[#allocation2 + $0xd4] sm:$0x1] %vm368_vm1, %v6567_v0  ;;  %s9046_s10 = smov (!%p345_p3, %s5849_s10), 1  ;;  %v8934_v4 = vmov 0 }
  0x10   : > { %371 = vst.msk [vmem:[#allocation2 + $0xcc] sm:$0xf] %vm365_vm0, %v6567_v0  ;;  %372 = vst.msk [vmem:[#allocation2 + $0xd0] sm:$0xf] %vm365_vm0, %v6567_v0  ;;  %v383_v2 = vld [vmem:[#allocation2 + $0x18] sm:$0x1] }
  0x11   : > { %vm6646_vm3 = vmand %vm368_vm1, %vm375_vm2  ;;  %s6149_s11 = sshll.u32 %s9046_s10, 8  ;;  %s6148_s12 = sshll.u32 %s9046_s10, 7  ;;  %v380_v5 = vld [vmem:[#allocation2 + $0xc] sm:$0x1]  ;;  %v386_v6 = vld [vmem:[#allocation2 + $0x24] sm:$0x1] }
  0x12   : > { %v384_v3 = vsel %vm6646_vm3, 0, %v383_v2  ;;  %s6657_s15 = scalar_lea.vmem %s8909_s1, %s6149_s11  ;;  %vm6661_vm5 = vmand %vm368_vm1, %vm431_vm4  ;;  %v381_v10 = vsel %vm6646_vm3, 0, %v380_v5  ;;  %v387_v11 = vsel %vm6646_vm3, 0, %v386_v6  ;;  %vm2175_vm6 = vcmask 1042432   ;;  %s6678_s18 = scalar_lea.vmem %s8908_s0, %s6148_s12  ;;  %v6683_v21 = vld [vmem:[%s8910_s2] ss:$0 sm:$0xff] }
  0x13   : > { %385 = vst [vmem:[#allocation2 + $0x18] sm:$0x1] %v384_v3  ;;  %v8935_v4 = vsel %vm6661_vm5, 4294967295, %v8934_v4  ;;  %v4490_v7 = vld [vmem:[%s6657_s15] sm:$0xff]  ;;  %v4491_v8 = vld [vmem:[%s6657_s15 + $0x8] sm:$0xff]  ;;  %v4492_v9 = vld [vmem:[%s6657_s15 + $0x10] sm:$0xff] }
  0x14   : > { %8936 = vst [vmem:[#allocation4_spill] sm:$0xff] %v8935_v4  ;;  %v4522_v12 = vpack.c.bf16 %v4491_v8, %v4490_v7  ;;  %v4493_v13 = vld [vmem:[%s6657_s15 + $0x18] sm:$0xff]  ;;  %v4494_v14 = vld [vmem:[%s6657_s15 + $0x20] sm:$0xff]  ;;  %v4495_v15 = vld [vmem:[%s6657_s15 + $0x28] sm:$0xff]  ;;  %vm2176_vm7 = vcmask 1046532   ;;  %s6568_s21 = smov 72  }
  0x15   : > { %382 = vst [vmem:[#allocation2 + $0xc] sm:$0x1] %v381_v10  ;;  %388 = vst [vmem:[#allocation2 + $0x24] sm:$0x1] %v387_v11  ;;  %v4523_v16 = vpack.c.bf16 %v4493_v13, %v4492_v9  ;;  %v4524_v17 = vpack.c.bf16 %v4495_v15, %v4494_v14  ;;  %v377_v18 = vld [vmem:[#allocation2] sm:$0x1] }
  0x16   : > { %v433_v19 = vld [vmem:[#allocation2 + $0x8] sm:$0x1]  ;;  %v1532_v20 = vld [vmem:[#allocation2 + $0x4] sm:$0xf]  ;;  %vm1579_vm8 = vsmask.f32 3328  ;;  %4554 = vrot.lane.b32.xlu1 %v4522_v12, %s6568_s21  ;;  %vm6693_vm10 = vmor %vm2175_vm6, %vm2176_vm7 }
  0x17   : > { %v378_v22 = vsel %vm6646_vm3, 0, %v377_v18  ;;  %v434_v23 = vsel %vm6661_vm5, 0, %v433_v19  ;;  %v1592_v24 = vshll.u32 %v1532_v20, 16  ;;  %v1596_v25 = vshrl.u32 %v1532_v20, 16  ;;  %v2079_v26 = vld [vmem:[#allocation2] sm:$0xe]  ;;  %4556 = vrot.lane.b32.xlu0 %v4523_v16, %s6568_s21  ;;  %vm6875_vm13 = vmand %vm365_vm0, %vm431_vm4 }
  0x18   : > { %379 = vst [vmem:[#allocation2] sm:$0x1] %v378_v22  ;;  %435 = vst [vmem:[#allocation2 + $0x8] sm:$0x1] %v434_v23  ;;  %vm1580_vm9 = vsmask.f32 7440 }
  0x19   : > { %v2080_v27 = vld [vmem:[#allocation2 + $0x4] sm:$0xf]  ;;  %v5959_v29 = vrot.slane %v2079_v26, 9  ;;  %v6247_v30 = vld [vmem:[%s6678_s18 + $0x8] sm:$0xff]   ;;  %v6698_v31 = vrot.slane %v1592_v24, 5  ;;  %v1598_v32 = vrot.slane %v1596_v25, 4  ;;  %vm6740_vm11 = vmor %vm1579_vm8, %vm1580_vm9 }
  0x1a   : > { %v2180_v33 = vrot.slane %v2080_v27, 5  ;;  %v6189_v34 = vunpack.c.l.bf16 %v6247_v30  ;;  %v6184_v35 = vld [vmem:[%s6678_s18] sm:$0xff]   ;;  %v6190_v36 = vunpack.c.h.bf16 %v6247_v30  ;;  %v6248_v40 = vld [vmem:[%s6678_s18 + $0x10] sm:$0xff]   ;;  %4558 = vrot.lane.b32.xlu1 %v4524_v17, %s6568_s21  ;;  %v6249_v50 = vld [vmem:[%s6678_s18 + $0x18] sm:$0xff]   ;;  %s6569_s24 = smov 16   ;;  %s6570_s25 = smov 8  }
  0x1b   : > { %v6704_v37 = vld [vmem:[%s8911_s3] ss:$0 sm:$0xff]  ;;  %v6185_v38 = vunpack.c.l.bf16 %v6184_v35  ;;  %v6186_v39 = vunpack.c.h.bf16 %v6184_v35  ;;  %v389_v41 = vld [vmem:[#allocation2 + $0x30] sm:$0x1]  ;;  %v1599_v42 = vor.u32 %v1598_v32, %v6698_v31  ;;  %v6193_v49 = vunpack.c.l.bf16 %v6248_v40  ;;  %v392_v18 = vld [vmem:[#allocation2 + $0x3c] sm:$0x1] }
  0x1c   : > { %v2181_v43 = vsel %vm6693_vm10, %v5959_v29, %v2180_v33  ;;  %v2182_v44 = vrot.slane %v2180_v33, 4  ;;  %v560_v45 = vmul.f32 %v6189_v34, %v6683_v21  ;;  %v561_v46 = vmul.f32 %v6190_v36, %v6683_v21  ;;  %v6717_v51 = vld [vmem:[%s6678_s18 + $0x20] sm:$0xff]   ;;  %v436_v23 = vld [vmem:[#allocation2 + $0x14] sm:$0x1]  ;;  %v442_v33 = vld [vmem:[#allocation2 + $0x2c] sm:$0x1] }
  0x1d   : > { %v558_v47 = vmul.f32 %v6185_v38, %v6683_v21  ;;  %v559_v48 = vmul.f32 %v6186_v39, %v6683_v21  ;;  %v6719_v52 = vrot.slane %v1599_v42, 4  ;;  %v6194_v54 = vunpack.c.h.bf16 %v6248_v40  ;;  %v439_v32 = vld [vmem:[#allocation2 + $0x20] sm:$0x1]  ;;  %v445_v34 = vld [vmem:[#allocation2 + $0x38] sm:$0x1]  ;;  %s6571_s26 = smov 24  }
  0x1e   : > { %v6722_v53 = vadd.f32 %v6704_v37, %v560_v45  ;;  %v390_v55 = vsel %vm6646_vm3, 0, %v389_v41  ;;  %v6727_v56 = vadd.f32 %v6704_v37, %v561_v46  ;;  %v562_v59 = vmul.f32 %v6193_v49, %v6683_v21  ;;  %v448_v39 = vld [vmem:[#allocation2 + $0x44] sm:$0x1]  ;;  %v407_v40 = vld [vmem:[#allocation2 + $0x78] sm:$0x1]  ;;  %s6572_s27 = smov 48  }
  0x1f   : > { %v6730_v57 = vadd.f32 %v6704_v37, %v558_v47  ;;  %v6733_v58 = vadd.f32 %v6704_v37, %v559_v48  ;;  %391 = vst [vmem:[#allocation2 + $0x30] sm:$0x1] %v390_v55  ;;  %v1531_v60 = vld [vmem:[#allocation2] sm:$0xf]  ;;  %v1533_v61 = vld [vmem:[#allocation2 + $0x8] sm:$0x1]  ;;  %v563_v63 = vmul.f32 %v6194_v54, %v6683_v21  ;;  %v6197_v0 = vunpack.c.l.bf16 %v6249_v50 }
  0x20   : > { %v2081_v62 = vld [vmem:[#allocation2 + $0x8] sm:$0x1]  ;;  %v6198_v2 = vunpack.c.h.bf16 %v6249_v50  ;;  %v6201_v3 = vunpack.c.l.bf16 %v6717_v51  ;;  %v1583_v5 = vshrl.u32 %v1531_v60, 16  ;;  %v1586_v6 = vshll.u32 %v1531_v60, 16  ;;  %v410_v49 = vld [vmem:[#allocation2 + $0x84] sm:$0x1] }
  0x21   : > { %v1602_v7 = vshll.u32 %v1533_v61, 16  ;;  %v2183_v8 = vrot.slane %v2081_v62, 5  ;;  %v5865_v10 = vmul.f32 -1.442695, %v6722_v53  ;;  %v5866_v11 = vmul.f32 -1.442695, %v6727_v56 }
  0x22   : > { %v5863_v12 = vmul.f32 -1.442695, %v6730_v57  ;;  %v6748_v13 = vadd.f32 %v6704_v37, %v562_v59  ;;  %v1585_v14 = vrot.slane %v1583_v5, 4  ;;  %v1588_v15 = vrot.slane %v1586_v6, 5  ;;  %v6255_v48 = vld [vmem:[%s6678_s18 + $0x48] sm:$0xff]   ;;  %v6256_v62 = vld [vmem:[%s6678_s18 + $0x50] sm:$0xff]  }
  0x23   : > { %v1604_v16 = vrot.slane %v1602_v7, 5  ;;  %v2184_v17 = vsel %vm6693_vm10, %v2182_v44, %v2183_v8  ;;  %6426 = vpow2.f32 %v5865_v10  ;;  %v5864_v20 = vmul.f32 -1.442695, %v6733_v58  ;;  %v463_v44 = vld [vmem:[#allocation2 + $0x80] sm:$0x1]  ;;  %v6251_v7 = vld [vmem:[%s6678_s18 + $0x28] sm:$0xff]  }
  0x24   : > { %v5975_v19 = vcombine.low %v2181_v43, %v2184_v17  ;;  %v6754_v22 = vadd.f32 %v6704_v37, %v563_v63  ;;  %v1589_v24 = vor.u32 %v1588_v15, %v1585_v14  ;;  %6428 = vpow2.f32 %v5866_v11  ;;  %v466_v50 = vld [vmem:[#allocation2 + $0x8c] sm:$0x1]  ;;  %s6573_s28 = smov 40   ;;  %s6574_s29 = smov 64  }
  0x25   : > { %v1605_v25 = vsel %vm6740_vm11, %v6719_v52, %v1604_v16  ;;  %v5867_v26 = vmul.f32 -1.442695, %v6748_v13  ;;  %6430 = vpow2.f32 %v5863_v12  ;;  %v564_v29 = vmul.f32 %v6197_v0, %v6683_v21  ;;  %s6575_s11 = smov 32   ;;  %s6576_s12 = smov 56  }
  0x26   : > { %2338 = vrot.lane.b32.xlu1 %v5975_v19, %s6569_s24  ;;  %v5868_v27 = vmul.f32 -1.442695, %v6754_v22  ;;  %v565_v30 = vmul.f32 %v6198_v2, %v6683_v21  ;;  %v1590_v35 = vrot.slane %v1589_v24, 4  ;;  %6432 = vpow2.f32 %v5864_v20  ;;  %s5860_s17 = sshll.u32 %s9046_s10, 3 }
  0x27   : > { %v393_v36 = vsel %vm6646_vm3, 0, %v392_v18  ;;  %v6202_v38 = vunpack.c.h.bf16 %v6717_v51  ;;  %6434 = vpow2.f32 %v5867_v26  ;;  %v6768_v41 = vadd.f32 %v6704_v37, %v564_v29  ;;  %s363_s22 = scalar_lea.vmem %s8917_s9, %s5860_s17 }
  0x28   : > { %v6771_v42 = vadd.f32 %v6704_v37, %v565_v30  ;;  %394 = vst [vmem:[#allocation2 + $0x3c] sm:$0x1] %v393_v36  ;;  %v566_v43 = vmul.f32 %v6201_v3, %v6683_v21  ;;  %v1595_v45 = vsel %vm6740_vm11, %v1590_v35, %v6698_v31  ;;  %6436 = vpow2.f32 %v5868_v27 }
  0x29   : > { %v567_v46 = vmul.f32 %v6202_v38, %v6683_v21  ;;  %v437_v47 = vsel %vm6661_vm5, 0, %v436_v23  ;;  %v5943_v51 = vcombine.low %v1595_v45, %v1605_v25  ;;  %v5869_v52 = vmul.f32 -1.442695, %v6768_v41 }
  0x2a   : > { %v5870_v54 = vmul.f32 -1.442695, %v6771_v42  ;;  %v6784_v55 = vadd.f32 %v6704_v37, %v566_v43  ;;  %438 = vst [vmem:[#allocation2 + $0x14] sm:$0x1] %v437_v47  ;;  %v440_v59 = vsel %vm6661_vm5, 0, %v439_v32  ;;  %v443_v60 = vsel %vm6661_vm5, 0, %v442_v33 }
  0x2b   : > { %v6787_v31 = vadd.f32 %v6704_v37, %v567_v46  ;;  %v446_v61 = vsel %vm6661_vm5, 0, %v445_v34  ;;  %2014 = vrot.lane.b32.xlu0 %v5943_v51, %s6570_s25  ;;  %6438 = vpow2.f32 %v5869_v52  ;;  %441 = vst [vmem:[#allocation2 + $0x20] sm:$0x1] %v440_v59  ;;  %444 = vst [vmem:[#allocation2 + $0x2c] sm:$0x1] %v443_v60  ;;  %v449_v0 = vsel %vm6661_vm5, 0, %v448_v39 }
  0x2c   : > { %v5871_v63 = vmul.f32 -1.442695, %v6784_v55  ;;  %447 = vst [vmem:[#allocation2 + $0x38] sm:$0x1] %v446_v61  ;;  %v408_v2 = vsel %vm6646_vm3, 0, %v407_v40  ;;  %6440 = vpow2.f32 %v5870_v54  ;;  %v464_v5 = vsel %vm6661_vm5, 0, %v463_v44 }
  0x2d   : > { %v5872_v3 = vmul.f32 -1.442695, %v6787_v31  ;;  %450 = vst [vmem:[#allocation2 + $0x44] sm:$0x1] %v449_v0  ;;  %409 = vst [vmem:[#allocation2 + $0x78] sm:$0x1] %v408_v2  ;;  %v6221_v6 = vunpack.c.l.bf16 %v6255_v48  ;;  %v6427_v8 = vpop.eup %6426  ;;  %v6222_v10 = vunpack.c.h.bf16 %v6255_v48  ;;  %v6225_v17 = vunpack.c.l.bf16 %v6256_v62 }
  0x2e   : > { %6442 = vpow2.f32 %v5871_v63  ;;  %465 = vst [vmem:[#allocation2 + $0x80] sm:$0x1] %v464_v5  ;;  %v411_v11 = vsel %vm6646_vm3, 0, %v410_v49  ;;  %v467_v12 = vsel %vm6661_vm5, 0, %v466_v50  ;;  %v6429_v14 = vpop.eup %6428  ;;  %v727_v15 = vadd.f32 1.0, %v6427_v8  ;;  %v6257_v39 = vld [vmem:[%s6678_s18 + $0x58] sm:$0xff]  }
  0x2f   : > { %6444 = vpow2.f32 %v5872_v3  ;;  %v576_v16 = vmul.f32 %v6221_v6, %v6683_v21  ;;  %412 = vst [vmem:[#allocation2 + $0x84] sm:$0x1] %v411_v11  ;;  %468 = vst [vmem:[#allocation2 + $0x8c] sm:$0x1] %v467_v12  ;;  %v6431_v18 = vpop.eup %6430  ;;  %v728_v19 = vadd.f32 1.0, %v6429_v14  ;;  %v577_v20 = vmul.f32 %v6222_v10, %v6683_v21 }
  0x30   : > { %v6226_v23 = vunpack.c.h.bf16 %v6256_v62  ;;  %v6205_v24 = vunpack.c.l.bf16 %v6251_v7  ;;  %v6433_v25 = vpop.eup %6432  ;;  %6446 = vrcp.f32 %v727_v15  ;;  %v725_v26 = vadd.f32 1.0, %v6431_v18  ;;  %v395_v0 = vld [vmem:[#allocation2 + $0x48] sm:$0x1] }
  0x31   : > { %v6813_v27 = vadd.f32 %v6704_v37, %v576_v16  ;;  %v578_v29 = vmul.f32 %v6225_v17, %v6683_v21  ;;  %v6435_v30 = vpop.eup %6434  ;;  %6448 = vrcp.f32 %v728_v19  ;;  %v726_v32 = vadd.f32 1.0, %v6433_v25 }
  0x32   : > { %v6817_v33 = vadd.f32 %v6704_v37, %v577_v20  ;;  %v6437_v34 = vpop.eup %6436  ;;  %6450 = vrcp.f32 %v725_v26  ;;  %v729_v35 = vadd.f32 1.0, %v6435_v30  ;;  %v579_v36 = vmul.f32 %v6226_v23, %v6683_v21 }
  0x33   : > { %v6206_v38 = vunpack.c.h.bf16 %v6251_v7  ;;  %6452 = vrcp.f32 %v726_v32  ;;  %v730_v40 = vadd.f32 1.0, %v6437_v34  ;;  %v6822_v43 = vadd.f32 %v6704_v37, %v578_v29 }
  0x34   : > { %v568_v44 = vmul.f32 %v6205_v24, %v6683_v21  ;;  %6454 = vrcp.f32 %v729_v35  ;;  %v5881_v45 = vmul.f32 -1.442695, %v6813_v27  ;;  %v5882_v46 = vmul.f32 -1.442695, %v6817_v33 }
  0x35   : > { %v6439_v47 = vpop.eup %6438  ;;  %6456 = vrcp.f32 %v730_v40  ;;  %v569_v48 = vmul.f32 %v6206_v38, %v6683_v21  ;;  %v6229_v49 = vunpack.c.l.bf16 %v6257_v39  ;;  %v6829_v52 = vadd.f32 %v6704_v37, %v579_v36 }
  0x36   : > { %v6441_v50 = vpop.eup %6440  ;;  %v731_v51 = vadd.f32 1.0, %v6439_v47  ;;  %6458 = vpow2.f32 %v5881_v45  ;;  %v5883_v60 = vmul.f32 -1.442695, %v6822_v43  ;;  %v6833_v61 = vadd.f32 %v6704_v37, %v568_v44 }
  0x37   : > { %v732_v59 = vadd.f32 1.0, %v6441_v50  ;;  %6460 = vpow2.f32 %v5882_v46  ;;  %v6230_v2 = vunpack.c.h.bf16 %v6257_v39  ;;  %v580_v3 = vmul.f32 %v6229_v49, %v6683_v21  ;;  %v1281_v49 = vld [vmem:[#allocation2 + $0x18] sm:$0xf] }
  0x38   : > { %v6443_v54 = vpop.eup %6442  ;;  %6462 = vrcp.f32 %v731_v51  ;;  %v396_v6 = vsel %vm6646_vm3, 0, %v395_v0  ;;  %v6839_v7 = vadd.f32 %v6704_v37, %v569_v48  ;;  %vm949_vm12 = vsmask.f32 4368 }
  0x39   : > { %v6445_v62 = vpop.eup %6444  ;;  %v733_v63 = vadd.f32 1.0, %v6443_v54  ;;  %6464 = vrcp.f32 %v732_v59  ;;  %397 = vst [vmem:[#allocation2 + $0x48] sm:$0x1] %v396_v6  ;;  %v581_v10 = vmul.f32 %v6230_v2, %v6683_v21  ;;  %v6843_v11 = vadd.f32 %v6704_v37, %v580_v3  ;;  %vm6881_vm14 = vmor %vm375_vm2, %vm949_vm12 }
  0x3a   : > { %v734_v5 = vadd.f32 1.0, %v6445_v62  ;;  %v6447_v8 = vpop.eup %6446  ;;  %v6847_v15 = vmul.f32 -1.442695, %v6829_v52  ;;  %v6851_v18 = vmul.f32 -1.442695, %v6833_v61  ;;  %vm8931_vm15 = vcmask 64512  }
  0x3b   : > { %v6449_v12 = vpop.eup %6448  ;;  %v823_v14 = vmul.f32 %v6447_v8, %v6722_v53  ;;  %6466 = vrcp.f32 %v733_v63  ;;  %v6854_v21 = vadd.f32 %v6704_v37, %v581_v10  ;;  %v6858_v53 = vmul.f32 -1.442695, %v6839_v7  ;;  %v1274_v8 = vld [vmem:[#allocation2 + $0xc] sm:$0xf] }
  0x3c   : > { %v6451_v16 = vpop.eup %6450  ;;  %v824_v17 = vmul.f32 %v6449_v12, %v6727_v56  ;;  %6468 = vrcp.f32 %v734_v5  ;;  %v6862_v56 = vmul.f32 -1.442695, %v6843_v11  ;;  %vm2062_vm1 = vcmask 130112  }
  0x3d   : > { %v6453_v19 = vpop.eup %6452  ;;  %v6153_v20 = vpack.c.bf16 %v823_v14, %v823_v14  ;;  %v821_v23 = vmul.f32 %v6451_v16, %v6730_v57  ;;  %6470 = vpow2.f32 %v5883_v60  ;;  %v6865_v29 = vmul.f32 -1.442695, %v6854_v21 }
  0x3e   : > { %v6455_v24 = vpop.eup %6454  ;;  %v6154_v25 = vpack.c.bf16 %v824_v17, %v824_v17  ;;  %v822_v26 = vmul.f32 %v6453_v19, %v6733_v58  ;;  %vm2386_vm2 = vcmask 195712   ;;  %vm2563_vm4 = vcmask 261312  }
  0x3f   : > { %v6457_v37 = vpop.eup %6456  ;;  %v969_v30 = vshrl.u32 %v6153_v20, 16  ;;  %v972_v32 = vshll.u32 %v6153_v20, 16  ;;  %v6151_v34 = vpack.c.bf16 %v821_v23, %v821_v23  ;;  %v825_v57 = vmul.f32 %v6455_v24, %v6748_v13 }
  0x40   : > { %v977_v35 = vshrl.u32 %v6154_v25, 16  ;;  %v980_v36 = vshll.u32 %v6154_v25, 16  ;;  %v6152_v38 = vpack.c.bf16 %v822_v26, %v822_v26  ;;  %v826_v39 = vmul.f32 %v6457_v37, %v6754_v22  ;;  %v6869_v40 = vpop.eup %6458  ;;  %v1288_v37 = vld [vmem:[#allocation2 + $0x24] sm:$0xf] }
  0x41   : > { %v971_v58 = vrot.slane %v969_v30, 7  ;;  %v952_v44 = vshrl.u32 %v6151_v34, 16  ;;  %v955_v45 = vshll.u32 %v6151_v34, 16  ;;  %v6155_v46 = vpack.c.bf16 %v825_v57, %v825_v57  ;;  %v6871_v47 = vpop.eup %6460  ;;  %v1278_v30 = vld [vmem:[#allocation2 + $0x14] sm:$0x1] }
  0x42   : > { %v979_v13 = vrot.slane %v977_v35, 7  ;;  %v960_v50 = vshrl.u32 %v6152_v38, 16  ;;  %v963_v51 = vshll.u32 %v6152_v38, 16  ;;  %v6156_v54 = vpack.c.bf16 %v826_v39, %v826_v39  ;;  %v6463_v22 = vpop.eup %6462 }
  0x43   : > { %v974_v60 = vor.u32 %v972_v32, %v971_v58  ;;  %v975_v62 = vrot.slane %v971_v58, 4  ;;  %v954_v63 = vrot.slane %v952_v44, 7  ;;  %v986_v0 = vshrl.u32 %v6155_v46, 16  ;;  %v6465_v2 = vpop.eup %6464 }
  0x44   : > { %v982_v3 = vor.u32 %v980_v36, %v979_v13  ;;  %v984_v5 = vrot.slane %v979_v13, 4  ;;  %v962_v6 = vrot.slane %v960_v50, 7  ;;  %v989_v10 = vshll.u32 %v6155_v46, 16 }
  0x45   : > { %v6467_v12 = vpop.eup %6466  ;;  %v1282_v14 = vsel %vm6875_vm13, %v974_v60, %v1281_v49  ;;  %v957_v16 = vor.u32 %v955_v45, %v954_v63  ;;  %v958_v17 = vrot.slane %v954_v63, 4  ;;  %v988_v19 = vrot.slane %v986_v0, 7  ;;  %v1285_v45 = vld [vmem:[#allocation2 + $0x20] sm:$0x1] }
  0x46   : > { %v6469_v20 = vpop.eup %6468  ;;  %v983_v23 = vsel %vm6881_vm14, %v975_v62, %v982_v3  ;;  %1283 = vst [vmem:[#allocation2 + $0x18] sm:$0xf] %v1282_v14  ;;  %v965_v24 = vor.u32 %v963_v51, %v962_v6  ;;  %v967_v25 = vrot.slane %v962_v6, 4  ;;  %v994_v26 = vshrl.u32 %v6156_v54, 16 }
  0x47   : > { %v6889_v32 = vpop.eup %6470  ;;  %1284 = vst.msk [vmem:[#allocation2 + $0x1c] sm:$0xf] %vm365_vm0, %v983_v23  ;;  %v1275_v34 = vsel %vm6875_vm13, %v957_v16, %v1274_v8  ;;  %v991_v57 = vor.u32 %v989_v10, %v988_v19  ;;  %v992_v35 = vrot.slane %v988_v19, 4  ;;  %v997_v36 = vshll.u32 %v6156_v54, 16  ;;  %v1295_v8 = vld [vmem:[#allocation2 + $0x30] sm:$0xf] }
  0x48   : > { %v966_v38 = vsel %vm6881_vm14, %v958_v17, %v965_v24  ;;  %1276 = vst [vmem:[#allocation2 + $0xc] sm:$0xf] %v1275_v34  ;;  %v996_v39 = vrot.slane %v994_v26, 7  ;;  %v827_v58 = vmul.f32 %v6463_v22, %v6768_v41  ;;  %v828_v44 = vmul.f32 %v6465_v2, %v6771_v42  ;;  %v1292_v42 = vld [vmem:[#allocation2 + $0x2c] sm:$0x1] }
  0x49   : > { %1277 = vst.msk [vmem:[#allocation2 + $0x10] sm:$0xf] %vm365_vm0, %v966_v38  ;;  %v1289_v46 = vsel %vm6875_vm13, %v991_v57, %v1288_v37  ;;  %v829_v13 = vmul.f32 %v6467_v12, %v6784_v55  ;;  %v830_v49 = vmul.f32 %v6469_v20, %v6787_v31  ;;  %v1279_v50 = vsel %vm6646_vm3, %v967_v25, %v1278_v30  ;;  %v1302_v16 = vld [vmem:[#allocation2 + $0x3c] sm:$0xf]  ;;  %v1299_v20 = vld [vmem:[#allocation2 + $0x38] sm:$0x1] }
  0x4a   : > { %v999_v51 = vor.u32 %v997_v36, %v996_v39  ;;  %v1001_v54 = vrot.slane %v996_v39, 4  ;;  %1290 = vst [vmem:[#allocation2 + $0x24] sm:$0xf] %v1289_v46  ;;  %v6157_v60 = vpack.c.bf16 %v827_v58, %v827_v58  ;;  %v6158_v41 = vpack.c.bf16 %v828_v44, %v828_v44  ;;  %1280 = vst [vmem:[#allocation2 + $0x14] sm:$0x1] %v1279_v50  ;;  %v6920_v46 = vld [vmem:[%s6657_s15 + $0x30] sm:$0xff] }
  0x4b   : > { %v6159_v22 = vpack.c.bf16 %v829_v13, %v829_v13  ;;  %v6160_v62 = vpack.c.bf16 %v830_v49, %v830_v49  ;;  %v1286_v63 = vsel %vm6646_vm3, %v984_v5, %v1285_v45  ;;  %v743_v0 = vadd.f32 1.0, %v6869_v40  ;;  %v1306_v38 = vld [vmem:[#allocation2 + $0x44] sm:$0x1]  ;;  %v6923_v13 = vld [vmem:[%s6657_s15 + $0x38] sm:$0xff] }
  0x4c   : > { %v1000_v55 = vsel %vm6881_vm14, %v992_v35, %v999_v51  ;;  %v1003_v31 = vshrl.u32 %v6157_v60, 16  ;;  %v1006_v2 = vshll.u32 %v6157_v60, 16  ;;  %v1011_v3 = vshrl.u32 %v6158_v41, 16  ;;  %1287 = vst [vmem:[#allocation2 + $0x20] sm:$0x1] %v1286_v63 }
  0x4d   : > { %1291 = vst.msk [vmem:[#allocation2 + $0x28] sm:$0xf] %vm365_vm0, %v1000_v55  ;;  %v1014_v6 = vshll.u32 %v6158_v41, 16  ;;  %v1020_v10 = vshrl.u32 %v6159_v22, 16  ;;  %v1293_v12 = vsel %vm6646_vm3, %v1001_v54, %v1292_v42  ;;  %6472 = vrcp.f32 %v743_v0  ;;  %v6930_v42 = vld [vmem:[%s6678_s18 + $0x30] sm:$0xff]  }
  0x4e   : > { %v6373_v14 = vld [vmem:[#allocation2 + $0x18] sm:$0xff]   ;;  %v1005_v5 = vrot.slane %v1003_v31, 7  ;;  %1294 = vst [vmem:[#allocation2 + $0x2c] sm:$0x1] %v1293_v12  ;;  %v1013_v40 = vrot.slane %v1011_v3, 7  ;;  %v1023_v19 = vshll.u32 %v6159_v22, 16  ;;  %6474 = vpow2.f32 %v6847_v15 }
  0x4f   : > { %v1022_v17 = vrot.slane %v1020_v10, 7  ;;  %2517 = vrot.lane.b32.xlu1 %v6373_v14, %s6571_s26  ;;  %v6376_v24 = vld [vmem:[#allocation2 + $0x18] sm:$0xff]   ;;  %v1028_v37 = vshrl.u32 %v6160_v62, 16  ;;  %v1031_v30 = vshll.u32 %v6160_v62, 16  ;;  %v3125_v58 = vld [vmem:[#allocation2 + $0xc] sm:$0xe] }
  0x50   : > { %v6374_v23 = vld [vmem:[#allocation2 + $0xc] sm:$0xff]   ;;  %v1008_v25 = vor.u32 %v1006_v2, %v1005_v5  ;;  %v1009_v26 = vrot.slane %v1005_v5, 4  ;;  %v1016_v34 = vor.u32 %v1014_v6, %v1013_v40  ;;  %v1018_v57 = vrot.slane %v1013_v40, 4  ;;  %v4169_v12 = vld [vmem:[#allocation2 + $0x18] sm:$0xe] }
  0x51   : > { %v1025_v35 = vor.u32 %v1023_v19, %v1022_v17  ;;  %v1026_v36 = vrot.slane %v1022_v17, 4  ;;  %2515 = vrot.lane.b32.xlu0 %v6374_v23, %s6571_s26  ;;  %v1030_v39 = vrot.slane %v1028_v37, 7  ;;  %v3126_v44 = vld [vmem:[#allocation2 + $0x10] sm:$0xf]  ;;  %v744_v45 = vadd.f32 1.0, %v6871_v47 }
  0x52   : > { %v1296_v15 = vsel %vm6875_vm13, %v1008_v25, %v1295_v8  ;;  %v1017_v49 = vsel %vm6881_vm14, %v1009_v26, %v1016_v34  ;;  %v3127_v51 = vld [vmem:[#allocation2 + $0x14] sm:$0x1]  ;;  %v6023_v54 = vrot.slane %v3125_v58, 9  ;;  %v3223_v60 = vrot.slane %v3126_v44, 5  ;;  %v2082_v41 = vld [vmem:[#allocation2 + $0xc] sm:$0xe] }
  0x53   : > { %1297 = vst [vmem:[#allocation2 + $0x30] sm:$0xf] %v1296_v15  ;;  %v1303_v50 = vsel %vm6875_vm13, %v1025_v35, %v1302_v16  ;;  %1298 = vst.msk [vmem:[#allocation2 + $0x34] sm:$0xf] %vm365_vm0, %v1017_v49  ;;  %v1033_v47 = vor.u32 %v1031_v30, %v1030_v39  ;;  %v1035_v62 = vrot.slane %v1030_v39, 4  ;;  %v1300_v63 = vsel %vm6646_vm3, %v1018_v57, %v1299_v20 }
  0x54   : > { %v6375_v22 = vld [vmem:[#allocation2 + $0x24] sm:$0xff]   ;;  %1304 = vst [vmem:[#allocation2 + $0x3c] sm:$0xf] %v1303_v50  ;;  %6476 = vrcp.f32 %v744_v45  ;;  %v3225_v55 = vrot.slane %v3223_v60, 4  ;;  %v3226_v31 = vrot.slane %v3127_v51, 5  ;;  %v5960_v3 = vrot.slane %v2082_v41, 9 }
  0x55   : > { %v6378_v0 = vld [vmem:[#allocation2 + $0x24] sm:$0xff]   ;;  %v2083_v2 = vld [vmem:[#allocation2 + $0x10] sm:$0xf]  ;;  %1301 = vst [vmem:[#allocation2 + $0x38] sm:$0x1] %v1300_v63  ;;  %3561 = vrot.lane.b32.xlu1 %v6375_v22, %s6572_s27  ;;  %3559 = vrot.lane.b32.xlu0 %v6376_v24, %s6572_s27  ;;  %v1034_v6 = vsel %vm6881_vm14, %v1026_v36, %v1033_v47  ;;  %v1307_v14 = vsel %vm6646_vm3, %v1035_v62, %v1306_v38  ;;  %v745_v5 = vadd.f32 1.0, %v6889_v32  ;;  %v6209_v30 = vunpack.c.l.bf16 %v6930_v42 }
  0x56   : > { %v2084_v8 = vld [vmem:[#allocation2 + $0x14] sm:$0x1]  ;;  %v2187_v10 = vrot.slane %v2083_v2, 5  ;;  %1305 = vst.msk [vmem:[#allocation2 + $0x40] sm:$0xf] %vm365_vm0, %v1034_v6  ;;  %v6087_v20 = vrot.slane %v4169_v12, 9  ;;  %v4525_v23 = vpack.c.bf16 %v6923_v13, %v6920_v46  ;;  %v6210_v34 = vunpack.c.h.bf16 %v6930_v42 }
  0x57   : > { %v6473_v16 = vpop.eup %6472  ;;  %v2190_v40 = vrot.slane %v2084_v8, 5  ;;  %v4170_v17 = vld [vmem:[#allocation2 + $0x1c] sm:$0xf]  ;;  %v4171_v19 = vld [vmem:[#allocation2 + $0x20] sm:$0x1]  ;;  %v3224_v39 = vsel %vm6693_vm10, %v6023_v54, %v3223_v60  ;;  %v3227_v58 = vsel %vm6693_vm10, %v3225_v55, %v3226_v31  ;;  %6478 = vpow2.f32 %v6851_v18 }
  0x58   : > { %1308 = vst [vmem:[#allocation2 + $0x44] sm:$0x1] %v1307_v14  ;;  %v2189_v24 = vrot.slane %v2187_v10, 4  ;;  %v4267_v25 = vrot.slane %v4170_v17, 5  ;;  %v3128_v26 = vld [vmem:[#allocation2 + $0x18] sm:$0xe]  ;;  %v6475_v32 = vpop.eup %6474  ;;  %v839_v15 = vmul.f32 %v6473_v16, %v6813_v27  ;;  %v2188_v50 = vsel %vm6693_vm10, %v5960_v3, %v2187_v10 }
  0x59   : > { %v3129_v37 = vld [vmem:[#allocation2 + $0x1c] sm:$0xf]  ;;  %v4270_v57 = vrot.slane %v4171_v19, 5  ;;  %v3130_v35 = vld [vmem:[#allocation2 + $0x20] sm:$0x1]  ;;  %v6024_v36 = vrot.slane %v3128_v26, 9  ;;  %2519 = vrot.lane.b32.xlu0 %v6378_v0, %s6571_s26  ;;  %v6039_v63 = vcombine.low %v3224_v39, %v3227_v58  ;;  %6480 = vrcp.f32 %v745_v5 }
  0x5a   : > { %v3230_v38 = vrot.slane %v3129_v37, 5  ;;  %v4269_v44 = vrot.slane %v4267_v25, 4  ;;  %v3233_v45 = vrot.slane %v3130_v35, 5  ;;  %v6377_v49 = vld [vmem:[#allocation2 + $0x30] sm:$0xff]   ;;  %v2191_v51 = vsel %vm6693_vm10, %v2189_v24, %v2190_v40  ;;  %v4172_v62 = vld [vmem:[#allocation2 + $0x24] sm:$0xe] }
  0x5b   : > { %v6957_v22 = vpack.c.bf16 %v839_v15, %v839_v15  ;;  %v6380_v27 = vld [vmem:[#allocation2 + $0x30] sm:$0xff]   ;;  %v6961_v47 = vsel %vm6693_vm10, %v6087_v20, %v4267_v25  ;;  %2521 = vrot.lane.b32.xlu1 %v6377_v49, %s6571_s26  ;;  %v4173_v55 = vld [vmem:[#allocation2 + $0x28] sm:$0xf]  ;;  %v4174_v31 = vld [vmem:[#allocation2 + $0x2c] sm:$0x1]  ;;  %v6088_v2 = vrot.slane %v4172_v62, 9  ;;  %v5976_v10 = vcombine.low %v2188_v50, %v2191_v51 }
  0x5c   : > { %v3232_v41 = vrot.slane %v3230_v38, 4  ;;  %v6965_v54 = vsel %vm6693_vm10, %v4269_v44, %v4270_v57  ;;  %v6969_v60 = vsel %vm6693_vm10, %v6024_v36, %v3230_v38  ;;  %v746_v3 = vadd.f32 1.0, %v6475_v32  ;;  %v2085_v17 = vld [vmem:[#allocation2 + $0x18] sm:$0xe]  ;;  %v2086_v19 = vld [vmem:[#allocation2 + $0x1c] sm:$0xf] }
  0x5d   : > { %v6379_v8 = vld [vmem:[#allocation2 + $0x3c] sm:$0xff]   ;;  %3563 = vrot.lane.b32.xlu0 %v6380_v27, %s6572_s27  ;;  %v4274_v12 = vrot.slane %v4173_v55, 5  ;;  %v4277_v14 = vrot.slane %v4174_v31, 5  ;;  %v1105_v18 = vshrl.u32 %v6957_v22, 16  ;;  %v6103_v16 = vcombine.low %v6961_v47, %v6965_v54  ;;  %v3131_v32 = vld [vmem:[#allocation2 + $0x24] sm:$0xe] }
  0x5e   : > { %v6975_v0 = vsel %vm6693_vm10, %v3232_v41, %v3233_v45  ;;  %v6477_v6 = vpop.eup %6476  ;;  %v2087_v20 = vld [vmem:[#allocation2 + $0x20] sm:$0x1]  ;;  %v5961_v26 = vrot.slane %v2085_v17, 9  ;;  %v2194_v37 = vrot.slane %v2086_v19, 5  ;;  %v1108_v57 = vshll.u32 %v6957_v22, 16 }
  0x5f   : > { %v6040_v40 = vcombine.low %v6969_v60, %v6975_v0  ;;  %v840_v24 = vmul.f32 %v6477_v6, %v6817_v33  ;;  %v4276_v25 = vrot.slane %v4274_v12, 4  ;;  %3565 = vrot.lane.b32.xlu1 %v6379_v8, %s6572_s27  ;;  %v4275_v35 = vsel %vm6693_vm10, %v6088_v2, %v4274_v12  ;;  %v3132_v38 = vld [vmem:[#allocation2 + $0x28] sm:$0xf]  ;;  %v3133_v15 = vld [vmem:[#allocation2 + $0x2c] sm:$0x1] }
  0x60   : > { %v2197_v36 = vrot.slane %v2087_v20, 5  ;;  %v6025_v39 = vrot.slane %v3131_v32, 9  ;;  %6482 = vrcp.f32 %v746_v3  ;;  %v2196_v5 = vrot.slane %v2194_v37, 4  ;;  %v2088_v44 = vld [vmem:[#allocation2 + $0x24] sm:$0xe] }
  0x61   : > { %3381 = vrot.lane.b32.xlu0 %v6039_v63, %s6573_s28  ;;  %v4278_v33 = vsel %vm6693_vm10, %v4276_v25, %v4277_v14  ;;  %v3237_v58 = vrot.slane %v3132_v38, 5  ;;  %v2089_v45 = vld [vmem:[#allocation2 + $0x28] sm:$0xf]  ;;  %v6991_v49 = vpack.c.bf16 %v840_v24, %v840_v24  ;;  %v6995_v50 = vsel %vm6693_vm10, %v5961_v26, %v2194_v37  ;;  %v2090_v41 = vld [vmem:[#allocation2 + $0x2c] sm:$0x1]  ;;  %v7008_v19 = vpop.eup %6478 }
  0x62   : > { %v3240_v51 = vrot.slane %v3133_v15, 5  ;;  %v5962_v27 = vrot.slane %v2088_v44, 9  ;;  %v2201_v47 = vrot.slane %v2089_v45, 5  ;;  %v2198_v54 = vsel %vm6693_vm10, %v2196_v5, %v2197_v36  ;;  %v4175_v31 = vld [vmem:[#allocation2 + $0x30] sm:$0xe] }
  0x63   : > { %v7001_v62 = vsel %vm6693_vm10, %v6025_v39, %v3237_v58  ;;  %v3239_v63 = vrot.slane %v3237_v58, 4  ;;  %v2204_v55 = vrot.slane %v2090_v41, 5  ;;  %v4176_v2 = vld [vmem:[#allocation2 + $0x34] sm:$0xf]  ;;  %2340 = vrot.lane.b32.xlu1 %v5976_v10, %s6569_s24  ;;  %v6104_v3 = vcombine.low %v4275_v35, %v4278_v33  ;;  %v4177_v12 = vld [vmem:[#allocation2 + $0x38] sm:$0x1] }
  0x64   : > { %v7006_v6 = vsel %vm6693_vm10, %v5962_v27, %v2201_v47  ;;  %v2203_v8 = vrot.slane %v2201_v47, 4  ;;  %v6089_v14 = vrot.slane %v4175_v31, 9  ;;  %v3134_v17 = vld [vmem:[#allocation2 + $0x30] sm:$0xe]  ;;  %v5977_v20 = vcombine.low %v6995_v50, %v2198_v54  ;;  %v3135_v26 = vld [vmem:[#allocation2 + $0x34] sm:$0xf]  ;;  %v7020_v50 = vpop.eup %6480 }
  0x65   : > { %4425 = vrot.lane.b32.xlu0 %v6103_v16, %s6574_s29  ;;  %v3241_v24 = vsel %vm6693_vm10, %v3239_v63, %v3240_v51  ;;  %v4281_v10 = vrot.slane %v4176_v2, 5  ;;  %v4284_v25 = vrot.slane %v4177_v12, 5  ;;  %v3136_v37 = vld [vmem:[#allocation2 + $0x38] sm:$0x1]  ;;  %v6026_v36 = vrot.slane %v3134_v17, 9 }
  0x66   : > { %v6041_v32 = vcombine.low %v7001_v62, %v3241_v24  ;;  %v2205_v35 = vsel %vm6693_vm10, %v2203_v8, %v2204_v55  ;;  %v3244_v38 = vrot.slane %v3135_v26, 5  ;;  %v4178_v15 = vld [vmem:[#allocation2 + $0x3c] sm:$0xe]  ;;  %v4179_v39 = vld [vmem:[#allocation2 + $0x40] sm:$0xf]  ;;  %v3247_v58 = vrot.slane %v3136_v37, 5 }
  0x67   : > { %v5978_v16 = vcombine.low %v7006_v6, %v2205_v35  ;;  %v4282_v33 = vsel %vm6693_vm10, %v6089_v14, %v4281_v10  ;;  %v4283_v5 = vrot.slane %v4281_v10, 4  ;;  %v4180_v44 = vld [vmem:[#allocation2 + $0x44] sm:$0x1]  ;;  %v2583_v45 = vld [vmem:[#allocation2 + $0x18] sm:$0xf]  ;;  %3383 = vrot.lane.b32.xlu1 %v6040_v40, %s6573_s28  ;;  %v6090_v27 = vrot.slane %v4178_v15, 9 }
  0x68   : > { %v7028_v51 = vsel %vm6693_vm10, %v6026_v36, %v3244_v38  ;;  %v3246_v41 = vrot.slane %v3244_v38, 4  ;;  %v4288_v47 = vrot.slane %v4179_v39, 5  ;;  %v2584_v54 = vld [vmem:[#allocation2 + $0x1c] sm:$0xf]  ;;  %v4291_v63 = vrot.slane %v4180_v44, 5 }
  0x69   : > { %4427 = vrot.lane.b32.xlu0 %v6104_v3, %s6574_s29  ;;  %v4285_v62 = vsel %vm6693_vm10, %v4283_v5, %v4284_v25  ;;  %v2585_v55 = vld [vmem:[#allocation2 + $0x20] sm:$0x1]  ;;  %v2653_v31 = vshrl.u32 %v2583_v45, 16  ;;  %v2656_v2 = vshll.u32 %v2583_v45, 16  ;;  %v3627_v12 = vld [vmem:[#allocation2 + $0x24] sm:$0xf]  ;;  %6484 = vpow2.f32 %v6858_v53 }
  0x6a   : > { %v7033_v6 = vpop.eup %6482  ;;  %v6105_v60 = vcombine.low %v4282_v33, %v4285_v62  ;;  %v3248_v0 = vsel %vm6693_vm10, %v3246_v41, %v3247_v58  ;;  %v4289_v40 = vsel %vm6693_vm10, %v6090_v27, %v4288_v47  ;;  %v4290_v8 = vrot.slane %v4288_v47, 4  ;;  %v3628_v10 = vld [vmem:[#allocation2 + $0x28] sm:$0xf]  ;;  %v3629_v35 = vld [vmem:[#allocation2 + $0x2c] sm:$0x1] }
  0x6b   : > { %v6042_v3 = vcombine.low %v7028_v51, %v3248_v0  ;;  %v2655_v14 = vrot.slane %v2653_v31, 4  ;;  %v2658_v17 = vrot.slane %v2656_v2, 5  ;;  %v2662_v24 = vshll.u32 %v2584_v54, 16  ;;  %2342 = vrot.lane.b32.xlu1 %v5977_v20, %s6569_s24  ;;  %v1534_v5 = vld [vmem:[#allocation2 + $0xc] sm:$0xf] }
  0x6c   : > { %v4292_v25 = vsel %vm6693_vm10, %v4290_v8, %v4291_v63  ;;  %v2666_v26 = vshrl.u32 %v2584_v54, 16  ;;  %v2672_v37 = vshll.u32 %v2585_v55, 16  ;;  %v3697_v36 = vshrl.u32 %v3627_v12, 16  ;;  %v1535_v62 = vld [vmem:[#allocation2 + $0x10] sm:$0xf] }
  0x6d   : > { %3385 = vrot.lane.b32.xlu0 %v6041_v32, %s6573_s28  ;;  %v6106_v38 = vcombine.low %v4289_v40, %v4292_v25  ;;  %v2659_v15 = vor.u32 %v2658_v17, %v2655_v14  ;;  %v2664_v39 = vrot.slane %v2662_v24, 5  ;;  %v3700_v33 = vshll.u32 %v3627_v12, 16  ;;  %v1536_v55 = vld [vmem:[#allocation2 + $0x14] sm:$0x1]  ;;  %v1537_v12 = vld [vmem:[#allocation2 + $0x18] sm:$0xf] }
  0x6e   : > { %v2668_v58 = vrot.slane %v2666_v26, 4  ;;  %v2674_v44 = vrot.slane %v2672_v37, 5  ;;  %v3699_v45 = vrot.slane %v3697_v36, 4  ;;  %v3706_v51 = vshll.u32 %v3628_v10, 16  ;;  %v7125_v53 = vld [vmem:[%s8910_s2] ss:$0 sm:$0xff] }
  0x6f   : > { %v2660_v41 = vrot.slane %v2659_v15, 4  ;;  %v3702_v20 = vrot.slane %v3700_v33, 5  ;;  %v3710_v27 = vshrl.u32 %v3628_v10, 16  ;;  %v3716_v47 = vshll.u32 %v3629_v35, 16  ;;  %2344 = vrot.lane.b32.xlu1 %v5978_v16, %s6569_s24  ;;  %v1538_v15 = vld [vmem:[#allocation2 + $0x1c] sm:$0xf] }
  0x70   : > { %v2669_v54 = vor.u32 %v2668_v58, %v2664_v39  ;;  %v3708_v63 = vrot.slane %v3706_v51, 5  ;;  %v1607_v32 = vshrl.u32 %v1534_v5, 16  ;;  %v1610_v31 = vshll.u32 %v1534_v5, 16  ;;  %v1539_v51 = vld [vmem:[#allocation2 + $0x20] sm:$0x1] }
  0x71   : > { %4429 = vrot.lane.b32.xlu0 %v6105_v60, %s6574_s29  ;;  %v2665_v2 = vsel %vm6740_vm11, %v2660_v41, %v2664_v39  ;;  %v3703_v0 = vor.u32 %v3702_v20, %v3699_v45  ;;  %v3712_v40 = vrot.slane %v3710_v27, 4  ;;  %v3718_v8 = vrot.slane %v3716_v47, 5  ;;  %v2580_v47 = vld [vmem:[#allocation2 + $0xc] sm:$0xf]  ;;  %v469_v13 = vld [vmem:[#allocation2 + $0x98] sm:$0x1] }
  0x72   : > { %v2670_v14 = vrot.slane %v2669_v54, 4  ;;  %v1609_v17 = vrot.slane %v1607_v32, 4  ;;  %v1612_v24 = vrot.slane %v1610_v31, 5  ;;  %v1616_v10 = vshll.u32 %v1535_v62, 16  ;;  %v2581_v32 = vld [vmem:[#allocation2 + $0x10] sm:$0xf] }
  0x73   : > { %v3704_v25 = vrot.slane %v3703_v0, 4  ;;  %v3713_v16 = vor.u32 %v3712_v40, %v3708_v63  ;;  %v1620_v26 = vshrl.u32 %v1535_v62, 16  ;;  %v1626_v37 = vshll.u32 %v1536_v55, 16  ;;  %3387 = vrot.lane.b32.xlu1 %v6042_v3, %s6573_s28 }
  0x74   : > { %v2675_v60 = vsel %vm6740_vm11, %v2670_v14, %v2674_v44  ;;  %v1613_v35 = vor.u32 %v1612_v24, %v1609_v17  ;;  %v1618_v36 = vrot.slane %v1616_v10, 5  ;;  %v1631_v39 = vshrl.u32 %v1537_v12, 16  ;;  %v2582_v14 = vld [vmem:[#allocation2 + $0x14] sm:$0x1] }
  0x75   : > { %4431 = vrot.lane.b32.xlu0 %v6106_v38, %s6574_s29  ;;  %v6008_v33 = vcombine.low %v2665_v2, %v2675_v60  ;;  %v3709_v5 = vsel %vm6740_vm11, %v3704_v25, %v3708_v63  ;;  %v3714_v58 = vrot.slane %v3713_v16, 4  ;;  %v1622_v45 = vrot.slane %v1620_v26, 4  ;;  %v2589_v16 = vld [vmem:[#allocation2 + $0x30] sm:$0xf] }
  0x76   : > { %v1614_v41 = vrot.slane %v1613_v35, 4  ;;  %v1628_v20 = vrot.slane %v1626_v37, 5  ;;  %v1633_v27 = vrot.slane %v1631_v39, 4  ;;  %v1634_v3 = vshll.u32 %v1537_v12, 16 }
  0x77   : > { %v3719_v44 = vsel %vm6740_vm11, %v3714_v58, %v3718_v8  ;;  %v1623_v62 = vor.u32 %v1622_v45, %v1618_v36  ;;  %v1640_v54 = vshll.u32 %v1538_v15, 16  ;;  %v1644_v55 = vshrl.u32 %v1538_v15, 16  ;;  %3062 = vrot.lane.b32.xlu1 %v6008_v33, %s6575_s11  ;;  %v2590_v15 = vld [vmem:[#allocation2 + $0x34] sm:$0xf] }
  0x78   : > { %v6072_v38 = vcombine.low %v3709_v5, %v3719_v44  ;;  %v1619_v63 = vsel %vm6740_vm11, %v1614_v41, %v1618_v36  ;;  %v1636_v31 = vrot.slane %v1634_v3, 5  ;;  %v1650_v2 = vshll.u32 %v1539_v51, 16  ;;  %v2591_v3 = vld [vmem:[#allocation2 + $0x38] sm:$0x1] }
  0x79   : > { %v1624_v0 = vrot.slane %v1623_v62, 4  ;;  %v1642_v40 = vrot.slane %v1640_v54, 5  ;;  %v1646_v12 = vrot.slane %v1644_v55, 4  ;;  %v2629_v17 = vshrl.u32 %v2580_v47, 16  ;;  %v3624_v62 = vld [vmem:[#allocation2 + $0x18] sm:$0xf] }
  0x7a   : > { %v1637_v24 = vor.u32 %v1636_v31, %v1633_v27  ;;  %v1652_v8 = vrot.slane %v1650_v2, 5  ;;  %v2632_v10 = vshll.u32 %v2580_v47, 16  ;;  %v2638_v25 = vshll.u32 %v2581_v32, 16 }
  0x7b   : > { %v1629_v26 = vsel %vm6740_vm11, %v1624_v0, %v1628_v20  ;;  %v1647_v37 = vor.u32 %v1646_v12, %v1642_v40  ;;  %v2631_v60 = vrot.slane %v2629_v17, 4  ;;  %v2642_v35 = vshrl.u32 %v2581_v32, 16  ;;  %4106 = vrot.lane.b32.xlu1 %v6072_v38, %s6576_s12 }
  0x7c   : > { %v5944_v36 = vcombine.low %v1619_v63, %v1629_v26  ;;  %v1638_v39 = vrot.slane %v1637_v24, 4  ;;  %v2634_v33 = vrot.slane %v2632_v10, 5  ;;  %v2640_v5 = vrot.slane %v2638_v25, 5  ;;  %v3625_v63 = vld [vmem:[#allocation2 + $0x1c] sm:$0xf] }
  0x7d   : > { %v1648_v58 = vrot.slane %v1647_v37, 4  ;;  %v2644_v45 = vrot.slane %v2642_v35, 4  ;;  %v2648_v51 = vshll.u32 %v2582_v14, 16  ;;  %v2701_v41 = vshrl.u32 %v2589_v16, 16  ;;  %v3633_v37 = vld [vmem:[#allocation2 + $0x3c] sm:$0xf] }
  0x7e   : > { %2016 = vrot.lane.b32.xlu0 %v5944_v36, %s6570_s25  ;;  %v1643_v20 = vsel %vm6740_vm11, %v1638_v39, %v1642_v40  ;;  %v2635_v27 = vor.u32 %v2634_v33, %v2631_v60  ;;  %v2704_v47 = vshll.u32 %v2589_v16, 16  ;;  %v2710_v44 = vshll.u32 %v2590_v15, 16  ;;  %v3626_v16 = vld [vmem:[#allocation2 + $0x20] sm:$0x1] }
  0x7f   : > { %v1653_v54 = vsel %vm6740_vm11, %v1648_v58, %v1652_v8  ;;  %v2645_v55 = vor.u32 %v2644_v45, %v2640_v5  ;;  %v2650_v32 = vrot.slane %v2648_v51, 5  ;;  %v2703_v38 = vrot.slane %v2701_v41, 4  ;;  %v3634_v33 = vld [vmem:[#allocation2 + $0x40] sm:$0xf] }
  0x80   : > { %v5945_v31 = vcombine.low %v1643_v20, %v1653_v54  ;;  %v2636_v2 = vrot.slane %v2635_v27, 4  ;;  %v2706_v0 = vrot.slane %v2704_v47, 5  ;;  %v2712_v12 = vrot.slane %v2710_v44, 5  ;;  %v3635_v44 = vld [vmem:[#allocation2 + $0x44] sm:$0x1] }
  0x81   : > { %v2646_v14 = vrot.slane %v2645_v55, 4  ;;  %v2714_v17 = vshrl.u32 %v2590_v15, 16  ;;  %v2720_v24 = vshll.u32 %v2591_v3, 16  ;;  %v3673_v40 = vshrl.u32 %v3624_v62, 16  ;;  %v1540_v55 = vld [vmem:[#allocation2 + $0x24] sm:$0xf] }
  0x82   : > { %2018 = vrot.lane.b32.xlu1 %v5945_v31, %s6570_s25  ;;  %v2641_v10 = vsel %vm6740_vm11, %v2636_v2, %v2640_v5  ;;  %v2707_v25 = vor.u32 %v2706_v0, %v2703_v38  ;;  %v3676_v8 = vshll.u32 %v3624_v62, 16  ;;  %v3682_v26 = vshll.u32 %v3625_v63, 16 }
  0x83   : > { %v2651_v60 = vsel %vm6740_vm11, %v2646_v14, %v2650_v32  ;;  %v2716_v35 = vrot.slane %v2714_v17, 4  ;;  %v2722_v36 = vrot.slane %v2720_v24, 5  ;;  %v3675_v39 = vrot.slane %v3673_v40, 4 }
  0x84   : > { %v6007_v15 = vcombine.low %v2641_v10, %v2651_v60  ;;  %v2708_v58 = vrot.slane %v2707_v25, 4  ;;  %v3678_v45 = vrot.slane %v3676_v8, 5  ;;  %v3684_v51 = vrot.slane %v3682_v26, 5  ;;  %v1541_v25 = vld [vmem:[#allocation2 + $0x28] sm:$0xf] }
  0x85   : > { %v2717_v41 = vor.u32 %v2716_v35, %v2712_v12  ;;  %v3686_v20 = vshrl.u32 %v3625_v63, 16  ;;  %v3692_v27 = vshll.u32 %v3626_v16, 16  ;;  %v3745_v5 = vshrl.u32 %v3633_v37, 16  ;;  %v1542_v60 = vld [vmem:[#allocation2 + $0x2c] sm:$0x1] }
  0x86   : > { %3060 = vrot.lane.b32.xlu0 %v6007_v15, %s6575_s11  ;;  %v2713_v3 = vsel %vm6740_vm11, %v2708_v58, %v2712_v12  ;;  %v3679_v47 = vor.u32 %v3678_v45, %v3675_v39  ;;  %v3748_v62 = vshll.u32 %v3633_v37, 16  ;;  %v3754_v54 = vshll.u32 %v3634_v33, 16  ;;  %v1543_v35 = vld [vmem:[#allocation2 + $0x30] sm:$0xf] }
  0x87   : > { %v2718_v32 = vrot.slane %v2717_v41, 4  ;;  %v3688_v38 = vrot.slane %v3686_v20, 4  ;;  %v3694_v31 = vrot.slane %v3692_v27, 5  ;;  %v3747_v2 = vrot.slane %v3745_v5, 4 }
  0x88   : > { %v3680_v0 = vrot.slane %v3679_v47, 4  ;;  %v3750_v14 = vrot.slane %v3748_v62, 5  ;;  %v3756_v17 = vrot.slane %v3754_v54, 5  ;;  %v3758_v63 = vshrl.u32 %v3634_v33, 16 }
  0x89   : > { %v2723_v24 = vsel %vm6740_vm11, %v2718_v32, %v2722_v36  ;;  %v3689_v40 = vor.u32 %v3688_v38, %v3684_v51  ;;  %v3764_v10 = vshll.u32 %v3635_v44, 16  ;;  %v1655_v12 = vshrl.u32 %v1540_v55, 16  ;;  %v2586_v38 = vld [vmem:[#allocation2 + $0x24] sm:$0xf] }
  0x8a   : > { %v6010_v16 = vcombine.low %v2713_v3, %v2723_v24  ;;  %v3685_v8 = vsel %vm6740_vm11, %v3680_v0, %v3684_v51  ;;  %v3751_v26 = vor.u32 %v3750_v14, %v3747_v2  ;;  %v3760_v37 = vrot.slane %v3758_v63, 4  ;;  %v1544_v51 = vld [vmem:[#allocation2 + $0x34] sm:$0xf]  ;;  %v2587_v24 = vld [vmem:[#allocation2 + $0x28] sm:$0xf] }
  0x8b   : > { %v3690_v39 = vrot.slane %v3689_v40, 4  ;;  %v3766_v15 = vrot.slane %v3764_v10, 5  ;;  %v1657_v58 = vrot.slane %v1655_v12, 4  ;;  %v1658_v45 = vshll.u32 %v1540_v55, 16  ;;  %v1545_v55 = vld [vmem:[#allocation2 + $0x38] sm:$0x1] }
  0x8c   : > { %3066 = vrot.lane.b32.xlu1 %v6010_v16, %s6575_s11  ;;  %v3752_v33 = vrot.slane %v3751_v26, 4  ;;  %v3761_v36 = vor.u32 %v3760_v37, %v3756_v17  ;;  %v1664_v41 = vshll.u32 %v1541_v25, 16  ;;  %v1668_v20 = vshrl.u32 %v1541_v25, 16  ;;  %v2588_v12 = vld [vmem:[#allocation2 + $0x2c] sm:$0x1] }
  0x8d   : > { %v3695_v27 = vsel %vm6740_vm11, %v3690_v39, %v3694_v31  ;;  %v1660_v5 = vrot.slane %v1658_v45, 5  ;;  %v1674_v3 = vshll.u32 %v1542_v60, 16  ;;  %v1679_v47 = vshrl.u32 %v1543_v35, 16 }
  0x8e   : > { %v6071_v44 = vcombine.low %v3685_v8, %v3695_v27  ;;  %v3757_v62 = vsel %vm6740_vm11, %v3752_v33, %v3756_v17  ;;  %v3762_v54 = vrot.slane %v3761_v36, 4  ;;  %v1666_v32 = vrot.slane %v1664_v41, 5 }
  0x8f   : > { %v1661_v2 = vor.u32 %v1660_v5, %v1657_v58  ;;  %v1670_v0 = vrot.slane %v1668_v20, 4  ;;  %v1676_v14 = vrot.slane %v1674_v3, 5  ;;  %v1681_v63 = vrot.slane %v1679_v47, 4 }
  0x90   : > { %4104 = vrot.lane.b32.xlu0 %v6071_v44, %s6576_s12  ;;  %v3767_v31 = vsel %vm6740_vm11, %v3762_v54, %v3766_v15  ;;  %v1682_v40 = vshll.u32 %v1543_v35, 16  ;;  %v1688_v10 = vshll.u32 %v1544_v51, 16  ;;  %v1692_v25 = vshrl.u32 %v1544_v51, 16  ;;  %v3630_v44 = vld [vmem:[#allocation2 + $0x30] sm:$0xf] }
  0x91   : > { %v6074_v16 = vcombine.low %v3757_v62, %v3767_v31  ;;  %v1662_v17 = vrot.slane %v1661_v2, 4  ;;  %v1671_v8 = vor.u32 %v1670_v0, %v1666_v32  ;;  %v1698_v26 = vshll.u32 %v1545_v55, 16  ;;  %v1337_v0 = vld [vmem:[#allocation2 + $0x78] sm:$0xf] }
  0x92   : > { %v1684_v37 = vrot.slane %v1682_v40, 5  ;;  %v1690_v60 = vrot.slane %v1688_v10, 5  ;;  %v1694_v39 = vrot.slane %v1692_v25, 4  ;;  %v2677_v58 = vshrl.u32 %v2586_v38, 16  ;;  %v3631_v25 = vld [vmem:[#allocation2 + $0x34] sm:$0xf] }
  0x93   : > { %4110 = vrot.lane.b32.xlu1 %v6074_v16, %s6576_s12  ;;  %v1667_v45 = vsel %vm6740_vm11, %v1662_v17, %v1666_v32  ;;  %v1672_v33 = vrot.slane %v1671_v8, 4  ;;  %v1700_v36 = vrot.slane %v1698_v26, 5  ;;  %v2680_v15 = vshll.u32 %v2586_v38, 16 }
  0x94   : > { %v1685_v35 = vor.u32 %v1684_v37, %v1681_v63  ;;  %v1695_v41 = vor.u32 %v1694_v39, %v1690_v60  ;;  %v2679_v20 = vrot.slane %v2677_v58, 4  ;;  %v2686_v27 = vshll.u32 %v2587_v24, 16  ;;  %v3632_v37 = vld [vmem:[#allocation2 + $0x38] sm:$0x1] }
  0x95   : > { %v1677_v5 = vsel %vm6740_vm11, %v1672_v33, %v1676_v14  ;;  %v2682_v3 = vrot.slane %v2680_v15, 5  ;;  %v2690_v51 = vshrl.u32 %v2587_v24, 16  ;;  %v2696_v47 = vshll.u32 %v2588_v12, 16  ;;  %v1341_v33 = vld [vmem:[#allocation2 + $0x80] sm:$0x1] }
  0x96   : > { %v5946_v62 = vcombine.low %v1667_v45, %v1677_v5  ;;  %v1686_v54 = vrot.slane %v1685_v35, 4  ;;  %v1696_v55 = vrot.slane %v1695_v41, 4  ;;  %v2688_v2 = vrot.slane %v2686_v27, 5  ;;  %v1546_v15 = vld [vmem:[#allocation2 + $0x3c] sm:$0xf] }
  0x97   : > { %v2683_v32 = vor.u32 %v2682_v3, %v2679_v20  ;;  %v2692_v31 = vrot.slane %v2690_v51, 4  ;;  %v2698_v40 = vrot.slane %v2696_v47, 5  ;;  %v1107_v38 = vrot.slane %v1105_v18, 7  ;;  %v1547_v20 = vld [vmem:[#allocation2 + $0x40] sm:$0xf] }
  0x98   : > { %2020 = vrot.lane.b32.xlu0 %v5946_v62, %s6570_s25  ;;  %v1691_v14 = vsel %vm6740_vm11, %v1686_v54, %v1690_v60  ;;  %v1701_v63 = vsel %vm6740_vm11, %v1696_v55, %v1700_v36  ;;  %v1113_v24 = vshrl.u32 %v6991_v49, 16  ;;  %v1116_v10 = vshll.u32 %v6991_v49, 16  ;;  %v1548_v47 = vld [vmem:[#allocation2 + $0x44] sm:$0x1] }
  0x99   : > { %v5947_v12 = vcombine.low %v1691_v14, %v1701_v63  ;;  %v2684_v16 = vrot.slane %v2683_v32, 4  ;;  %v2693_v17 = vor.u32 %v2692_v31, %v2688_v2  ;;  %v1110_v8 = vor.u32 %v1108_v57, %v1107_v38  ;;  %v7115_v31 = vld [vmem:[#allocation2 + $0x3c] sm:$0xe] }
  0x9a   : > { %v1111_v18 = vrot.slane %v1107_v38, 4  ;;  %v1115_v26 = vrot.slane %v1113_v24, 7  ;;  %v3721_v39 = vshrl.u32 %v3630_v44, 16  ;;  %v3724_v58 = vshll.u32 %v3630_v44, 16 }
  0x9b   : > { %2022 = vrot.lane.b32.xlu1 %v5947_v12, %s6570_s25  ;;  %v2689_v60 = vsel %vm6740_vm11, %v2684_v16, %v2688_v2  ;;  %v2694_v45 = vrot.slane %v2693_v17, 4  ;;  %v1338_v49 = vsel %vm6875_vm13, %v1110_v8, %v1337_v0  ;;  %v3730_v36 = vshll.u32 %v3631_v25, 16  ;;  %v7119_v16 = vld [vmem:[#allocation2 + $0x40] sm:$0xf] }
  0x9c   : > { %v1118_v35 = vor.u32 %v1116_v10, %v1115_v26  ;;  %v1120_v22 = vrot.slane %v1115_v26, 4  ;;  %1339 = vst [vmem:[#allocation2 + $0x78] sm:$0xf] %v1338_v49  ;;  %v3723_v57 = vrot.slane %v3721_v39, 4  ;;  %v3726_v41 = vrot.slane %v3724_v58, 5 }
  0x9d   : > { %v2699_v27 = vsel %vm6740_vm11, %v2694_v45, %v2698_v40  ;;  %v3732_v5 = vrot.slane %v3730_v36, 5  ;;  %v3734_v3 = vshrl.u32 %v3631_v25, 16  ;;  %v3740_v51 = vshll.u32 %v3632_v37, 16  ;;  %v2091_v26 = vld [vmem:[#allocation2 + $0x30] sm:$0xe] }
  0x9e   : > { %v6009_v44 = vcombine.low %v2689_v60, %v2699_v27  ;;  %v1119_v62 = vsel %vm6881_vm14, %v1111_v18, %v1118_v35  ;;  %v1342_v54 = vsel %vm6646_vm3, %v1120_v22, %v1341_v33  ;;  %v3727_v55 = vor.u32 %v3726_v41, %v3723_v57  ;;  %v7134_v35 = vld [vmem:[#allocation2 + $0x44] sm:$0x1]  ;;  %v2092_v57 = vld [vmem:[#allocation2 + $0x34] sm:$0xf] }
  0x9f   : > { %1340 = vst.msk [vmem:[#allocation2 + $0x7c] sm:$0xf] %vm365_vm0, %v1119_v62  ;;  %1343 = vst [vmem:[#allocation2 + $0x80] sm:$0x1] %v1342_v54  ;;  %v3736_v2 = vrot.slane %v3734_v3, 4  ;;  %v1703_v0 = vshrl.u32 %v1546_v15, 16  ;;  %v7130_v37 = vmul.f32 %v7125_v53, %v6209_v30  ;;  %6486 = vpow2.f32 %v6862_v56 }
  0xa0   : > { %v1706_v32 = vshll.u32 %v1546_v15, 16  ;;  %3064 = vrot.lane.b32.xlu0 %v6009_v44, %s6575_s11  ;;  %v3728_v40 = vrot.slane %v3727_v55, 4  ;;  %v1712_v38 = vshll.u32 %v1547_v20, 16  ;;  %v1716_v14 = vshrl.u32 %v1547_v20, 16 }
  0xa1   : > { %v1722_v63 = vshll.u32 %v1548_v47, 16  ;;  %v3737_v24 = vor.u32 %v3736_v2, %v3732_v5  ;;  %v3742_v10 = vrot.slane %v3740_v51, 5  ;;  %v1705_v25 = vrot.slane %v1703_v0, 4 }
  0xa2   : > { %v1708_v12 = vrot.slane %v1706_v32, 5  ;;  %v1714_v17 = vrot.slane %v1712_v38, 5  ;;  %v1718_v8 = vrot.slane %v1716_v14, 4  ;;  %v5964_v18 = vrot.slane %v7115_v31, 9  ;;  %v2093_v32 = vld [vmem:[#allocation2 + $0x38] sm:$0x1]  ;;  %v6485_v38 = vpop.eup %6484 }
  0xa3   : > { %v1561_v39 = vld [vmem:[#allocation2 + $0x78] sm:$0xf]  ;;  %v3733_v58 = vsel %vm6740_vm11, %v3728_v40, %v3732_v5  ;;  %v3738_v60 = vrot.slane %v3737_v24, 4  ;;  %v1724_v49 = vrot.slane %v1722_v63, 5  ;;  %v2215_v22 = vrot.slane %v7119_v16, 5 }
  0xa4   : > { %v1709_v45 = vor.u32 %v1708_v12, %v1705_v25  ;;  %v1823_v33 = vshrl.u32 %v1561_v39, 16  ;;  %v1826_v36 = vshll.u32 %v1561_v39, 16  ;;  %v1719_v15 = vor.u32 %v1718_v8, %v1714_v17 }
  0xa5   : > { %v3743_v41 = vsel %vm6740_vm11, %v3738_v60, %v3742_v10  ;;  %v5963_v20 = vrot.slane %v2091_v26, 9  ;;  %6488 = vpow2.f32 %v6865_v29  ;;  %v841_v55 = vmul.f32 %v7020_v50, %v6822_v43 }
  0xa6   : > { %v1710_v30 = vrot.slane %v1709_v45, 4  ;;  %v1562_v27 = vld [vmem:[#allocation2 + $0x7c] sm:$0xf]  ;;  %v1563_v5 = vld [vmem:[#allocation2 + $0x80] sm:$0x1]  ;;  %v1825_v3 = vrot.slane %v1823_v33, 4  ;;  %v6073_v47 = vcombine.low %v3733_v58, %v3743_v41  ;;  %v842_v8 = vmul.f32 %v7033_v6, %v6829_v52 }
  0xa7   : > { %v1828_v51 = vrot.slane %v1826_v36, 5  ;;  %v1832_v44 = vshll.u32 %v1562_v27, 16  ;;  %v1836_v62 = vshrl.u32 %v1562_v27, 16  ;;  %v1842_v54 = vshll.u32 %v1563_v5, 16  ;;  %v2592_v52 = vld [vmem:[#allocation2 + $0x3c] sm:$0xf] }
  0xa8   : > { %4108 = vrot.lane.b32.xlu0 %v6073_v47, %s6576_s12  ;;  %v1715_v0 = vsel %vm6740_vm11, %v1710_v30, %v1714_v17  ;;  %v1720_v56 = vrot.slane %v1719_v15, 4  ;;  %v2208_v40 = vrot.slane %v2092_v57, 5  ;;  %v2218_v29 = vrot.slane %v7134_v35, 5  ;;  %v2593_v27 = vld [vmem:[#allocation2 + $0x40] sm:$0xf] }
  0xa9   : > { %v1829_v2 = vor.u32 %v1828_v51, %v1825_v3  ;;  %v1834_v14 = vrot.slane %v1832_v44, 5  ;;  %v1838_v63 = vrot.slane %v1836_v62, 4  ;;  %v1844_v24 = vrot.slane %v1842_v54, 5  ;;  %v6487_v6 = vpop.eup %6486  ;;  %v1344_v44 = vld [vmem:[#allocation2 + $0x84] sm:$0xf] }
  0xaa   : > { %v1725_v25 = vsel %vm6740_vm11, %v1720_v56, %v1724_v49  ;;  %v2209_v43 = vsel %vm6693_vm10, %v5963_v20, %v2208_v40  ;;  %v2210_v50 = vrot.slane %v2208_v40, 4  ;;  %v2211_v17 = vrot.slane %v2093_v32, 5  ;;  %v7161_v20 = vld [vmem:[#allocation2 + $0x7c] sm:$0xf]  ;;  %v1348_v62 = vld [vmem:[#allocation2 + $0x8c] sm:$0x1] }
  0xab   : > { %v1830_v10 = vrot.slane %v1829_v2, 4  ;;  %v1839_v12 = vor.u32 %v1838_v63, %v1834_v14  ;;  %v5948_v16 = vcombine.low %v1715_v0, %v1725_v25  ;;  %v2217_v26 = vrot.slane %v2215_v22, 4  ;;  %v451_v32 = vld [vmem:[#allocation2 + $0x50] sm:$0x1]  ;;  %v2109_v40 = vld [vmem:[#allocation2 + $0x78] sm:$0xe] }
  0xac   : > { %v6171_v39 = vpack.c.bf16 %v841_v55, %v841_v55  ;;  %v735_v58 = vadd.f32 1.0, %v7008_v19  ;;  %v736_v60 = vadd.f32 1.0, %v6485_v38  ;;  %v2212_v49 = vsel %vm6693_vm10, %v2210_v50, %v2211_v17  ;;  %v7172_v55 = vpop.permute.xlu1 %4554  ;;  %v2111_v63 = vld [vmem:[#allocation2 + $0x80] sm:$0x1]  ;;  %v2594_v17 = vld [vmem:[#allocation2 + $0x44] sm:$0x1] }
  0xad   : > { %v1835_v45 = vsel %vm6740_vm11, %v1830_v10, %v1834_v14  ;;  %v1840_v33 = vrot.slane %v1839_v12, 4  ;;  %2024 = vrot.lane.b32.xlu0 %v5948_v16, %s6570_s25  ;;  %v6172_v36 = vpack.c.bf16 %v842_v8, %v842_v8  ;;  %v5979_v15 = vcombine.low %v2209_v43, %v2212_v49  ;;  %8945 = vst [vmem:[#allocation5_spill] sm:$0xff] %v7172_v55  ;;  %v413_v43 = vld [vmem:[#allocation2 + $0x90] sm:$0x1] }
  0xae   : > { %v1122_v35 = vshrl.u32 %v6171_v39, 16  ;;  %v1125_v57 = vshll.u32 %v6171_v39, 16  ;;  %6490 = vrcp.f32 %v735_v58  ;;  %v7167_v51 = vsel %vm6693_vm10, %v5964_v18, %v2215_v22 }
  0xaf   : > { %v1845_v19 = vsel %vm6740_vm11, %v1840_v33, %v1844_v24  ;;  %v1130_v41 = vshrl.u32 %v6172_v36, 16  ;;  %v1133_v30 = vshll.u32 %v6172_v36, 16  ;;  %6492 = vrcp.f32 %v736_v60  ;;  %v6489_v5 = vpop.eup %6488  ;;  %v7196_v33 = vld [vmem:[%s6678_s18 + $0x60] sm:$0xff]   ;;  %v7200_v36 = vld [vmem:[#allocation2 + $0x3c] sm:$0xe] }
  0xb0   : > { %v5953_v3 = vcombine.low %v1835_v45, %v1845_v19  ;;  %v1124_v47 = vrot.slane %v1122_v35, 7  ;;  %v571_v54 = vmul.f32 %v7125_v53, %v6210_v34  ;;  %v2219_v2 = vsel %vm6693_vm10, %v2217_v26, %v2218_v29  ;;  %v7193_v45 = vpop.permute.xlu1 %4558 }
  0xb1   : > { %2346 = vrot.lane.b32.xlu0 %v5979_v15, %s6569_s24  ;;  %v1132_v0 = vrot.slane %v1130_v41, 7  ;;  %v2725_v31 = vshrl.u32 %v2592_v52, 16  ;;  %v2728_v56 = vshll.u32 %v2592_v52, 16  ;;  %v2250_v42 = vrot.slane %v7161_v20, 5  ;;  %8946 = vst [vmem:[#allocation6_spill] sm:$0xff] %v7193_v45 }
  0xb2   : > { %2034 = vrot.lane.b32.xlu1 %v5953_v3, %s6570_s25  ;;  %v1127_v18 = vor.u32 %v1125_v57, %v1124_v47  ;;  %v1128_v22 = vrot.slane %v1124_v47, 4  ;;  %v2734_v38 = vshll.u32 %v2593_v27, 16  ;;  %v2738_v25 = vshrl.u32 %v2593_v27, 16  ;;  %v7216_v57 = vpop.permute.xlu0 %4556  ;;  %v398_v27 = vld [vmem:[#allocation2 + $0x54] sm:$0x1] }
  0xb3   : > { %v1135_v34 = vor.u32 %v1133_v30, %v1132_v0  ;;  %v1137_v14 = vrot.slane %v1132_v0, 4  ;;  %v2727_v24 = vrot.slane %v2725_v31, 4  ;;  %v2730_v10 = vrot.slane %v2728_v56, 5  ;;  %8947 = vst [vmem:[#allocation7_spill] sm:$0xff] %v7216_v57 }
  0xb4   : > { %v1345_v29 = vsel %vm6875_vm13, %v1127_v18, %v1344_v44  ;;  %v5969_v16 = vrot.slane %v2109_v40, 9  ;;  %v5980_v26 = vcombine.low %v7167_v51, %v2219_v2  ;;  %v2252_v39 = vrot.slane %v2250_v42, 4  ;;  %v7225_v44 = vld [vmem:[#allocation2 + $0x40] sm:$0xf]  ;;  %v7243_v40 = vpop.permute.xlu1 %2338 }
  0xb5   : > { %v1136_v50 = vsel %vm6881_vm14, %v1128_v22, %v1135_v34  ;;  %1346 = vst [vmem:[#allocation2 + $0x84] sm:$0xf] %v1345_v29  ;;  %v1349_v12 = vsel %vm6646_vm3, %v1137_v14, %v1348_v62  ;;  %v2731_v8 = vor.u32 %v2730_v10, %v2727_v24  ;;  %v2253_v58 = vrot.slane %v2111_v63, 5 }
  0xb6   : > { %4560 = vrot.lane.b32.xlu1 %v4525_v23, %s6568_s21  ;;  %1347 = vst.msk [vmem:[#allocation2 + $0x88] sm:$0xf] %vm365_vm0, %v1136_v50  ;;  %1350 = vst [vmem:[#allocation2 + $0x8c] sm:$0x1] %v1349_v12  ;;  %v452_v60 = vsel %vm6661_vm5, 0, %v451_v32  ;;  %v7198_v49 = vrot.slane %v2734_v38, 5  ;;  %v7221_v47 = vsel %vm6693_vm10, %v5969_v16, %v2250_v42  ;;  %v6233_v62 = vunpack.c.l.bf16 %v7196_v33  ;;  %v7251_v10 = vpop.permute.xlu0 %2014 }
  0xb7   : > { %453 = vst [vmem:[#allocation2 + $0x50] sm:$0x1] %v452_v60  ;;  %v414_v46 = vsel %vm6646_vm3, 0, %v413_v43  ;;  %v7207_v23 = vld [vmem:[%s8911_s3] ss:$0 sm:$0xff]  ;;  %v2740_v19 = vrot.slane %v2738_v25, 4 }
  0xb8   : > { %v7211_v15 = vadd.f32 %v7207_v23, %v7130_v37  ;;  %v7214_v35 = vadd.f32 %v7207_v23, %v571_v54  ;;  %v6491_v52 = vpop.eup %6490  ;;  %v2744_v41 = vshll.u32 %v2594_v17, 16  ;;  %415 = vst [vmem:[#allocation2 + $0x90] sm:$0x1] %v414_v46  ;;  %v747_v30 = vadd.f32 1.0, %v6487_v6  ;;  %v6381_v54 = vld [vmem:[#allocation2 + $0x3c] sm:$0xff]  }
  0xb9   : > { %v748_v20 = vadd.f32 1.0, %v6489_v5  ;;  %v6493_v3 = vpop.eup %6492  ;;  %v831_v51 = vmul.f32 %v6491_v52, %v6833_v61  ;;  %v7223_v37 = vrot.slane %v2731_v8, 4  ;;  %v7232_v5 = vsel %vm6693_vm10, %v2252_v39, %v2253_v58  ;;  %v1309_v39 = vld [vmem:[#allocation2 + $0x48] sm:$0xf] }
  0xba   : > { %2348 = vrot.lane.b32.xlu1 %v5980_v26, %s6569_s24  ;;  %v832_v6 = vmul.f32 %v6493_v3, %v6839_v7  ;;  %6494 = vrcp.f32 %v747_v30  ;;  %v470_v61 = vsel %vm6661_vm5, 0, %v469_v13  ;;  %v6027_v0 = vrot.slane %v7200_v36, 9  ;;  %v6395_v36 = vld [vmem:[%s8912_s4 + $0x8] sm:$0xff]  }
  0xbb   : > { %v6161_v2 = vpack.c.bf16 %v831_v51, %v831_v51  ;;  %6496 = vrcp.f32 %v748_v20  ;;  %471 = vst [vmem:[#allocation2 + $0x98] sm:$0x1] %v470_v61  ;;  %v399_v31 = vsel %vm6646_vm3, 0, %v398_v27  ;;  %v2741_v7 = vor.u32 %v2740_v19, %v7198_v49 }
  0xbc   : > { %v1564_v56 = vld [vmem:[#allocation2 + $0x84] sm:$0xf]  ;;  %v6162_v32 = vpack.c.bf16 %v832_v6, %v832_v6  ;;  %v7240_v18 = vrot.slane %v2744_v41, 5  ;;  %v3251_v22 = vrot.slane %v7225_v44, 5  ;;  %400 = vst [vmem:[#allocation2 + $0x54] sm:$0x1] %v399_v31  ;;  %v5985_v63 = vcombine.low %v7221_v47, %v7232_v5 }
  0xbd   : > { %v1565_v42 = vld [vmem:[#allocation2 + $0x88] sm:$0xf]  ;;  %v1566_v38 = vld [vmem:[#allocation2 + $0x8c] sm:$0x1]  ;;  %v1847_v34 = vshrl.u32 %v1564_v56, 16  ;;  %v1850_v14 = vshll.u32 %v1564_v56, 16  ;;  %v2737_v24 = vsel %vm6740_vm11, %v7223_v37, %v7198_v49 }
  0xbe   : > { %2523 = vrot.lane.b32.xlu1 %v6381_v54, %s6571_s26  ;;  %v1856_v29 = vshll.u32 %v1565_v42, 16  ;;  %v1860_v25 = vshrl.u32 %v1565_v42, 16  ;;  %v1866_v43 = vshll.u32 %v1566_v38, 16  ;;  %v1037_v50 = vshrl.u32 %v6161_v2, 16  ;;  %v2112_v12 = vld [vmem:[#allocation2 + $0x84] sm:$0xe] }
  0xbf   : > { %v1849_v16 = vrot.slane %v1847_v34, 4  ;;  %v1852_v17 = vrot.slane %v1850_v14, 5  ;;  %v1040_v8 = vshll.u32 %v6161_v2, 16  ;;  %v1045_v26 = vshrl.u32 %v6162_v32, 16  ;;  %v2113_v58 = vld [vmem:[#allocation2 + $0x88] sm:$0xf] }
  0xc0   : > { %v1858_v60 = vrot.slane %v1856_v29, 5  ;;  %v1862_v46 = vrot.slane %v1860_v25, 4  ;;  %v1039_v13 = vrot.slane %v1037_v50, 7  ;;  %v2742_v52 = vrot.slane %v2741_v7, 4  ;;  %v2114_v19 = vld [vmem:[#allocation2 + $0x8c] sm:$0x1] }
  0xc1   : > { %v1853_v41 = vor.u32 %v1852_v17, %v1849_v16  ;;  %v1868_v30 = vrot.slane %v1866_v43, 5  ;;  %v1047_v20 = vrot.slane %v1045_v26, 7  ;;  %v1048_v27 = vshll.u32 %v6162_v32, 16  ;;  %v1313_v61 = vld [vmem:[#allocation2 + $0x50] sm:$0x1]  ;;  %v7254_v31 = vpop.permute.xlu1 %2517 }
  0xc2   : > { %v1863_v3 = vor.u32 %v1862_v46, %v1858_v60  ;;  %v1042_v51 = vor.u32 %v1040_v8, %v1039_v13  ;;  %v1043_v54 = vrot.slane %v1039_v13, 4  ;;  %v2257_v6 = vrot.slane %v2113_v58, 5  ;;  %v2610_v34 = vld [vmem:[#allocation2 + $0x84] sm:$0xf]  ;;  %v2611_v26 = vld [vmem:[#allocation2 + $0x88] sm:$0xf] }
  0xc3   : > { %v1854_v2 = vrot.slane %v1853_v41, 4  ;;  %v1050_v56 = vor.u32 %v1048_v27, %v1047_v20  ;;  %v1052_v42 = vrot.slane %v1047_v20, 4  ;;  %v5970_v38 = vrot.slane %v2112_v12, 9  ;;  %v7256_v14 = vpop.permute.xlu0 %2515  ;;  %v7276_v41 = vld [vmem:[#allocation2 + $0x44] sm:$0x1] }
  0xc4   : > { %v6495_v7 = vpop.eup %6494  ;;  %v1864_v29 = vrot.slane %v1863_v3, 4  ;;  %v1310_v25 = vsel %vm6875_vm13, %v1042_v51, %v1309_v39  ;;  %v2259_v32 = vrot.slane %v2257_v6, 4  ;;  %v2260_v43 = vrot.slane %v2114_v19, 5  ;;  %v7280_v3 = vld [vmem:[#allocation2 + $0x8c] sm:$0x1] }
  0xc5   : > { %v6497_v50 = vpop.eup %6496  ;;  %v1859_v16 = vsel %vm6740_vm11, %v1854_v2, %v1858_v60  ;;  %v1051_v17 = vsel %vm6881_vm14, %v1043_v54, %v1050_v56  ;;  %1311 = vst [vmem:[#allocation2 + $0x48] sm:$0xf] %v1310_v25  ;;  %v1314_v12 = vsel %vm6646_vm3, %v1052_v42, %v1313_v61  ;;  %v843_v8 = vmul.f32 %v6495_v7, %v6843_v11 }
  0xc6   : > { %v1869_v58 = vsel %vm6740_vm11, %v1864_v29, %v1868_v30  ;;  %1312 = vst.msk [vmem:[#allocation2 + $0x4c] sm:$0xf] %vm365_vm0, %v1051_v17  ;;  %v2747_v39 = vsel %vm6740_vm11, %v2742_v52, %v7240_v18  ;;  %1315 = vst [vmem:[#allocation2 + $0x50] sm:$0x1] %v1314_v12  ;;  %v844_v60 = vmul.f32 %v6497_v50, %v6854_v21  ;;  %v2869_v46 = vshrl.u32 %v2610_v34, 16 }
  0xc7   : > { %v5954_v13 = vcombine.low %v1859_v16, %v1869_v58  ;;  %v2258_v19 = vsel %vm6693_vm10, %v5970_v38, %v2257_v6  ;;  %v6173_v11 = vpack.c.bf16 %v843_v8, %v843_v8  ;;  %v2872_v20 = vshll.u32 %v2610_v34, 16  ;;  %v7278_v27 = vpop.permute.xlu0 %3559  ;;  %v7284_v54 = vpop.permute.xlu1 %3561  ;;  %v1351_v50 = vld [vmem:[#allocation2 + $0x90] sm:$0xf] }
  0xc8   : > { %8948 = vst [vmem:[#allocation8_spill] sm:$0xff] %v7278_v27  ;;  %v6174_v30 = vpack.c.bf16 %v844_v60, %v844_v60  ;;  %v7282_v51 = vrot.slane %v2869_v46, 4  ;;  %v2878_v18 = vshll.u32 %v2611_v26, 16  ;;  %v2882_v52 = vshrl.u32 %v2611_v26, 16  ;;  %8949 = vst [vmem:[#allocation9_spill] sm:$0xff] %v7284_v54 }
  0xc9   : > { %2036 = vrot.lane.b32.xlu0 %v5954_v13, %s6570_s25  ;;  %v2261_v21 = vsel %vm6693_vm10, %v2259_v32, %v2260_v43  ;;  %v1139_v6 = vshrl.u32 %v6173_v11, 16  ;;  %v1142_v61 = vshll.u32 %v6173_v11, 16  ;;  %v2874_v2 = vrot.slane %v2872_v20, 5 }
  0xca   : > { %v3254_v56 = vrot.slane %v7276_v41, 5  ;;  %v1147_v42 = vshrl.u32 %v6174_v30, 16  ;;  %v7290_v38 = vrot.slane %v2878_v18, 5  ;;  %v7292_v34 = vrot.slane %v2882_v52, 4 }
  0xcb   : > { %v6011_v7 = vcombine.low %v2737_v24, %v2747_v39  ;;  %v1141_v29 = vrot.slane %v1139_v6, 7  ;;  %v1150_v25 = vshll.u32 %v6174_v30, 16  ;;  %v5875_v32 = vmul.f32 -1.442695, %v7211_v15  ;;  %v7300_v43 = vpop.permute.xlu0 %2519 }
  0xcc   : > { %v5986_v16 = vcombine.low %v2258_v19, %v2261_v21  ;;  %v2595_v17 = vld [vmem:[#allocation2 + $0x48] sm:$0xf]  ;;  %v1149_v12 = vrot.slane %v1147_v42, 7  ;;  %v2875_v8 = vor.u32 %v2874_v2, %v7282_v51  ;;  %v2888_v26 = vshll.u32 %v7280_v3, 16  ;;  %v6392_v2 = vld [vmem:[%s8912_s4] sm:$0xff]  }
  0xcd   : > { %v6382_v58 = vld [vmem:[#allocation2 + $0x48] sm:$0xff]   ;;  %2358 = vrot.lane.b32.xlu0 %v5985_v63, %s6569_s24  ;;  %v2749_v37 = vshrl.u32 %v2595_v17, 16  ;;  %v1144_v24 = vor.u32 %v1142_v61, %v1141_v29  ;;  %v2885_v39 = vor.u32 %v7292_v34, %v7290_v38  ;;  %6498 = vpow2.f32 %v5875_v32  ;;  %v2597_v60 = vld [vmem:[#allocation2 + $0x50] sm:$0x1]  ;;  %v7310_v20 = vpop.permute.xlu1 %2521  ;;  %v1355_v63 = vld [vmem:[#allocation2 + $0x98] sm:$0x1]  ;;  %6288 = vmatprep.subr.bf16.mxu0 %v6392_v2 }
  0xce   : > { %v2596_v49 = vld [vmem:[#allocation2 + $0x4c] sm:$0xf]  ;;  %v2752_v46 = vshll.u32 %v2595_v17, 16  ;;  %v1145_v11 = vrot.slane %v1141_v29, 4  ;;  %2525 = vrot.lane.b32.xlu1 %v6382_v58, %s6571_s26  ;;  %v2768_v3 = vshll.u32 %v2597_v60, 16  ;;  %v1152_v47 = vor.u32 %v1150_v25, %v1149_v12  ;;  %v6383_v34 = vld [vmem:[#allocation2 + $0x84] sm:$0xff]   ;;  %6340 = vmatprep.subr.bf16.mxu1 %v6392_v2 }
  0xcf   : > { %v2758_v13 = vshll.u32 %v2596_v49, 16  ;;  %v2762_v19 = vshrl.u32 %v2596_v49, 16  ;;  %v2751_v30 = vrot.slane %v2749_v37, 4  ;;  %v1154_v5 = vrot.slane %v1149_v12, 4  ;;  %v7313_v51 = vpop.permute.xlu0 %3563  ;;  %v3141_v61 = vld [vmem:[#allocation2 + $0x4c] sm:$0xf]  ;;  %6289 = vmatpush3.bf16.msra.mxu0 %v6392_v2  ;;  %6345 = vmatpush3.bf16.msra.mxu1 %v6392_v2 }
  0xd0   : > { %8950 = vst [vmem:[#allocation10_spill] sm:$0xff] %v7313_v51  ;;  %v2754_v18 = vrot.slane %v2752_v46, 5  ;;  %v1352_v6 = vsel %vm6875_vm13, %v1144_v24, %v1351_v50  ;;  %v2770_v42 = vrot.slane %v2768_v3, 5  ;;  %v3253_v29 = vrot.slane %v3251_v22, 4  ;;  %v3140_v32 = vld [vmem:[#allocation2 + $0x48] sm:$0xe]  ;;  %6290 = vmatprep.subr.bf16.mxu0 %v6395_v36  ;;  %6341 = vmatprep.subr.bf16.mxu1 %v6395_v36 }
  0xd1   : > { %v2760_v52 = vrot.slane %v2758_v13, 5  ;;  %v2764_v21 = vrot.slane %v2762_v19, 4  ;;  %2360 = vrot.lane.b32.xlu0 %v5986_v16, %s6569_s24  ;;  %v1153_v25 = vsel %vm6881_vm14, %v1145_v11, %v1152_v47  ;;  %1353 = vst [vmem:[#allocation2 + $0x90] sm:$0xf] %v1352_v6  ;;  %v3258_v17 = vrot.slane %v3141_v61, 5  ;;  %v7326_v49 = vpop.permute.xlu1 %3565 }
  0xd2   : > { %v2755_v12 = vor.u32 %v2754_v18, %v2751_v30  ;;  %1354 = vst.msk [vmem:[#allocation2 + $0x94] sm:$0xf] %vm365_vm0, %v1153_v25  ;;  %v3142_v58 = vld [vmem:[#allocation2 + $0x50] sm:$0x1]  ;;  %8951 = vst [vmem:[#allocation11_spill] sm:$0xff] %v7326_v49  ;;  %3068 = vrot.lane.b32.xlu1 %v6011_v7, %s6575_s11  ;;  %v2876_v16 = vrot.slane %v2875_v8, 4  ;;  %v1356_v24 = vsel %vm6646_vm3, %v1154_v5, %v1355_v63  ;;  %v6234_v46 = vunpack.c.h.bf16 %v7196_v33 }
  0xd3   : > { %v2765_v50 = vor.u32 %v2764_v21, %v2760_v52  ;;  %v2890_v37 = vrot.slane %v2888_v26, 5  ;;  %v7331_v60 = vld [vmem:[#allocation2 + $0x88] sm:$0xf]  ;;  %v7334_v13 = vpop.permute.xlu0 %3381  ;;  %v2886_v30 = vrot.slane %v2885_v39, 4  ;;  %1357 = vst [vmem:[#allocation2 + $0x98] sm:$0x1] %v1356_v24  ;;  %v582_v5 = vmul.f32 %v7125_v53, %v6233_v62  ;;  %6291 = vmatpush3.bf16.msra.mxu0 %v6395_v36  ;;  %6346 = vmatpush3.bf16.msra.mxu1 %v6395_v36 }
  0xd4   : > { %v2756_v19 = vrot.slane %v2755_v12, 4  ;;  %v5876_v3 = vmul.f32 -1.442695, %v7214_v35  ;;  %v6028_v7 = vrot.slane %v3140_v32, 9  ;;  %v3260_v8 = vrot.slane %v3258_v17, 4 }
  0xd5   : > { %v2766_v11 = vrot.slane %v2765_v50, 4  ;;  %2535 = vrot.lane.b32.xlu0 %v6383_v34, %s6571_s26  ;;  %v3261_v26 = vrot.slane %v3142_v58, 5  ;;  %v7338_v47 = vld [vmem:[#allocation2 + $0x84] sm:$0xe]  ;;  %v3252_v18 = vsel %vm6693_vm10, %v6027_v0, %v3251_v22  ;;  %v3255_v33 = vsel %vm6693_vm10, %v3253_v29, %v3254_v56  ;;  %v7357_v21 = vpop.permute.xlu1 %2340 }
  0xd6   : > { %v2761_v63 = vsel %vm6740_vm11, %v2756_v19, %v2760_v52  ;;  %6500 = vpow2.f32 %v5876_v3  ;;  %v3157_v52 = vld [vmem:[#allocation2 + $0x8c] sm:$0x1]  ;;  %v3293_v61 = vrot.slane %v7331_v60, 5  ;;  %v583_v44 = vmul.f32 %v7125_v53, %v6234_v46 }
  0xd7   : > { %v2771_v39 = vsel %vm6740_vm11, %v2766_v11, %v2770_v42  ;;  %v6499_v62 = vpop.eup %6498  ;;  %v7361_v2 = vpop.permute.xlu0 %4425  ;;  %v2881_v0 = vsel %vm6740_vm11, %v2876_v16, %v7290_v38  ;;  %v2891_v22 = vsel %vm6740_vm11, %v2886_v30, %v2890_v37  ;;  %v6033_v42 = vrot.slane %v7338_v47, 9  ;;  %v7377_v16 = vld [vmem:[#allocation2 + $0x48] sm:$0xf]  ;;  %v454_v47 = vld [vmem:[#allocation2 + $0x5c] sm:$0x1] }
  0xd8   : > { %v6012_v6 = vcombine.low %v2761_v63, %v2771_v39  ;;  %8952 = vst [vmem:[#allocation12_spill] sm:$0xff] %v7361_v2  ;;  %v2613_v41 = vld [vmem:[#allocation2 + $0x90] sm:$0xf]  ;;  %v737_v56 = vadd.f32 1.0, %v6499_v62  ;;  %v6043_v53 = vcombine.low %v3252_v18, %v3255_v33  ;;  %v3259_v29 = vsel %vm6693_vm10, %v6028_v7, %v3258_v17  ;;  %v6388_v63 = vld [vmem:[#allocation2] sm:$0xff]  }
  0xd9   : > { %v6384_v34 = vld [vmem:[#allocation2 + $0x90] sm:$0xff]   ;;  %v3262_v25 = vsel %vm6693_vm10, %v3260_v8, %v3261_v26  ;;  %v2893_v12 = vshrl.u32 %v2613_v41, 16  ;;  %v2896_v38 = vshll.u32 %v2613_v41, 16  ;;  %v7379_v37 = vpop.permute.xlu1 %3383  ;;  %v6017_v24 = vcombine.low %v2881_v0, %v2891_v22  ;;  %v3637_v26 = vld [vmem:[#allocation2 + $0x4c] sm:$0xf]  ;;  %1515 = vst.msk [vmem:[#allocation3] sm:$0xff] %vm8931_vm15, %v6388_v63 }
  0xda   : > { %3070 = vrot.lane.b32.xlu1 %v6012_v6, %s6575_s11  ;;  %v2614_v32 = vld [vmem:[#allocation2 + $0x94] sm:$0xf]  ;;  %6502 = vrcp.f32 %v737_v56  ;;  %2537 = vrot.lane.b32.xlu0 %v6384_v34, %s6571_s26  ;;  %v2615_v17 = vld [vmem:[#allocation2 + $0x98] sm:$0x1]  ;;  %v3295_v46 = vrot.slane %v3293_v61, 4  ;;  %v3296_v19 = vrot.slane %v3157_v52, 5  ;;  %v6044_v39 = vcombine.low %v3259_v29, %v3262_v25 }
  0xdb   : > { %v2902_v50 = vshll.u32 %v2614_v32, 16  ;;  %v2906_v58 = vshrl.u32 %v2614_v32, 16  ;;  %v2895_v60 = vrot.slane %v2893_v12, 4  ;;  %v7382_v11 = vpop.permute.xlu0 %4427  ;;  %v2898_v30 = vrot.slane %v2896_v38, 5  ;;  %v7386_v33 = vld [vmem:[#allocation2 + $0x90] sm:$0xe] }
  0xdc   : > { %8953 = vst [vmem:[#allocation13_spill] sm:$0xff] %v7382_v11  ;;  %v2912_v8 = vshll.u32 %v2615_v17, 16  ;;  %v3769_v18 = vshrl.u32 %v7377_v16, 16  ;;  %v7388_v62 = vld [vmem:[#allocation2 + $0x94] sm:$0xf]  ;;  %v7391_v6 = vadd.f32 %v7207_v23, %v582_v5  ;;  %v6393_v52 = vld [vmem:[#allocation2 + $0xc] sm:$0xff]   ;;  %v7394_v41 = vadd.f32 %v7207_v23, %v583_v44 }
  0xdd   : > { %v2904_v3 = vrot.slane %v2902_v50, 5  ;;  %v2908_v7 = vrot.slane %v2906_v58, 4  ;;  %v2899_v36 = vor.u32 %v2898_v30, %v2895_v60  ;;  %v7396_v56 = vpop.permute.xlu1 %2342  ;;  %v7401_v34 = vsel %vm6693_vm10, %v6033_v42, %v3293_v61  ;;  %v3160_v32 = vld [vmem:[#allocation2 + $0x98] sm:$0x1]  ;;  %v6398_v23 = vld [vmem:[%s8912_s4 + $0x10] sm:$0xff]   ;;  %v6385_v58 = vld [vmem:[#allocation2 + $0x48] sm:$0xff]  }
  0xde   : > { %3389 = vrot.lane.b32.xlu1 %v6043_v53, %s6573_s28  ;;  %v2914_v22 = vrot.slane %v2912_v8, 5  ;;  %v6396_v53 = vld [vmem:[#allocation2 + $0x18] sm:$0xff]   ;;  %3080 = vrot.lane.b32.xlu0 %v6017_v24, %s6575_s11  ;;  %v7405_v5 = vsel %vm6693_vm10, %v3295_v46, %v3296_v19  ;;  %v3772_v29 = vshll.u32 %v7377_v16, 16  ;;  %v3778_v25 = vshll.u32 %v3637_v26, 16  ;;  %1516 = vst.msk [vmem:[#allocation3 + $0x8] sm:$0xff] %vm8931_vm15, %v6393_v52 }
  0xdf   : > { %v2909_v0 = vor.u32 %v2908_v7, %v2904_v3  ;;  %v7408_v12 = vpop.permute.xlu0 %3385  ;;  %v2900_v44 = vrot.slane %v2899_v36, 4  ;;  %v3782_v50 = vshrl.u32 %v3637_v26, 16  ;;  %v3300_v61 = vrot.slane %v7388_v62, 5  ;;  %6292 = vmatprep.subr.bf16.mxu0 %v6398_v23  ;;  %v6399_v60 = vld [vmem:[%s8912_s4 + $0x18] sm:$0xff]   ;;  %1517 = vst.msk [vmem:[#allocation3 + $0x10] sm:$0xff] %vm8931_vm15, %v6396_v53  ;;  %v6400_v26 = vld [vmem:[#allocation2 + $0x24] sm:$0xff]   ;;  %6342 = vmatprep.subr.bf16.mxu1 %v6398_v23 }
  0xe0   : > { %v6501_v42 = vpop.eup %6500  ;;  %v7415_v24 = vrot.slane %v3769_v18, 4  ;;  %v6034_v16 = vrot.slane %v7386_v33, 9  ;;  %v455_v17 = vsel %vm6661_vm5, 0, %v454_v47  ;;  %v3303_v7 = vrot.slane %v3160_v32, 5  ;;  %6293 = vmatpush3.bf16.msra.mxu0 %v6398_v23  ;;  %v416_v33 = vld [vmem:[#allocation2 + $0x9c] sm:$0x1]  ;;  %6347 = vmatpush3.bf16.msra.mxu1 %v6398_v23 }
  0xe1   : > { %v2910_v38 = vrot.slane %v2909_v0, 4  ;;  %v2905_v46 = vsel %vm6740_vm11, %v2900_v44, %v2904_v3  ;;  %v738_v30 = vadd.f32 1.0, %v6501_v42  ;;  %456 = vst [vmem:[#allocation2 + $0x5c] sm:$0x1] %v455_v17  ;;  %v7428_v8 = vpop.permute.xlu1 %2344  ;;  %v7434_v3 = vrot.slane %v3778_v25, 5  ;;  %6294 = vmatprep.subr.bf16.mxu0 %v6399_v60  ;;  %1518 = vst.msk [vmem:[#allocation3 + $0x18] sm:$0xff] %vm8931_vm15, %v6400_v26  ;;  %6343 = vmatprep.subr.bf16.mxu1 %v6399_v60 }
  0xe2   : > { %3391 = vrot.lane.b32.xlu1 %v6044_v39, %s6573_s28  ;;  %v7432_v39 = vrot.slane %v3772_v29, 5  ;;  %v3302_v18 = vrot.slane %v3300_v61, 4  ;;  %v3638_v63 = vld [vmem:[#allocation2 + $0x50] sm:$0x1]  ;;  %v3784_v36 = vrot.slane %v3782_v50, 4  ;;  %v6049_v53 = vcombine.low %v7401_v34, %v7405_v5  ;;  %2063 = vst.msk [vmem:[#allocation3] sm:$0xff] %vm2062_vm1, %v7251_v10 }
  0xe3   : > { %v2915_v19 = vsel %vm6740_vm11, %v2910_v38, %v2914_v22  ;;  %6504 = vrcp.f32 %v738_v30  ;;  %v7436_v52 = vpop.permute.xlu0 %4429  ;;  %v6403_v0 = vld [vmem:[#allocation2 + $0x30] sm:$0xff]   ;;  %v472_v29 = vld [vmem:[#allocation2 + $0xa4] sm:$0x1]  ;;  %v3301_v25 = vsel %vm6693_vm10, %v6034_v16, %v3300_v61  ;;  %2387 = vst.msk [vmem:[#allocation3] sm:$0xff] %vm2386_vm2, %v7243_v40  ;;  %v3788_v5 = vshll.u32 %v3638_v63, 16  ;;  %v6405_v40 = vld [vmem:[#allocation2 + $0x78] sm:$0xff]  }
  0xe4   : > { %v6018_v47 = vcombine.low %v2905_v46, %v2915_v19  ;;  %v6503_v62 = vpop.eup %6502  ;;  %8954 = vst [vmem:[#allocation14_spill] sm:$0xff] %v7436_v52  ;;  %v3304_v32 = vsel %vm6693_vm10, %v3302_v18, %v3303_v7  ;;  %6295 = vmatpush3.bf16.msra.mxu0 %v6399_v60  ;;  %1519 = vst.msk [vmem:[#allocation3 + $0x20] sm:$0xff] %vm8931_vm15, %v6403_v0  ;;  %v3775_v34 = vor.u32 %v7432_v39, %v7415_v24  ;;  %v7465_v42 = vld [vmem:[%s6657_s15 + $0x40] sm:$0xff]  ;;  %v7477_v46 = vld [vmem:[%s6657_s15 + $0x58] sm:$0xff]  ;;  %vm8928_vm6 = vcmask 326912  }
  0xe5   : > { %v833_v22 = vmul.f32 %v6503_v62, %v7211_v15  ;;  %v417_v15 = vsel %vm6646_vm3, 0, %v416_v33  ;;  %v7454_v23 = vpop.permute.xlu1 %3387  ;;  %v5887_v44 = vmul.f32 -1.442695, %v7391_v6  ;;  %6348 = vmatpush3.bf16.msra.mxu1 %v6399_v60  ;;  %v3785_v38 = vor.u32 %v3784_v36, %v7434_v3  ;;  %8955 = vst [vmem:[#allocation15_spill] sm:$0xff] %v7465_v42  ;;  %2564 = vst.msk [vmem:[#allocation3] sm:$0xff] %vm2563_vm4, %v7256_v14  ;;  %v7474_v60 = vld [vmem:[%s6657_s15 + $0x50] sm:$0xff] }
  0xe6   : > { %3567 = vrot.lane.b32.xlu1 %v6385_v58, %s6572_s27  ;;  %3082 = vrot.lane.b32.xlu0 %v6018_v47, %s6575_s11  ;;  %418 = vst [vmem:[#allocation2 + $0x9c] sm:$0x1] %v417_v15  ;;  %v5888_v50 = vmul.f32 -1.442695, %v7394_v41  ;;  %v473_v61 = vsel %vm6661_vm5, 0, %v472_v29  ;;  %v7468_v58 = vld [vmem:[%s6657_s15 + $0x48] sm:$0xff]  ;;  %v6050_v17 = vcombine.low %v3301_v25, %v3304_v32 }
  0xe7   : > { %v6163_v10 = vpack.c.bf16 %v833_v22, %v833_v22  ;;  %8956 = vst [vmem:[#allocation16_spill] sm:$0xff] %v7468_v58  ;;  %6506 = vpow2.f32 %v5887_v44  ;;  %474 = vst [vmem:[#allocation2 + $0xa4] sm:$0x1] %v473_v61  ;;  %v7480_v19 = vld [vmem:[%s6657_s15 + $0xa0] sm:$0xff]  ;;  %v7483_v30 = vld [vmem:[#allocation2 + $0x4c] sm:$0xf]  ;;  %v7491_v47 = vpop.permute.xlu0 %4431 }
  0xe8   : > { %8957 = vst [vmem:[#allocation17_spill] sm:$0xff] %v7474_v60  ;;  %8958 = vst [vmem:[#allocation18_spill] sm:$0xff] %v7477_v46  ;;  %6508 = vpow2.f32 %v5888_v50  ;;  %v7486_v7 = vld [vmem:[%s6657_s15 + $0xa8] sm:$0xff]  ;;  %v7489_v26 = vld [vmem:[%s6657_s15 + $0xb0] sm:$0xff]  ;;  %v7500_v36 = vrot.slane %v3775_v34, 4  ;;  %v7511_v25 = vrot.slane %v3785_v38, 4 }
  0xe9   : > { %v1054_v24 = vshrl.u32 %v6163_v10, 16  ;;  %v1057_v16 = vshll.u32 %v6163_v10, 16  ;;  %8959 = vst [vmem:[#allocation19_spill] sm:$0xff] %v7480_v19  ;;  %1525 = vst.msk [vmem:[#allocation3 + $0x50] sm:$0xff] %vm8931_vm15, %v6405_v40  ;;  %v7493_v14 = vpop.permute.xlu1 %3062  ;;  %v3654_v18 = vld [vmem:[#allocation2 + $0x90] sm:$0xf] }
  0xea   : > { %3401 = vrot.lane.b32.xlu0 %v6049_v53, %s6573_s28  ;;  %8960 = vst [vmem:[#allocation20_spill] sm:$0xff] %v7486_v7  ;;  %8961 = vst [vmem:[#allocation21_spill] sm:$0xff] %v7489_v26  ;;  %v7498_v33 = vld [vmem:[%s6657_s15 + $0xb8] sm:$0xff]  ;;  %v1316_v63 = vld [vmem:[#allocation2 + $0x54] sm:$0xf]  ;;  %v7513_v32 = vrot.slane %v3788_v5, 5 }
  0xeb   : > { %8962 = vst [vmem:[#allocation22_spill] sm:$0xff] %v7491_v47  ;;  %v7495_v39 = vrot.slane %v1054_v24, 7  ;;  %8963 = vst [vmem:[#allocation23_spill] sm:$0xff] %v7498_v33  ;;  %v6406_v62 = vld [vmem:[#allocation2 + $0x3c] sm:$0xff]   ;;  %v7508_v53 = vld [vmem:[%s6678_s18 + $0x68] sm:$0xff]   ;;  %v3913_v50 = vshrl.u32 %v3654_v18, 16 }
  0xec   : > { %v7505_v22 = vld [vmem:[%s6678_s18 + $0x38] sm:$0xff]   ;;  %v6387_v15 = vld [vmem:[#allocation2 + $0x90] sm:$0xff]   ;;  %v7516_v10 = vld [vmem:[#allocation2 + $0x48] sm:$0xe]  ;;  %1520 = vst.msk [vmem:[#allocation3 + $0x28] sm:$0xff] %vm8931_vm15, %v6406_v62  ;;  %v3916_v26 = vshll.u32 %v3654_v18, 16 }
  0xed   : > { %v1059_v29 = vor.u32 %v1057_v16, %v7495_v39  ;;  %v6505_v44 = vpop.eup %6504  ;;  %v7520_v40 = vld [vmem:[#allocation2 + $0x50] sm:$0x1]  ;;  %v1549_v61 = vld [vmem:[#allocation2 + $0x48] sm:$0xf]  ;;  %v7528_v16 = vpop.permute.xlu1 %4106  ;;  %v3655_v0 = vld [vmem:[#allocation2 + $0x94] sm:$0xf] }
  0xee   : > { %3403 = vrot.lane.b32.xlu0 %v6050_v17, %s6573_s28  ;;  %8964 = vst [vmem:[#allocation24_spill] sm:$0xff] %v7528_v16  ;;  %v834_v17 = vmul.f32 %v6505_v44, %v7214_v35  ;;  %v7540_v38 = vld [vmem:[#allocation2 + $0x98] sm:$0x1]  ;;  %v1550_v35 = vld [vmem:[#allocation2 + $0x4c] sm:$0xf]  ;;  %v8965_v45 = vrot.slane %v7483_v30, 5 }
  0xef   : > { %v1317_v62 = vsel %vm6875_vm13, %v1059_v29, %v1316_v63  ;;  %v7554_v18 = vrot.slane %v3913_v50, 4  ;;  %v3922_v5 = vshll.u32 %v3655_v0, 16  ;;  %v3926_v63 = vshrl.u32 %v3655_v0, 16  ;;  %v4199_v7 = vld [vmem:[#allocation2 + $0x90] sm:$0xe] }
  0xf0   : > { %1318 = vst [vmem:[#allocation2 + $0x54] sm:$0xf] %v1317_v62  ;;  %v2017_v44 = vpop.permute.xlu0 %2016  ;;  %v6164_v29 = vpack.c.bf16 %v834_v17, %v834_v17  ;;  %v3791_v62 = vsel %vm6740_vm11, %v7511_v25, %v7513_v32  ;;  %v7550_v34 = vrot.slane %v8965_v45, 4  ;;  %v7556_v17 = vld [vmem:[#allocation2 + $0x94] sm:$0xf]  ;;  %v1727_v33 = vshrl.u32 %v1549_v61, 16 }
  0xf1   : > { %2064 = vst.msk [vmem:[#allocation3 + $0x8] sm:$0xff] %vm2062_vm1, %v2017_v44  ;;  %v6507_v25 = vpop.eup %6506  ;;  %v3932_v45 = vshll.u32 %v7540_v38, 16  ;;  %v1730_v19 = vshll.u32 %v1549_v61, 16  ;;  %v3918_v24 = vrot.slane %v3916_v26, 5  ;;  %v1736_v0 = vshll.u32 %v1550_v35, 16 }
  0xf2   : > { %3579 = vrot.lane.b32.xlu0 %v6387_v15, %s6572_s27  ;;  %2388 = vst.msk [vmem:[#allocation3 + $0x8] sm:$0xff] %vm2386_vm2, %v7357_v21  ;;  %v1062_v32 = vshrl.u32 %v6164_v29, 16  ;;  %v1065_v15 = vshll.u32 %v6164_v29, 16  ;;  %v6509_v44 = vpop.eup %6508  ;;  %v749_v50 = vadd.f32 1.0, %v6507_v25  ;;  %v1740_v60 = vshrl.u32 %v1550_v35, 16 }
  0xf3   : > { %2565 = vst.msk [vmem:[#allocation3 + $0x8] sm:$0xff] %vm2563_vm4, %v7254_v31  ;;  %v1060_v55 = vrot.slane %v7495_v39, 4  ;;  %v750_v21 = vadd.f32 1.0, %v6509_v44  ;;  %v4201_v52 = vld [vmem:[#allocation2 + $0x98] sm:$0x1]  ;;  %v4337_v29 = vrot.slane %v7556_v17, 5 }
  0xf4   : > { %v2019_v46 = vpop.permute.xlu1 %2018  ;;  %v1064_v57 = vrot.slane %v1062_v32, 7  ;;  %v1551_v47 = vld [vmem:[#allocation2 + $0x50] sm:$0x1]  ;;  %v1320_v61 = vld [vmem:[#allocation2 + $0x5c] sm:$0x1]  ;;  %6510 = vrcp.f32 %v749_v50  ;;  %v7566_v31 = vrot.slane %v3922_v5, 5 }
  0xf5   : > { %2065 = vst.msk [vmem:[#allocation3 + $0x10] sm:$0xff] %vm2062_vm1, %v2019_v46  ;;  %v3928_v38 = vrot.slane %v3926_v63, 4  ;;  %v1729_v26 = vrot.slane %v1727_v33, 4  ;;  %6512 = vrcp.f32 %v750_v21  ;;  %v1732_v32 = vrot.slane %v1730_v19, 5  ;;  %v6409_v5 = vld [vmem:[#allocation2 + $0x84] sm:$0xff]  }
  0xf6   : > { %2389 = vst.msk [vmem:[#allocation3 + $0x10] sm:$0xff] %vm2386_vm2, %v7396_v56  ;;  %v1067_v35 = vor.u32 %v1065_v15, %v1064_v57  ;;  %v1069_v25 = vrot.slane %v1064_v57, 4  ;;  %v7572_v46 = vrot.slane %v1736_v0, 5  ;;  %v1742_v50 = vrot.slane %v1740_v60, 4  ;;  %v1358_v4 = vld [vmem:[#allocation2 + $0x9c] sm:$0xf] }
  0xf7   : > { %v3639_v39 = vld [vmem:[#allocation2 + $0x54] sm:$0xf]  ;;  %2566 = vst.msk [vmem:[#allocation3 + $0x10] sm:$0xff] %vm2563_vm4, %v7300_v43  ;;  %v3919_v57 = vor.u32 %v3918_v24, %v7554_v18  ;;  %v6097_v63 = vrot.slane %v4199_v7, 9  ;;  %v3929_v43 = vor.u32 %v3928_v38, %v7566_v31  ;;  %v4339_v19 = vrot.slane %v4337_v29, 4 }
  0xf8   : > { %v3793_v17 = vshrl.u32 %v3639_v39, 16  ;;  %v3796_v44 = vshll.u32 %v3639_v39, 16  ;;  %v1068_v33 = vsel %vm6881_vm14, %v1060_v55, %v1067_v35  ;;  %v1321_v56 = vsel %vm6646_vm3, %v1069_v25, %v1320_v61  ;;  %v1552_v15 = vld [vmem:[#allocation2 + $0x54] sm:$0xf]  ;;  %1526 = vst.msk [vmem:[#allocation3 + $0x58] sm:$0xff] %vm8931_vm15, %v6409_v5  ;;  %v7628_v5 = vpop.permute.xlu0 %3060 }
  0xf9   : > { %1319 = vst.msk [vmem:[#allocation2 + $0x58] sm:$0xf] %vm365_vm0, %v1068_v33  ;;  %1322 = vst [vmem:[#allocation2 + $0x5c] sm:$0x1] %v1321_v56  ;;  %v4340_v0 = vrot.slane %v4201_v52, 5  ;;  %v1746_v21 = vshll.u32 %v1551_v47, 16  ;;  %v8966_v55 = vsel %vm6740_vm11, %v7500_v36, %v7434_v3  ;;  %v1733_v18 = vor.u32 %v1732_v32, %v1729_v26 }
  0xfa   : > { %v7587_v60 = vcombine.low %v8966_v55, %v3791_v62  ;;  %v3795_v24 = vrot.slane %v3793_v17, 4  ;;  %v3798_v7 = vrot.slane %v3796_v44, 5  ;;  %v7589_v61 = vld [vmem:[#allocation2 + $0x48] sm:$0xe]  ;;  %v7591_v35 = vld [vmem:[#allocation2 + $0x4c] sm:$0xf]  ;;  %v1743_v25 = vor.u32 %v1742_v50, %v7572_v46 }
  0xfb   : > { %v8967_v38 = vrot.slane %v7483_v30, 5  ;;  %v8968_v52 = vrot.slane %v7516_v10, 9  ;;  %v1751_v3 = vshrl.u32 %v1552_v15, 16  ;;  %v1754_v36 = vshll.u32 %v1552_v15, 16  ;;  %v7602_v62 = vld [vmem:[#allocation2 + $0x50] sm:$0x1] }
  0xfc   : > { %v8969_v26 = vrot.slane %v7520_v40, 5  ;;  %v7611_v30 = vrot.slane %v3919_v57, 4  ;;  %v7613_v10 = vrot.slane %v3932_v45, 5  ;;  %v7617_v32 = vsel %vm6693_vm10, %v6097_v63, %v4337_v29  ;;  %v1567_v17 = vld [vmem:[#allocation2 + $0x90] sm:$0xf]  ;;  %3110 = vst.msk [vmem:[#allocation3 + $0x8] sm:$0xff] %vm8928_vm6, %v7493_v14 }
  0xfd   : > { %v7599_v47 = vsel %vm6693_vm10, %v8968_v52, %v8967_v38  ;;  %v7619_v44 = vrot.slane %v3929_v43, 4  ;;  %v7623_v50 = vsel %vm6693_vm10, %v4339_v19, %v4340_v0  ;;  %v7625_v40 = vrot.slane %v1746_v21, 5  ;;  %v1568_v19 = vld [vmem:[#allocation2 + $0x94] sm:$0xf]  ;;  %3109 = vst.msk [vmem:[#allocation3] sm:$0xff] %vm8928_vm6, %v7628_v5 }
  0xfe   : > { %v7609_v39 = vsel %vm6693_vm10, %v7550_v34, %v8969_v26  ;;  %v3799_v33 = vor.u32 %v3798_v7, %v3795_v24  ;;  %v7630_v45 = vrot.slane %v1733_v18, 4  ;;  %v6511_v57 = vpop.eup %6510  ;;  %v7634_v63 = vrot.slane %v1743_v25, 4  ;;  %v7645_v25 = vpop.permute.xlu1 %3066 }
  0xff   : > { %v7636_v15 = vrot.slane %v1751_v3, 4  ;;  %v7638_v43 = vrot.slane %v1754_v36, 5  ;;  %v1871_v0 = vshrl.u32 %v1567_v17, 16  ;;  %v6513_v21 = vpop.eup %6512  ;;  %v845_v7 = vmul.f32 %v6511_v57, %v7391_v6 }
 0x100   : > { %v6386_v55 = vld [vmem:[#allocation2 + $0x54] sm:$0xff]   ;;  %v1874_v52 = vshll.u32 %v1567_v17, 16  ;;  %v3641_v3 = vld [vmem:[#allocation2 + $0x5c] sm:$0x1]  ;;  %v846_v29 = vmul.f32 %v6513_v21, %v7394_v41  ;;  %v3800_v6 = vrot.slane %v3799_v33, 4  ;;  %v1880_v21 = vshll.u32 %v1568_v19, 16 }
 0x101   : > { %v3640_v38 = vld [vmem:[#allocation2 + $0x58] sm:$0xf]  ;;  %3569 = vrot.lane.b32.xlu1 %v6386_v55, %s6572_s27  ;;  %v3812_v57 = vshll.u32 %v3641_v3, 16  ;;  %v6175_v24 = vpack.c.bf16 %v845_v7, %v845_v7  ;;  %v1884_v58 = vshrl.u32 %v1568_v19, 16  ;;  %v1873_v7 = vrot.slane %v1871_v0, 4 }
 0x102   : > { %v3802_v26 = vshll.u32 %v3640_v38, 16  ;;  %v3806_v36 = vshrl.u32 %v3640_v38, 16  ;;  %v1553_v56 = vld [vmem:[#allocation2 + $0x58] sm:$0xf]  ;;  %v6176_v11 = vpack.c.bf16 %v846_v29, %v846_v29  ;;  %v7653_v42 = vpop.permute.xlu0 %4104  ;;  %v1876_v29 = vrot.slane %v1874_v52, 5 }
 0x103   : > { %v1760_v18 = vshll.u32 %v1553_v56, 16  ;;  %v1764_v16 = vshrl.u32 %v1553_v56, 16  ;;  %8970 = vst [vmem:[#allocation25_spill] sm:$0xff] %v7653_v42  ;;  %v1156_v38 = vshrl.u32 %v6175_v24, 16  ;;  %v1159_v41 = vshll.u32 %v6175_v24, 16 }
 0x104   : > { %v3804_v17 = vrot.slane %v3802_v26, 5  ;;  %v3808_v2 = vrot.slane %v3806_v36, 4  ;;  %v3814_v49 = vrot.slane %v3812_v57, 5  ;;  %v1164_v34 = vshrl.u32 %v6176_v11, 16  ;;  %v1554_v57 = vld [vmem:[#allocation2 + $0x5c] sm:$0x1] }
 0x105   : > { %v1167_v27 = vshll.u32 %v6176_v11, 16  ;;  %4112 = vrot.lane.b32.xlu1 %v7587_v60, %s6576_s12  ;;  %v1158_v33 = vrot.slane %v1156_v38, 7  ;;  %v7657_v55 = vrot.slane %v1760_v18, 5  ;;  %v7659_v56 = vpop.permute.xlu1 %4110  ;;  %v1766_v26 = vrot.slane %v1764_v16, 4 }
 0x106   : > { %v3809_v51 = vor.u32 %v3808_v2, %v3804_v17  ;;  %8971 = vst [vmem:[#allocation26_spill] sm:$0xff] %v7659_v56  ;;  %v3805_v24 = vsel %vm6740_vm11, %v3800_v6, %v3804_v17  ;;  %v1166_v19 = vrot.slane %v1164_v34, 7  ;;  %v1362_v2 = vld [vmem:[#allocation2 + $0xa4] sm:$0x1]  ;;  %v8972_v42 = vrot.slane %v7591_v35, 5 }
 0x107   : > { %v1161_v36 = vor.u32 %v1159_v41, %v1158_v33  ;;  %v1162_v11 = vrot.slane %v1158_v33, 4  ;;  %v7665_v38 = vrot.slane %v1880_v21, 5  ;;  %v1569_v56 = vld [vmem:[#allocation2 + $0x98] sm:$0x1]  ;;  %v1886_v54 = vrot.slane %v1884_v58, 4 }
 0x108   : > { %v3810_v3 = vrot.slane %v3809_v51, 4  ;;  %v2224_v60 = vrot.slane %v8972_v42, 4  ;;  %v1169_v18 = vor.u32 %v1167_v27, %v1166_v19  ;;  %v1171_v52 = vrot.slane %v1166_v19, 4  ;;  %v4185_v17 = vld [vmem:[#allocation2 + $0x58] sm:$0xf] }
 0x109   : > { %v1359_v16 = vsel %vm6875_vm13, %v1161_v36, %v1358_v4  ;;  %v1757_v34 = vor.u32 %v7638_v43, %v7636_v15  ;;  %v1877_v41 = vor.u32 %v1876_v29, %v1873_v7  ;;  %v401_v42 = vld [vmem:[#allocation2 + $0x60] sm:$0x1]  ;;  %v1767_v58 = vor.u32 %v1766_v26, %v7657_v55  ;;  %v2115_v33 = vld [vmem:[#allocation2 + $0x90] sm:$0xe]  ;;  %v2116_v4 = vld [vmem:[#allocation2 + $0x94] sm:$0xf] }
 0x10a   : > { %v3815_v0 = vsel %vm6740_vm11, %v3810_v3, %v3814_v49  ;;  %v2021_v6 = vpop.permute.xlu0 %2020  ;;  %v1170_v49 = vsel %vm6881_vm14, %v1162_v11, %v1169_v18  ;;  %1360 = vst [vmem:[#allocation2 + $0x9c] sm:$0xf] %v1359_v16  ;;  %v1363_v27 = vsel %vm6646_vm3, %v1171_v52, %v1362_v2  ;;  %v1770_v21 = vshll.u32 %v1554_v57, 16  ;;  %v4184_v7 = vld [vmem:[#allocation2 + $0x54] sm:$0xe] }
 0x10b   : > { %v6076_v51 = vcombine.low %v3805_v24, %v3815_v0  ;;  %2066 = vst.msk [vmem:[#allocation3 + $0x18] sm:$0xff] %vm2062_vm1, %v2021_v6  ;;  %1364 = vst [vmem:[#allocation2 + $0xa4] sm:$0x1] %v1363_v27  ;;  %v3935_v15 = vsel %vm6740_vm11, %v7619_v44, %v7613_v10  ;;  %v1739_v43 = vsel %vm6740_vm11, %v7630_v45, %v7572_v46  ;;  %v1890_v29 = vshll.u32 %v1569_v56, 16  ;;  %v4186_v56 = vld [vmem:[#allocation2 + $0x5c] sm:$0x1] }
 0x10c   : > { %2390 = vst.msk [vmem:[#allocation3 + $0x18] sm:$0xff] %vm2386_vm2, %v7428_v8  ;;  %v1749_v8 = vsel %vm6740_vm11, %v7634_v63, %v7625_v40  ;;  %v4302_v3 = vrot.slane %v4185_v17, 5  ;;  %v8973_v19 = vrot.slane %v7591_v35, 5  ;;  %v8974_v10 = vrot.slane %v7589_v61, 9  ;;  %v2117_v63 = vld [vmem:[#allocation2 + $0x98] sm:$0x1] }
 0x10d   : > { %4114 = vrot.lane.b32.xlu1 %v6076_v51, %s6576_s12  ;;  %1361 = vst.msk [vmem:[#allocation2 + $0xa0] sm:$0xf] %vm365_vm0, %v1170_v49  ;;  %v2023_v24 = vpop.permute.xlu1 %2022  ;;  %v8975_v46 = vrot.slane %v7602_v62, 5  ;;  %v1887_v45 = vor.u32 %v1886_v54, %v7665_v38  ;;  %v5971_v35 = vrot.slane %v2115_v33, 9  ;;  %v2264_v2 = vrot.slane %v2116_v4, 5 }
 0x10e   : > { %2567 = vst.msk [vmem:[#allocation3 + $0x18] sm:$0xff] %vm2563_vm4, %v7310_v20  ;;  %v7703_v44 = vsel %vm6693_vm10, %v8974_v10, %v8973_v19  ;;  %v1758_v20 = vrot.slane %v1757_v34, 4  ;;  %v402_v61 = vsel %vm6646_vm3, 0, %v401_v42  ;;  %v1768_v26 = vrot.slane %v1767_v58, 4  ;;  %v7738_v42 = vld [vmem:[%s8910_s2] ss:$0 sm:$0xff] }
 0x10f   : > { %v7709_v40 = vsel %vm6693_vm10, %v2224_v60, %v8975_v46  ;;  %2067 = vst.msk [vmem:[#allocation3 + $0x20] sm:$0xff] %vm2062_vm1, %v2023_v24  ;;  %v1772_v36 = vrot.slane %v1770_v21, 5  ;;  %v6092_v11 = vrot.slane %v4184_v7, 9  ;;  %v1878_v62 = vrot.slane %v1877_v41, 4  ;;  %403 = vst [vmem:[#allocation2 + $0x60] sm:$0x1] %v402_v61 }
 0x110   : > { %v8976_v57 = vcombine.low %v7599_v47, %v7609_v39  ;;  %v8977_v54 = vsel %vm6740_vm11, %v7611_v30, %v7566_v31  ;;  %v7724_v0 = vcombine.low %v1739_v43, %v1749_v8  ;;  %v5981_v18 = vcombine.low %v7703_v44, %v7709_v40  ;;  %v2100_v30 = vld [vmem:[#allocation2 + $0x54] sm:$0xe]  ;;  %v2101_v41 = vld [vmem:[#allocation2 + $0x58] sm:$0xf]  ;;  %3112 = vst.msk [vmem:[#allocation3 + $0x18] sm:$0xff] %vm8928_vm6, %v7645_v25 }
 0x111   : > { %v6081_v60 = vcombine.low %v8977_v54, %v3935_v15  ;;  %v1892_v52 = vrot.slane %v1890_v29, 5  ;;  %v4304_v6 = vrot.slane %v4302_v3, 4  ;;  %v4305_v51 = vrot.slane %v4186_v56, 5  ;;  %v3657_v17 = vld [vmem:[#allocation2 + $0x9c] sm:$0xf] }
 0x112   : > { %4433 = vrot.lane.b32.xlu1 %v8976_v57, %s6574_s29  ;;  %v1888_v16 = vrot.slane %v1887_v45, 4  ;;  %v2267_v34 = vrot.slane %v2117_v63, 5  ;;  %v1763_v47 = vsel %vm6740_vm11, %v1758_v20, %v7657_v55  ;;  %v7733_v39 = vsel %vm6693_vm10, %v5971_v35, %v2264_v2  ;;  %v7752_v43 = vpop.permute.xlu0 %3064  ;;  %v3659_v8 = vld [vmem:[#allocation2 + $0xa4] sm:$0x1]  ;;  %v1570_v61 = vld [vmem:[#allocation2 + $0x9c] sm:$0xf] }
 0x113   : > { %v2266_v31 = vrot.slane %v2264_v2, 4  ;;  %v8978_v49 = vunpack.c.l.bf16 %v7505_v22  ;;  %v3937_v33 = vshrl.u32 %v3657_v17, 16  ;;  %v1773_v55 = vsel %vm6740_vm11, %v1768_v26, %v1772_v36  ;;  %3111 = vst.msk [vmem:[#allocation3 + $0x10] sm:$0xff] %vm8928_vm6, %v7752_v43  ;;  %v419_v25 = vld [vmem:[#allocation2 + $0xa8] sm:$0x1] }
 0x114   : > { %v6389_v58 = vld [vmem:[#allocation2 + $0x9c] sm:$0xff]   ;;  %v7747_v4 = vsel %vm6693_vm10, %v6092_v11, %v4302_v3  ;;  %v1883_v15 = vsel %vm6740_vm11, %v1878_v62, %v7665_v38  ;;  %v3940_v7 = vshll.u32 %v3657_v17, 16  ;;  %v8979_v19 = vunpack.c.h.bf16 %v7505_v22 }
 0x115   : > { %v572_v27 = vmul.f32 %v7738_v42, %v8978_v49  ;;  %v3658_v21 = vld [vmem:[#allocation2 + $0xa0] sm:$0xf]  ;;  %3581 = vrot.lane.b32.xlu0 %v6389_v58, %s6572_s27  ;;  %v3939_v46 = vrot.slane %v3937_v33, 4  ;;  %v3956_v45 = vshll.u32 %v3659_v8, 16  ;;  %v4306_v3 = vsel %vm6693_vm10, %v4304_v6, %v4305_v51  ;;  %v2102_v22 = vld [vmem:[#allocation2 + $0x5c] sm:$0x1] }
 0x116   : > { %v3946_v29 = vshll.u32 %v3658_v21, 16  ;;  %v3950_v24 = vshrl.u32 %v3658_v21, 16  ;;  %v573_v10 = vmul.f32 %v7738_v42, %v8979_v19  ;;  %v1893_v38 = vsel %vm6740_vm11, %v1888_v16, %v1892_v52  ;;  %v7771_v11 = vld [vmem:[%s8911_s3] ss:$0 sm:$0xff] }
 0x117   : > { %v3942_v63 = vrot.slane %v3940_v7, 5  ;;  %v7764_v35 = vsel %vm6693_vm10, %v2266_v31, %v2267_v34  ;;  %v7766_v2 = vcombine.low %v1763_v47, %v1773_v55  ;;  %v5966_v26 = vrot.slane %v2100_v30, 9  ;;  %v1571_v6 = vld [vmem:[#allocation2 + $0xa0] sm:$0xf]  ;;  %v7785_v31 = vld [vmem:[#allocation2 + $0x54] sm:$0xf] }
 0x118   : > { %v3948_v20 = vrot.slane %v3946_v29, 5  ;;  %v3952_v56 = vrot.slane %v3950_v24, 4  ;;  %v2229_v36 = vrot.slane %v2101_v41, 5  ;;  %v7774_v62 = vadd.f32 %v7771_v11, %v572_v27  ;;  %v7789_v21 = vld [vmem:[#allocation2 + $0xa0] sm:$0xf] }
 0x119   : > { %v3943_v57 = vor.u32 %v3942_v63, %v3939_v46  ;;  %v3958_v52 = vrot.slane %v3956_v45, 5  ;;  %v7777_v51 = vadd.f32 %v7771_v11, %v573_v10  ;;  %4124 = vrot.lane.b32.xlu0 %v6081_v60, %s6576_s12  ;;  %v6108_v16 = vcombine.low %v7747_v4, %v4306_v3  ;;  %v7805_v46 = vld [vmem:[#allocation2 + $0x58] sm:$0xf]  ;;  %v4202_v63 = vld [vmem:[#allocation2 + $0x9c] sm:$0xe] }
 0x11a   : > { %v3953_v54 = vor.u32 %v3952_v56, %v3948_v20  ;;  %v7781_v34 = vcombine.low %v1883_v15, %v1893_v38  ;;  %v5987_v17 = vcombine.low %v7733_v39, %v7764_v35  ;;  %v2232_v47 = vrot.slane %v2102_v22, 5  ;;  %v7787_v30 = vpop.permute.xlu0 %4108 }
 0x11b   : > { %v3944_v41 = vrot.slane %v3943_v57, 4  ;;  %v1895_v27 = vshrl.u32 %v1570_v61, 16  ;;  %v1898_v58 = vshll.u32 %v1570_v61, 16  ;;  %v1904_v33 = vshll.u32 %v1571_v6, 16  ;;  %v7822_v57 = vld [vmem:[#allocation2 + $0xa4] sm:$0x1] }
 0x11c   : > { %v3954_v49 = vrot.slane %v3953_v54, 4  ;;  %v1908_v60 = vshrl.u32 %v1571_v6, 16  ;;  %v2231_v55 = vrot.slane %v2229_v36, 4  ;;  %v6238_v4 = vunpack.c.h.bf16 %v7508_v53 }
 0x11d   : > { %v3949_v15 = vsel %vm6740_vm11, %v3944_v41, %v3948_v20  ;;  %v5877_v7 = vmul.f32 -1.442695, %v7774_v62  ;;  %v5878_v29 = vmul.f32 -1.442695, %v7777_v51  ;;  %2026 = vrot.lane.b32.xlu0 %v7724_v0, %s6570_s25  ;;  %v4344_v19 = vrot.slane %v7789_v21, 5 }
 0x11e   : > { %v3959_v8 = vsel %vm6740_vm11, %v3954_v49, %v3958_v52  ;;  %v7803_v10 = vsel %vm6693_vm10, %v5966_v26, %v2229_v36  ;;  %v2773_v45 = vshrl.u32 %v7785_v31, 16  ;;  %v7808_v3 = vrot.slane %v1895_v27, 4  ;;  %v4204_v20 = vld [vmem:[#allocation2 + $0xa4] sm:$0x1]  ;;  %v7834_v21 = vld [vmem:[#allocation2 + $0x5c] sm:$0x1] }
 0x11f   : > { %v6082_v24 = vcombine.low %v3949_v15, %v3959_v8  ;;  %v7810_v38 = vrot.slane %v1898_v58, 5  ;;  %6514 = vpow2.f32 %v5877_v7  ;;  %v8980_v56 = vunpack.c.l.bf16 %v7508_v53  ;;  %v2025_v22 = vpop.permute.xlu0 %2024  ;;  %v8987_v15 = vld [vmem:[#allocation16_spill] sm:$0xff]  ;;  %v8988_v8 = vld [vmem:[#allocation15_spill] sm:$0xff] }
 0x120   : > { %v7816_v61 = vrot.slane %v1904_v33, 5  ;;  %v7818_v26 = vrot.slane %v1908_v60, 4  ;;  %6516 = vpow2.f32 %v5878_v29  ;;  %v2776_v36 = vshll.u32 %v7785_v31, 16  ;;  %2068 = vst.msk [vmem:[#allocation3 + $0x28] sm:$0xff] %vm2062_vm1, %v2025_v22  ;;  %v457_v31 = vld [vmem:[#allocation2 + $0x68] sm:$0x1] }
 0x121   : > { %v584_v0 = vmul.f32 %v7738_v42, %v8980_v56  ;;  %4126 = vrot.lane.b32.xlu1 %v6082_v24, %s6576_s12  ;;  %v7826_v54 = vsel %vm6693_vm10, %v2231_v55, %v2232_v47  ;;  %v2782_v53 = vshll.u32 %v7805_v46, 16  ;;  %v2786_v52 = vshrl.u32 %v7805_v46, 16  ;;  %4435 = vrot.lane.b32.xlu0 %v6108_v16, %s6574_s29  ;;  %v8992_v56 = vld [vmem:[#allocation26_spill] sm:$0xff]  ;;  %v8993_v22 = vld [vmem:[#allocation13_spill] sm:$0xff] }
 0x122   : > { %v585_v6 = vmul.f32 %v7738_v42, %v6238_v4  ;;  %v6098_v41 = vrot.slane %v4202_v63, 9  ;;  %v4346_v49 = vrot.slane %v4344_v19, 4  ;;  %v4347_v27 = vrot.slane %v4204_v20, 5  ;;  %v8986_v4 = vld [vmem:[#allocation10_spill] sm:$0xff]  ;;  %v8990_v63 = vld [vmem:[#allocation24_spill] sm:$0xff]  ;;  %v8991_v20 = vld [vmem:[#allocation25_spill] sm:$0xff] }
 0x123   : > { %v1901_v58 = vor.u32 %v7810_v38, %v7808_v3  ;;  %vm3429_vm7 = vcmask 392512   ;;  %vm3607_vm8 = vcmask 458112   ;;  %v7841_v16 = vadd.f32 %v7771_v11, %v584_v0  ;;  %v2347_v47 = vpop.permute.xlu0 %2346  ;;  %v7892_v38 = vld [vmem:[#allocation2 + $0xa0] sm:$0xf] }
 0x124   : > { %v8981_v33 = vcombine.low %v7617_v32, %v7623_v50  ;;  %v1911_v14 = vor.u32 %v7818_v26, %v7816_v61  ;;  %v1914_v5 = vshll.u32 %v7822_v57, 16  ;;  %vm4152_vm9 = vcmask 523712   ;;  %3431 = vst.msk [vmem:[#allocation3 + $0x8] sm:$0xff] %vm3429_vm7, %v7379_v37  ;;  %3430 = vst.msk [vmem:[#allocation3] sm:$0xff] %vm3429_vm7, %v7334_v13  ;;  %v7863_v32 = vld [vmem:[%s6678_s18 + $0x40] sm:$0xff]   ;;  %v2035_v50 = vpop.permute.xlu1 %2034  ;;  %v8994_v57 = vld [vmem:[#allocation12_spill] sm:$0xff] }
 0x125   : > { %vm4473_vm12 = vcmask 589312   ;;  %3433 = vst.msk [vmem:[#allocation3 + $0x18] sm:$0xff] %vm3429_vm7, %v7454_v23  ;;  %3432 = vst.msk [vmem:[#allocation3 + $0x10] sm:$0xff] %vm3429_vm7, %v7408_v12  ;;  %v7866_v43 = vrot.slane %v2773_v45, 4  ;;  %v7868_v60 = vrot.slane %v2776_v36, 5  ;;  %vm8929_vm6 = vcmask 622144  }
 0x126   : > { %4445 = vrot.lane.b32.xlu1 %v8981_v33, %s6574_s29  ;;  %2391 = vst.msk [vmem:[#allocation3 + $0x20] sm:$0xff] %vm2386_vm2, %v2347_v47  ;;  %v8982_v37 = vld [vmem:[#allocation9_spill] sm:$0xff]  ;;  %v458_v55 = vsel %vm6661_vm5, 0, %v457_v31  ;;  %v8984_v23 = vld [vmem:[#allocation8_spill] sm:$0xff]  ;;  %v8985_v12 = vld [vmem:[#allocation11_spill] sm:$0xff]  ;;  %v8989_v7 = vpack.c.bf16 %v8987_v15, %v8988_v8  ;;  %v4345_v29 = vsel %vm6693_vm10, %v6098_v41, %v4344_v19  ;;  %v4348_v24 = vsel %vm6693_vm10, %v4346_v49, %v4347_v27 }
 0x127   : > { %3609 = vst.msk [vmem:[#allocation3 + $0x8] sm:$0xff] %vm3607_vm8, %v8982_v37  ;;  %3608 = vst.msk [vmem:[#allocation3] sm:$0xff] %vm3607_vm8, %v8984_v23  ;;  %v5982_v45 = vcombine.low %v7803_v10, %v7826_v54  ;;  %v2792_v3 = vshll.u32 %v7834_v21, 16  ;;  %v7903_v19 = vld [vmem:[%s6678_s18 + $0x70] sm:$0xff]   ;;  %v1902_v0 = vrot.slane %v1901_v58, 4  ;;  %v420_v26 = vsel %vm6646_vm3, 0, %v419_v25 }
 0x128   : > { %3611 = vst.msk [vmem:[#allocation3 + $0x18] sm:$0xff] %vm3607_vm8, %v8985_v12  ;;  %3610 = vst.msk [vmem:[#allocation3 + $0x10] sm:$0xff] %vm3607_vm8, %v8986_v4  ;;  %4562 = vrot.lane.b32.xlu0 %v8989_v7, %s6568_s21  ;;  %v7910_v36 = vadd.f32 %v7771_v11, %v585_v6  ;;  %v8995_v41 = vld [vmem:[#allocation22_spill] sm:$0xff]  ;;  %v1912_v27 = vrot.slane %v1911_v14, 4  ;;  %v1916_v31 = vrot.slane %v1914_v5, 5  ;;  %v8997_v47 = vld [vmem:[#allocation7_spill] sm:$0xff]  ;;  %v6114_v14 = vcombine.low %v4345_v29, %v4348_v24 }
 0x129   : > { %2073 = vst.msk [vmem:[#allocation3 + $0x50] sm:$0xff] %vm2062_vm1, %v2035_v50  ;;  %459 = vst [vmem:[#allocation2 + $0x68] sm:$0x1] %v458_v55  ;;  %v8996_v49 = vld [vmem:[#allocation14_spill] sm:$0xff]  ;;  %v2118_v58 = vld [vmem:[#allocation2 + $0x9c] sm:$0xe]  ;;  %v6218_v50 = vunpack.c.h.bf16 %v7863_v32  ;;  %v4561_v55 = vpop.permute.xlu1 %4560  ;;  %v2779_v5 = vor.u32 %v7868_v60, %v7866_v43  ;;  %v1907_v60 = vsel %vm6740_vm11, %v1902_v0, %v7816_v61 }
 0x12a   : > { %4154 = vst.msk [vmem:[#allocation3 + $0x8] sm:$0xff] %vm4152_vm9, %v8990_v63  ;;  %4153 = vst.msk [vmem:[#allocation3] sm:$0xff] %vm4152_vm9, %v8991_v20  ;;  %2028 = vrot.lane.b32.xlu1 %v7766_v2, %s6570_s25  ;;  %v5889_v6 = vmul.f32 -1.442695, %v7841_v16  ;;  %v8998_v33 = vld [vmem:[#allocation5_spill] sm:$0xff]  ;;  %v8999_v37 = vld [vmem:[#allocation6_spill] sm:$0xff]  ;;  %v6515_v2 = vpop.eup %6514  ;;  %v1917_v46 = vsel %vm6740_vm11, %v1912_v27, %v1916_v31  ;;  %v6242_v31 = vunpack.c.h.bf16 %v7903_v19 }
 0x12b   : > { %4156 = vst.msk [vmem:[#allocation3 + $0x18] sm:$0xff] %vm4152_vm9, %v8992_v56  ;;  %4155 = vst.msk [vmem:[#allocation3 + $0x10] sm:$0xff] %vm4152_vm9, %v7787_v30  ;;  %v6217_v30 = vunpack.c.l.bf16 %v7863_v32  ;;  %v475_v25 = vld [vmem:[#allocation2 + $0xb0] sm:$0x1]  ;;  %v7933_v23 = vrot.slane %v2782_v53, 5  ;;  %v6517_v32 = vpop.eup %6516  ;;  %v739_v15 = vadd.f32 1.0, %v6515_v2 }
 0x12c   : > { %4475 = vst.msk [vmem:[#allocation3 + $0x8] sm:$0xff] %vm4473_vm12, %v8993_v22  ;;  %4474 = vst.msk [vmem:[#allocation3] sm:$0xff] %vm4473_vm12, %v8994_v57  ;;  %v7935_v12 = vld [vmem:[#allocation2 + $0xa4] sm:$0x1]  ;;  %v5890_v4 = vmul.f32 -1.442695, %v7910_v36  ;;  %2038 = vrot.lane.b32.xlu0 %v7781_v34, %s6570_s25  ;;  %6518 = vpow2.f32 %v5889_v6  ;;  %v6241_v34 = vunpack.c.l.bf16 %v7903_v19  ;;  %v5956_v22 = vcombine.low %v1907_v60, %v1917_v46 }
 0x12d   : > { %4477 = vst.msk [vmem:[#allocation3 + $0x18] sm:$0xff] %vm4473_vm12, %v8995_v41  ;;  %4476 = vst.msk [vmem:[#allocation3 + $0x10] sm:$0xff] %vm4473_vm12, %v8996_v49  ;;  %v2788_v8 = vrot.slane %v2786_v52, 4  ;;  %v2271_v43 = vrot.slane %v7892_v38, 5  ;;  %v6402_v53 = vld [vmem:[%s8912_s4 + $0x20] sm:$0x3f]   ;;  %v2349_v38 = vpop.permute.xlu1 %2348  ;;  %v574_v57 = vmul.f32 %v7738_v42, %v6217_v30  ;;  %v575_v41 = vmul.f32 %v7738_v42, %v6218_v50 }
 0x12e   : > { %4604 = vst.msk [vmem:[#allocation3 + $0x8] sm:$0xff] %vm8929_vm6, %v8997_v47  ;;  %421 = vst [vmem:[#allocation2 + $0xa8] sm:$0x1] %v420_v26  ;;  %v740_v7 = vadd.f32 1.0, %v6517_v32  ;;  %6520 = vpow2.f32 %v5890_v4  ;;  %v404_v29 = vld [vmem:[#allocation2 + $0x6c] sm:$0x1]  ;;  %2350 = vrot.lane.b32.xlu1 %v5981_v18, %s6569_s24 }
 0x12f   : > { %4603 = vst.msk [vmem:[#allocation3] sm:$0xff] %vm8929_vm6, %v8998_v33  ;;  %4605 = vst.msk [vmem:[#allocation3 + $0x10] sm:$0xff] %vm8929_vm6, %v8999_v37  ;;  %6522 = vrcp.f32 %v739_v15  ;;  %v5972_v52 = vrot.slane %v2118_v58, 9  ;;  %v2274_v24 = vrot.slane %v7935_v12, 5  ;;  %v7958_v61 = vrot.slane %v2779_v5, 4  ;;  %v9000_v58 = vld [vmem:[#allocation18_spill] sm:$0xff] }
 0x130   : > { %4606 = vst.msk [vmem:[#allocation3 + $0x18] sm:$0xff] %vm8929_vm6, %v4561_v55  ;;  %6524 = vrcp.f32 %v740_v7  ;;  %v2616_v63 = vld [vmem:[#allocation2 + $0x9c] sm:$0xf]  ;;  %v476_v20 = vsel %vm6661_vm5, 0, %v475_v25  ;;  %vm4730_vm6 = vcmask 1045504   ;;  %4447 = vrot.lane.b32.xlu0 %v6114_v14, %s6574_s29  ;;  %v2789_v44 = vor.u32 %v2788_v8, %v7933_v23  ;;  %v9001_v47 = vld [vmem:[#allocation17_spill] sm:$0xff] }
 0x131   : > { %2392 = vst.msk [vmem:[#allocation3 + $0x28] sm:$0xff] %vm2386_vm2, %v2349_v38  ;;  %v2273_v40 = vrot.slane %v2271_v43, 4  ;;  %477 = vst [vmem:[#allocation2 + $0xb0] sm:$0x1] %v476_v20  ;;  %6350 = vmatprep.subr.msk.bf16.mxu0 %vm4730_vm6, %v6402_v53  ;;  %v4732_v18 = vsel %vm4730_vm6, %v6402_v53, 0  ;;  %v405_v56 = vsel %vm6646_vm3, 0, %v404_v29  ;;  %6351 = vmatprep.subr.msk.bf16.mxu1 %vm4730_vm6, %v6402_v53  ;;  %v9002_v6 = vpack.c.bf16 %v9000_v58, %v9001_v47  ;;  %v2524_v37 = vpop.permute.xlu1 %2523 }
 0x132   : > { %v460_v0 = vld [vmem:[#allocation2 + $0x74] sm:$0x1]  ;;  %v7969_v26 = vld [vmem:[#allocation2 + $0xa0] sm:$0xf]  ;;  %6297 = vmatpush3.bf16.msra.mxu0 %v4732_v18  ;;  %406 = vst [vmem:[#allocation2 + $0x6c] sm:$0x1] %v405_v56  ;;  %v7985_v30 = vsel %vm6693_vm10, %v5972_v52, %v2271_v43  ;;  %6349 = vmatpush3.bf16.msra.mxu1 %v4732_v18  ;;  %v7990_v14 = vadd.f32 %v7771_v11, %v574_v57 }
 0x133   : > { %v422_v27 = vld [vmem:[#allocation2 + $0xb4] sm:$0x1]  ;;  %4564 = vrot.lane.b32.xlu1 %v9002_v6, %s6568_s21  ;;  %v7981_v33 = vrot.slane %v2792_v3, 5  ;;  %v2917_v25 = vshrl.u32 %v2616_v63, 16  ;;  %v2920_v50 = vshll.u32 %v2616_v63, 16  ;;  %v7993_v5 = vadd.f32 %v7771_v11, %v575_v41  ;;  %2568 = vst.msk [vmem:[#allocation3 + $0x20] sm:$0xff] %vm2563_vm4, %v2524_v37 }
 0x134   : > { %v478_v55 = vld [vmem:[#allocation2 + $0xbc] sm:$0x1]  ;;  %v7987_v2 = vld [vmem:[#allocation2 + $0x58] sm:$0xf]  ;;  %vm8930_vm6 = vcmask 621568   ;;  %v461_v21 = vsel %vm6661_vm5, 0, %v460_v0  ;;  %v2785_v15 = vsel %vm6740_vm11, %v7958_v61, %v7933_v23  ;;  %v8010_v43 = vsel %vm6693_vm10, %v2273_v40, %v2274_v24 }
 0x135   : > { %v9003_v12 = vld [vmem:[#allocation20_spill] sm:$0xff]  ;;  %v9004_v4 = vld [vmem:[#allocation19_spill] sm:$0xff]  ;;  %v8006_v8 = vrot.slane %v2789_v44, 4  ;;  %v2926_v53 = vshll.u32 %v7969_v26, 16  ;;  %v4620_v60 = vld [vmem:[#allocation3 + $0x8] sm:$0xff]  ;;  %v2930_v7 = vshrl.u32 %v7969_v26, 16  ;;  %v586_v63 = vmul.f32 %v7738_v42, %v6241_v34 }
 0x136   : > { %v4619_v49 = vld [vmem:[#allocation3] sm:$0xff]  ;;  %v4621_v3 = vld [vmem:[#allocation3 + $0x10] sm:$0xff]  ;;  %v9005_v32 = vpack.c.bf16 %v9003_v12, %v9004_v4  ;;  %462 = vst [vmem:[#allocation2 + $0x74] sm:$0x1] %v461_v21  ;;  %v5879_v29 = vmul.f32 -1.442695, %v7990_v14  ;;  %v6519_v38 = vpop.eup %6518  ;;  %v587_v20 = vmul.f32 %v7738_v42, %v6242_v31  ;;  %v5988_v35 = vcombine.low %v7985_v30, %v8010_v43 }
 0x137   : > { %6298 = vmatprep.mubr.msk.bf16.mxu0 %vm8930_vm6, %v4619_v49  ;;  %v5880_v46 = vmul.f32 -1.442695, %v7993_v5  ;;  %v423_v52 = vsel %vm6646_vm3, 0, %v422_v27  ;;  %2040 = vrot.lane.b32.xlu1 %v5956_v22, %s6570_s25  ;;  %v3265_v24 = vrot.slane %v7987_v2, 5  ;;  %v479_v44 = vsel %vm6661_vm5, 0, %v478_v55  ;;  %v6391_v19 = vld [vmem:[#allocation2 + $0x54] sm:$0xff]  }
 0x138   : > { %4574 = vrot.lane.b32.xlu0 %v9005_v32, %s6568_s21  ;;  %6299 = vmatmul.mubr.msk.bf16.vlgmr.msra.gmra.mrb[0].mxu0 %vm8930_vm6, %v4620_v60  ;;  %424 = vst [vmem:[#allocation2 + $0xb4] sm:$0x1] %v423_v52  ;;  %v6521_v40 = vpop.eup %6520  ;;  %v751_v18 = vadd.f32 1.0, %v6519_v38  ;;  %v8029_v56 = vrot.slane %v2917_v25, 4  ;;  %v8031_v0 = vrot.slane %v2920_v50, 5  ;;  %6526 = vpow2.f32 %v5879_v29  ;;  %v4622_v25 = vld [vmem:[#allocation3 + $0x18] sm:$0xff] }
 0x139   : > { %6302 = vmatprep.mubr.msk.bf16.mxu0 %vm8930_vm6, %v4621_v3  ;;  %480 = vst [vmem:[#allocation2 + $0xbc] sm:$0x1] %v479_v44  ;;  %v6523_v22 = vpop.eup %6522  ;;  %v3143_v34 = vld [vmem:[#allocation2 + $0x54] sm:$0xe]  ;;  %v3145_v26 = vld [vmem:[#allocation2 + $0x5c] sm:$0x1]  ;;  %6528 = vpow2.f32 %v5880_v46  ;;  %v8038_v41 = vadd.f32 %v7771_v11, %v586_v63  ;;  %v8041_v49 = vadd.f32 %v7771_v11, %v587_v20  ;;  %v2795_v37 = vsel %vm6740_vm11, %v8006_v8, %v7981_v33 }
 0x13a   : > { %v752_v57 = vadd.f32 1.0, %v6521_v40  ;;  %v6525_v27 = vpop.eup %6524  ;;  %v835_v31 = vmul.f32 %v6523_v22, %v7774_v62  ;;  %6530 = vrcp.f32 %v751_v18  ;;  %v2618_v58 = vld [vmem:[#allocation2 + $0xa4] sm:$0x1]  ;;  %v8044_v47 = vrot.slane %v2926_v53, 5  ;;  %v6414_v50 = vld [vmem:[#allocation2 + $0x48] sm:$0xff]   ;;  %v8067_v8 = vld [vmem:[%s6678_s18 + $0x78] sm:$0xff]  }
 0x13b   : > { %v2932_v10 = vrot.slane %v2930_v7, 4  ;;  %2362 = vrot.lane.b32.xlu1 %v5987_v17, %s6569_s24  ;;  %v836_v54 = vmul.f32 %v6525_v27, %v7777_v51  ;;  %v5892_v6 = vmul.f32 -1.442695, %v8041_v49  ;;  %v6029_v55 = vrot.slane %v3143_v34, 9  ;;  %v425_v17 = vld [vmem:[#allocation2 + $0xc0] sm:$0x1]  ;;  %v2037_v32 = vpop.permute.xlu0 %2036 }
 0x13c   : > { %2352 = vrot.lane.b32.xlu0 %v5982_v45, %s6569_s24  ;;  %6532 = vrcp.f32 %v752_v57  ;;  %v5891_v45 = vmul.f32 -1.442695, %v8038_v41  ;;  %v6165_v62 = vpack.c.bf16 %v835_v31, %v835_v31  ;;  %v3268_v21 = vrot.slane %v3145_v26, 5  ;;  %1521 = vst.msk [vmem:[#allocation3 + $0x30] sm:$0xff] %vm8931_vm15, %v6414_v50  ;;  %v9006_v30 = vld [vmem:[#allocation23_spill] sm:$0xff]  ;;  %v9007_v43 = vld [vmem:[#allocation21_spill] sm:$0xff] }
 0x13d   : > { %v6166_v39 = vpack.c.bf16 %v836_v54, %v836_v54  ;;  %v3267_v51 = vrot.slane %v3265_v24, 4  ;;  %v2923_v33 = vor.u32 %v8031_v0, %v8029_v56  ;;  %v2936_v4 = vshll.u32 %v2618_v58, 16  ;;  %2074 = vst.msk [vmem:[#allocation3 + $0x58] sm:$0xff] %vm2062_vm1, %v2037_v32  ;;  %v1323_v52 = vld [vmem:[#allocation2 + $0x60] sm:$0xf]  ;;  %v6415_v20 = vld [vmem:[#allocation2 + $0x54] sm:$0xff]  }
 0x13e   : > { %6534 = vpow2.f32 %v5891_v45  ;;  %v1071_v3 = vshrl.u32 %v6165_v62, 16  ;;  %v1074_v12 = vshll.u32 %v6165_v62, 16  ;;  %v9008_v53 = vpack.c.bf16 %v9006_v30, %v9007_v43  ;;  %v6394_v40 = vld [vmem:[#allocation2 + $0x9c] sm:$0xff]   ;;  %v1327_v34 = vld [vmem:[#allocation2 + $0x68] sm:$0x1]  ;;  %1522 = vst.msk [vmem:[#allocation3 + $0x38] sm:$0xff] %vm8931_vm15, %v6415_v20 }
 0x13f   : > { %v1079_v60 = vshrl.u32 %v6166_v39, 16  ;;  %v1082_v7 = vshll.u32 %v6166_v39, 16  ;;  %v2933_v29 = vor.u32 %v2932_v10, %v8044_v47  ;;  %6536 = vpow2.f32 %v5892_v6  ;;  %v8095_v23 = vld [vmem:[#allocation2 + $0x9c] sm:$0xe]  ;;  %v8097_v61 = vld [vmem:[#allocation2 + $0xa0] sm:$0xf] }
 0x140   : > { %2527 = vrot.lane.b32.xlu0 %v6391_v19, %s6571_s26  ;;  %6303 = vmatmul.mubr.msk.bf16.gmra.mrb[4].mxu0 %vm8930_vm6, %v4622_v25  ;;  %v1073_v46 = vrot.slane %v1071_v3, 7  ;;  %v8080_v38 = vcombine.low %v2785_v15, %v2795_v37  ;;  %v426_v63 = vsel %vm6646_vm3, 0, %v425_v17  ;;  %v8089_v18 = vsel %vm6693_vm10, %v6029_v55, %v3265_v24  ;;  %v2359_v24 = vpop.permute.xlu0 %2358  ;;  %v2607_v54 = vld [vmem:[#allocation2 + $0x78] sm:$0xf]  ;;  %v3163_v50 = vld [vmem:[#allocation2 + $0xa4] sm:$0x1]  ;;  %v2526_v37 = vpop.permute.xlu1 %2525 }
 0x141   : > { %4576 = vrot.lane.b32.xlu1 %v9008_v53, %s6568_s21  ;;  %v1081_v44 = vrot.slane %v1079_v60, 7  ;;  %v8093_v56 = vsel %vm6693_vm10, %v3267_v51, %v3268_v21  ;;  %427 = vst [vmem:[#allocation2 + $0xc0] sm:$0x1] %v426_v63  ;;  %v6245_v15 = vunpack.c.l.bf16 %v8067_v8  ;;  %v8100_v2 = vrot.slane %v2923_v33, 4  ;;  %2397 = vst.msk [vmem:[#allocation3 + $0x50] sm:$0xff] %vm2386_vm2, %v2359_v24 }
 0x142   : > { %v6527_v0 = vpop.eup %6526  ;;  %v1076_v22 = vor.u32 %v1074_v12, %v1073_v46  ;;  %v1077_v19 = vrot.slane %v1073_v46, 4  ;;  %v8102_v26 = vrot.slane %v2936_v4, 5  ;;  %v8105_v58 = vrot.slane %v2933_v29, 4  ;;  %2569 = vst.msk [vmem:[#allocation3 + $0x28] sm:$0xff] %vm2563_vm4, %v2526_v37  ;;  %v8123_v43 = vld [vmem:[#allocation2 + $0x7c] sm:$0xf] }
 0x143   : > { %v6529_v57 = vpop.eup %6528  ;;  %v1084_v27 = vor.u32 %v1082_v7, %v1081_v44  ;;  %v1086_v31 = vrot.slane %v1081_v44, 4  ;;  %v741_v10 = vadd.f32 1.0, %v6527_v0  ;;  %v3307_v62 = vrot.slane %v8097_v61, 5 }
 0x144   : > { %2364 = vrot.lane.b32.xlu0 %v5988_v35, %s6569_s24  ;;  %v6531_v45 = vpop.eup %6530  ;;  %v1324_v6 = vsel %vm6875_vm13, %v1076_v22, %v1323_v52  ;;  %v742_v25 = vadd.f32 1.0, %v6529_v57  ;;  %v588_v55 = vmul.f32 %v7738_v42, %v6245_v15  ;;  %v6035_v3 = vrot.slane %v8095_v23, 9  ;;  %v2361_v12 = vpop.permute.xlu0 %2360  ;;  %v6418_v23 = vld [vmem:[#allocation2 + $0x90] sm:$0xff]   ;;  %v1365_v57 = vld [vmem:[#allocation2 + $0xa8] sm:$0xf] }
 0x145   : > { %v1085_v39 = vsel %vm6881_vm14, %v1077_v19, %v1084_v27  ;;  %1325 = vst [vmem:[#allocation2 + $0x60] sm:$0xf] %v1324_v6  ;;  %v1328_v35 = vsel %vm6646_vm3, %v1086_v31, %v1327_v34  ;;  %v847_v51 = vmul.f32 %v6531_v45, %v7841_v16  ;;  %6538 = vrcp.f32 %v741_v10  ;;  %2398 = vst.msk [vmem:[#allocation3 + $0x58] sm:$0xff] %vm2386_vm2, %v2361_v12  ;;  %v3069_v46 = vpop.permute.xlu1 %3068 }
 0x146   : > { %v6533_v21 = vpop.eup %6532  ;;  %1326 = vst.msk [vmem:[#allocation2 + $0x64] sm:$0xf] %vm365_vm0, %v1085_v39  ;;  %1329 = vst [vmem:[#allocation2 + $0x68] sm:$0x1] %v1328_v35  ;;  %6540 = vrcp.f32 %v742_v25  ;;  %v2845_v33 = vshrl.u32 %v2607_v54, 16  ;;  %v3310_v30 = vrot.slane %v3163_v50, 5  ;;  %v8126_v53 = vadd.f32 %v7771_v11, %v588_v55 }
 0x147   : > { %v848_v17 = vmul.f32 %v6533_v21, %v7910_v36  ;;  %v6177_v32 = vpack.c.bf16 %v847_v51, %v847_v51  ;;  %v2848_v16 = vshll.u32 %v2607_v54, 16  ;;  %v2929_v36 = vsel %vm6740_vm11, %v8100_v2, %v8044_v47  ;;  %1527 = vst.msk [vmem:[#allocation3 + $0x60] sm:$0xff] %vm8931_vm15, %v6418_v23  ;;  %v1369_v21 = vld [vmem:[#allocation2 + $0xb0] sm:$0x1] }
 0x148   : > { %2539 = vrot.lane.b32.xlu0 %v6394_v40, %s6571_s26  ;;  %v6535_v4 = vpop.eup %6534  ;;  %v2939_v7 = vsel %vm6740_vm11, %v8105_v58, %v8102_v26  ;;  %v3309_v29 = vrot.slane %v3307_v62, 4  ;;  %vm9009_vm6 = vcmask 326912   ;;  %v6246_v40 = vunpack.c.h.bf16 %v8067_v8  ;;  %v2536_v15 = vpop.permute.xlu0 %2535 }
 0x149   : > { %v6178_v60 = vpack.c.bf16 %v848_v17, %v848_v17  ;;  %v6537_v52 = vpop.eup %6536  ;;  %v1173_v63 = vshrl.u32 %v6177_v32, 16  ;;  %v1176_v20 = vshll.u32 %v6177_v32, 16  ;;  %v753_v44 = vadd.f32 1.0, %v6535_v4  ;;  %3113 = vst.msk [vmem:[#allocation3 + $0x20] sm:$0xff] %vm9009_vm6, %v3069_v46 }
 0x14a   : > { %v8138_v0 = vrot.slane %v2845_v33, 4  ;;  %v2854_v22 = vshll.u32 %v8123_v43, 16  ;;  %v2858_v19 = vshrl.u32 %v8123_v43, 16  ;;  %2574 = vst.msk [vmem:[#allocation3 + $0x50] sm:$0xff] %vm2563_vm4, %v2536_v15  ;;  %v8143_v27 = vrot.slane %v2848_v16, 5 }
 0x14b   : > { %v1181_v61 = vshrl.u32 %v6178_v60, 16  ;;  %v1175_v34 = vrot.slane %v1173_v63, 7  ;;  %v1184_v24 = vshll.u32 %v6178_v60, 16  ;;  %v8146_v31 = vmul.f32 -1.442695, %v8126_v53 }
 0x14c   : > { %v2601_v8 = vld [vmem:[#allocation2 + $0x60] sm:$0xf]  ;;  %v8151_v54 = vsel %vm6693_vm10, %v6035_v3, %v3307_v62  ;;  %v8155_v45 = vsel %vm6693_vm10, %v3309_v29, %v3310_v30  ;;  %v754_v6 = vadd.f32 1.0, %v6537_v52  ;;  %6542 = vrcp.f32 %v753_v44  ;;  %v3071_v3 = vpop.permute.xlu1 %3070  ;;  %v2538_v44 = vpop.permute.xlu0 %2537 }
 0x14d   : > { %v1183_v10 = vrot.slane %v1181_v61, 7  ;;  %v6390_v25 = vld [vmem:[#allocation2 + $0x60] sm:$0xff]   ;;  %v2797_v37 = vshrl.u32 %v2601_v8, 16  ;;  %v1178_v55 = vor.u32 %v1176_v20, %v1175_v34  ;;  %v8158_v39 = vmul.f32 %v7738_v42, %v6246_v40  ;;  %v2603_v35 = vld [vmem:[#allocation2 + $0x68] sm:$0x1]  ;;  %3114 = vst.msk [vmem:[#allocation3 + $0x28] sm:$0xff] %vm9009_vm6, %v3071_v3 }
 0x14e   : > { %v2602_v50 = vld [vmem:[#allocation2 + $0x64] sm:$0xf]  ;;  %v2800_v51 = vshll.u32 %v2601_v8, 16  ;;  %v1179_v62 = vrot.slane %v1175_v34, 4  ;;  %2529 = vrot.lane.b32.xlu1 %v6390_v25, %s6571_s26  ;;  %v2816_v32 = vshll.u32 %v2603_v35, 16  ;;  %v6419_v40 = vld [vmem:[#allocation2 + $0x9c] sm:$0xff]   ;;  %6544 = vrcp.f32 %v754_v6 }
 0x14f   : > { %v2806_v17 = vshll.u32 %v2602_v50, 16  ;;  %v2810_v12 = vshrl.u32 %v2602_v50, 16  ;;  %v6539_v33 = vpop.eup %6538  ;;  %v2799_v4 = vrot.slane %v2797_v37, 4  ;;  %v1186_v30 = vor.u32 %v1184_v24, %v1183_v10  ;;  %v3146_v60 = vld [vmem:[#allocation2 + $0x60] sm:$0xe]  ;;  %2575 = vst.msk [vmem:[#allocation3 + $0x58] sm:$0xff] %vm2563_vm4, %v2538_v44 }
 0x150   : > { %v1188_v16 = vrot.slane %v1183_v10, 4  ;;  %v6541_v29 = vpop.eup %6540  ;;  %v2802_v46 = vrot.slane %v2800_v51, 5  ;;  %v1366_v63 = vsel %vm6875_vm13, %v1178_v55, %v1365_v57  ;;  %v3147_v20 = vld [vmem:[#allocation2 + $0x64] sm:$0xf]  ;;  %v2818_v23 = vrot.slane %v2816_v32, 5  ;;  %v3390_v50 = vpop.permute.xlu1 %3389  ;;  %1528 = vst.msk [vmem:[#allocation3 + $0x68] sm:$0xff] %vm8931_vm15, %v6419_v40 }
 0x151   : > { %v2808_v42 = vrot.slane %v2806_v17, 5  ;;  %v2812_v52 = vrot.slane %v2810_v12, 4  ;;  %v1187_v61 = vsel %vm6881_vm14, %v1179_v62, %v1186_v30  ;;  %1367 = vst [vmem:[#allocation2 + $0xa8] sm:$0xf] %v1366_v63  ;;  %v3148_v15 = vld [vmem:[#allocation2 + $0x68] sm:$0x1]  ;;  %v837_v55 = vmul.f32 %v6539_v33, %v7990_v14 }
 0x152   : > { %v6030_v34 = vrot.slane %v3146_v60, 9  ;;  %v3272_v24 = vrot.slane %v3147_v20, 5  ;;  %v2803_v8 = vor.u32 %v2802_v46, %v2799_v4  ;;  %1368 = vst.msk [vmem:[#allocation2 + $0xac] sm:$0xf] %vm365_vm0, %v1187_v61  ;;  %v3275_v25 = vrot.slane %v3148_v15, 5  ;;  %3072 = vrot.lane.b32.xlu1 %v8080_v38, %s6575_s11  ;;  %v3081_v4 = vpop.permute.xlu0 %3080 }
 0x153   : > { %v2813_v10 = vor.u32 %v2812_v52, %v2808_v42  ;;  %v1370_v57 = vsel %vm6646_vm3, %v1188_v16, %v1369_v21  ;;  %v838_v35 = vmul.f32 %v6541_v29, %v7993_v5  ;;  %v3642_v51 = vld [vmem:[#allocation2 + $0x60] sm:$0xf]  ;;  %v8175_v17 = vld [vmem:[#allocation2 + $0x64] sm:$0xf]  ;;  %3434 = vst.msk [vmem:[#allocation3 + $0x20] sm:$0xff] %vm3429_vm7, %v3390_v50  ;;  %v6167_v5 = vpack.c.bf16 %v837_v55, %v837_v55 }
 0x154   : > { %v3274_v37 = vrot.slane %v3272_v24, 4  ;;  %1371 = vst [vmem:[#allocation2 + $0xb0] sm:$0x1] %v1370_v57  ;;  %v2804_v12 = vrot.slane %v2803_v8, 4  ;;  %v3817_v62 = vshrl.u32 %v3642_v51, 16  ;;  %v3820_v3 = vshll.u32 %v3642_v51, 16  ;;  %v3392_v60 = vpop.permute.xlu1 %3391 }
 0x155   : > { %v2814_v21 = vrot.slane %v2813_v10, 4  ;;  %v8180_v38 = vsel %vm6693_vm10, %v6030_v34, %v3272_v24  ;;  %v6168_v33 = vpack.c.bf16 %v838_v35, %v838_v35  ;;  %3119 = vst.msk [vmem:[#allocation3 + $0x50] sm:$0xff] %vm9009_vm6, %v3081_v4  ;;  %v3826_v16 = vshll.u32 %v8175_v17, 16  ;;  %v1330_v24 = vld [vmem:[#allocation2 + $0x6c] sm:$0xf] }
 0x156   : > { %v8184_v14 = vsel %vm6693_vm10, %v3274_v37, %v3275_v25  ;;  %v2809_v6 = vsel %vm6740_vm11, %v2804_v12, %v2808_v42  ;;  %v8191_v30 = vrot.slane %v3817_v62, 4  ;;  %v6543_v29 = vpop.eup %6542  ;;  %v1088_v52 = vshrl.u32 %v6167_v5, 16  ;;  %3435 = vst.msk [vmem:[#allocation3 + $0x28] sm:$0xff] %vm3429_vm7, %v3392_v60  ;;  %v3644_v55 = vld [vmem:[#allocation2 + $0x68] sm:$0x1] }
 0x157   : > { %v2819_v32 = vsel %vm6740_vm11, %v2814_v21, %v2818_v23  ;;  %v1091_v63 = vshll.u32 %v6167_v5, 16  ;;  %v1096_v20 = vshrl.u32 %v6168_v33, 16  ;;  %v6045_v44 = vcombine.low %v8089_v18, %v8093_v56 }
 0x158   : > { %v6014_v46 = vcombine.low %v2809_v6, %v2819_v32  ;;  %v6019_v42 = vcombine.low %v2929_v36, %v2939_v7  ;;  %v2619_v40 = vld [vmem:[#allocation2 + $0xa8] sm:$0xf]  ;;  %v1099_v23 = vshll.u32 %v6168_v33, 16  ;;  %v3822_v61 = vrot.slane %v3820_v3, 5  ;;  %v3568_v10 = vpop.permute.xlu1 %3567  ;;  %v3083_v25 = vpop.permute.xlu0 %3082 }
 0x159   : > { %v6397_v15 = vld [vmem:[#allocation2 + $0xa8] sm:$0xff]   ;;  %v6046_v18 = vcombine.low %v8180_v38, %v8184_v14  ;;  %v2941_v34 = vshrl.u32 %v2619_v40, 16  ;;  %v6051_v26 = vcombine.low %v8151_v54, %v8155_v45  ;;  %v8214_v58 = vadd.f32 %v7771_v11, %v8158_v39  ;;  %3612 = vst.msk [vmem:[#allocation3 + $0x20] sm:$0xff] %vm3607_vm8, %v3568_v10  ;;  %v6545_v62 = vpop.eup %6544 }
 0x15a   : > { %3074 = vrot.lane.b32.xlu1 %v6014_v46, %s6575_s11  ;;  %v2620_v56 = vld [vmem:[#allocation2 + $0xac] sm:$0xf]  ;;  %v2944_v2 = vshll.u32 %v2619_v40, 16  ;;  %v1090_v8 = vrot.slane %v1088_v52, 7  ;;  %2541 = vrot.lane.b32.xlu0 %v6397_v15, %s6571_s26  ;;  %v1098_v37 = vrot.slane %v1096_v20, 7  ;;  %v3823_v35 = vor.u32 %v3822_v61, %v8191_v30  ;;  %3120 = vst.msk [vmem:[#allocation3 + $0x58] sm:$0xff] %vm9009_vm6, %v3083_v25 }
 0x15b   : > { %v2621_v47 = vld [vmem:[#allocation2 + $0xb0] sm:$0x1]  ;;  %v2950_v36 = vshll.u32 %v2620_v56, 16  ;;  %v2954_v7 = vshrl.u32 %v2620_v56, 16  ;;  %v2943_v57 = vrot.slane %v2941_v34, 4  ;;  %v849_v60 = vmul.f32 %v6543_v29, %v8038_v41 }
 0x15c   : > { %v2960_v50 = vshll.u32 %v2621_v47, 16  ;;  %v2946_v11 = vrot.slane %v2944_v2, 5  ;;  %v1093_v12 = vor.u32 %v1091_v63, %v1090_v8  ;;  %v3164_v21 = vld [vmem:[#allocation2 + $0xa8] sm:$0xe]  ;;  %v1094_v4 = vrot.slane %v1090_v8, 4  ;;  %v3402_v46 = vpop.permute.xlu0 %3401 }
 0x15d   : > { %v2952_v39 = vrot.slane %v2950_v36, 5  ;;  %v2956_v51 = vrot.slane %v2954_v7, 4  ;;  %v1101_v38 = vor.u32 %v1099_v23, %v1098_v37  ;;  %v1103_v14 = vrot.slane %v1098_v37, 4  ;;  %v3165_v5 = vld [vmem:[#allocation2 + $0xac] sm:$0xf]  ;;  %3440 = vst.msk [vmem:[#allocation3 + $0x50] sm:$0xff] %vm3429_vm7, %v3402_v46 }
 0x15e   : > { %3393 = vrot.lane.b32.xlu1 %v6045_v44, %s6573_s28  ;;  %v2962_v3 = vrot.slane %v2960_v50, 5  ;;  %v2947_v33 = vor.u32 %v2946_v11, %v2943_v57  ;;  %v1331_v32 = vsel %vm6875_vm13, %v1093_v12, %v1330_v24  ;;  %v3166_v30 = vld [vmem:[#allocation2 + $0xb0] sm:$0x1]  ;;  %3084 = vrot.lane.b32.xlu0 %v6019_v42, %s6575_s11  ;;  %v8227_v63 = vrot.slane %v3826_v16, 5  ;;  %v1334_v40 = vld [vmem:[#allocation2 + $0x74] sm:$0x1] }
 0x15f   : > { %v2957_v6 = vor.u32 %v2956_v51, %v2952_v39  ;;  %v1102_v52 = vsel %vm6881_vm14, %v1094_v4, %v1101_v38  ;;  %1332 = vst [vmem:[#allocation2 + $0x6c] sm:$0xf] %v1331_v32  ;;  %v3830_v20 = vshrl.u32 %v8175_v17, 16  ;;  %v3836_v44 = vshll.u32 %v3644_v55, 16  ;;  %v4187_v15 = vld [vmem:[#allocation2 + $0x60] sm:$0xe] }
 0x160   : > { %v2948_v23 = vrot.slane %v2947_v33, 4  ;;  %1333 = vst.msk [vmem:[#allocation2 + $0x70] sm:$0xf] %vm365_vm0, %v1102_v52  ;;  %v6036_v41 = vrot.slane %v3164_v21, 9  ;;  %v3314_v29 = vrot.slane %v3165_v5, 5  ;;  %v6401_v42 = vld [vmem:[#allocation2 + $0x60] sm:$0xff]   ;;  %v850_v24 = vmul.f32 %v6545_v62, %v8041_v49 }
 0x161   : > { %v2958_v61 = vrot.slane %v2957_v6, 4  ;;  %v3824_v56 = vrot.slane %v3823_v35, 4  ;;  %v3832_v16 = vrot.slane %v3830_v20, 4  ;;  %v3317_v34 = vrot.slane %v3166_v30, 5  ;;  %v4188_v17 = vld [vmem:[#allocation2 + $0x64] sm:$0xf] }
 0x162   : > { %3395 = vrot.lane.b32.xlu1 %v6046_v18, %s6573_s28  ;;  %v2953_v47 = vsel %vm6740_vm11, %v2948_v23, %v2952_v39  ;;  %v3838_v36 = vrot.slane %v3836_v44, 5  ;;  %v3316_v7 = vrot.slane %v3314_v29, 4  ;;  %v4189_v8 = vld [vmem:[#allocation2 + $0x68] sm:$0x1]  ;;  %v3404_v18 = vpop.permute.xlu0 %3403  ;;  %v3315_v50 = vsel %vm6693_vm10, %v6036_v41, %v3314_v29  ;;  %v8246_v37 = vld [vmem:[%s6657_s15 + $0x60] sm:$0xff] }
 0x163   : > { %v2963_v2 = vsel %vm6740_vm11, %v2958_v61, %v2962_v3  ;;  %v8238_v10 = vld [vmem:[#allocation2 + $0xa8] sm:$0xf]  ;;  %v3833_v57 = vor.u32 %v3832_v16, %v8227_v63  ;;  %v1335_v49 = vsel %vm6646_vm3, %v1103_v14, %v1334_v40  ;;  %3441 = vst.msk [vmem:[#allocation3 + $0x58] sm:$0xff] %vm3429_vm7, %v3404_v18  ;;  %v6093_v11 = vrot.slane %v4187_v15, 9 }
 0x164   : > { %v6020_v25 = vcombine.low %v2953_v47, %v2963_v2  ;;  %v8249_v55 = vld [vmem:[%s6657_s15 + $0x68] sm:$0xff]  ;;  %v3318_v35 = vsel %vm6693_vm10, %v3316_v7, %v3317_v34  ;;  %1336 = vst [vmem:[#allocation2 + $0x74] sm:$0x1] %v1335_v49  ;;  %v4309_v39 = vrot.slane %v4188_v17, 5  ;;  %v6179_v51 = vpack.c.bf16 %v849_v60, %v849_v60  ;;  %v3662_v49 = vld [vmem:[#allocation2 + $0xb0] sm:$0x1] }
 0x165   : > { %v3834_v12 = vrot.slane %v3833_v57, 4  ;;  %v4312_v21 = vrot.slane %v4189_v8, 5  ;;  %v3961_v62 = vshrl.u32 %v8238_v10, 16  ;;  %v8258_v3 = vmul.f32 -1.442695, %v8214_v58 }
 0x166   : > { %3571 = vrot.lane.b32.xlu1 %v6401_v42, %s6572_s27  ;;  %3086 = vrot.lane.b32.xlu0 %v6020_v25, %s6575_s11  ;;  %v3829_v4 = vsel %vm6740_vm11, %v3824_v56, %v8227_v63  ;;  %v3645_v38 = vld [vmem:[#allocation2 + $0x6c] sm:$0xf]  ;;  %v4311_v14 = vrot.slane %v4309_v39, 4  ;;  %v1190_v5 = vshrl.u32 %v6179_v51, 16  ;;  %v4528_v33 = vpack.c.bf16 %v8249_v55, %v8246_v37  ;;  %v3580_v6 = vpop.permute.xlu0 %3579  ;;  %v1372_v42 = vld [vmem:[#allocation2 + $0xb4] sm:$0xf] }
 0x167   : > { %v6404_v32 = vld [vmem:[#allocation2 + $0x6c] sm:$0xff]   ;;  %v3839_v30 = vsel %vm6740_vm11, %v3834_v12, %v3838_v36  ;;  %v6052_v60 = vcombine.low %v3315_v50, %v3318_v35  ;;  %v3841_v52 = vshrl.u32 %v3645_v38, 16  ;;  %v6180_v20 = vpack.c.bf16 %v850_v24, %v850_v24  ;;  %3618 = vst.msk [vmem:[#allocation3 + $0x50] sm:$0xff] %vm3607_vm8, %v3580_v6 }
 0x168   : > { %v3646_v46 = vld [vmem:[#allocation2 + $0x70] sm:$0xf]  ;;  %v3844_v44 = vshll.u32 %v3645_v38, 16  ;;  %v8270_v23 = vsel %vm6693_vm10, %v6093_v11, %v4309_v39  ;;  %v6077_v61 = vcombine.low %v3829_v4, %v3839_v30  ;;  %v1192_v29 = vrot.slane %v1190_v5, 7  ;;  %v3661_v24 = vld [vmem:[#allocation2 + $0xac] sm:$0xf] }
 0x169   : > { %v3850_v40 = vshll.u32 %v3646_v46, 16  ;;  %v3854_v63 = vshrl.u32 %v3646_v46, 16  ;;  %v3843_v41 = vrot.slane %v3841_v52, 4  ;;  %v1193_v15 = vshll.u32 %v6179_v51, 16  ;;  %v6407_v25 = vld [vmem:[#allocation2 + $0xa8] sm:$0xff]  }
 0x16a   : > { %3573 = vrot.lane.b32.xlu1 %v6404_v32, %s6572_s27  ;;  %3405 = vrot.lane.b32.xlu0 %v6051_v26, %s6573_s28  ;;  %v3846_v56 = vrot.slane %v3844_v44, 5  ;;  %v8279_v17 = vsel %vm6693_vm10, %v4311_v14, %v4312_v21  ;;  %v1196_v36 = vrot.slane %v1192_v29, 4  ;;  %v1198_v7 = vshrl.u32 %v6180_v20, 16  ;;  %v1376_v21 = vld [vmem:[#allocation2 + $0xbc] sm:$0x1] }
 0x16b   : > { %v3852_v16 = vrot.slane %v3850_v40, 5  ;;  %v3856_v34 = vrot.slane %v3854_v63, 4  ;;  %v3647_v47 = vld [vmem:[#allocation2 + $0x74] sm:$0x1]  ;;  %v1195_v2 = vor.u32 %v1193_v15, %v1192_v29  ;;  %v1201_v8 = vshll.u32 %v6180_v20, 16 }
 0x16c   : > { %v3847_v54 = vor.u32 %v3846_v56, %v3843_v41  ;;  %v3860_v26 = vshll.u32 %v3647_v47, 16  ;;  %v3963_v18 = vrot.slane %v3961_v62, 4  ;;  %v1200_v57 = vrot.slane %v1198_v7, 7  ;;  %v4206_v6 = vld [vmem:[#allocation2 + $0xac] sm:$0xf] }
 0x16d   : > { %v3857_v45 = vor.u32 %v3856_v34, %v3852_v16  ;;  %v1373_v50 = vsel %vm6875_vm13, %v1195_v2, %v1372_v42  ;;  %v3964_v35 = vshll.u32 %v8238_v10, 16  ;;  %v3970_v11 = vshll.u32 %v3661_v24, 16  ;;  %v4205_v46 = vld [vmem:[#allocation2 + $0xa8] sm:$0xe]  ;;  %v1555_v52 = vld [vmem:[#allocation2 + $0x60] sm:$0xf] }
 0x16e   : > { %4116 = vrot.lane.b32.xlu1 %v6077_v61, %s6576_s12  ;;  %3407 = vrot.lane.b32.xlu0 %v6052_v60, %s6573_s28  ;;  %v3848_v39 = vrot.slane %v3847_v54, 4  ;;  %v3862_v12 = vrot.slane %v3860_v26, 5  ;;  %1374 = vst [vmem:[#allocation2 + $0xb4] sm:$0xf] %v1373_v50  ;;  %v3974_v4 = vshrl.u32 %v3661_v24, 16  ;;  %v1203_v62 = vor.u32 %v1201_v8, %v1200_v57  ;;  %v8302_v34 = vld [vmem:[%s6657_s15 + $0x78] sm:$0xff] }
 0x16f   : > { %v3858_v51 = vrot.slane %v3857_v45, 4  ;;  %v1205_v38 = vrot.slane %v1200_v57, 4  ;;  %v3966_v14 = vrot.slane %v3964_v35, 5  ;;  %v3972_v5 = vrot.slane %v3970_v11, 5  ;;  %v4207_v61 = vld [vmem:[#allocation2 + $0xb0] sm:$0x1] }
 0x170   : > { %v3853_v32 = vsel %vm6740_vm11, %v3848_v39, %v3852_v16  ;;  %v3976_v60 = vrot.slane %v3974_v4, 4  ;;  %v3980_v10 = vshll.u32 %v3662_v49, 16  ;;  %v1204_v44 = vsel %vm6881_vm14, %v1196_v36, %v1203_v62  ;;  %v1556_v41 = vld [vmem:[#allocation2 + $0x64] sm:$0xf]  ;;  %v8299_v16 = vld [vmem:[%s6657_s15 + $0x70] sm:$0xff] }
 0x171   : > { %v3863_v30 = vsel %vm6740_vm11, %v3858_v51, %v3862_v12  ;;  %v1377_v40 = vsel %vm6646_vm3, %v1205_v38, %v1376_v21  ;;  %v3967_v63 = vor.u32 %v3966_v14, %v3963_v18  ;;  %v6109_v29 = vcombine.low %v8270_v23, %v8279_v17  ;;  %1375 = vst.msk [vmem:[#allocation2 + $0xb8] sm:$0xf] %vm365_vm0, %v1204_v44  ;;  %v1557_v2 = vld [vmem:[#allocation2 + $0x68] sm:$0x1]  ;;  %v1558_v51 = vld [vmem:[#allocation2 + $0x6c] sm:$0xf] }
 0x172   : > { %v6078_v20 = vcombine.low %v3853_v32, %v3863_v30  ;;  %3583 = vrot.lane.b32.xlu0 %v6407_v25, %s6572_s27  ;;  %1378 = vst [vmem:[#allocation2 + $0xbc] sm:$0x1] %v1377_v40  ;;  %v3977_v15 = vor.u32 %v3976_v60, %v3972_v5  ;;  %v3982_v42 = vrot.slane %v3980_v10, 5  ;;  %v4351_v56 = vrot.slane %v4206_v6, 5  ;;  %v1559_v38 = vld [vmem:[#allocation2 + $0x70] sm:$0xf] }
 0x173   : > { %v3968_v24 = vrot.slane %v3967_v63, 4  ;;  %v6099_v47 = vrot.slane %v4205_v46, 9  ;;  %v1775_v36 = vshrl.u32 %v1555_v52, 16  ;;  %v1778_v7 = vshll.u32 %v1555_v52, 16  ;;  %v3570_v14 = vpop.permute.xlu1 %3569 }
 0x174   : > { %4118 = vrot.lane.b32.xlu1 %v6078_v20, %s6576_s12  ;;  %v3978_v8 = vrot.slane %v3977_v15, 4  ;;  %v4353_v54 = vrot.slane %v4351_v56, 4  ;;  %v4354_v23 = vrot.slane %v4207_v61, 5  ;;  %v1784_v17 = vshll.u32 %v1556_v41, 16  ;;  %3613 = vst.msk [vmem:[#allocation3 + $0x28] sm:$0xff] %vm3607_vm8, %v3570_v14 }
 0x175   : > { %v3663_v45 = vld [vmem:[#allocation2 + $0xb4] sm:$0xf]  ;;  %v1777_v26 = vrot.slane %v1775_v36, 4  ;;  %v1780_v18 = vrot.slane %v1778_v7, 5  ;;  %v4529_v25 = vpack.c.bf16 %v8302_v34, %v8299_v16  ;;  %6546 = vpow2.f32 %v8146_v31 }
 0x176   : > { %v3985_v57 = vshrl.u32 %v3663_v45, 16  ;;  %v3988_v50 = vshll.u32 %v3663_v45, 16  ;;  %v3973_v49 = vsel %vm6740_vm11, %v3968_v24, %v3972_v5  ;;  %v3983_v35 = vsel %vm6740_vm11, %v3978_v8, %v3982_v42  ;;  %v1560_v24 = vld [vmem:[#allocation2 + $0x74] sm:$0x1]  ;;  %v2124_v16 = vld [vmem:[#allocation2 + $0xb4] sm:$0xe] }
 0x177   : > { %v1781_v11 = vor.u32 %v1780_v18, %v1777_v26  ;;  %v8313_v39 = vrot.slane %v1784_v17, 5  ;;  %v8317_v12 = vrot.slane %v2854_v22, 5  ;;  %6548 = vpow2.f32 %v8258_v3 }
 0x178   : > { %4437 = vrot.lane.b32.xlu1 %v6109_v29, %s6574_s29  ;;  %v3987_v31 = vrot.slane %v3985_v57, 4  ;;  %v3990_v21 = vrot.slane %v3988_v50, 5  ;;  %v1788_v4 = vshrl.u32 %v1556_v41, 16  ;;  %v1794_v62 = vshll.u32 %v1557_v2, 16  ;;  %v6408_v5 = vld [vmem:[#allocation2 + $0xb4] sm:$0xff]   ;;  %v6422_v2 = vld [vmem:[#allocation2 + $0x60] sm:$0xff]  }
 0x179   : > { %v3664_v6 = vld [vmem:[#allocation2 + $0xb8] sm:$0xf]  ;;  %v6083_v32 = vcombine.low %v3973_v49, %v3983_v35  ;;  %v8322_v30 = vsel %vm6693_vm10, %v6099_v47, %v4351_v56  ;;  %v8326_v60 = vsel %vm6693_vm10, %v4353_v54, %v4354_v23  ;;  %v1782_v22 = vrot.slane %v1781_v11, 4  ;;  %v3665_v3 = vld [vmem:[#allocation2 + $0xbc] sm:$0x1]  ;;  %3585 = vrot.lane.b32.xlu0 %v6408_v5, %s6572_s27  ;;  %v4113_v47 = vpop.permute.xlu1 %4112  ;;  %1523 = vst.msk [vmem:[#allocation3 + $0x40] sm:$0xff] %vm8931_vm15, %v6422_v2 }
 0x17a   : > { %v3991_v10 = vor.u32 %v3990_v21, %v3987_v31  ;;  %v3994_v46 = vshll.u32 %v3664_v6, 16  ;;  %v3998_v52 = vshrl.u32 %v3664_v6, 16  ;;  %v1790_v20 = vrot.slane %v1788_v4, 4  ;;  %v4190_v41 = vld [vmem:[#allocation2 + $0x6c] sm:$0xe]  ;;  %4157 = vst.msk [vmem:[#allocation3 + $0x20] sm:$0xff] %vm4152_vm9, %v4113_v47 }
 0x17b   : > { %v4004_v44 = vshll.u32 %v3665_v3, 16  ;;  %v1787_v40 = vsel %vm6740_vm11, %v1782_v22, %v8313_v39  ;;  %v1796_v63 = vrot.slane %v1794_v62, 5  ;;  %v1799_v61 = vshrl.u32 %v1558_v51, 16  ;;  %v4191_v23 = vld [vmem:[#allocation2 + $0x70] sm:$0xf] }
 0x17c   : > { %v3992_v29 = vrot.slane %v3991_v10, 4  ;;  %v3996_v15 = vrot.slane %v3994_v46, 5  ;;  %v4000_v42 = vrot.slane %v3998_v52, 4  ;;  %v1791_v56 = vor.u32 %v1790_v20, %v8313_v39  ;;  %v4192_v57 = vld [vmem:[#allocation2 + $0x74] sm:$0x1]  ;;  %v6423_v6 = vld [vmem:[#allocation2 + $0x6c] sm:$0xff]  }
 0x17d   : > { %v4006_v36 = vrot.slane %v4004_v44, 5  ;;  %v1801_v7 = vrot.slane %v1799_v61, 4  ;;  %v1802_v8 = vshll.u32 %v1558_v51, 16  ;;  %v1808_v54 = vshll.u32 %v1559_v38, 16  ;;  %v2103_v50 = vld [vmem:[#allocation2 + $0x60] sm:$0xe]  ;;  %4128 = vrot.lane.b32.xlu0 %v6083_v32, %s6576_s12 }
 0x17e   : > { %v3997_v17 = vsel %vm6740_vm11, %v3992_v29, %v3996_v15  ;;  %v4001_v45 = vor.u32 %v4000_v42, %v3996_v15  ;;  %v1792_v26 = vrot.slane %v1791_v56, 4  ;;  %v1812_v18 = vshrl.u32 %v1559_v38, 16  ;;  %v2104_v49 = vld [vmem:[#allocation2 + $0x64] sm:$0xf]  ;;  %v2105_v21 = vld [vmem:[#allocation2 + $0x68] sm:$0x1] }
 0x17f   : > { %v8338_v35 = vpop.eup %6546  ;;  %v1804_v11 = vrot.slane %v1802_v8, 5  ;;  %v1810_v39 = vrot.slane %v1808_v54, 5  ;;  %v1818_v51 = vshll.u32 %v1560_v24, 16  ;;  %v6094_v31 = vrot.slane %v4190_v41, 9  ;;  %v1573_v5 = vld [vmem:[#allocation2 + $0xa8] sm:$0xf]  ;;  %v4115_v41 = vpop.permute.xlu1 %4114 }
 0x180   : > { %v4002_v4 = vrot.slane %v4001_v45, 4  ;;  %v1797_v62 = vsel %vm6740_vm11, %v1792_v26, %v1796_v63  ;;  %v1814_v14 = vrot.slane %v1812_v18, 4  ;;  %v4316_v38 = vrot.slane %v4191_v23, 5  ;;  %1524 = vst.msk [vmem:[#allocation3 + $0x48] sm:$0xff] %vm8931_vm15, %v6423_v6  ;;  %v1574_v42 = vld [vmem:[#allocation2 + $0xac] sm:$0xf] }
 0x181   : > { %v8343_v22 = vpop.eup %6548  ;;  %v5951_v3 = vcombine.low %v1787_v40, %v1797_v62  ;;  %v1805_v10 = vor.u32 %v1804_v11, %v1801_v7  ;;  %v1820_v46 = vrot.slane %v1818_v51, 5  ;;  %v4319_v52 = vrot.slane %v4192_v57, 5  ;;  %4158 = vst.msk [vmem:[#allocation3 + $0x28] sm:$0xff] %vm4152_vm9, %v4115_v41  ;;  %v1575_v2 = vld [vmem:[#allocation2 + $0xb0] sm:$0x1] }
 0x182   : > { %v4007_v32 = vsel %vm6740_vm11, %v4002_v4, %v4006_v36  ;;  %v1815_v20 = vor.u32 %v1814_v14, %v1810_v39  ;;  %v4317_v44 = vsel %vm6693_vm10, %v6094_v31, %v4316_v38  ;;  %v4318_v61 = vrot.slane %v4316_v38, 4  ;;  %v1578_v51 = vld [vmem:[#allocation2 + $0xbc] sm:$0x1]  ;;  %v4208_v14 = vld [vmem:[#allocation2 + $0xb4] sm:$0xe]  ;;  %v6424_v38 = vld [vmem:[#allocation2 + $0xa8] sm:$0xff]  }
 0x183   : > { %v6084_v63 = vcombine.low %v3997_v17, %v4007_v32  ;;  %2030 = vrot.lane.b32.xlu0 %v5951_v3, %s6570_s25  ;;  %v1806_v29 = vrot.slane %v1805_v10, 4  ;;  %v5967_v15 = vrot.slane %v2103_v50, 9  ;;  %v2236_v40 = vrot.slane %v2104_v49, 5  ;;  %v1576_v17 = vld [vmem:[#allocation2 + $0xb4] sm:$0xf]  ;;  %1529 = vst.msk [vmem:[#allocation3 + $0x70] sm:$0xff] %vm8931_vm15, %v6424_v38 }
 0x184   : > { %v1816_v56 = vrot.slane %v1815_v20, 4  ;;  %v4320_v24 = vsel %vm6693_vm10, %v4318_v61, %v4319_v52  ;;  %v2239_v47 = vrot.slane %v2105_v21, 5  ;;  %v1919_v36 = vshrl.u32 %v1573_v5, 16  ;;  %v1577_v50 = vld [vmem:[#allocation2 + $0xb8] sm:$0xf]  ;;  %v4434_v49 = vpop.permute.xlu1 %4433 }
 0x185   : > { %4130 = vrot.lane.b32.xlu1 %v6084_v63, %s6576_s12  ;;  %v6115_v7 = vcombine.low %v8322_v30, %v8326_v60  ;;  %v1811_v8 = vsel %vm6740_vm11, %v1806_v29, %v1810_v39  ;;  %v6110_v54 = vcombine.low %v4317_v44, %v4320_v24  ;;  %v2238_v23 = vrot.slane %v2236_v40, 4  ;;  %4478 = vst.msk [vmem:[#allocation3 + $0x20] sm:$0xff] %vm4473_vm12, %v4434_v49  ;;  %v4210_v61 = vld [vmem:[#allocation2 + $0xbc] sm:$0x1]  ;;  %v8370_v41 = vld [vmem:[#allocation2 + $0xa8] sm:$0xe] }
 0x186   : > { %v1821_v45 = vsel %vm6740_vm11, %v1816_v56, %v1820_v46  ;;  %v1921_v26 = vrot.slane %v1919_v36, 4  ;;  %v1922_v18 = vshll.u32 %v1573_v5, 16  ;;  %v1928_v57 = vshll.u32 %v1574_v42, 16  ;;  %v4209_v46 = vld [vmem:[#allocation2 + $0xb8] sm:$0xf] }
 0x187   : > { %v5952_v11 = vcombine.low %v1811_v8, %v1821_v45  ;;  %4439 = vrot.lane.b32.xlu0 %v6110_v54, %s6574_s29  ;;  %v8364_v30 = vsel %vm6693_vm10, %v5967_v15, %v2236_v40  ;;  %v1932_v60 = vshrl.u32 %v1574_v42, 16  ;;  %v1938_v39 = vshll.u32 %v1575_v2, 16  ;;  %v6425_v63 = vld [vmem:[#allocation2 + $0xb4] sm:$0xff]   ;;  %v2122_v56 = vld [vmem:[#allocation2 + $0xac] sm:$0xf]  ;;  %v3582_v24 = vpop.permute.xlu0 %3581 }
 0x188   : > { %v2240_v31 = vsel %vm6693_vm10, %v2238_v23, %v2239_v47  ;;  %v1924_v21 = vrot.slane %v1922_v18, 5  ;;  %v1930_v4 = vrot.slane %v1928_v57, 5  ;;  %v1943_v62 = vshrl.u32 %v1576_v17, 16  ;;  %v2123_v8 = vld [vmem:[#allocation2 + $0xb0] sm:$0x1]  ;;  %3619 = vst.msk [vmem:[#allocation3 + $0x58] sm:$0xff] %vm3607_vm8, %v3582_v24 }
 0x189   : > { %4449 = vrot.lane.b32.xlu1 %v6115_v7, %s6574_s29  ;;  %v1934_v5 = vrot.slane %v1932_v60, 4  ;;  %v1940_v6 = vrot.slane %v1938_v39, 5  ;;  %v1946_v3 = vshll.u32 %v1576_v17, 16  ;;  %v1952_v10 = vshll.u32 %v1577_v50, 16  ;;  %1530 = vst.msk [vmem:[#allocation3 + $0x78] sm:$0xff] %vm8931_vm15, %v6425_v63 }
 0x18a   : > { %v1925_v52 = vor.u32 %v1924_v21, %v1921_v26  ;;  %v1945_v32 = vrot.slane %v1943_v62, 4  ;;  %v1956_v20 = vshrl.u32 %v1577_v50, 16  ;;  %v1962_v44 = vshll.u32 %v1578_v51, 16  ;;  %v2106_v23 = vld [vmem:[#allocation2 + $0x6c] sm:$0xe] }
 0x18b   : > { %4566 = vrot.lane.b32.xlu0 %v4528_v33, %s6568_s21  ;;  %v1935_v29 = vor.u32 %v1934_v5, %v1930_v4  ;;  %v1948_v15 = vrot.slane %v1946_v3, 5  ;;  %v1954_v40 = vrot.slane %v1952_v10, 5  ;;  %v6100_v42 = vrot.slane %v4208_v14, 9  ;;  %v2107_v57 = vld [vmem:[#allocation2 + $0x70] sm:$0xf]  ;;  %v4125_v51 = vpop.permute.xlu0 %4124  ;;  %v4514_v14 = vld [vmem:[%s6657_s15 + $0xc0] sm:$0xff] }
 0x18c   : > { %v5983_v47 = vcombine.low %v8364_v30, %v2240_v31  ;;  %v1926_v2 = vrot.slane %v1925_v52, 4  ;;  %v1958_v36 = vrot.slane %v1956_v20, 4  ;;  %v4358_v7 = vrot.slane %v4209_v46, 5  ;;  %v2108_v50 = vld [vmem:[#allocation2 + $0x74] sm:$0x1]  ;;  %4163 = vst.msk [vmem:[#allocation3 + $0x50] sm:$0xff] %vm4152_vm9, %v4125_v51 }
 0x18d   : > { %2032 = vrot.lane.b32.xlu1 %v5952_v11, %s6570_s25  ;;  %v1936_v37 = vrot.slane %v1935_v29, 4  ;;  %v1949_v55 = vor.u32 %v1948_v15, %v1945_v32  ;;  %v1964_v33 = vrot.slane %v1962_v44, 5  ;;  %v4361_v54 = vrot.slane %v4210_v61, 5  ;;  %v2604_v39 = vld [vmem:[#allocation2 + $0x6c] sm:$0xf] }
 0x18e   : > { %v1931_v17 = vsel %vm6740_vm11, %v1926_v2, %v1930_v4  ;;  %v1959_v45 = vor.u32 %v1958_v36, %v1954_v40  ;;  %v4359_v26 = vsel %vm6693_vm10, %v6100_v42, %v4358_v7  ;;  %v4360_v18 = vrot.slane %v4358_v7, 4  ;;  %v2605_v38 = vld [vmem:[#allocation2 + $0x70] sm:$0xf]  ;;  %v4515_v52 = vld [vmem:[%s6657_s15 + $0xc8] sm:$0xff]  ;;  %v8399_v61 = vld [vmem:[#allocation2 + $0xb8] sm:$0xf] }
 0x18f   : > { %v1941_v49 = vsel %vm6740_vm11, %v1936_v37, %v1940_v6  ;;  %v1950_v11 = vrot.slane %v1949_v55, 4  ;;  %v5973_v30 = vrot.slane %v8370_v41, 9  ;;  %v2278_v60 = vrot.slane %v2122_v56, 5  ;;  %v2027_v29 = vpop.permute.xlu0 %2026  ;;  %v2609_v36 = vld [vmem:[#allocation2 + $0x80] sm:$0x1] }
 0x190   : > { %v5957_v31 = vcombine.low %v1931_v17, %v1941_v49  ;;  %v1960_v21 = vrot.slane %v1959_v45, 4  ;;  %v4362_v4 = vsel %vm6693_vm10, %v4360_v18, %v4361_v54  ;;  %v2281_v62 = vrot.slane %v2123_v8, 5  ;;  %2069 = vst.msk [vmem:[#allocation3 + $0x30] sm:$0xff] %vm2062_vm1, %v2027_v29  ;;  %v3150_v18 = vld [vmem:[#allocation2 + $0x70] sm:$0xf]  ;;  %v4517_v49 = vld [vmem:[%s6657_s15 + $0xd8] sm:$0xff] }
 0x191   : > { %2354 = vrot.lane.b32.xlu1 %v5983_v47, %s6569_s24  ;;  %v1955_v5 = vsel %vm6740_vm11, %v1950_v11, %v1954_v40  ;;  %v6116_v6 = vcombine.low %v4359_v26, %v4362_v4  ;;  %v2280_v3 = vrot.slane %v2278_v60, 4  ;;  %v5968_v10 = vrot.slane %v2106_v23, 9  ;;  %v2606_v47 = vld [vmem:[#allocation2 + $0x74] sm:$0x1]  ;;  %v2126_v23 = vld [vmem:[#allocation2 + $0xbc] sm:$0x1] }
 0x192   : > { %2042 = vrot.lane.b32.xlu0 %v5957_v31, %s6570_s25  ;;  %v1965_v46 = vsel %vm6740_vm11, %v1960_v21, %v1964_v33  ;;  %v2243_v32 = vrot.slane %v2107_v57, 5  ;;  %v2246_v20 = vrot.slane %v2108_v50, 5  ;;  %v2821_v44 = vshrl.u32 %v2604_v39, 16  ;;  %v4516_v50 = vld [vmem:[%s6657_s15 + $0xd0] sm:$0xff]  ;;  %v3149_v31 = vld [vmem:[#allocation2 + $0x6c] sm:$0xe] }
 0x193   : > { %v2824_v41 = vshll.u32 %v2604_v39, 16  ;;  %v2830_v63 = vshll.u32 %v2605_v38, 16  ;;  %v2860_v40 = vrot.slane %v2858_v19, 4  ;;  %v5958_v42 = vcombine.low %v1955_v5, %v1965_v46  ;;  %v4127_v7 = vpop.permute.xlu1 %4126  ;;  %v4436_v54 = vpop.permute.xlu0 %4435  ;;  %v8433_v4 = vld [vmem:[#allocation2 + $0x7c] sm:$0xf] }
 0x194   : > { %v2245_v15 = vrot.slane %v2243_v32, 4  ;;  %v2279_v56 = vsel %vm6693_vm10, %v5973_v30, %v2278_v60  ;;  %v4534_v24 = vpack.c.bf16 %v4515_v52, %v4514_v14  ;;  %v2834_v2 = vshrl.u32 %v2605_v38, 16  ;;  %4164 = vst.msk [vmem:[#allocation3 + $0x58] sm:$0xff] %vm4152_vm9, %v4127_v7  ;;  %v3152_v29 = vld [vmem:[#allocation2 + $0x78] sm:$0xe] }
 0x195   : > { %4568 = vrot.lane.b32.xlu1 %v4529_v25, %s6568_s21  ;;  %v2282_v43 = vsel %vm6693_vm10, %v2280_v3, %v2281_v62  ;;  %v2823_v19 = vrot.slane %v2821_v44, 4  ;;  %v2826_v8 = vrot.slane %v2824_v41, 5  ;;  %v8413_v37 = vrot.slane %v2830_v63, 5  ;;  %4479 = vst.msk [vmem:[#allocation3 + $0x28] sm:$0xff] %vm4473_vm12, %v4436_v54  ;;  %v3151_v3 = vld [vmem:[#allocation2 + $0x74] sm:$0x1] }
 0x196   : > { %4451 = vrot.lane.b32.xlu0 %v6116_v6, %s6574_s29  ;;  %v2244_v34 = vsel %vm6693_vm10, %v5968_v10, %v2243_v32  ;;  %v2247_v25 = vsel %vm6693_vm10, %v2245_v15, %v2246_v20  ;;  %v2836_v55 = vrot.slane %v2834_v2, 4  ;;  %v2285_v33 = vrot.slane %v8399_v61, 5  ;;  %v481_v20 = vld [vmem:[#allocation2 + $0xc8] sm:$0x1]  ;;  %v6411_v44 = vld [vmem:[#allocation2 + $0x6c] sm:$0xff]  }
 0x197   : > { %v2851_v17 = vor.u32 %v8143_v27, %v8138_v0  ;;  %v2861_v45 = vor.u32 %v2860_v40, %v8317_v12  ;;  %v2864_v26 = vshll.u32 %v2609_v36, 16  ;;  %v5989_v57 = vcombine.low %v2279_v56, %v2282_v43  ;;  %v2622_v36 = vld [vmem:[#allocation2 + $0xb4] sm:$0xf]  ;;  %v2623_v7 = vld [vmem:[#allocation2 + $0xb8] sm:$0xf] }
 0x198   : > { %v2840_v11 = vshll.u32 %v2606_v47, 16  ;;  %v5974_v30 = vrot.slane %v2124_v16, 9  ;;  %v755_v60 = vadd.f32 1.0, %v8338_v35  ;;  %v4446_v39 = vpop.permute.xlu1 %4445  ;;  %v5984_v51 = vcombine.low %v2244_v34, %v2247_v25 }
 0x199   : > { %2044 = vrot.lane.b32.xlu1 %v5958_v42, %s6570_s25  ;;  %v2827_v0 = vor.u32 %v2826_v8, %v2823_v19  ;;  %v2837_v27 = vor.u32 %v2836_v55, %v8413_v37  ;;  %v756_v21 = vadd.f32 1.0, %v8343_v22  ;;  %4484 = vst.msk [vmem:[#allocation3 + $0x50] sm:$0xff] %vm4473_vm12, %v4446_v39  ;;  %v2287_v62 = vrot.slane %v2285_v33, 4  ;;  %v6410_v19 = vld [vmem:[#allocation2 + $0x78] sm:$0xff]  }
 0x19a   : > { %4578 = vrot.lane.b32.xlu0 %v4534_v24, %s6568_s21  ;;  %v2288_v14 = vrot.slane %v2126_v23, 5  ;;  %v3279_v38 = vrot.slane %v3150_v18, 5  ;;  %6550 = vrcp.f32 %v755_v60  ;;  %v4563_v5 = vpop.permute.xlu0 %4562  ;;  %v4535_v35 = vpack.c.bf16 %v4517_v49, %v4516_v50  ;;  %v3154_v24 = vld [vmem:[#allocation2 + $0x80] sm:$0x1] }
 0x19b   : > { %v2852_v6 = vrot.slane %v2851_v17, 4  ;;  %6552 = vrcp.f32 %v756_v21  ;;  %vm9010_vm6 = vcmask 622144   ;;  %v2862_v10 = vrot.slane %v2861_v45, 4 }
 0x19c   : > { %4607 = vst.msk [vmem:[#allocation3 + $0x20] sm:$0xff] %vm9010_vm6, %v4563_v5  ;;  %v2866_v46 = vrot.slane %v2864_v26, 5  ;;  %v6031_v22 = vrot.slane %v3149_v31, 9  ;;  %v3286_v52 = vrot.slane %v8433_v4, 5  ;;  %v2029_v32 = vpop.permute.xlu1 %2028  ;;  %v2828_v61 = vrot.slane %v2827_v0, 4 }
 0x19d   : > { %2366 = vrot.lane.b32.xlu1 %v5989_v57, %s6569_s24  ;;  %v2838_v41 = vrot.slane %v2837_v27, 4  ;;  %v2842_v63 = vrot.slane %v2840_v11, 5  ;;  %2070 = vst.msk [vmem:[#allocation3 + $0x38] sm:$0xff] %vm2062_vm1, %v2029_v32  ;;  %v2286_v15 = vsel %vm6693_vm10, %v5974_v30, %v2285_v33  ;;  %v2289_v40 = vsel %vm6693_vm10, %v2287_v62, %v2288_v14  ;;  %v8471_v30 = vld [vmem:[#allocation2 + $0xbc] sm:$0x1]  ;;  %v6412_v27 = vld [vmem:[#allocation2 + $0xb4] sm:$0xff]  }
 0x19e   : > { %2356 = vrot.lane.b32.xlu0 %v5984_v51, %s6569_s24  ;;  %v3281_v42 = vrot.slane %v3279_v38, 4  ;;  %v3282_v56 = vrot.slane %v3151_v3, 5  ;;  %v2039_v47 = vpop.permute.xlu0 %2038  ;;  %v2857_v2 = vsel %vm6740_vm11, %v2852_v6, %v8317_v12  ;;  %v482_v43 = vsel %vm6661_vm5, 0, %v481_v20  ;;  %v3648_v51 = vld [vmem:[#allocation2 + $0x78] sm:$0xf] }
 0x19f   : > { %2075 = vst.msk [vmem:[#allocation3 + $0x60] sm:$0xff] %vm2062_vm1, %v2039_v47  ;;  %v2867_v8 = vsel %vm6740_vm11, %v2862_v10, %v2866_v46  ;;  %v8455_v16 = vsel %vm6693_vm10, %v6031_v22, %v3279_v38  ;;  %v6032_v34 = vrot.slane %v3152_v29, 9  ;;  %v3288_v25 = vrot.slane %v3286_v52, 4  ;;  %483 = vst [vmem:[#allocation2 + $0xc8] sm:$0x1] %v482_v43 }
 0x1a0   : > { %v2351_v12 = vpop.permute.xlu1 %2350  ;;  %v2833_v55 = vsel %vm6740_vm11, %v2828_v61, %v8413_v37  ;;  %v2843_v33 = vsel %vm6740_vm11, %v2838_v41, %v2842_v63  ;;  %v5990_v54 = vcombine.low %v2286_v15, %v2289_v40  ;;  %v3289_v23 = vrot.slane %v3154_v24, 5  ;;  %v3649_v14 = vld [vmem:[#allocation2 + $0x7c] sm:$0xf]  ;;  %v3652_v32 = vld [vmem:[#allocation2 + $0x88] sm:$0xf] }
 0x1a1   : > { %4580 = vrot.lane.b32.xlu1 %v4535_v35, %s6568_s21  ;;  %2393 = vst.msk [vmem:[#allocation3 + $0x30] sm:$0xff] %vm2386_vm2, %v2351_v12  ;;  %v8466_v17 = vsel %vm6693_vm10, %v3281_v42, %v3282_v56  ;;  %v2965_v45 = vshrl.u32 %v2622_v36, 16  ;;  %v2968_v26 = vshll.u32 %v2622_v36, 16  ;;  %v2974_v18 = vshll.u32 %v2623_v7, 16  ;;  %v8498_v24 = vld [vmem:[#allocation2 + $0x80] sm:$0x1] }
 0x1a2   : > { %2531 = vrot.lane.b32.xlu0 %v6411_v44, %s6571_s26  ;;  %v4448_v57 = vpop.permute.xlu0 %4447  ;;  %vm9011_vm6 = vcmask 621568   ;;  %v6015_v49 = vcombine.low %v2833_v55, %v2843_v33  ;;  %v6016_v11 = vcombine.low %v2857_v2, %v2867_v8  ;;  %v2978_v60 = vshrl.u32 %v2623_v7, 16  ;;  %v1379_v43 = vld [vmem:[#allocation2 + $0xc0] sm:$0xf] }
 0x1a3   : > { %v4623_v50 = vld [vmem:[#allocation3 + $0x20] sm:$0xff]  ;;  %4485 = vst.msk [vmem:[#allocation3 + $0x58] sm:$0xff] %vm4473_vm12, %v4448_v57  ;;  %v6047_v31 = vcombine.low %v8455_v16, %v8466_v17  ;;  %v8479_v4 = vsel %vm6693_vm10, %v6032_v34, %v3286_v52  ;;  %v8483_v62 = vsel %vm6693_vm10, %v3288_v25, %v3289_v23  ;;  %v8487_v5 = vrot.slane %v2965_v45, 4  ;;  %v428_v45 = vld [vmem:[#allocation2 + $0xcc] sm:$0x1] }
 0x1a4   : > { %6306 = vmatprep.mubr.msk.bf16.mxu0 %vm9011_vm6, %v4623_v50  ;;  %v6551_v37 = vpop.eup %6550  ;;  %vm9012_vm6 = vcmask 622144   ;;  %v8489_v35 = vrot.slane %v2968_v26, 5  ;;  %v8491_v6 = vrot.slane %v2974_v18, 5  ;;  %v2984_v46 = vshll.u32 %v8471_v30, 16  ;;  %v6416_v30 = vld [vmem:[#allocation2 + $0x78] sm:$0xff]  }
 0x1a5   : > { %2533 = vrot.lane.b32.xlu1 %v6410_v19, %s6571_s26  ;;  %v4565_v39 = vpop.permute.xlu1 %4564  ;;  %v6553_v0 = vpop.eup %6552  ;;  %v851_v21 = vmul.f32 %v6551_v37, %v8126_v53  ;;  %v3651_v53 = vld [vmem:[#allocation2 + $0x84] sm:$0xf]  ;;  %v3865_v22 = vshrl.u32 %v3648_v51, 16  ;;  %v3868_v52 = vshll.u32 %v3648_v51, 16  ;;  %vm9013_vm15 = vmmov %vm9012_vm6  ;;  %v3874_v44 = vshll.u32 %v3649_v14, 16 }
 0x1a6   : > { %2368 = vrot.lane.b32.xlu0 %v5990_v54, %s6569_s24  ;;  %4608 = vst.msk [vmem:[#allocation3 + $0x28] sm:$0xff] %vm9012_vm6, %v4565_v39  ;;  %v852_v38 = vmul.f32 %v6553_v0, %v8214_v58  ;;  %v2980_v58 = vrot.slane %v2978_v60, 4  ;;  %v3878_v61 = vshrl.u32 %v3649_v14, 16  ;;  %v3889_v15 = vshrl.u32 %v3651_v53, 16  ;;  %v1383_v57 = vld [vmem:[#allocation2 + $0xc8] sm:$0x1] }
 0x1a7   : > { %v6181_v10 = vpack.c.bf16 %v851_v21, %v851_v21  ;;  %v3892_v40 = vshll.u32 %v3651_v53, 16  ;;  %v3898_v47 = vshll.u32 %v3652_v32, 16  ;;  %v3902_v2 = vshrl.u32 %v3652_v32, 16  ;;  %v8509_v60 = vld [vmem:[#allocation2 + $0xb8] sm:$0xf] }
 0x1a8   : > { %v6182_v20 = vpack.c.bf16 %v852_v38, %v852_v38  ;;  %v2971_v19 = vor.u32 %v8489_v35, %v8487_v5  ;;  %v3867_v8 = vrot.slane %v3865_v22, 4  ;;  %v3870_v34 = vrot.slane %v3868_v52, 5  ;;  %v3653_v35 = vld [vmem:[#allocation2 + $0x8c] sm:$0x1]  ;;  %v484_v53 = vld [vmem:[#allocation2 + $0xd4] sm:$0x1] }
 0x1a9   : > { %3076 = vrot.lane.b32.xlu1 %v6015_v49, %s6575_s11  ;;  %v2041_v41 = vpop.permute.xlu1 %2040  ;;  %v1207_v63 = vshrl.u32 %v6181_v10, 16  ;;  %v1210_v29 = vshll.u32 %v6181_v10, 16  ;;  %v2981_v12 = vor.u32 %v2980_v58, %v8491_v6  ;;  %v8505_v55 = vrot.slane %v3874_v44, 5  ;;  %v3169_v32 = vld [vmem:[#allocation2 + $0xbc] sm:$0x1] }
 0x1aa   : > { %v4575_v3 = vpop.permute.xlu0 %4574  ;;  %2543 = vrot.lane.b32.xlu0 %v6412_v27, %s6571_s26  ;;  %2076 = vst.msk [vmem:[#allocation3 + $0x68] sm:$0xff] %vm2062_vm1, %v2041_v41  ;;  %v1215_v42 = vshrl.u32 %v6182_v20, 16  ;;  %v1218_v56 = vshll.u32 %v6182_v20, 16  ;;  %v3880_v33 = vrot.slane %v3878_v61, 4  ;;  %v3891_v50 = vrot.slane %v3889_v15, 4 }
 0x1ab   : > { %4613 = vst.msk [vmem:[#allocation3 + $0x50] sm:$0xff] %vm9013_vm15, %v4575_v3  ;;  %v1209_v7 = vrot.slane %v1207_v63, 7  ;;  %v3894_v37 = vrot.slane %v3892_v40, 5  ;;  %vm9014_vm15 = vcmask 621568   ;;  %v8511_v39 = vrot.slane %v3898_v47, 5  ;;  %v6417_v47 = vld [vmem:[#allocation2 + $0x84] sm:$0xff]  }
 0x1ac   : > { %v1217_v25 = vrot.slane %v1215_v42, 7  ;;  %v3904_v51 = vrot.slane %v3902_v2, 4  ;;  %v6048_v14 = vcombine.low %v8479_v4, %v8483_v62  ;;  %v3871_v38 = vor.u32 %v3870_v34, %v3867_v8  ;;  %vm9015_vm6 = vmmov %vm9014_vm15  ;;  %v8529_v3 = vld [vmem:[#allocation2 + $0x7c] sm:$0xf]  ;;  %v4193_v15 = vld [vmem:[#allocation2 + $0x78] sm:$0xe] }
 0x1ad   : > { %3078 = vrot.lane.b32.xlu1 %v6016_v11, %s6575_s11  ;;  %v2363_v54 = vpop.permute.xlu1 %2362  ;;  %v4624_v23 = vld [vmem:[#allocation3 + $0x28] sm:$0xff]  ;;  %v1212_v26 = vor.u32 %v1210_v29, %v1209_v7  ;;  %v1213_v18 = vrot.slane %v1209_v7, 4  ;;  %v3884_v5 = vshll.u32 %v8498_v24, 16  ;;  %v3881_v62 = vor.u32 %v3880_v33, %v8505_v55 }
 0x1ae   : > { %v2353_v36 = vpop.permute.xlu0 %2352  ;;  %2399 = vst.msk [vmem:[#allocation3 + $0x60] sm:$0xff] %vm2386_vm2, %v2363_v54  ;;  %6307 = vmatmul.mubr.msk.bf16.gmra.mrb[8].mxu0 %vm9014_vm15, %v4624_v23  ;;  %v1220_v49 = vor.u32 %v1218_v56, %v1217_v25  ;;  %v1222_v11 = vrot.slane %v1217_v25, 4  ;;  %v429_v10 = vsel %vm6646_vm3, 0, %v428_v45  ;;  %v2972_v52 = vrot.slane %v2971_v19, 4  ;;  %v4195_v24 = vld [vmem:[#allocation2 + $0x80] sm:$0x1] }
 0x1af   : > { %2394 = vst.msk [vmem:[#allocation3 + $0x38] sm:$0xff] %vm2386_vm2, %v2353_v36  ;;  %v1380_v21 = vsel %vm6875_vm13, %v1212_v26, %v1379_v43  ;;  %v2982_v16 = vrot.slane %v2981_v12, 4  ;;  %v2986_v59 = vrot.slane %v2984_v46, 5  ;;  %v3321_v17 = vrot.slane %v8509_v60, 5  ;;  %430 = vst [vmem:[#allocation2 + $0xcc] sm:$0x1] %v429_v10 }
 0x1b0   : > { %v1221_v48 = vsel %vm6881_vm14, %v1213_v18, %v1220_v49  ;;  %1381 = vst [vmem:[#allocation2 + $0xc0] sm:$0xf] %v1380_v21  ;;  %v1384_v4 = vsel %vm6646_vm3, %v1222_v11, %v1383_v57  ;;  %vm9016_vm13 = vcmask 622144   ;;  %v3895_v20 = vor.u32 %v3894_v37, %v3891_v50  ;;  %v8549_v19 = vld [vmem:[#allocation2 + $0x88] sm:$0xf] }
 0x1b1   : > { %3397 = vrot.lane.b32.xlu1 %v6047_v31, %s6573_s28  ;;  %1382 = vst.msk [vmem:[#allocation2 + $0xc4] sm:$0xf] %vm365_vm0, %v1221_v48  ;;  %1385 = vst [vmem:[#allocation2 + $0xc8] sm:$0x1] %v1384_v4  ;;  %v3167_v31 = vld [vmem:[#allocation2 + $0xb4] sm:$0xe]  ;;  %v3905_v1 = vor.u32 %v3904_v51, %v8511_v39  ;;  %v2977_v40 = vsel %vm6740_vm11, %v2972_v52, %v8491_v6  ;;  %v2987_v13 = vsel %vm6740_vm11, %v2982_v16, %v2986_v59 }
 0x1b2   : > { %v2528_v0 = vpop.permute.xlu0 %2527  ;;  %v4629_v27 = vld [vmem:[#allocation3 + $0x50] sm:$0xff]  ;;  %v3908_v58 = vshll.u32 %v3653_v35, 16  ;;  %v485_v44 = vsel %vm6661_vm5, 0, %v484_v53  ;;  %v4323_v41 = vrot.slane %v8529_v3, 5  ;;  %v3872_v46 = vrot.slane %v3871_v38, 4  ;;  %vm9017_vm0 = vmmov %vm9015_vm6 }
 0x1b3   : > { %2570 = vst.msk [vmem:[#allocation3 + $0x30] sm:$0xff] %vm2563_vm4, %v2528_v0  ;;  %6318 = vmatprep.mubr.msk.bf16.mxu1 %vm9015_vm6, %v4629_v27  ;;  %v4577_v22 = vpop.permute.xlu1 %4576  ;;  %486 = vst [vmem:[#allocation2 + $0xd4] sm:$0x1] %v485_v44  ;;  %v3882_v63 = vrot.slane %v3881_v62, 4  ;;  %v3886_v29 = vrot.slane %v3884_v5, 5  ;;  %v6037_v42 = vrot.slane %v3167_v31, 9  ;;  %v6021_v33 = vcombine.low %v2977_v40, %v2987_v13 }
 0x1b4   : > { %4614 = vst.msk [vmem:[#allocation3 + $0x58] sm:$0xff] %vm9016_vm13, %v4577_v22  ;;  %v3324_v56 = vrot.slane %v3169_v32, 5  ;;  %v3323_v2 = vrot.slane %v3321_v17, 4  ;;  %v3896_v36 = vrot.slane %v3895_v20, 4  ;;  %v3906_v7 = vrot.slane %v3905_v1, 4 }
 0x1b5   : > { %3399 = vrot.lane.b32.xlu1 %v6048_v14, %s6573_s28  ;;  %v3910_v43 = vrot.slane %v3908_v58, 5  ;;  %v6095_v25 = vrot.slane %v4193_v15, 9  ;;  %v4325_v12 = vrot.slane %v4323_v41, 4  ;;  %v3877_v45 = vsel %vm6740_vm11, %v3872_v46, %v8505_v55  ;;  %v4196_v11 = vld [vmem:[#allocation2 + $0x84] sm:$0xe] }
 0x1b6   : > { %v2365_v61 = vpop.permute.xlu0 %2364  ;;  %v3887_v26 = vsel %vm6740_vm11, %v3882_v63, %v3886_v29  ;;  %v4326_v49 = vrot.slane %v4195_v24, 5  ;;  %v4198_v60 = vld [vmem:[#allocation2 + $0x8c] sm:$0x1]  ;;  %v3901_v55 = vsel %vm6740_vm11, %v3896_v36, %v8511_v39  ;;  %v4330_v53 = vrot.slane %v8549_v19, 5  ;;  %v3670_v63 = vld [vmem:[#allocation2 + $0xd0] sm:$0xf] }
 0x1b7   : > { %2400 = vst.msk [vmem:[#allocation3 + $0x68] sm:$0xff] %vm2386_vm2, %v2365_v61  ;;  %v2625_v34 = vld [vmem:[#allocation2 + $0xc0] sm:$0xf]  ;;  %v3911_v14 = vsel %vm6740_vm11, %v3906_v7, %v3910_v43  ;;  %v3322_v48 = vsel %vm6693_vm10, %v6037_v42, %v3321_v17  ;;  %v3325_v4 = vsel %vm6693_vm10, %v3323_v2, %v3324_v56  ;;  %v6079_v62 = vcombine.low %v3877_v45, %v3887_v26  ;;  %v3669_v7 = vld [vmem:[#allocation2 + $0xcc] sm:$0xf] }
 0x1b8   : > { %v6413_v6 = vld [vmem:[#allocation2 + $0xc0] sm:$0xff]   ;;  %v2989_v23 = vshrl.u32 %v2625_v34, 16  ;;  %v2627_v18 = vld [vmem:[#allocation2 + $0xc8] sm:$0x1]  ;;  %v2992_v57 = vshll.u32 %v2625_v34, 16  ;;  %v4324_v16 = vsel %vm6693_vm10, %v6095_v25, %v4323_v41  ;;  %v6080_v32 = vcombine.low %v3901_v55, %v3911_v14 }
 0x1b9   : > { %3575 = vrot.lane.b32.xlu1 %v6416_v30, %s6572_s27  ;;  %v2626_v54 = vld [vmem:[#allocation2 + $0xc4] sm:$0xf]  ;;  %2545 = vrot.lane.b32.xlu0 %v6413_v6, %s6571_s26  ;;  %v3008_v0 = vshll.u32 %v2627_v18, 16  ;;  %v3170_v27 = vld [vmem:[#allocation2 + $0xc0] sm:$0xe]  ;;  %v4327_v17 = vsel %vm6693_vm10, %v4325_v12, %v4326_v49  ;;  %v6096_v20 = vrot.slane %v4196_v11, 9  ;;  %v6053_v36 = vcombine.low %v3322_v48, %v3325_v4 }
 0x1ba   : > { %v2540_v8 = vpop.permute.xlu0 %2539  ;;  %v2998_v50 = vshll.u32 %v2626_v54, 16  ;;  %v3002_v37 = vshrl.u32 %v2626_v54, 16  ;;  %v2991_v51 = vrot.slane %v2989_v23, 4  ;;  %v3171_v21 = vld [vmem:[#allocation2 + $0xc4] sm:$0xf]  ;;  %v2994_v38 = vrot.slane %v2992_v57, 5 }
 0x1bb   : > { %2576 = vst.msk [vmem:[#allocation3 + $0x60] sm:$0xff] %vm2563_vm4, %v2540_v8  ;;  %v3172_v3 = vld [vmem:[#allocation2 + $0xc8] sm:$0x1]  ;;  %v3328_v10 = vrot.slane %v3171_v21, 5  ;;  %v3010_v52 = vrot.slane %v3008_v0, 5  ;;  %v4630_v31 = vld [vmem:[#allocation3 + $0x58] sm:$0xff]  ;;  %v6111_v19 = vcombine.low %v4324_v16, %v4327_v17  ;;  %v4331_v8 = vsel %vm6693_vm10, %v6096_v20, %v4330_v53 }
 0x1bc   : > { %v3000_v5 = vrot.slane %v2998_v50, 5  ;;  %v3004_v35 = vrot.slane %v3002_v37, 4  ;;  %v2995_v39 = vor.u32 %v2994_v38, %v2991_v51  ;;  %v3666_v59 = vld [vmem:[#allocation2 + $0xc0] sm:$0xf]  ;;  %v4333_v1 = vrot.slane %v4198_v60, 5  ;;  %6319 = vmatmul.mubr.msk.bf16.vlgmr.msra.gmra.mrb[0].mxu1 %vm9017_vm0, %v4630_v31  ;;  %v4507_v55 = vld [vmem:[%s6657_s15 + $0x88] sm:$0xff] }
 0x1bd   : > { %3577 = vrot.lane.b32.xlu1 %v6417_v47, %s6572_s27  ;;  %3088 = vrot.lane.b32.xlu0 %v6021_v33, %s6575_s11  ;;  %v3667_v58 = vld [vmem:[#allocation2 + $0xc4] sm:$0xf]  ;;  %v6038_v30 = vrot.slane %v3170_v27, 9  ;;  %v4332_v46 = vrot.slane %v4330_v53, 4  ;;  %v3330_v41 = vrot.slane %v3328_v10, 4  ;;  %v3331_v29 = vrot.slane %v3172_v3, 5 }
 0x1be   : > { %v3005_v22 = vor.u32 %v3004_v35, %v3000_v5  ;;  %v2996_v44 = vrot.slane %v2995_v39, 4  ;;  %v4009_v15 = vshrl.u32 %v3666_v59, 16  ;;  %v4012_v40 = vshll.u32 %v3666_v59, 16  ;;  %v3668_v45 = vld [vmem:[#allocation2 + $0xc8] sm:$0x1]  ;;  %v4506_v21 = vld [vmem:[%s6657_s15 + $0x80] sm:$0xff] }
 0x1bf   : > { %v4018_v24 = vshll.u32 %v3667_v58, 16  ;;  %v4022_v47 = vshrl.u32 %v3667_v58, 16  ;;  %v4042_v43 = vshll.u32 %v3670_v63, 16  ;;  %v4334_v34 = vsel %vm6693_vm10, %v4332_v46, %v4333_v1  ;;  %v3671_v14 = vld [vmem:[#allocation2 + $0xd4] sm:$0x1]  ;;  %v6420_v53 = vld [vmem:[#allocation2 + $0xc0] sm:$0xff]  }
 0x1c0   : > { %v3006_v61 = vrot.slane %v3005_v22, 4  ;;  %v2530_v13 = vpop.permute.xlu1 %2529  ;;  %v3001_v42 = vsel %vm6740_vm11, %v2996_v44, %v3000_v5  ;;  %v4046_v25 = vshrl.u32 %v3670_v63, 16  ;;  %v3329_v12 = vsel %vm6693_vm10, %v6038_v30, %v3328_v10  ;;  %v4508_v16 = vld [vmem:[%s6657_s15 + $0x90] sm:$0xff]  ;;  %v4509_v59 = vld [vmem:[%s6657_s15 + $0x98] sm:$0xff]  ;;  %v4212_v31 = vld [vmem:[#allocation2 + $0xc4] sm:$0xf] }
 0x1c1   : > { %4120 = vrot.lane.b32.xlu1 %v6079_v62, %s6576_s12  ;;  %2571 = vst.msk [vmem:[#allocation3 + $0x38] sm:$0xff] %vm2563_vm4, %v2530_v13  ;;  %v3332_v6 = vsel %vm6693_vm10, %v3330_v41, %v3331_v29  ;;  %v4011_v33 = vrot.slane %v4009_v15, 4  ;;  %v4014_v54 = vrot.slane %v4012_v40, 5  ;;  %v4020_v26 = vrot.slane %v4018_v24, 5  ;;  %v6421_v17 = vld [vmem:[#allocation2 + $0xcc] sm:$0xff]  }
 0x1c2   : > { %v3011_v56 = vsel %vm6740_vm11, %v3006_v61, %v3010_v52  ;;  %v4024_v18 = vrot.slane %v4022_v47, 4  ;;  %v4033_v57 = vshrl.u32 %v3669_v7, 16  ;;  %v4036_v50 = vshll.u32 %v3669_v7, 16  ;;  %v4520_v44 = vld [vmem:[%s6657_s15 + $0xf0] sm:$0xff]  ;;  %v4521_v61 = vld [vmem:[%s6657_s15 + $0xf8] sm:$0xff] }
 0x1c3   : > { %v6022_v2 = vcombine.low %v3001_v42, %v3011_v56  ;;  %vm9018_vm3 = vcmask 326912   ;;  %v8593_v37 = vrot.slane %v4042_v43, 5  ;;  %v6054_v49 = vcombine.low %v3329_v12, %v3332_v6  ;;  %v4211_v29 = vld [vmem:[#allocation2 + $0xc0] sm:$0xe]  ;;  %v4215_v40 = vld [vmem:[#allocation2 + $0xd0] sm:$0xf] }
 0x1c4   : > { %v3073_v23 = vpop.permute.xlu1 %3072  ;;  %v6112_v11 = vcombine.low %v4331_v8, %v4334_v34  ;;  %v4028_v60 = vshll.u32 %v3668_v45, 16  ;;  %v4048_v51 = vrot.slane %v4046_v25, 4  ;;  %v4015_v0 = vor.u32 %v4014_v54, %v4011_v33  ;;  %vm9019_vm5 = vmmov %vm9018_vm3  ;;  %v4213_v13 = vld [vmem:[#allocation2 + $0xc8] sm:$0x1]  ;;  %v4214_v8 = vld [vmem:[#allocation2 + $0xcc] sm:$0xe] }
 0x1c5   : > { %3090 = vrot.lane.b32.xlu0 %v6022_v2, %s6575_s11  ;;  %4122 = vrot.lane.b32.xlu1 %v6080_v32, %s6576_s12  ;;  %3115 = vst.msk [vmem:[#allocation3 + $0x30] sm:$0xff] %vm9018_vm3, %v3073_v23  ;;  %v4025_v27 = vor.u32 %v4024_v18, %v4020_v26  ;;  %v4035_v38 = vrot.slane %v4033_v57, 4  ;;  %v4038_v5 = vrot.slane %v4036_v50, 5  ;;  %v4530_v48 = vpack.c.bf16 %v4507_v55, %v4506_v21  ;;  %vm9020_vm14 = vmmov %vm9018_vm3  ;;  %v4216_v34 = vld [vmem:[#allocation2 + $0xd4] sm:$0x1] }
 0x1c6   : > { %v4049_v4 = vor.u32 %v4048_v51, %v8593_v37  ;;  %v4052_v62 = vshll.u32 %v3671_v14, 16  ;;  %v4016_v10 = vrot.slane %v4015_v0, 4  ;;  %v4030_v22 = vrot.slane %v4028_v60, 5  ;;  %vm9021_vm15 = vmmov %vm9018_vm3  ;;  %v4518_v51 = vld [vmem:[%s6657_s15 + $0xe0] sm:$0xff]  ;;  %v4519_v0 = vld [vmem:[%s6657_s15 + $0xe8] sm:$0xff] }
 0x1c7   : > { %v4026_v39 = vrot.slane %v4025_v27, 4  ;;  %v4039_v52 = vor.u32 %v4038_v5, %v4035_v38  ;;  %v4531_v58 = vpack.c.bf16 %v4509_v59, %v4508_v16  ;;  %v4365_v15 = vrot.slane %v4212_v31, 5 }
 0x1c8   : > { %v4050_v20 = vrot.slane %v4049_v4, 4  ;;  %v4054_v1 = vrot.slane %v4052_v62, 5  ;;  %v4021_v46 = vsel %vm6740_vm11, %v4016_v10, %v4020_v26  ;;  %v6101_v24 = vrot.slane %v4211_v29, 9 }
 0x1c9   : > { %3409 = vrot.lane.b32.xlu0 %v6053_v36, %s6573_s28  ;;  %4441 = vrot.lane.b32.xlu1 %v6111_v19, %s6574_s29  ;;  %v4031_v63 = vsel %vm6740_vm11, %v4026_v39, %v4030_v22  ;;  %v4040_v41 = vrot.slane %v4039_v52, 4  ;;  %v4372_v47 = vrot.slane %v4215_v40, 5  ;;  %v4537_v2 = vpack.c.bf16 %v4521_v61, %v4520_v44 }
 0x1ca   : > { %v6085_v56 = vcombine.low %v4021_v46, %v4031_v63  ;;  %v4055_v7 = vsel %vm6740_vm11, %v4050_v20, %v4054_v1  ;;  %v4367_v43 = vrot.slane %v4365_v15, 4  ;;  %v4368_v19 = vrot.slane %v4213_v13, 5  ;;  %v8664_v20 = vld [vmem:[%s8913_s5] ss:$0 sm:$0xff] }
 0x1cb   : > { %v4045_v36 = vsel %vm6740_vm11, %v4040_v41, %v8593_v37  ;;  %v6102_v33 = vrot.slane %v4214_v8, 9  ;;  %v4366_v9 = vsel %vm6693_vm10, %v6101_v24, %v4365_v15  ;;  %v4374_v23 = vrot.slane %v4372_v47, 4  ;;  %vm9023_vm11 = vmmov %vm9017_vm0 }
 0x1cc   : > { %v3075_v35 = vpop.permute.xlu1 %3074  ;;  %v2542_v3 = vpop.permute.xlu0 %2541  ;;  %v6086_v6 = vcombine.low %v4045_v36, %v4055_v7  ;;  %v4369_v54 = vsel %vm6693_vm10, %v4367_v43, %v4368_v19  ;;  %v4375_v45 = vrot.slane %v4216_v34, 5  ;;  %v4536_v21 = vpack.c.bf16 %v4519_v0, %v4518_v51 }
 0x1cd   : > { %3116 = vst.msk [vmem:[#allocation3 + $0x38] sm:$0xff] %vm9019_vm5, %v3075_v35  ;;  %3411 = vrot.lane.b32.xlu0 %v6054_v49, %s6573_s28  ;;  %4443 = vrot.lane.b32.xlu1 %v6112_v11, %s6574_s29  ;;  %v6117_v57 = vcombine.low %v4366_v9, %v4369_v54  ;;  %v4373_v50 = vsel %vm6693_vm10, %v6102_v33, %v4372_v47  ;;  %v4981_v39 = vlaneseq  ;;  %vm5514_vm0 = vcmask 1041409  }
 0x1ce   : > { %2577 = vst.msk [vmem:[#allocation3 + $0x68] sm:$0xff] %vm2563_vm4, %v2542_v3  ;;  %v4376_v37 = vsel %vm6693_vm10, %v4374_v23, %v4375_v45  ;;  %vm9022_vm10 = vmmov %vm9016_vm13  ;;  %v6577_v3 = vmov 1983009808   ;;  %vm5517_vm3 = vcmask 1042434   ;;  %vm5520_vm5 = vcmask 1043459  }
 0x1cf   : > { %v6118_v60 = vcombine.low %v4373_v50, %v4376_v37  ;;  %v4979_v10 = vunpack.c.l.s4 %v6577_v3  ;;  %v4982_v31 = vshrl.u32 %v4981_v39, 7  ;;  %vm9024_vm6 = vmmov %vm9022_vm10 }
 0x1d0   : > { %v3394_v32 = vpop.permute.xlu1 %3393  ;;  %v3085_v30 = vpop.permute.xlu0 %3084  ;;  %vm9025_vm13 = vmmov %vm9024_vm6 }
 0x1d1   : > { %3436 = vst.msk [vmem:[#allocation3 + $0x30] sm:$0xff] %vm3429_vm7, %v3394_v32  ;;  %3587 = vrot.lane.b32.xlu0 %v6420_v53, %s6572_s27  ;;  %4570 = vrot.lane.b32.xlu1 %v4530_v48, %s6568_s21  ;;  %v4980_v59 = vunpack.c.0.s8 %v4979_v10 }
 0x1d2   : > { %3121 = vst.msk [vmem:[#allocation3 + $0x60] sm:$0xff] %vm9020_vm14, %v3085_v30  ;;  %vm5523_vm14 = vcmask 1044484  }
 0x1d4   : > { %v3396_v42 = vpop.permute.xlu1 %3395 }
 0x1d5   : > { %3437 = vst.msk [vmem:[#allocation3 + $0x38] sm:$0xff] %vm3429_vm7, %v3396_v42  ;;  %3589 = vrot.lane.b32.xlu0 %v6421_v17, %s6572_s27  ;;  %4572 = vrot.lane.b32.xlu1 %v4531_v58, %s6568_s21  ;;  %v8667_v58 = vsub.s32 %v4980_v59, %v4982_v31  ;;  %s6150_s27 = sshll.u32 %s9046_s10, 4 }
 0x1d6   : > { %s359_s11 = scalar_lea.vmem %s8916_s8, %s6150_s27 }
 0x1d8   : > { %v3572_v25 = vpop.permute.xlu1 %3571  ;;  %v3087_v12 = vpop.permute.xlu0 %3086 }
 0x1d9   : > { %3614 = vst.msk [vmem:[#allocation3 + $0x30] sm:$0xff] %vm3607_vm8, %v3572_v25  ;;  %4132 = vrot.lane.b32.xlu0 %v6085_v56, %s6576_s12  ;;  %4584 = vrot.lane.b32.xlu1 %v4537_v2, %s6568_s21 }
 0x1da   : > { %3122 = vst.msk [vmem:[#allocation3 + $0x68] sm:$0xff] %vm9021_vm15, %v3087_v12  ;;  %vm9027_vm15 = vmmov %vm9024_vm6 }
 0x1dc   : > { %v3574_v26 = vpop.permute.xlu1 %3573  ;;  %v3406_v18 = vpop.permute.xlu0 %3405 }
 0x1dd   : > { %3615 = vst.msk [vmem:[#allocation3 + $0x38] sm:$0xff] %vm3607_vm8, %v3574_v26  ;;  %4134 = vrot.lane.b32.xlu0 %v6086_v6, %s6576_s12 }
 0x1de   : > { %3442 = vst.msk [vmem:[#allocation3 + $0x60] sm:$0xff] %vm3429_vm7, %v3406_v18 }
 0x1e0   : > { %v4117_v49 = vpop.permute.xlu1 %4116  ;;  %v3408_v11 = vpop.permute.xlu0 %3407 }
 0x1e1   : > { %4159 = vst.msk [vmem:[#allocation3 + $0x30] sm:$0xff] %vm4152_vm9, %v4117_v49  ;;  %4453 = vrot.lane.b32.xlu0 %v6117_v57, %s6574_s29 }
 0x1e2   : > { %3443 = vst.msk [vmem:[#allocation3 + $0x68] sm:$0xff] %vm3429_vm7, %v3408_v11 }
 0x1e4   : > { %v3584_v27 = vpop.permute.xlu0 %3583 }
 0x1e5   : > { %3620 = vst.msk [vmem:[#allocation3 + $0x60] sm:$0xff] %vm3607_vm8, %v3584_v27  ;;  %4455 = vrot.lane.b32.xlu0 %v6118_v60, %s6574_s29 }
 0x1e6   : > { %v4119_v55 = vpop.permute.xlu1 %4118 }
 0x1e7   : > { %4160 = vst.msk [vmem:[#allocation3 + $0x38] sm:$0xff] %vm4152_vm9, %v4119_v55 }
 0x1e9   : > { %4582 = vrot.lane.b32.xlu0 %v4536_v21, %s6568_s21 }
 0x1ea   : > { %v4438_v28 = vpop.permute.xlu1 %4437 }
 0x1eb   : > { %4480 = vst.msk [vmem:[#allocation3 + $0x30] sm:$0xff] %vm4473_vm12, %v4438_v28  ;;  %v3586_v14 = vpop.permute.xlu0 %3585 }
 0x1ec   : > { %3621 = vst.msk [vmem:[#allocation3 + $0x68] sm:$0xff] %vm3607_vm8, %v3586_v14 }
 0x1ef   : > { %v4129_v38 = vpop.permute.xlu0 %4128 }
 0x1f0   : > { %4165 = vst.msk [vmem:[#allocation3 + $0x60] sm:$0xff] %vm4152_vm9, %v4129_v38 }
 0x1f5   : > { %v2031_v5 = vpop.permute.xlu0 %2030 }
 0x1f6   : > { %2071 = vst.msk [vmem:[#allocation3 + $0x40] sm:$0xff] %vm2062_vm1, %v2031_v5 }
 0x1f7   : > { %v4131_v35 = vpop.permute.xlu1 %4130 }
 0x1f8   : > { %4166 = vst.msk [vmem:[#allocation3 + $0x68] sm:$0xff] %vm4152_vm9, %v4131_v35 }
 0x1f9   : > { %v4440_v53 = vpop.permute.xlu0 %4439 }
 0x1fa   : > { %4481 = vst.msk [vmem:[#allocation3 + $0x38] sm:$0xff] %vm4473_vm12, %v4440_v53 }
 0x1fb   : > { %v4450_v48 = vpop.permute.xlu1 %4449 }
 0x1fc   : > { %4486 = vst.msk [vmem:[#allocation3 + $0x60] sm:$0xff] %vm4473_vm12, %v4450_v48 }
 0x1fd   : > { %v4567_v4 = vpop.permute.xlu0 %4566 }
 0x1fe   : > { %4609 = vst.msk [vmem:[#allocation3 + $0x30] sm:$0xff] %vm9022_vm10, %v4567_v4 }
 0x1ff   : > { %v2033_v62 = vpop.permute.xlu1 %2032 }
 0x200   : > { %2072 = vst.msk [vmem:[#allocation3 + $0x48] sm:$0xff] %vm2062_vm1, %v2033_v62 }
 0x203   : > { %v2355_v22 = vpop.permute.xlu1 %2354 }
 0x204   : > { %2395 = vst.msk [vmem:[#allocation3 + $0x40] sm:$0xff] %vm2386_vm2, %v2355_v22  ;;  %v2043_v52 = vpop.permute.xlu0 %2042 }
 0x205   : > { %2077 = vst.msk [vmem:[#allocation3 + $0x70] sm:$0xff] %vm2062_vm1, %v2043_v52  ;;  %v4625_v16 = vld [vmem:[#allocation3 + $0x30] sm:$0xff] }
 0x206   : > { %6310 = vmatprep.mubr.msk.bf16.mxu0 %vm9023_vm11, %v4625_v16 }
 0x207   : > { %v4569_v32 = vpop.permute.xlu1 %4568 }
 0x208   : > { %4610 = vst.msk [vmem:[#allocation3 + $0x38] sm:$0xff] %vm9024_vm6, %v4569_v32  ;;  %v4452_v17 = vpop.permute.xlu0 %4451  ;;  %vm5529_vm6 = vcmask 1046534  }
 0x209   : > { %4487 = vst.msk [vmem:[#allocation3 + $0x68] sm:$0xff] %vm4473_vm12, %v4452_v17 }
 0x20b   : > { %v6300_v1 = vpop.f32.mrb[0].mxu0  ;;  %v2045_v61 = vpop.permute.xlu1 %2044 }
 0x20c   : > { %v4768_v44 = vpop.f32.mrb[1].mxu0  ;;  %2078 = vst.msk [vmem:[#allocation3 + $0x78] sm:$0xff] %vm2062_vm1, %v2045_v61  ;;  %v4579_v63 = vpop.permute.xlu0 %4578  ;;  %vm9026_vm1 = vmmov %vm9023_vm11  ;;  %v4777_v43 = vadd.f32 %v6300_v1, %v8664_v20  ;;  %vm5526_vm11 = vcmask 1045509  }
 0x20d   : > { %v4769_v30 = vadd.f32 %v8664_v20, %v4768_v44  ;;  %v6301_v46 = vpop.f32.mrb[2].mxu0  ;;  %4615 = vst.msk [vmem:[#allocation3 + $0x60] sm:$0xff] %vm9025_vm13, %v4579_v63  ;;  %vm9028_vm10 = vmmov %vm9026_vm1  ;;  %vm5532_vm13 = vcmask 1047559  }
 0x20e   : > { %v4771_v41 = vpop.f32.mrb[3].mxu0  ;;  %v4780_v38 = vadd.f32 %v6301_v46, %v8664_v20 }
 0x20f   : > { %v4977_v29 = vcombine.high %v4769_v30, %v4769_v30  ;;  %v4984_v15 = vrot.slane %v4769_v30, %v8667_v58  ;;  %v4772_v40 = vadd.f32 %v8664_v20, %v4771_v41  ;;  %4895 = vxpose.xlu0.b32.start [1/16] (narrow) %v4769_v30, 8  ;;  %v2367_v13 = vpop.permute.xlu1 %2366  ;;  %v4626_v42 = vld [vmem:[#allocation3 + $0x38] sm:$0xff] }
 0x210   : > { %2401 = vst.msk [vmem:[#allocation3 + $0x70] sm:$0xff] %vm2386_vm2, %v2367_v13  ;;  %6311 = vmatmul.mubr.msk.bf16.gmra.mrb[12].mxu0 %vm9026_vm1, %v4626_v42  ;;  %v2357_v36 = vpop.permute.xlu0 %2356  ;;  %vm9029_vm1 = vcmask 326912  }
 0x211   : > { %v4991_v56 = vrot.slane %v4977_v29, %v8667_v58  ;;  %v4992_v24 = vcombine.high %v4984_v15, %v4984_v15  ;;  %v5313_v47 = vpack.c.bf16 %v4984_v15, %v4984_v15  ;;  %v4994_v2 = vcombine.high %v4772_v40, %v4772_v40  ;;  %2396 = vst.msk [vmem:[#allocation3 + $0x48] sm:$0xff] %vm2386_vm2, %v2357_v36 }
 0x212   : > { %v5001_v7 = vrot.slane %v4772_v40, %v8667_v58 }
 0x213   : > { %v4993_v19 = vcombine.high %v4991_v56, %v4991_v56  ;;  %v5314_v8 = vpack.c.bf16 %v4992_v24, %v4992_v24  ;;  %v5315_v34 = vpack.c.bf16 %v4991_v56, %v4991_v56  ;;  %4896 = vxpose.xlu0.b32.cont [2/16] (narrow) %v4772_v40, 8  ;;  %v8680_v25 = vpop.f32.mrb[4].mxu0  ;;  %v5449_v12 = vunpack.c.l.b16 %v5313_v47  ;;  %v4581_v23 = vpop.permute.xlu1 %4580 }
 0x214   : > { %v5008_v6 = vrot.slane %v4994_v2, %v8667_v58  ;;  %v5009_v33 = vcombine.high %v5001_v7, %v5001_v7  ;;  %v5317_v9 = vpack.c.bf16 %v5001_v7, %v5001_v7  ;;  %v4784_v54 = vpop.f32.mrb[5].mxu0  ;;  %4616 = vst.msk [vmem:[#allocation3 + $0x68] sm:$0xff] %vm9027_vm15, %v4581_v23  ;;  %v2532_v37 = vpop.permute.xlu0 %2531  ;;  %v4631_v49 = vld [vmem:[#allocation3 + $0x60] sm:$0xff]  ;;  %vm9031_vm15 = vmmov %vm9029_vm1 }
 0x215   : > { %v5316_v45 = vpack.c.bf16 %v4993_v19, %v4993_v19  ;;  %v5450_v26 = vunpack.c.l.b16 %v5314_v8  ;;  %v5451_v18 = vunpack.c.l.b16 %v5315_v34  ;;  %v4785_v57 = vadd.f32 %v8664_v20, %v4784_v54  ;;  %v8684_v50 = vpop.f32.mrb[6].mxu0  ;;  %2572 = vst.msk [vmem:[#allocation3 + $0x40] sm:$0xff] %vm2563_vm4, %v2532_v37  ;;  %6322 = vmatprep.mubr.msk.bf16.mxu1 %vm9028_vm10, %v4631_v49 }
 0x216   : > { %v5010_v11 = vcombine.high %v5008_v6, %v5008_v6  ;;  %v5318_v60 = vpack.c.bf16 %v5009_v33, %v5009_v33  ;;  %v5319_v51 = vpack.c.bf16 %v5008_v6, %v5008_v6  ;;  %v5453_v0 = vunpack.c.l.b16 %v5317_v9  ;;  %v4787_v27 = vpop.f32.mrb[7].mxu0 }
 0x217   : > { %v5452_v21 = vunpack.c.l.b16 %v5316_v45  ;;  %v5513_v55 = vrot.slane %v5450_v26, 7  ;;  %v5516_v28 = vrot.slane %v5451_v18, 6  ;;  %4897 = vxpose.xlu0.b32.cont [3/16] (narrow) %v4777_v43, 8  ;;  %v5011_v14 = vcombine.high %v4785_v57, %v4785_v57  ;;  %v2534_v53 = vpop.permute.xlu1 %2533 }
 0x218   : > { %v5320_v5 = vpack.c.bf16 %v5010_v11, %v5010_v11  ;;  %v5454_v35 = vunpack.c.l.b16 %v5318_v60  ;;  %v5018_v62 = vrot.slane %v4785_v57, %v8667_v58  ;;  %2573 = vst.msk [vmem:[#allocation3 + $0x48] sm:$0xff] %vm2563_vm4, %v2534_v53  ;;  %v2369_v10 = vpop.permute.xlu0 %2368  ;;  %v5455_v22 = vunpack.c.l.b16 %v5319_v51 }
 0x219   : > { %v5515_v48 = vsel %vm5514_vm0, %v5513_v55, %v5449_v12  ;;  %v5519_v4 = vrot.slane %v5452_v21, 5  ;;  %v5025_v3 = vrot.slane %v5011_v14, %v8667_v58  ;;  %v5522_v52 = vrot.slane %v5453_v0, 4  ;;  %2402 = vst.msk [vmem:[#allocation3 + $0x78] sm:$0xff] %vm2386_vm2, %v2369_v10  ;;  %vm9030_vm2 = vmmov %vm9028_vm10 }
 0x21a   : > { %v5518_v39 = vsel %vm5517_vm3, %v5516_v28, %v5515_v48  ;;  %v5026_v59 = vcombine.high %v5018_v62, %v5018_v62  ;;  %v5321_v32 = vpack.c.bf16 %v5018_v62, %v5018_v62  ;;  %v5456_v17 = vunpack.c.l.b16 %v5320_v5  ;;  %vm9032_vm10 = vmmov %vm9029_vm1 }
 0x21b   : > { %v5521_v16 = vsel %vm5520_vm5, %v5519_v4, %v5518_v39  ;;  %v5027_v31 = vcombine.high %v5025_v3, %v5025_v3  ;;  %4898 = vxpose.xlu0.b32.cont [4/16] (narrow) %v4780_v38, 8  ;;  %v5525_v44 = vrot.slane %v5454_v35, 3  ;;  %v5323_v61 = vpack.c.bf16 %v5025_v3, %v5025_v3  ;;  %v3077_v30 = vpop.permute.xlu1 %3076  ;;  %v4632_v46 = vld [vmem:[#allocation3 + $0x68] sm:$0xff] }
 0x21c   : > { %v5524_v1 = vsel %vm5523_vm14, %v5522_v52, %v5521_v16  ;;  %v5322_v63 = vpack.c.bf16 %v5026_v59, %v5026_v59  ;;  %v4788_v29 = vadd.f32 %v8664_v20, %v4787_v27  ;;  %3117 = vst.msk [vmem:[#allocation3 + $0x40] sm:$0xff] %vm9029_vm1, %v3077_v30  ;;  %6323 = vmatmul.mubr.msk.bf16.gmra.mrb[4].mxu1 %vm9030_vm2, %v4632_v46  ;;  %v2544_v15 = vpop.permute.xlu0 %2543  ;;  %v5528_v40 = vrot.slane %v5455_v22, 2 }
 0x21d   : > { %v5324_v41 = vpack.c.bf16 %v5027_v31, %v5027_v31  ;;  %v5457_v13 = vunpack.c.l.b16 %v5321_v32  ;;  %v5459_v42 = vunpack.c.l.b16 %v5323_v61  ;;  %v5527_v56 = vsel %vm5526_vm11, %v5525_v44, %v5524_v1  ;;  %2578 = vst.msk [vmem:[#allocation3 + $0x70] sm:$0xff] %vm2563_vm4, %v2544_v15 }
 0x21e   : > { %v5458_v24 = vunpack.c.l.b16 %v5322_v63  ;;  %v5028_v2 = vcombine.high %v4788_v29, %v4788_v29  ;;  %v5035_v36 = vrot.slane %v4788_v29, %v8667_v58  ;;  %v5531_v7 = vrot.slane %v5456_v17, 1 }
 0x21f   : > { %v5460_v47 = vunpack.c.l.b16 %v5324_v41  ;;  %4899 = vxpose.xlu0.b32.cont [5/16] (narrow) %v4785_v57, 8  ;;  %v5536_v43 = vrot.slane %v5459_v42, 6  ;;  %v5530_v19 = vsel %vm5529_vm6, %v5528_v40, %v5527_v56  ;;  %v3079_v8 = vpop.permute.xlu1 %3078  ;;  %v4793_v57 = vadd.f32 %v8680_v25, %v8664_v20 }
 0x220   : > { %v5534_v34 = vrot.slane %v5458_v24, 7  ;;  %v5042_v6 = vrot.slane %v5028_v2, %v8667_v58  ;;  %v5043_v33 = vcombine.high %v5035_v36, %v5035_v36  ;;  %3118 = vst.msk [vmem:[#allocation3 + $0x48] sm:$0xff] %vm9031_vm15, %v3079_v8  ;;  %v5325_v9 = vpack.c.bf16 %v5035_v36, %v5035_v36 }
 0x221   : > { %v5538_v12 = vrot.slane %v5460_v47, 5  ;;  %v8708_v54 = vsel %vm5532_vm13, %v5531_v7, %v5530_v19  ;;  %v4796_v25 = vadd.f32 %v8684_v50, %v8664_v20  ;;  %vm9035_vm15 = vcmask 621568   ;;  %v5377_v47 = vld [vmem:[%s8914_s6] sm:$0xf] }
 0x222   : > { %v5535_v23 = vsel %vm5514_vm0, %v5534_v34, %v5457_v13  ;;  %v5044_v45 = vcombine.high %v5042_v6, %v5042_v6  ;;  %v5326_v26 = vpack.c.bf16 %v5043_v33, %v5043_v33  ;;  %v5327_v18 = vpack.c.bf16 %v5042_v6, %v5042_v6 }
 0x223   : > { %4900 = vxpose.xlu0.b32.cont [6/16] (narrow) %v4788_v29, 8  ;;  %v5537_v37 = vsel %vm5517_vm3, %v5536_v43, %v5535_v23  ;;  %v5461_v49 = vunpack.c.l.b16 %v5325_v9  ;;  %v3398_v11 = vpop.permute.xlu1 %3397 }
 0x224   : > { %v5328_v60 = vpack.c.bf16 %v5044_v45, %v5044_v45  ;;  %v5462_v51 = vunpack.c.l.b16 %v5326_v26  ;;  %v5463_v0 = vunpack.c.l.b16 %v5327_v18  ;;  %v5539_v27 = vsel %vm5520_vm5, %v5538_v12, %v5537_v37  ;;  %3438 = vst.msk [vmem:[#allocation3 + $0x40] sm:$0xff] %vm3429_vm7, %v3398_v11 }
 0x225   : > { %v5540_v21 = vrot.slane %v5461_v49, 4 }
 0x226   : > { %v5464_v55 = vunpack.c.l.b16 %v5328_v60  ;;  %v5542_v28 = vrot.slane %v5462_v51, 3  ;;  %v5544_v14 = vrot.slane %v5463_v0, 2 }
 0x227   : > { %4901 = vxpose.xlu0.b32.cont [7/16] (narrow) %v4793_v57, 8  ;;  %v5541_v38 = vsel %vm5523_vm14, %v5540_v21, %v5539_v27  ;;  %v3400_v5 = vpop.permute.xlu1 %3399 }
 0x228   : > { %v5546_v35 = vrot.slane %v5464_v55, 1  ;;  %v5543_v53 = vsel %vm5526_vm11, %v5542_v28, %v5541_v38  ;;  %3439 = vst.msk [vmem:[#allocation3 + $0x48] sm:$0xff] %vm3429_vm7, %v3400_v5 }
 0x229   : > { %v5545_v48 = vsel %vm5529_vm6, %v5544_v14, %v5543_v53 }
 0x22a   : > { %v5547_v4 = vsel %vm5532_vm13, %v5546_v35, %v5545_v48 }
 0x22b   : > { %4902 = vxpose.xlu0.b32.cont [8/16] (narrow) %v4796_v25, 8  ;;  %v5632_v62 = vpack.c.b16 %v5547_v4, %v8708_v54  ;;  %v3576_v3 = vpop.permute.xlu1 %3575  ;;  %v2546_v10 = vpop.permute.xlu0 %2545 }
 0x22c   : > { %3616 = vst.msk [vmem:[#allocation3 + $0x40] sm:$0xff] %vm3607_vm8, %v3576_v3 }
 0x22d   : > { %2579 = vst.msk [vmem:[#allocation3 + $0x78] sm:$0xff] %vm2563_vm4, %v2546_v10  ;;  %vm9033_vm4 = vcmask 622144  }
 0x22e   : > { %vm9034_vm2 = vmmov %vm9033_vm4 }
 0x22f   : > { %v3578_v39 = vpop.permute.xlu1 %3577  ;;  %v3089_v50 = vpop.permute.xlu0 %3088 }
 0x230   : > { %3617 = vst.msk [vmem:[#allocation3 + $0x48] sm:$0xff] %vm3607_vm8, %v3578_v39 }
 0x231   : > { %3123 = vst.msk [vmem:[#allocation3 + $0x70] sm:$0xff] %vm9032_vm10, %v3089_v50  ;;  %vm9038_vm10 = vmmov %vm9034_vm2 }
 0x233   : > { %v4121_v22 = vpop.permute.xlu1 %4120 }
 0x234   : > { %4161 = vst.msk [vmem:[#allocation3 + $0x40] sm:$0xff] %vm4152_vm9, %v4121_v22 }
 0x237   : > { %v3091_v52 = vpop.permute.xlu0 %3090  ;;  %v4123_v16 = vpop.permute.xlu1 %4122 }
 0x238   : > { %3124 = vst.msk [vmem:[#allocation3 + $0x78] sm:$0xff] %vm9029_vm1, %v3091_v52 }
 0x239   : > { %4162 = vst.msk [vmem:[#allocation3 + $0x48] sm:$0xff] %vm4152_vm9, %v4123_v16 }
 0x23b   : > { %v3410_v59 = vpop.permute.xlu0 %3409  ;;  %v4442_v31 = vpop.permute.xlu1 %4441 }
 0x23c   : > { %3444 = vst.msk [vmem:[#allocation3 + $0x70] sm:$0xff] %vm3429_vm7, %v3410_v59 }
 0x23d   : > { %4482 = vst.msk [vmem:[#allocation3 + $0x40] sm:$0xff] %vm4473_vm12, %v4442_v31 }
 0x23f   : > { %v3412_v32 = vpop.permute.xlu0 %3411  ;;  %v4444_v17 = vpop.permute.xlu1 %4443 }
 0x240   : > { %3445 = vst.msk [vmem:[#allocation3 + $0x78] sm:$0xff] %vm3429_vm7, %v3412_v32  ;;  %vm9036_vm7 = vmmov %vm9035_vm15 }
 0x241   : > { %4483 = vst.msk [vmem:[#allocation3 + $0x48] sm:$0xff] %vm4473_vm12, %v4444_v17  ;;  %vm9039_vm1 = vmmov %vm9036_vm7 }
 0x243   : > { %v3588_v1 = vpop.permute.xlu0 %3587  ;;  %v4571_v44 = vpop.permute.xlu1 %4570 }
 0x244   : > { %3622 = vst.msk [vmem:[#allocation3 + $0x70] sm:$0xff] %vm3607_vm8, %v3588_v1 }
 0x245   : > { %4611 = vst.msk [vmem:[#allocation3 + $0x40] sm:$0xff] %vm9033_vm4, %v4571_v44  ;;  %vm9040_vm4 = vmmov %vm9039_vm1 }
 0x247   : > { %v3590_v61 = vpop.permute.xlu0 %3589  ;;  %v4573_v30 = vpop.permute.xlu1 %4572 }
 0x248   : > { %3623 = vst.msk [vmem:[#allocation3 + $0x78] sm:$0xff] %vm3607_vm8, %v3590_v61  ;;  %vm9037_vm8 = vmmov %vm9034_vm2 }
 0x249   : > { %4612 = vst.msk [vmem:[#allocation3 + $0x48] sm:$0xff] %vm9034_vm2, %v4573_v30  ;;  %vm5648_vm2 = vcmask 1043456  }
 0x24a   : > { %6352 = vmatprep.subr.msk.bf16.mxu1 %vm5648_vm2, %v5377_v47  ;;  %v5650_v36 = vsel %vm5648_vm2, %v5377_v47, 0 }
 0x24b   : > { %v4133_v46 = vpop.permute.xlu0 %4132  ;;  %v4585_v40 = vpop.permute.xlu1 %4584  ;;  %6331 = vmatpush3.bf16.msra.mxu1 %v5650_v36 }
 0x24c   : > { %v4627_v63 = vld [vmem:[#allocation3 + $0x40] sm:$0xff]  ;;  %4167 = vst.msk [vmem:[#allocation3 + $0x70] sm:$0xff] %vm4152_vm9, %v4133_v46 }
 0x24d   : > { %6314 = vmatprep.mubr.msk.bf16.mxu0 %vm9035_vm15, %v4627_v63 }
 0x24f   : > { %v4135_v41 = vpop.permute.xlu0 %4134 }
 0x250   : > { %v4628_v29 = vld [vmem:[#allocation3 + $0x48] sm:$0xff]  ;;  %4168 = vst.msk [vmem:[#allocation3 + $0x78] sm:$0xff] %vm4152_vm9, %v4135_v41  ;;  %vm9041_vm9 = vcmask 64512  }
 0x251   : > { %6315 = vmatmul.mubr.msk.bf16.gmra.mrb[16].mxu0 %vm9036_vm7, %v4628_v29  ;;  %vm9043_vm15 = vmmov %vm9041_vm9 }
 0x253   : > { %v4454_v15 = vpop.permute.xlu0 %4453 }
 0x254   : > { %4488 = vst.msk [vmem:[#allocation3 + $0x70] sm:$0xff] %vm4473_vm12, %v4454_v15 }
 0x257   : > { %v4456_v13 = vpop.permute.xlu0 %4455 }
 0x258   : > { %4489 = vst.msk [vmem:[#allocation3 + $0x78] sm:$0xff] %vm4473_vm12, %v4456_v13  ;;  %vm9042_vm12 = vmmov %vm9041_vm9 }
 0x259   : > { %4618 = vst.msk [vmem:[#allocation3 + $0x78] sm:$0xff] %vm9037_vm8, %v4585_v40 }
 0x25b   : > { %v4583_v42 = vpop.permute.xlu0 %4582 }
 0x25c   : > { %4617 = vst.msk [vmem:[#allocation3 + $0x70] sm:$0xff] %vm9038_vm10, %v4583_v42 }
 0x260   : > { %v4634_v56 = vld [vmem:[#allocation3 + $0x78] sm:$0xff] }
 0x263   : > { %v4633_v24 = vld [vmem:[#allocation3 + $0x70] sm:$0xff] }
 0x264   : > { %6326 = vmatprep.mubr.msk.bf16.mxu1 %vm9039_vm1, %v4633_v24 }
 0x265   : > { %6327 = vmatmul.mubr.msk.bf16.gmra.mrb[8].mxu1 %vm9040_vm4, %v4634_v56 }
 0x266   : > { %6332 = vmatprep.mubr.msk.bf16.mxu1 %vm9041_vm9, %v5632_v62 }
 0x281   : > { %v6308_v2 = vpop.f32.mrb[8].mxu0 }
 0x282   : > { %v4800_v7 = vpop.f32.mrb[9].mxu0  ;;  %v4809_v37 = vadd.f32 %v6308_v2, %v8664_v20 }
 0x283   : > { %v4801_v43 = vadd.f32 %v8664_v20, %v4800_v7  ;;  %v6309_v19 = vpop.f32.mrb[10].mxu0 }
 0x284   : > { %v4803_v8 = vpop.f32.mrb[11].mxu0  ;;  %v4812_v39 = vadd.f32 %v6309_v19, %v8664_v20 }
 0x285   : > { %v5045_v34 = vcombine.high %v4801_v43, %v4801_v43  ;;  %v5052_v12 = vrot.slane %v4801_v43, %v8667_v58  ;;  %4903 = vxpose.xlu0.b32.cont [9/16] (narrow) %v4801_v43, 8  ;;  %v4804_v6 = vadd.f32 %v8664_v20, %v4803_v8 }
 0x287   : > { %v5059_v33 = vrot.slane %v5045_v34, %v8667_v58  ;;  %v5060_v9 = vcombine.high %v5052_v12, %v5052_v12  ;;  %v5329_v54 = vpack.c.bf16 %v5052_v12, %v5052_v12  ;;  %v5062_v23 = vcombine.high %v4804_v6, %v4804_v6 }
 0x288   : > { %v5069_v45 = vrot.slane %v4804_v6, %v8667_v58 }
 0x289   : > { %v5061_v26 = vcombine.high %v5059_v33, %v5059_v33  ;;  %v5330_v18 = vpack.c.bf16 %v5060_v9, %v5060_v9  ;;  %v5331_v57 = vpack.c.bf16 %v5059_v33, %v5059_v33  ;;  %4904 = vxpose.xlu0.b32.cont [10/16] (narrow) %v4804_v6, 8  ;;  %v5076_v49 = vrot.slane %v5062_v23, %v8667_v58 }
 0x28a   : > { %v5077_v11 = vcombine.high %v5069_v45, %v5069_v45  ;;  %v5333_v60 = vpack.c.bf16 %v5069_v45, %v5069_v45  ;;  %v5465_v0 = vunpack.c.l.b16 %v5329_v54 }
 0x28b   : > { %v5332_v51 = vpack.c.bf16 %v5061_v26, %v5061_v26  ;;  %v5466_v27 = vunpack.c.l.b16 %v5330_v18  ;;  %v5467_v21 = vunpack.c.l.b16 %v5331_v57  ;;  %v5078_v55 = vcombine.high %v5076_v49, %v5076_v49 }
 0x28c   : > { %v5334_v28 = vpack.c.bf16 %v5077_v11, %v5077_v11  ;;  %v5335_v14 = vpack.c.bf16 %v5076_v49, %v5076_v49  ;;  %v5469_v38 = vunpack.c.l.b16 %v5333_v60 }
 0x28d   : > { %v5468_v5 = vunpack.c.l.b16 %v5332_v51  ;;  %v5548_v25 = vrot.slane %v5466_v27, 7  ;;  %v5550_v35 = vrot.slane %v5467_v21, 6  ;;  %4905 = vxpose.xlu0.b32.cont [11/16] (narrow) %v4809_v37, 8  ;;  %v5336_v53 = vpack.c.bf16 %v5078_v55, %v5078_v55 }
 0x28e   : > { %v5470_v48 = vunpack.c.l.b16 %v5334_v28  ;;  %v5471_v4 = vunpack.c.l.b16 %v5335_v14  ;;  %v5554_v62 = vrot.slane %v5469_v38, 4 }
 0x28f   : > { %v5549_v3 = vsel %vm5514_vm0, %v5548_v25, %v5465_v0  ;;  %v5552_v10 = vrot.slane %v5468_v5, 5  ;;  %v5472_v22 = vunpack.c.l.b16 %v5336_v53  ;;  %v8765_v17 = vpop.f32.mrb[0].mxu1 }
 0x290   : > { %v5551_v50 = vsel %vm5517_vm3, %v5550_v35, %v5549_v3  ;;  %v5556_v52 = vrot.slane %v5470_v48, 3  ;;  %v5558_v16 = vrot.slane %v5471_v4, 2  ;;  %v4848_v44 = vpop.f32.mrb[1].mxu1 }
 0x291   : > { %v5553_v59 = vsel %vm5520_vm5, %v5552_v10, %v5551_v50  ;;  %4906 = vxpose.xlu0.b32.cont [12/16] (narrow) %v4812_v39, 8  ;;  %v5560_v32 = vrot.slane %v5472_v22, 1  ;;  %v8770_v30 = vadd.f32 %v8664_v20, %v4848_v44  ;;  %v8772_v46 = vpop.f32.mrb[2].mxu1 }
 0x292   : > { %v5555_v31 = vsel %vm5523_vm14, %v5554_v62, %v5553_v59  ;;  %v4851_v41 = vpop.f32.mrb[3].mxu1 }
 0x293   : > { %v5557_v1 = vsel %vm5526_vm11, %v5556_v52, %v5555_v31  ;;  %v5147_v29 = vcombine.high %v8770_v30, %v8770_v30  ;;  %v5154_v15 = vrot.slane %v8770_v30, %v8667_v58  ;;  %v8782_v40 = vadd.f32 %v8664_v20, %v4851_v41 }
 0x294   : > { %v5559_v61 = vsel %vm5529_vm6, %v5558_v16, %v5557_v1 }
 0x295   : > { %v8775_v63 = vsel %vm5532_vm13, %v5560_v32, %v5559_v61  ;;  %v5161_v13 = vrot.slane %v5147_v29, %v8667_v58  ;;  %v5162_v42 = vcombine.high %v5154_v15, %v5154_v15  ;;  %v5353_v56 = vpack.c.bf16 %v5154_v15, %v5154_v15 }
 0x296   : > { %v5164_v24 = vcombine.high %v8782_v40, %v8782_v40  ;;  %v5171_v47 = vrot.slane %v8782_v40, %v8667_v58 }
 0x297   : > { %v5163_v2 = vcombine.high %v5161_v13, %v5161_v13  ;;  %v5354_v36 = vpack.c.bf16 %v5162_v42, %v5162_v42  ;;  %v5355_v7 = vpack.c.bf16 %v5161_v13, %v5161_v13  ;;  %v5489_v12 = vunpack.c.l.b16 %v5353_v56 }
 0x298   : > { %v5178_v43 = vrot.slane %v5164_v24, %v8667_v58  ;;  %v5179_v19 = vcombine.high %v5171_v47, %v5171_v47  ;;  %v5357_v8 = vpack.c.bf16 %v5171_v47, %v5171_v47 }
 0x299   : > { %v5356_v34 = vpack.c.bf16 %v5163_v2, %v5163_v2  ;;  %v5490_v6 = vunpack.c.l.b16 %v5354_v36  ;;  %v5491_v33 = vunpack.c.l.b16 %v5355_v7 }
 0x29a   : > { %v5180_v9 = vcombine.high %v5178_v43, %v5178_v43  ;;  %v5358_v54 = vpack.c.bf16 %v5179_v19, %v5179_v19  ;;  %v5359_v23 = vpack.c.bf16 %v5178_v43, %v5178_v43  ;;  %v5493_v45 = vunpack.c.l.b16 %v5357_v8 }
 0x29b   : > { %v5492_v26 = vunpack.c.l.b16 %v5356_v34  ;;  %v5590_v18 = vrot.slane %v5490_v6, 7  ;;  %v5592_v57 = vrot.slane %v5491_v33, 6 }
 0x29c   : > { %v5360_v37 = vpack.c.bf16 %v5180_v9, %v5180_v9  ;;  %v5494_v49 = vunpack.c.l.b16 %v5358_v54  ;;  %v5495_v11 = vunpack.c.l.b16 %v5359_v23  ;;  %v5596_v60 = vrot.slane %v5493_v45, 4 }
 0x29d   : > { %v5591_v51 = vsel %vm5514_vm0, %v5590_v18, %v5489_v12  ;;  %v5594_v0 = vrot.slane %v5492_v26, 5 }
 0x29e   : > { %v5593_v27 = vsel %vm5517_vm3, %v5592_v57, %v5591_v51  ;;  %v5496_v21 = vunpack.c.l.b16 %v5360_v37  ;;  %v5598_v55 = vrot.slane %v5494_v49, 3  ;;  %v5600_v28 = vrot.slane %v5495_v11, 2 }
 0x29f   : > { %v5595_v14 = vsel %vm5520_vm5, %v5594_v0, %v5593_v27 }
 0x2a0   : > { %v5597_v38 = vsel %vm5523_vm14, %v5596_v60, %v5595_v14  ;;  %v5602_v5 = vrot.slane %v5496_v21, 1 }
 0x2a1   : > { %v5599_v25 = vsel %vm5526_vm11, %v5598_v55, %v5597_v38 }
 0x2a2   : > { %v5601_v35 = vsel %vm5529_vm6, %v5600_v28, %v5599_v25 }
 0x2a3   : > { %v8797_v53 = vsel %vm5532_vm13, %v5602_v5, %v5601_v35 }
 0x2e3   : > { %v6312_v48 = vpop.f32.mrb[12].mxu0 }
 0x2e4   : > { %v4816_v4 = vpop.f32.mrb[13].mxu0  ;;  %v4825_v41 = vadd.f32 %v6312_v48, %v8664_v20 }
 0x2e5   : > { %v4817_v62 = vadd.f32 %v8664_v20, %v4816_v4  ;;  %v6313_v3 = vpop.f32.mrb[14].mxu0 }
 0x2e6   : > { %v4819_v10 = vpop.f32.mrb[15].mxu0  ;;  %v4828_v18 = vadd.f32 %v6313_v3, %v8664_v20 }
 0x2e7   : > { %v5079_v39 = vcombine.high %v4817_v62, %v4817_v62  ;;  %v5086_v50 = vrot.slane %v4817_v62, %v8667_v58  ;;  %4907 = vxpose.xlu0.b32.cont [13/16] (narrow) %v4817_v62, 8  ;;  %v4820_v22 = vadd.f32 %v8664_v20, %v4819_v10 }
 0x2e9   : > { %v5093_v52 = vrot.slane %v5079_v39, %v8667_v58  ;;  %v5094_v16 = vcombine.high %v5086_v50, %v5086_v50  ;;  %v5337_v59 = vpack.c.bf16 %v5086_v50, %v5086_v50  ;;  %v5096_v31 = vcombine.high %v4820_v22, %v4820_v22 }
 0x2ea   : > { %v5103_v32 = vrot.slane %v4820_v22, %v8667_v58 }
 0x2eb   : > { %v5095_v1 = vcombine.high %v5093_v52, %v5093_v52  ;;  %v5338_v44 = vpack.c.bf16 %v5094_v16, %v5094_v16  ;;  %v5339_v61 = vpack.c.bf16 %v5093_v52, %v5093_v52  ;;  %4908 = vxpose.xlu0.b32.cont [14/16] (narrow) %v4820_v22, 8  ;;  %v5110_v29 = vrot.slane %v5096_v31, %v8667_v58 }
 0x2ec   : > { %v5111_v15 = vcombine.high %v5103_v32, %v5103_v32  ;;  %v5341_v13 = vpack.c.bf16 %v5103_v32, %v5103_v32  ;;  %v5473_v56 = vunpack.c.l.b16 %v5337_v59 }
 0x2ed   : > { %v5340_v42 = vpack.c.bf16 %v5095_v1, %v5095_v1  ;;  %v5474_v24 = vunpack.c.l.b16 %v5338_v44  ;;  %v5475_v47 = vunpack.c.l.b16 %v5339_v61  ;;  %v5112_v2 = vcombine.high %v5110_v29, %v5110_v29 }
 0x2ee   : > { %v5342_v36 = vpack.c.bf16 %v5111_v15, %v5111_v15  ;;  %v5343_v7 = vpack.c.bf16 %v5110_v29, %v5110_v29  ;;  %v5477_v43 = vunpack.c.l.b16 %v5341_v13 }
 0x2ef   : > { %v5476_v19 = vunpack.c.l.b16 %v5340_v42  ;;  %v5562_v8 = vrot.slane %v5474_v24, 7  ;;  %v5564_v34 = vrot.slane %v5475_v47, 6  ;;  %v8806_v12 = vpop.f32.mrb[4].mxu1  ;;  %4909 = vxpose.xlu0.b32.cont [15/16] (narrow) %v4825_v41, 8  ;;  %v5344_v6 = vpack.c.bf16 %v5112_v2, %v5112_v2 }
 0x2f0   : > { %v5478_v33 = vunpack.c.l.b16 %v5342_v36  ;;  %v5479_v9 = vunpack.c.l.b16 %v5343_v7  ;;  %v5568_v54 = vrot.slane %v5477_v43, 4  ;;  %v4864_v23 = vpop.f32.mrb[5].mxu1 }
 0x2f1   : > { %v5563_v45 = vsel %vm5514_vm0, %v5562_v8, %v5473_v56  ;;  %v5566_v26 = vrot.slane %v5476_v19, 5  ;;  %v8811_v57 = vadd.f32 %v8664_v20, %v4864_v23  ;;  %v8813_v37 = vpop.f32.mrb[6].mxu1  ;;  %v5480_v11 = vunpack.c.l.b16 %v5344_v6 }
 0x2f2   : > { %v5565_v49 = vsel %vm5517_vm3, %v5564_v34, %v5563_v45  ;;  %v5570_v60 = vrot.slane %v5478_v33, 3  ;;  %v5572_v51 = vrot.slane %v5479_v9, 2  ;;  %v4867_v0 = vpop.f32.mrb[7].mxu1 }
 0x2f3   : > { %v5567_v27 = vsel %vm5520_vm5, %v5566_v26, %v5565_v49  ;;  %v5181_v21 = vcombine.high %v8811_v57, %v8811_v57  ;;  %v5188_v55 = vrot.slane %v8811_v57, %v8667_v58  ;;  %4910 = vxpose.xlu0.b32.end [16/16] (narrow) %v4828_v18, 8  ;;  %v5574_v14 = vrot.slane %v5480_v11, 1 }
 0x2f4   : > { %v5569_v28 = vsel %vm5523_vm14, %v5568_v54, %v5567_v27  ;;  %v8823_v38 = vadd.f32 %v8664_v20, %v4867_v0 }
 0x2f5   : > { %v5571_v5 = vsel %vm5526_vm11, %v5570_v60, %v5569_v28  ;;  %v5195_v25 = vrot.slane %v5181_v21, %v8667_v58  ;;  %v5196_v35 = vcombine.high %v5188_v55, %v5188_v55  ;;  %v5361_v48 = vpack.c.bf16 %v5188_v55, %v5188_v55 }
 0x2f6   : > { %v5573_v4 = vsel %vm5529_vm6, %v5572_v51, %v5571_v5  ;;  %v5198_v62 = vcombine.high %v8823_v38, %v8823_v38  ;;  %v5205_v3 = vrot.slane %v8823_v38, %v8667_v58 }
 0x2f7   : > { %v5575_v10 = vsel %vm5532_vm13, %v5574_v14, %v5573_v4  ;;  %v5197_v39 = vcombine.high %v5195_v25, %v5195_v25  ;;  %v5362_v50 = vpack.c.bf16 %v5196_v35, %v5196_v35  ;;  %v5363_v22 = vpack.c.bf16 %v5195_v25, %v5195_v25 }
 0x2f8   : > { %v5633_v52 = vpack.c.b16 %v5575_v10, %v8775_v63  ;;  %v5497_v16 = vunpack.c.l.b16 %v5361_v48  ;;  %v5212_v59 = vrot.slane %v5198_v62, %v8667_v58  ;;  %v5213_v31 = vcombine.high %v5205_v3, %v5205_v3 }
 0x2f9   : > { %v5364_v32 = vpack.c.bf16 %v5197_v39, %v5197_v39  ;;  %v5498_v1 = vunpack.c.l.b16 %v5362_v50  ;;  %v5499_v44 = vunpack.c.l.b16 %v5363_v22  ;;  %v5365_v61 = vpack.c.bf16 %v5205_v3, %v5205_v3 }
 0x2fa   : > { %v5214_v41 = vcombine.high %v5212_v59, %v5212_v59  ;;  %v5366_v29 = vpack.c.bf16 %v5213_v31, %v5213_v31  ;;  %v5367_v15 = vpack.c.bf16 %v5212_v59, %v5212_v59  ;;  %6333 = vmatmul.mubr.msk.bf16.vlgmr.msra.gmra.mrb[12].mxu1 %vm9042_vm12, %v5633_v52 }
 0x2fb   : > { %v5500_v13 = vunpack.c.l.b16 %v5364_v32  ;;  %v5604_v42 = vrot.slane %v5498_v1, 7  ;;  %v5606_v56 = vrot.slane %v5499_v44, 6  ;;  %v5501_v24 = vunpack.c.l.b16 %v5365_v61 }
 0x2fc   : > { %v5368_v47 = vpack.c.bf16 %v5214_v41, %v5214_v41  ;;  %v5502_v2 = vunpack.c.l.b16 %v5366_v29  ;;  %v5503_v63 = vunpack.c.l.b16 %v5367_v15 }
 0x2fd   : > { %v5605_v36 = vsel %vm5514_vm0, %v5604_v42, %v5497_v16  ;;  %v5608_v7 = vrot.slane %v5500_v13, 5  ;;  %v5610_v43 = vrot.slane %v5501_v24, 4 }
 0x2fe   : > { %v5607_v19 = vsel %vm5517_vm3, %v5606_v56, %v5605_v36  ;;  %v5504_v8 = vunpack.c.l.b16 %v5368_v47  ;;  %v5612_v34 = vrot.slane %v5502_v2, 3  ;;  %v5614_v6 = vrot.slane %v5503_v63, 2 }
 0x2ff   : > { %v5609_v33 = vsel %vm5520_vm5, %v5608_v7, %v5607_v19 }
 0x300   : > { %v5611_v9 = vsel %vm5523_vm14, %v5610_v43, %v5609_v33  ;;  %v5616_v54 = vrot.slane %v5504_v8, 1 }
 0x301   : > { %v5613_v23 = vsel %vm5526_vm11, %v5612_v34, %v5611_v9 }
 0x302   : > { %v5615_v45 = vsel %vm5529_vm6, %v5614_v6, %v5613_v23 }
 0x303   : > { %v8843_v26 = vsel %vm5532_vm13, %v5616_v54, %v5615_v45 }
 0x324   : > { %v6316_v18 = vpop.f32.mrb[16].mxu0 }
 0x325   : > { %v4832_v49 = vpop.f32.mrb[17].mxu0  ;;  %v4841_v62 = vadd.f32 %v6316_v18, %v8664_v20 }
 0x326   : > { %v4833_v11 = vadd.f32 %v8664_v20, %v4832_v49  ;;  %v6317_v60 = vpop.f32.mrb[18].mxu0 }
 0x327   : > { %v4835_v51 = vpop.f32.mrb[19].mxu0  ;;  %v4844_v47 = vadd.f32 %v6317_v60, %v8664_v20 }
 0x328   : > { %v5113_v0 = vcombine.high %v4833_v11, %v4833_v11  ;;  %v5120_v27 = vrot.slane %v4833_v11, %v8667_v58  ;;  %4927 = vxpose.xlu1.b32.start [1/16] (narrow) %v4833_v11, 8  ;;  %v4836_v21 = vadd.f32 %v8664_v20, %v4835_v51  ;;  %v4857_v51 = vadd.f32 %v8765_v17, %v8664_v20 }
 0x32a   : > { %v5127_v55 = vrot.slane %v5113_v0, %v8667_v58  ;;  %v5128_v28 = vcombine.high %v5120_v27, %v5120_v27  ;;  %v5345_v14 = vpack.c.bf16 %v5120_v27, %v5120_v27  ;;  %v5130_v5 = vcombine.high %v4836_v21, %v4836_v21 }
 0x32b   : > { %v5137_v25 = vrot.slane %v4836_v21, %v8667_v58 }
 0x32c   : > { %v5129_v35 = vcombine.high %v5127_v55, %v5127_v55  ;;  %v5346_v48 = vpack.c.bf16 %v5128_v28, %v5128_v28  ;;  %v5347_v4 = vpack.c.bf16 %v5127_v55, %v5127_v55  ;;  %4928 = vxpose.xlu1.b32.cont [2/16] (narrow) %v4836_v21, 8  ;;  %v5144_v3 = vrot.slane %v5130_v5, %v8667_v58 }
 0x32d   : > { %v5145_v10 = vcombine.high %v5137_v25, %v5137_v25  ;;  %v5349_v39 = vpack.c.bf16 %v5137_v25, %v5137_v25  ;;  %v5481_v22 = vunpack.c.l.b16 %v5345_v14 }
 0x32e   : > { %v5348_v50 = vpack.c.bf16 %v5129_v35, %v5129_v35  ;;  %v5482_v52 = vunpack.c.l.b16 %v5346_v48  ;;  %v5483_v16 = vunpack.c.l.b16 %v5347_v4  ;;  %v5146_v59 = vcombine.high %v5144_v3, %v5144_v3 }
 0x32f   : > { %v5350_v31 = vpack.c.bf16 %v5145_v10, %v5145_v10  ;;  %v5351_v32 = vpack.c.bf16 %v5144_v3, %v5144_v3  ;;  %v5485_v1 = vunpack.c.l.b16 %v5349_v39 }
 0x330   : > { %v5484_v44 = vunpack.c.l.b16 %v5348_v50  ;;  %v5576_v61 = vrot.slane %v5482_v52, 7  ;;  %v5578_v41 = vrot.slane %v5483_v16, 6  ;;  %4929 = vxpose.xlu1.b32.cont [3/16] (narrow) %v4841_v62, 8  ;;  %v5352_v29 = vpack.c.bf16 %v5146_v59, %v5146_v59 }
 0x331   : > { %v5486_v15 = vunpack.c.l.b16 %v5350_v31  ;;  %v5487_v13 = vunpack.c.l.b16 %v5351_v32  ;;  %v5582_v42 = vrot.slane %v5485_v1, 4 }
 0x332   : > { %v5577_v56 = vsel %vm5514_vm0, %v5576_v61, %v5481_v22  ;;  %v5580_v24 = vrot.slane %v5484_v44, 5  ;;  %v5488_v63 = vunpack.c.l.b16 %v5352_v29 }
 0x333   : > { %v5579_v2 = vsel %vm5517_vm3, %v5578_v41, %v5577_v56  ;;  %v5584_v36 = vrot.slane %v5486_v15, 3  ;;  %v5586_v7 = vrot.slane %v5487_v13, 2 }
 0x334   : > { %v5581_v43 = vsel %vm5520_vm5, %v5580_v24, %v5579_v2  ;;  %4930 = vxpose.xlu1.b32.cont [4/16] (narrow) %v4844_v47, 8  ;;  %v5588_v8 = vrot.slane %v5488_v63, 1  ;;  %v4873_v63 = vadd.f32 %v8806_v12, %v8664_v20 }
 0x335   : > { %v5583_v19 = vsel %vm5523_vm14, %v5582_v42, %v5581_v43 }
 0x336   : > { %v5585_v34 = vsel %vm5526_vm11, %v5584_v36, %v5583_v19  ;;  %v6558_v36 = vld [vmem:[%s8913_s5] ss:$0 sm:$0xff] }
 0x337   : > { %v5587_v6 = vsel %vm5529_vm6, %v5586_v7, %v5585_v34  ;;  %v4876_v7 = vadd.f32 %v6558_v36, %v8813_v37  ;;  %v6141_v37 = vld [vmem:[%s8915_s7] ss:$0 sm:$0xff] }
 0x338   : > { %4931 = vxpose.xlu1.b32.cont [5/16] (narrow) %v8770_v30, 8  ;;  %v5589_v33 = vsel %vm5532_vm13, %v5588_v8, %v5587_v6  ;;  %v8861_v9 = vpop.f32.mrb[8].mxu1 }
 0x339   : > { %v5634_v54 = vpack.c.b16 %v8797_v53, %v5589_v33  ;;  %v4880_v23 = vpop.f32.mrb[9].mxu1 }
 0x33a   : > { %v4881_v45 = vadd.f32 %v8664_v20, %v4880_v23  ;;  %v6329_v18 = vpop.f32.mrb[10].mxu1 }
 0x33b   : > { %6336 = vmatprep.mubr.msk.bf16.mxu1 %vm9043_vm15, %v5634_v54  ;;  %v4883_v49 = vpop.f32.mrb[11].mxu1  ;;  %v4892_v43 = vadd.f32 %v6558_v36, %v6329_v18 }
 0x33c   : > { %4932 = vxpose.xlu1.b32.cont [6/16] (narrow) %v8782_v40, 8  ;;  %v5215_v11 = vcombine.high %v4881_v45, %v4881_v45  ;;  %v5222_v60 = vrot.slane %v4881_v45, %v8667_v58  ;;  %v4884_v30 = vadd.f32 %v8664_v20, %v4883_v49  ;;  %v4860_v40 = vadd.f32 %v8772_v46, %v8664_v20  ;;  %v4911_v20 = vpop.trf.xlu0 }
 0x33d   : > { %4959 = vst [vmem:[%s359_s11] sm:$0xff] %v4911_v20 }
 0x33e   : > { %v5229_v0 = vrot.slane %v5215_v11, %v8667_v58  ;;  %v5230_v53 = vcombine.high %v5222_v60, %v5222_v60  ;;  %v5232_v27 = vcombine.high %v4884_v30, %v4884_v30  ;;  %v5239_v21 = vrot.slane %v4884_v30, %v8667_v58 }
 0x33f   : > { %v5369_v28 = vpack.c.bf16 %v5222_v60, %v5222_v60 }
 0x340   : > { %4933 = vxpose.xlu1.b32.cont [7/16] (narrow) %v4857_v51, 8  ;;  %v5231_v55 = vcombine.high %v5229_v0, %v5229_v0  ;;  %v5370_v14 = vpack.c.bf16 %v5230_v53, %v5230_v53  ;;  %v5371_v5 = vpack.c.bf16 %v5229_v0, %v5229_v0  ;;  %v5246_v25 = vrot.slane %v5232_v27, %v8667_v58 }
 0x341   : > { %v5247_v35 = vcombine.high %v5239_v21, %v5239_v21  ;;  %v5373_v48 = vpack.c.bf16 %v5239_v21, %v5239_v21  ;;  %v5505_v22 = vunpack.c.l.b16 %v5369_v28 }
 0x342   : > { %v5372_v4 = vpack.c.bf16 %v5231_v55, %v5231_v55  ;;  %v5506_v17 = vunpack.c.l.b16 %v5370_v14  ;;  %v5507_v62 = vunpack.c.l.b16 %v5371_v5  ;;  %v5248_v3 = vcombine.high %v5246_v25, %v5246_v25 }
 0x343   : > { %v5374_v10 = vpack.c.bf16 %v5247_v35, %v5247_v35  ;;  %v5375_v39 = vpack.c.bf16 %v5246_v25, %v5246_v25  ;;  %v5509_v50 = vunpack.c.l.b16 %v5373_v48 }
 0x344   : > { %4934 = vxpose.xlu1.b32.cont [8/16] (narrow) %v4860_v40, 8  ;;  %v5508_v52 = vunpack.c.l.b16 %v5372_v4  ;;  %v5618_v16 = vrot.slane %v5506_v17, 7  ;;  %v5620_v59 = vrot.slane %v5507_v62, 6  ;;  %v5376_v31 = vpack.c.bf16 %v5248_v3, %v5248_v3 }
 0x345   : > { %v5510_v32 = vunpack.c.l.b16 %v5374_v10  ;;  %v5511_v1 = vunpack.c.l.b16 %v5375_v39  ;;  %v5624_v41 = vrot.slane %v5509_v50, 4 }
 0x346   : > { %v5619_v46 = vsel %vm5514_vm0, %v5618_v16, %v5505_v22  ;;  %v5622_v58 = vrot.slane %v5508_v52, 5  ;;  %v5512_v61 = vunpack.c.l.b16 %v5376_v31  ;;  %vm9044_vm0 = vmmov %vm9041_vm9 }
 0x347   : > { %v5621_v44 = vsel %vm5517_vm3, %v5620_v59, %v5619_v46  ;;  %v5626_v15 = vrot.slane %v5510_v32, 3  ;;  %v5628_v42 = vrot.slane %v5511_v1, 2  ;;  %vm5749_vm3 = vcmask 523264  }
 0x348   : > { %4935 = vxpose.xlu1.b32.cont [9/16] (narrow) %v8811_v57, 8  ;;  %v5623_v29 = vsel %vm5520_vm5, %v5622_v58, %v5621_v44  ;;  %v5630_v56 = vrot.slane %v5512_v61, 1 }
 0x349   : > { %v5625_v13 = vsel %vm5523_vm14, %v5624_v41, %v5623_v29 }
 0x34a   : > { %v5627_v24 = vsel %vm5526_vm11, %v5626_v15, %v5625_v13 }
 0x34b   : > { %v5629_v47 = vsel %vm5529_vm6, %v5628_v42, %v5627_v24 }
 0x34c   : > { %4936 = vxpose.xlu1.b32.cont [10/16] (narrow) %v8823_v38, 8  ;;  %v5631_v2 = vsel %vm5532_vm13, %v5630_v56, %v5629_v47  ;;  %v4889_v38 = vadd.f32 %v6558_v36, %v8861_v9 }
 0x34d   : > { %v5635_v57 = vpack.c.b16 %v5631_v2, %v8843_v26 }
 0x34f   : > { %6337 = vmatmul.mubr.msk.bf16.gmra.mrb[16].mxu1 %vm9044_vm0, %v5635_v57 }
 0x350   : > { %4937 = vxpose.xlu1.b32.cont [11/16] (narrow) %v4873_v63, 8 }
 0x354   : > { %4938 = vxpose.xlu1.b32.cont [12/16] (narrow) %v4876_v7, 8 }
 0x358   : > { %4939 = vxpose.xlu1.b32.cont [13/16] (narrow) %v4881_v45, 8 }
 0x35c   : > { %4940 = vxpose.xlu1.b32.cont [14/16] (narrow) %v4884_v30, 8 }
 0x360   : > { %4941 = vxpose.xlu1.b32.cont [15/16] (narrow) %v4889_v38, 8 }
 0x364   : > { %4942 = vxpose.xlu1.b32.end [16/16] (narrow) %v4892_v43, 8 }
 0x3a8   : > { %v4943_v12 = vpop.trf.xlu1 }
 0x3a9   : > { %4960 = vst [vmem:[%s359_s11 + $0x8] sm:$0xff] %v4943_v12 }
 0x3cd   : > { %v6334_v26 = vpop.f32.mrb[12].mxu1 }
 0x3ce   : > { %v5686_v19 = vpop.f32.mrb[13].mxu1  ;;  %v5695_v9 = vadd.f32 %v6334_v26, %v6141_v37 }
 0x3cf   : > { %v5687_v8 = vadd.f32 %v6141_v37, %v5686_v19  ;;  %v6335_v34 = vpop.f32.mrb[14].mxu1 }
 0x3d0   : > { %v5689_v6 = vpop.f32.mrb[15].mxu1  ;;  %v5698_v54 = vadd.f32 %v6335_v34, %v6141_v37 }
 0x3d1   : > { %5717 = vxpose.xlu0.b32.start [1/8] (short) (narrow) %v5687_v8, 8  ;;  %v5690_v33 = vadd.f32 %v6141_v37, %v5689_v6 }
 0x3d5   : > { %5718 = vxpose.xlu0.b32.cont [2/8] (short) (narrow) %v5690_v33, 8 }
 0x3d9   : > { %5719 = vxpose.xlu0.b32.cont [3/8] (short) (narrow) %v5695_v9, 8 }
 0x3dd   : > { %5720 = vxpose.xlu0.b32.cont [4/8] (short) (narrow) %v5698_v54, 8 }
 0x422   : > { %v6338_v23 = vpop.f32.mrb[16].mxu1 }
 0x423   : > { %v5702_v45 = vpop.f32.mrb[17].mxu1  ;;  %v5711_v30 = vadd.f32 %v6338_v23, %v6141_v37 }
 0x424   : > { %v5703_v18 = vadd.f32 %v6141_v37, %v5702_v45  ;;  %v6339_v49 = vpop.f32.mrb[18].mxu1 }
 0x425   : > { %v5705_v11 = vpop.f32.mrb[19].mxu1  ;;  %v5714_v51 = vadd.f32 %v6339_v49, %v6141_v37 }
 0x426   : > { %5721 = vxpose.xlu0.b32.cont [5/8] (short) (narrow) %v5703_v18, 8  ;;  %v5706_v60 = vadd.f32 %v6141_v37, %v5705_v11 }
 0x42a   : > { %5722 = vxpose.xlu0.b32.cont [6/8] (short) (narrow) %v5706_v60, 8 }
 0x42e   : > { %5723 = vxpose.xlu0.b32.cont [7/8] (short) (narrow) %v5711_v30, 8 }
 0x432   : > { %5724 = vxpose.xlu0.b32.end [8/8] (short) (narrow) %v5714_v51, 8 }
 0x496   : > { %v5733_v0 = vpop.trf.xlu0 }
 0x497   : > { %5750 = vst.msk [vmem:[%s363_s22] sm:$0xff] %vm5749_vm3, %v5733_v0 }
 0x498 PF: > { %s20_s30 = sadd.s32 1, %s6565_s30  }
 0x499   : > { %p17_p4 = scmp.ge.s32.totalorder %s20_s30, 4  }
 0x49b   :  { %19 = sbr.rel (!%p17_p4) target bundleno = 1 (0x1), region = 100 }

</bundles_post_ra>
